<compile_context>
chip_gen: v7x
topology: tpu7x:2x2x1
jax: 0.10.0
libtpu: 0.0.40
codegen_flags: <defaults>
</compile_context>

<pallas_src>
import math

import jax
import jax.numpy as jnp
from jax import lax
from jax.experimental import pallas as pl
from jax.experimental.pallas import tpu as pltpu


# --------------------------- fused kernel factory ----------------------------

def _make_fused_kernel(in_treedef, n_in, *, E, H, emb_scale):
    Dh = E // H
    head_scale = 1.0 / math.sqrt(Dh)
    f32 = jnp.float32

    def _ln(x, p):
        # residuals are added by the caller as `x`; this fuses (x, gamma, beta) -> LN
        g = p["g"][...]
        b = p["b"][...]
        mu = jnp.mean(x, axis=-1, keepdims=True)
        var = jnp.mean(jnp.square(x - mu), axis=-1, keepdims=True)
        return (x - mu) * lax.rsqrt(var + 1e-5) * g + b

    def _mha(xq, xkv, p, bias, is_self):
        w_in = p["w_in"][...]    # [E, 3E]
        b_in = p["b_in"][...]    # [1, 3E]
        w_out = p["w_out"][...]  # [E, E]
        b_out = p["b_out"][...]  # [1, E]
        if is_self:
            # one combined QKV matmul: wider (3E) lane-dense output, fewer MXU pushes
            qkv = jnp.dot(xq, w_in, preferred_element_type=f32) + b_in
            q = qkv[:, :E]
            k = qkv[:, E:2 * E]
            v = qkv[:, 2 * E:]
        else:
            q = jnp.dot(xq, w_in[:, :E], preferred_element_type=f32) + b_in[:, :E]
            kv = jnp.dot(xkv, w_in[:, E:], preferred_element_type=f32) + b_in[:, E:]
            k = kv[:, :E]
            v = kv[:, E:]

        # Per-head attention.  Heads are static lane slices of width Dh; the output
        # projection is folded into the loop so no head concat is materialized.
        acc = None
        for h in range(H):
            sl = slice(h * Dh, (h + 1) * Dh)
            qh = q[:, sl]
            kh = k[:, sl]
            vh = v[:, sl]
            # q @ k^T without materializing a transpose: contract the last dims.
            s = lax.dot_general(qh, kh, (((1,), (1,)), ((), ())),
                                preferred_element_type=f32) * head_scale + bias
            s = s - jnp.max(s, axis=-1, keepdims=True)
            e = jnp.exp(s)
            e = e * pl.reciprocal(jnp.sum(e, axis=-1, keepdims=True), approx=True)
            oh = jnp.dot(e, vh, preferred_element_type=f32)               # [Lq, Dh]
            part = jnp.dot(oh, w_out[sl, :], preferred_element_type=f32)  # [Lq, E]
            acc = part if acc is None else acc + part
        return acc + b_out

    def _ffn(x, p):
        h = jnp.dot(x, p["w1"][...], preferred_element_type=f32) + p["b1"][...]
        h = jnp.maximum(h, 0.0)
        return jnp.dot(h, p["w2"][...], preferred_element_type=f32) + p["b2"][...]

    def _enc_layer(x, p, bias):
        x = _ln(x + _mha(x, x, p["self_attn"], bias, True), p["norm1"])
        x = _ln(x + _ffn(x, p["ff"]), p["norm2"])
        return x

    def _dec_layer(y, mem, p, tgt_bias, mem_bias):
        y = _ln(y + _mha(y, y, p["self_attn"], tgt_bias, True), p["norm1"])
        y = _ln(y + _mha(y, mem, p["cross_attn"], mem_bias, False), p["norm2"])
        y = _ln(y + _ffn(y, p["ff"]), p["norm3"])
        return y

    def kernel(*refs):
        d = jax.tree_util.tree_unflatten(in_treedef, refs[:n_in])
        out_ref = refs[n_in]
        w = d["w"]

        # Combined additive masks, built in-kernel from tiny inputs.
        src_bias = d["src_mask"][...] + d["src_pad"][0]   # [S, S]
        tgt_bias = d["tgt_mask"][...] + d["tgt_pad"][0]   # [T, T]
        mem_bias = d["mem_pad"][0]                        # [1, S] (broadcasts over T)

        # embedding scale + positional encoding
        # TODO(synk): dropout is identity (eval-mode semantics).
        x = d["src_x"][0] * emb_scale + d["pos_src"][...]
        for lp in w["enc"]:
            x = _enc_layer(x, lp, src_bias)
        mem = _ln(x, w["enc_norm"])

        y = d["tgt_x"][0] * emb_scale + d["pos_tgt"][...]
        for lp in w["dec"]:
            y = _dec_layer(y, mem, lp, tgt_bias, mem_bias)
        y = _ln(y, w["dec_norm"])

        out = jnp.dot(y, w["fc_w"][...], preferred_element_type=f32) + w["fc_b"][...]
        out_ref[0] = out.astype(out_ref.dtype)

    return kernel


def _cost_estimate(N, S, T, E, P, Vout, H, n_layers, flat_inputs):
    Dh = E // H

    def mha_flops(Lq, Lkv):
        proj = 2 * Lq * E * E + 2 * Lkv * E * (2 * E) + 2 * Lq * E * E
        attn = 2 * 2 * H * Lq * Lkv * Dh
        return proj + attn

    def ffn_flops(L):
        return 2 * 2 * L * E * P

    enc = n_layers * (mha_flops(S, S) + ffn_flops(S))
    dec = n_layers * (mha_flops(T, T) + mha_flops(T, S) + ffn_flops(T))
    flops = N * (enc + dec + 2 * T * E * Vout)
    trans = N * n_layers * H * (S * S + T * T + T * S)
    bytes_acc = sum(int(a.size) * 4 for a in flat_inputs) + N * T * Vout * 4
    return pl.CostEstimate(flops=int(flops), transcendentals=int(trans),
                           bytes_accessed=int(bytes_acc))


# ------------------------------- forward pass --------------------------------

def transformer_forward(params, src, tgt, src_mask, tgt_mask,
                        src_padding_mask, tgt_padding_mask,
                        memory_key_padding_mask, n_heads):
    f32 = jnp.float32
    E = params["src_emb"].shape[1]
    Vout = params["fc_w"].shape[1]
    P = params["encoder_layers"][0]["ff"]["w1"].shape[1]
    S, N = src.shape
    T = tgt.shape[0]
    H = n_heads
    max_len = params["pos"].shape[0]
    assert S <= max_len and T <= max_len, "sequence exceeds positional-encoding table"

    # Glue (XLA, tiny): token-id gather, batch-major relayout, bool -> additive bias.
    src_x = params["src_emb"][src.T].astype(f32)          # [N, S, E]
    tgt_x = params["tgt_emb"][tgt.T].astype(f32)          # [N, T, E]
    pos_src = params["pos"][:S, 0, :].astype(f32)         # [S, E]
    pos_tgt = params["pos"][:T, 0, :].astype(f32)         # [T, E]

    src_mask = jnp.zeros((S, S), f32) if src_mask is None else src_mask.astype(f32)
    tgt_mask = jnp.zeros((T, T), f32) if tgt_mask is None else tgt_mask.astype(f32)

    neg = jnp.asarray(-1e9, f32)
    zero = jnp.asarray(0.0, f32)

    def pad_bias(m, L):
        if m is None:
            return jnp.zeros((N, 1, L), f32)
        return jnp.where(m, neg, zero).astype(f32).reshape(N, 1, L)

    src_pad = pad_bias(src_padding_mask, S)
    tgt_pad = pad_bias(tgt_padding_mask, T)
    mem_pad = pad_bias(memory_key_padding_mask, S)

    # All 1-D params reshaped to [1, d] so every kernel operand is >= 2-D.
    _2d = lambda a: a.reshape(1, -1) if a.ndim == 1 else a
    kernel_w = jax.tree_util.tree_map(_2d, {
        "enc": params["encoder_layers"],
        "dec": params["decoder_layers"],
        "enc_norm": params["encoder_norm"],
        "dec_norm": params["decoder_norm"],
        "fc_w": params["fc_w"],
        "fc_b": params["fc_b"],
    })

    kernel_inputs = {
        "src_x": src_x, "tgt_x": tgt_x,
        "pos_src": pos_src, "pos_tgt": pos_tgt,
        "src_mask": src_mask, "tgt_mask": tgt_mask,
        "src_pad": src_pad, "tgt_pad": tgt_pad, "mem_pad": mem_pad,
        "w": kernel_w,
    }

    def const_spec(a):
        nd = a.ndim
        return pl.BlockSpec(a.shape, lambda n, _nd=nd: (0,) * _nd)

    specs = {
        "src_x": pl.BlockSpec((1, S, E), lambda n: (n, 0, 0)),
        "tgt_x": pl.BlockSpec((1, T, E), lambda n: (n, 0, 0)),
        "pos_src": const_spec(pos_src),
        "pos_tgt": const_spec(pos_tgt),
        "src_mask": const_spec(src_mask),
        "tgt_mask": const_spec(tgt_mask),
        "src_pad": pl.BlockSpec((1, 1, S), lambda n: (n, 0, 0)),
        "tgt_pad": pl.BlockSpec((1, 1, T), lambda n: (n, 0, 0)),
        "mem_pad": pl.BlockSpec((1, 1, S), lambda n: (n, 0, 0)),
        "w": jax.tree_util.tree_map(const_spec, kernel_w),
    }

    flat_inputs, in_treedef = jax.tree_util.tree_flatten(kernel_inputs)
    flat_specs = jax.tree_util.tree_leaves(
        specs, is_leaf=lambda x: isinstance(x, pl.BlockSpec))
    assert len(flat_specs) == len(flat_inputs)

    n_layers = len(params["encoder_layers"])
    kernel = _make_fused_kernel(in_treedef, len(flat_inputs),
                                E=E, H=H, emb_scale=math.sqrt(float(E)))

    out = pl.pallas_call(
        kernel,
        out_shape=jax.ShapeDtypeStruct((N, T, Vout), f32),
        grid=(N,),
        in_specs=flat_specs,
        out_specs=pl.BlockSpec((1, T, Vout), lambda n: (n, 0, 0)),
        compiler_params=pltpu.CompilerParams(dimension_semantics=("parallel",)),
        cost_estimate=_cost_estimate(N, S, T, E, P, Vout, H, n_layers, flat_inputs),
    )(*flat_inputs)

    return out.transpose(1, 0, 2)   # -> [T, N, Vout] (PyTorch seq-major output)


# ------------------------------ parameters -----------------------------------

def init_params(key, input_dim, output_dim, hidden_dim, n_heads, n_layers, pf_dim,
                max_len=64):
    keys = iter(jax.random.split(key, 256))

    def w(shape, s=0.02):
        return jax.random.normal(next(keys), shape, jnp.float32) * s

    def zeros(shape):
        return jnp.zeros(shape, jnp.float32)

    def attn_params():
        return {"w_in": w((hidden_dim, 3 * hidden_dim)), "b_in": zeros((3 * hidden_dim,)),
                "w_out": w((hidden_dim, hidden_dim)), "b_out": zeros((hidden_dim,))}

    def ln_params():
        return {"g": jnp.ones((hidden_dim,), jnp.float32), "b": zeros((hidden_dim,))}

    def ff_params():
        return {"w1": w((hidden_dim, pf_dim)), "b1": zeros((pf_dim,)),
                "w2": w((pf_dim, hidden_dim)), "b2": zeros((hidden_dim,))}

    enc_layers = [{"self_attn": attn_params(), "norm1": ln_params(),
                   "ff": ff_params(), "norm2": ln_params()} for _ in range(n_layers)]
    dec_layers = [{"self_attn": attn_params(), "norm1": ln_params(),
                   "cross_attn": attn_params(), "norm2": ln_params(),
                   "ff": ff_params(), "norm3": ln_params()} for _ in range(n_layers)]

    # sinusoidal positional encoding [max_len, 1, hidden] (same construction as PyTorch)
    pos = jnp.arange(max_len, dtype=jnp.float32)[:, None]
    den = jnp.exp(jnp.arange(0, hidden_dim, 2, dtype=jnp.float32)
                  * (-math.log(10000.0) / hidden_dim))
    pe = jnp.zeros((max_len, hidden_dim), jnp.float32)
    pe = pe.at[:, 0::2].set(jnp.sin(pos * den))
    pe = pe.at[:, 1::2].set(jnp.cos(pos * den))
    pe = pe[:, None, :]

    return {
        "src_emb": w((input_dim, hidden_dim), 1.0),
        "tgt_emb": w((output_dim, hidden_dim), 1.0),
        "pos": pe,
        "encoder_layers": enc_layers,
        "decoder_layers": dec_layers,
        "encoder_norm": ln_params(),
        "decoder_norm": ln_params(),
        "fc_w": w((hidden_dim, output_dim)),
        "fc_b": zeros((output_dim,)),
    }


# --------------------------------- main ---------------------------------------

if __name__ == "__main__":
    # args: input_dim / output_dim are vocab sizes; hidden_dim / n_heads / n_layers / pf_dim
    input_dim, output_dim = 16, 12
    hidden_dim, n_heads, n_layers, pf_dim = 32, 4, 2, 64
    src_len, tgt_len, batch = 10, 8, 2

    key = jax.random.PRNGKey(0)
    kp, ks, kt = jax.random.split(key, 3)
    params = init_params(kp, input_dim, output_dim, hidden_dim, n_heads, n_layers, pf_dim)

    src = jax.random.randint(ks, (src_len, batch), 0, input_dim)   # [S, N] token ids
    tgt = jax.random.randint(kt, (tgt_len, batch), 0, output_dim)  # [T, N] token ids

    src_mask = jnp.zeros((src_len, src_len), jnp.float32)
    tgt_mask = jnp.triu(jnp.full((tgt_len, tgt_len), -1e9, jnp.float32), k=1)  # causal
    src_padding_mask = jnp.zeros((batch, src_len), bool)
    tgt_padding_mask = jnp.zeros((batch, tgt_len), bool)
    memory_key_padding_mask = jnp.zeros((batch, src_len), bool)

    out = transformer_forward(params, src, tgt, src_mask, tgt_mask,
                              src_padding_mask, tgt_padding_mask,
                              memory_key_padding_mask, n_heads)
    out = jax.block_until_ready(out)
    assert out.shape == (tgt_len, batch, output_dim)
    assert bool(jnp.all(jnp.isfinite(out)))
    print("KERNEL_OK")
</pallas_src>

<mosaic_0001>
module attributes {stable_mosaic.version = 11 : i64} {
  func.func @kernel(%arg0: i32, %arg1: memref<1x1x10xf32, #tpu.memory_space<vmem>>, %arg2: memref<10x32xf32, #tpu.memory_space<vmem>>, %arg3: memref<8x32xf32, #tpu.memory_space<vmem>>, %arg4: memref<10x10xf32, #tpu.memory_space<vmem>>, %arg5: memref<1x1x10xf32, #tpu.memory_space<vmem>>, %arg6: memref<1x10x32xf32, #tpu.memory_space<vmem>>, %arg7: memref<8x8xf32, #tpu.memory_space<vmem>>, %arg8: memref<1x1x8xf32, #tpu.memory_space<vmem>>, %arg9: memref<1x8x32xf32, #tpu.memory_space<vmem>>, %arg10: memref<1x96xf32, #tpu.memory_space<vmem>>, %arg11: memref<1x32xf32, #tpu.memory_space<vmem>>, %arg12: memref<32x96xf32, #tpu.memory_space<vmem>>, %arg13: memref<32x32xf32, #tpu.memory_space<vmem>>, %arg14: memref<1x64xf32, #tpu.memory_space<vmem>>, %arg15: memref<1x32xf32, #tpu.memory_space<vmem>>, %arg16: memref<32x64xf32, #tpu.memory_space<vmem>>, %arg17: memref<64x32xf32, #tpu.memory_space<vmem>>, %arg18: memref<1x32xf32, #tpu.memory_space<vmem>>, %arg19: memref<1x32xf32, #tpu.memory_space<vmem>>, %arg20: memref<1x32xf32, #tpu.memory_space<vmem>>, %arg21: memref<1x32xf32, #tpu.memory_space<vmem>>, %arg22: memref<1x32xf32, #tpu.memory_space<vmem>>, %arg23: memref<1x32xf32, #tpu.memory_space<vmem>>, %arg24: memref<1x96xf32, #tpu.memory_space<vmem>>, %arg25: memref<1x32xf32, #tpu.memory_space<vmem>>, %arg26: memref<32x96xf32, #tpu.memory_space<vmem>>, %arg27: memref<32x32xf32, #tpu.memory_space<vmem>>, %arg28: memref<1x96xf32, #tpu.memory_space<vmem>>, %arg29: memref<1x32xf32, #tpu.memory_space<vmem>>, %arg30: memref<32x96xf32, #tpu.memory_space<vmem>>, %arg31: memref<32x32xf32, #tpu.memory_space<vmem>>, %arg32: memref<1x64xf32, #tpu.memory_space<vmem>>, %arg33: memref<1x32xf32, #tpu.memory_space<vmem>>, %arg34: memref<32x64xf32, #tpu.memory_space<vmem>>, %arg35: memref<64x32xf32, #tpu.memory_space<vmem>>, %arg36: memref<1x32xf32, #tpu.memory_space<vmem>>, %arg37: memref<1x32xf32, #tpu.memory_space<vmem>>, %arg38: memref<1x32xf32, #tpu.memory_space<vmem>>, %arg39: memref<1x32xf32, #tpu.memory_space<vmem>>, %arg40: memref<1x32xf32, #tpu.memory_space<vmem>>, %arg41: memref<1x32xf32, #tpu.memory_space<vmem>>, %arg42: memref<1x96xf32, #tpu.memory_space<vmem>>, %arg43: memref<1x32xf32, #tpu.memory_space<vmem>>, %arg44: memref<32x96xf32, #tpu.memory_space<vmem>>, %arg45: memref<32x32xf32, #tpu.memory_space<vmem>>, %arg46: memref<1x32xf32, #tpu.memory_space<vmem>>, %arg47: memref<1x32xf32, #tpu.memory_space<vmem>>, %arg48: memref<1x64xf32, #tpu.memory_space<vmem>>, %arg49: memref<1x32xf32, #tpu.memory_space<vmem>>, %arg50: memref<32x64xf32, #tpu.memory_space<vmem>>, %arg51: memref<64x32xf32, #tpu.memory_space<vmem>>, %arg52: memref<1x32xf32, #tpu.memory_space<vmem>>, %arg53: memref<1x32xf32, #tpu.memory_space<vmem>>, %arg54: memref<1x32xf32, #tpu.memory_space<vmem>>, %arg55: memref<1x32xf32, #tpu.memory_space<vmem>>, %arg56: memref<1x96xf32, #tpu.memory_space<vmem>>, %arg57: memref<1x32xf32, #tpu.memory_space<vmem>>, %arg58: memref<32x96xf32, #tpu.memory_space<vmem>>, %arg59: memref<32x32xf32, #tpu.memory_space<vmem>>, %arg60: memref<1x64xf32, #tpu.memory_space<vmem>>, %arg61: memref<1x32xf32, #tpu.memory_space<vmem>>, %arg62: memref<32x64xf32, #tpu.memory_space<vmem>>, %arg63: memref<64x32xf32, #tpu.memory_space<vmem>>, %arg64: memref<1x32xf32, #tpu.memory_space<vmem>>, %arg65: memref<1x32xf32, #tpu.memory_space<vmem>>, %arg66: memref<1x32xf32, #tpu.memory_space<vmem>>, %arg67: memref<1x32xf32, #tpu.memory_space<vmem>>, %arg68: memref<1x96xf32, #tpu.memory_space<vmem>>, %arg69: memref<1x32xf32, #tpu.memory_space<vmem>>, %arg70: memref<32x96xf32, #tpu.memory_space<vmem>>, %arg71: memref<32x32xf32, #tpu.memory_space<vmem>>, %arg72: memref<1x32xf32, #tpu.memory_space<vmem>>, %arg73: memref<1x32xf32, #tpu.memory_space<vmem>>, %arg74: memref<1x12xf32, #tpu.memory_space<vmem>>, %arg75: memref<32x12xf32, #tpu.memory_space<vmem>>, %arg76: memref<1x8x12xf32, #tpu.memory_space<vmem>>) attributes {dimension_semantics = [#tpu.dimension_semantics<parallel>], iteration_bounds = array<i64: 2>, scalar_prefetch = 0 : i64, scratch_operands = 0 : i64, tpu.core_type = #tpu.core_type<tc>, window_params = [{transform_indices = @transform_0, window_bounds = array<i64: 1, 1, 10>}, {pipeline_mode = #tpu.pipeline_mode<synchronous>, transform_indices = @transform_1, window_bounds = array<i64: 10, 32>}, {pipeline_mode = #tpu.pipeline_mode<synchronous>, transform_indices = @transform_2, window_bounds = array<i64: 8, 32>}, {pipeline_mode = #tpu.pipeline_mode<synchronous>, transform_indices = @transform_3, window_bounds = array<i64: 10, 10>}, {transform_indices = @transform_4, window_bounds = array<i64: 1, 1, 10>}, {transform_indices = @transform_5, window_bounds = array<i64: 1, 10, 32>}, {pipeline_mode = #tpu.pipeline_mode<synchronous>, transform_indices = @transform_6, window_bounds = array<i64: 8, 8>}, {transform_indices = @transform_7, window_bounds = array<i64: 1, 1, 8>}, {transform_indices = @transform_8, window_bounds = array<i64: 1, 8, 32>}, {pipeline_mode = #tpu.pipeline_mode<synchronous>, transform_indices = @transform_9, window_bounds = array<i64: 1, 96>}, {pipeline_mode = #tpu.pipeline_mode<synchronous>, transform_indices = @transform_10, window_bounds = array<i64: 1, 32>}, {pipeline_mode = #tpu.pipeline_mode<synchronous>, transform_indices = @transform_11, window_bounds = array<i64: 32, 96>}, {pipeline_mode = #tpu.pipeline_mode<synchronous>, transform_indices = @transform_12, window_bounds = array<i64: 32, 32>}, {pipeline_mode = #tpu.pipeline_mode<synchronous>, transform_indices = @transform_13, window_bounds = array<i64: 1, 64>}, {pipeline_mode = #tpu.pipeline_mode<synchronous>, transform_indices = @transform_14, window_bounds = array<i64: 1, 32>}, {pipeline_mode = #tpu.pipeline_mode<synchronous>, transform_indices = @transform_15, window_bounds = array<i64: 32, 64>}, {pipeline_mode = #tpu.pipeline_mode<synchronous>, transform_indices = @transform_16, window_bounds = array<i64: 64, 32>}, {pipeline_mode = #tpu.pipeline_mode<synchronous>, transform_indices = @transform_17, window_bounds = array<i64: 1, 32>}, {pipeline_mode = #tpu.pipeline_mode<synchronous>, transform_indices = @transform_18, window_bounds = array<i64: 1, 32>}, {pipeline_mode = #tpu.pipeline_mode<synchronous>, transform_indices = @transform_19, window_bounds = array<i64: 1, 32>}, {pipeline_mode = #tpu.pipeline_mode<synchronous>, transform_indices = @transform_20, window_bounds = array<i64: 1, 32>}, {pipeline_mode = #tpu.pipeline_mode<synchronous>, transform_indices = @transform_21, window_bounds = array<i64: 1, 32>}, {pipeline_mode = #tpu.pipeline_mode<synchronous>, transform_indices = @transform_22, window_bounds = array<i64: 1, 32>}, {pipeline_mode = #tpu.pipeline_mode<synchronous>, transform_indices = @transform_23, window_bounds = array<i64: 1, 96>}, {pipeline_mode = #tpu.pipeline_mode<synchronous>, transform_indices = @transform_24, window_bounds = array<i64: 1, 32>}, {pipeline_mode = #tpu.pipeline_mode<synchronous>, transform_indices = @transform_25, window_bounds = array<i64: 32, 96>}, {pipeline_mode = #tpu.pipeline_mode<synchronous>, transform_indices = @transform_26, window_bounds = array<i64: 32, 32>}, {pipeline_mode = #tpu.pipeline_mode<synchronous>, transform_indices = @transform_27, window_bounds = array<i64: 1, 96>}, {pipeline_mode = #tpu.pipeline_mode<synchronous>, transform_indices = @transform_28, window_bounds = array<i64: 1, 32>}, {pipeline_mode = #tpu.pipeline_mode<synchronous>, transform_indices = @transform_29, window_bounds = array<i64: 32, 96>}, {pipeline_mode = #tpu.pipeline_mode<synchronous>, transform_indices = @transform_30, window_bounds = array<i64: 32, 32>}, {pipeline_mode = #tpu.pipeline_mode<synchronous>, transform_indices = @transform_31, window_bounds = array<i64: 1, 64>}, {pipeline_mode = #tpu.pipeline_mode<synchronous>, transform_indices = @transform_32, window_bounds = array<i64: 1, 32>}, {pipeline_mode = #tpu.pipeline_mode<synchronous>, transform_indices = @transform_33, window_bounds = array<i64: 32, 64>}, {pipeline_mode = #tpu.pipeline_mode<synchronous>, transform_indices = @transform_34, window_bounds = array<i64: 64, 32>}, {pipeline_mode = #tpu.pipeline_mode<synchronous>, transform_indices = @transform_35, window_bounds = array<i64: 1, 32>}, {pipeline_mode = #tpu.pipeline_mode<synchronous>, transform_indices = @transform_36, window_bounds = array<i64: 1, 32>}, {pipeline_mode = #tpu.pipeline_mode<synchronous>, transform_indices = @transform_37, window_bounds = array<i64: 1, 32>}, {pipeline_mode = #tpu.pipeline_mode<synchronous>, transform_indices = @transform_38, window_bounds = array<i64: 1, 32>}, {pipeline_mode = #tpu.pipeline_mode<synchronous>, transform_indices = @transform_39, window_bounds = array<i64: 1, 32>}, {pipeline_mode = #tpu.pipeline_mode<synchronous>, transform_indices = @transform_40, window_bounds = array<i64: 1, 32>}, {pipeline_mode = #tpu.pipeline_mode<synchronous>, transform_indices = @transform_41, window_bounds = array<i64: 1, 96>}, {pipeline_mode = #tpu.pipeline_mode<synchronous>, transform_indices = @transform_42, window_bounds = array<i64: 1, 32>}, {pipeline_mode = #tpu.pipeline_mode<synchronous>, transform_indices = @transform_43, window_bounds = array<i64: 32, 96>}, {pipeline_mode = #tpu.pipeline_mode<synchronous>, transform_indices = @transform_44, window_bounds = array<i64: 32, 32>}, {pipeline_mode = #tpu.pipeline_mode<synchronous>, transform_indices = @transform_45, window_bounds = array<i64: 1, 32>}, {pipeline_mode = #tpu.pipeline_mode<synchronous>, transform_indices = @transform_46, window_bounds = array<i64: 1, 32>}, {pipeline_mode = #tpu.pipeline_mode<synchronous>, transform_indices = @transform_47, window_bounds = array<i64: 1, 64>}, {pipeline_mode = #tpu.pipeline_mode<synchronous>, transform_indices = @transform_48, window_bounds = array<i64: 1, 32>}, {pipeline_mode = #tpu.pipeline_mode<synchronous>, transform_indices = @transform_49, window_bounds = array<i64: 32, 64>}, {pipeline_mode = #tpu.pipeline_mode<synchronous>, transform_indices = @transform_50, window_bounds = array<i64: 64, 32>}, {pipeline_mode = #tpu.pipeline_mode<synchronous>, transform_indices = @transform_51, window_bounds = array<i64: 1, 32>}, {pipeline_mode = #tpu.pipeline_mode<synchronous>, transform_indices = @transform_52, window_bounds = array<i64: 1, 32>}, {pipeline_mode = #tpu.pipeline_mode<synchronous>, transform_indices = @transform_53, window_bounds = array<i64: 1, 32>}, {pipeline_mode = #tpu.pipeline_mode<synchronous>, transform_indices = @transform_54, window_bounds = array<i64: 1, 32>}, {pipeline_mode = #tpu.pipeline_mode<synchronous>, transform_indices = @transform_55, window_bounds = array<i64: 1, 96>}, {pipeline_mode = #tpu.pipeline_mode<synchronous>, transform_indices = @transform_56, window_bounds = array<i64: 1, 32>}, {pipeline_mode = #tpu.pipeline_mode<synchronous>, transform_indices = @transform_57, window_bounds = array<i64: 32, 96>}, {pipeline_mode = #tpu.pipeline_mode<synchronous>, transform_indices = @transform_58, window_bounds = array<i64: 32, 32>}, {pipeline_mode = #tpu.pipeline_mode<synchronous>, transform_indices = @transform_59, window_bounds = array<i64: 1, 64>}, {pipeline_mode = #tpu.pipeline_mode<synchronous>, transform_indices = @transform_60, window_bounds = array<i64: 1, 32>}, {pipeline_mode = #tpu.pipeline_mode<synchronous>, transform_indices = @transform_61, window_bounds = array<i64: 32, 64>}, {pipeline_mode = #tpu.pipeline_mode<synchronous>, transform_indices = @transform_62, window_bounds = array<i64: 64, 32>}, {pipeline_mode = #tpu.pipeline_mode<synchronous>, transform_indices = @transform_63, window_bounds = array<i64: 1, 32>}, {pipeline_mode = #tpu.pipeline_mode<synchronous>, transform_indices = @transform_64, window_bounds = array<i64: 1, 32>}, {pipeline_mode = #tpu.pipeline_mode<synchronous>, transform_indices = @transform_65, window_bounds = array<i64: 1, 32>}, {pipeline_mode = #tpu.pipeline_mode<synchronous>, transform_indices = @transform_66, window_bounds = array<i64: 1, 32>}, {pipeline_mode = #tpu.pipeline_mode<synchronous>, transform_indices = @transform_67, window_bounds = array<i64: 1, 96>}, {pipeline_mode = #tpu.pipeline_mode<synchronous>, transform_indices = @transform_68, window_bounds = array<i64: 1, 32>}, {pipeline_mode = #tpu.pipeline_mode<synchronous>, transform_indices = @transform_69, window_bounds = array<i64: 32, 96>}, {pipeline_mode = #tpu.pipeline_mode<synchronous>, transform_indices = @transform_70, window_bounds = array<i64: 32, 32>}, {pipeline_mode = #tpu.pipeline_mode<synchronous>, transform_indices = @transform_71, window_bounds = array<i64: 1, 32>}, {pipeline_mode = #tpu.pipeline_mode<synchronous>, transform_indices = @transform_72, window_bounds = array<i64: 1, 32>}, {pipeline_mode = #tpu.pipeline_mode<synchronous>, transform_indices = @transform_73, window_bounds = array<i64: 1, 12>}, {pipeline_mode = #tpu.pipeline_mode<synchronous>, transform_indices = @transform_74, window_bounds = array<i64: 32, 12>}, {transform_indices = @transform_75, window_bounds = array<i64: 1, 8, 12>}]} {
    %c0 = arith.constant 0 : index
    %c0_0 = arith.constant 0 : index
    %0 = vector.load %arg4[%c0, %c0_0] : memref<10x10xf32, #tpu.memory_space<vmem>>, vector<10x10xf32>
    %c0_1 = arith.constant 0 : index
    %c0_2 = arith.constant 0 : index
    %c0_3 = arith.constant 0 : index
    %1 = vector.load %arg5[%c0_1, %c0_2, %c0_3] : memref<1x1x10xf32, #tpu.memory_space<vmem>>, vector<1x1x10xf32>
    %2 = vector.shape_cast %1 : vector<1x1x10xf32> to vector<1x10xf32>
    %3 = vector.broadcast %2 : vector<1x10xf32> to vector<10x10xf32>
    %4 = arith.addf %0, %3 : vector<10x10xf32>
    %c0_4 = arith.constant 0 : index
    %c0_5 = arith.constant 0 : index
    %5 = vector.load %arg7[%c0_4, %c0_5] : memref<8x8xf32, #tpu.memory_space<vmem>>, vector<8x8xf32>
    %c0_6 = arith.constant 0 : index
    %c0_7 = arith.constant 0 : index
    %c0_8 = arith.constant 0 : index
    %6 = vector.load %arg8[%c0_6, %c0_7, %c0_8] : memref<1x1x8xf32, #tpu.memory_space<vmem>>, vector<1x1x8xf32>
    %7 = vector.shape_cast %6 : vector<1x1x8xf32> to vector<1x8xf32>
    %8 = vector.broadcast %7 : vector<1x8xf32> to vector<8x8xf32>
    %9 = arith.addf %5, %8 : vector<8x8xf32>
    %c0_9 = arith.constant 0 : index
    %c0_10 = arith.constant 0 : index
    %c0_11 = arith.constant 0 : index
    %10 = vector.load %arg1[%c0_9, %c0_10, %c0_11] : memref<1x1x10xf32, #tpu.memory_space<vmem>>, vector<1x1x10xf32>
    %11 = vector.shape_cast %10 : vector<1x1x10xf32> to vector<1x10xf32>
    %c0_12 = arith.constant 0 : index
    %c0_13 = arith.constant 0 : index
    %c0_14 = arith.constant 0 : index
    %12 = vector.load %arg6[%c0_12, %c0_13, %c0_14] : memref<1x10x32xf32, #tpu.memory_space<vmem>>, vector<1x10x32xf32>
    %13 = vector.shape_cast %12 : vector<1x10x32xf32> to vector<10x32xf32>
    %cst = arith.constant 5.65685415 : f32
    %14 = vector.broadcast %cst : f32 to vector<10x32xf32>
    %15 = arith.mulf %13, %14 : vector<10x32xf32>
    %c0_15 = arith.constant 0 : index
    %c0_16 = arith.constant 0 : index
    %16 = vector.load %arg2[%c0_15, %c0_16] : memref<10x32xf32, #tpu.memory_space<vmem>>, vector<10x32xf32>
    %17 = arith.addf %15, %16 : vector<10x32xf32>
    %c0_17 = arith.constant 0 : index
    %c0_18 = arith.constant 0 : index
    %18 = vector.load %arg58[%c0_17, %c0_18] : memref<32x96xf32, #tpu.memory_space<vmem>>, vector<32x96xf32>
    %c0_19 = arith.constant 0 : index
    %c0_20 = arith.constant 0 : index
    %19 = vector.load %arg56[%c0_19, %c0_20] : memref<1x96xf32, #tpu.memory_space<vmem>>, vector<1x96xf32>
    %c0_21 = arith.constant 0 : index
    %c0_22 = arith.constant 0 : index
    %20 = vector.load %arg59[%c0_21, %c0_22] : memref<32x32xf32, #tpu.memory_space<vmem>>, vector<32x32xf32>
    %c0_23 = arith.constant 0 : index
    %c0_24 = arith.constant 0 : index
    %21 = vector.load %arg57[%c0_23, %c0_24] : memref<1x32xf32, #tpu.memory_space<vmem>>, vector<1x32xf32>
    %cst_25 = arith.constant dense<0.000000e+00> : vector<10x96xf32>
    %22 = tpu.matmul %17, %18, %cst_25 {dimension_numbers = #tpu.dot_dimension_numbers<[1], [0], [0], [1], [0, 0, 1, 1], [], []>} : vector<10x32xf32>, vector<32x96xf32>, vector<10x96xf32> -> vector<10x96xf32>
    %23 = vector.broadcast %19 : vector<1x96xf32> to vector<10x96xf32>
    %24 = arith.addf %22, %23 : vector<10x96xf32>
    %25 = vector.extract_strided_slice %24 {offsets = [0, 0], sizes = [10, 32], strides = [1, 1]} : vector<10x96xf32> to vector<10x32xf32>
    %26 = vector.extract_strided_slice %24 {offsets = [0, 32], sizes = [10, 32], strides = [1, 1]} : vector<10x96xf32> to vector<10x32xf32>
    %27 = vector.extract_strided_slice %24 {offsets = [0, 64], sizes = [10, 32], strides = [1, 1]} : vector<10x96xf32> to vector<10x32xf32>
    %28 = vector.extract_strided_slice %25 {offsets = [0, 0], sizes = [10, 8], strides = [1, 1]} : vector<10x32xf32> to vector<10x8xf32>
    %29 = vector.extract_strided_slice %26 {offsets = [0, 0], sizes = [10, 8], strides = [1, 1]} : vector<10x32xf32> to vector<10x8xf32>
    %30 = vector.extract_strided_slice %27 {offsets = [0, 0], sizes = [10, 8], strides = [1, 1]} : vector<10x32xf32> to vector<10x8xf32>
    %cst_26 = arith.constant dense<0.000000e+00> : vector<10x10xf32>
    %31 = tpu.matmul %28, %29, %cst_26 {dimension_numbers = #tpu.dot_dimension_numbers<[1], [1], [0], [0], [0, 0, 1, 0], [], []>} : vector<10x8xf32>, vector<10x8xf32>, vector<10x10xf32> -> vector<10x10xf32>
    %cst_27 = arith.constant 0.353553385 : f32
    %32 = vector.broadcast %cst_27 : f32 to vector<10x10xf32>
    %33 = arith.mulf %31, %32 : vector<10x10xf32>
    %34 = arith.addf %33, %4 : vector<10x10xf32>
    %cst_28 = arith.constant dense<0xFF800000> : vector<10xf32>
    %35 = vector.multi_reduction <maximumf>, %34, %cst_28 [1] : vector<10x10xf32> to vector<10xf32>
    %36 = vector.shape_cast %35 : vector<10xf32> to vector<10x1xf32>
    %37 = vector.broadcast %36 : vector<10x1xf32> to vector<10x10xf32>
    %38 = arith.subf %34, %37 : vector<10x10xf32>
    %39 = math.exp %38 : vector<10x10xf32>
    %cst_29 = arith.constant dense<0.000000e+00> : vector<10xf32>
    %40 = vector.multi_reduction <add>, %39, %cst_29 [1] : vector<10x10xf32> to vector<10xf32>
    %41 = vector.shape_cast %40 : vector<10xf32> to vector<10x1xf32>
    %42 = tpu.reciprocal %41 {approx = true} : vector<10x1xf32> -> vector<10x1xf32>
    %43 = vector.broadcast %42 : vector<10x1xf32> to vector<10x10xf32>
    %44 = arith.mulf %39, %43 : vector<10x10xf32>
    %cst_30 = arith.constant dense<0.000000e+00> : vector<10x8xf32>
    %45 = tpu.matmul %44, %30, %cst_30 {dimension_numbers = #tpu.dot_dimension_numbers<[1], [0], [0], [1], [0, 0, 1, 1], [], []>} : vector<10x10xf32>, vector<10x8xf32>, vector<10x8xf32> -> vector<10x8xf32>
    %46 = vector.extract_strided_slice %20 {offsets = [0, 0], sizes = [8, 32], strides = [1, 1]} : vector<32x32xf32> to vector<8x32xf32>
    %cst_31 = arith.constant dense<0.000000e+00> : vector<10x32xf32>
    %47 = tpu.matmul %45, %46, %cst_31 {dimension_numbers = #tpu.dot_dimension_numbers<[1], [0], [0], [1], [0, 0, 1, 1], [], []>} : vector<10x8xf32>, vector<8x32xf32>, vector<10x32xf32> -> vector<10x32xf32>
    %48 = vector.extract_strided_slice %25 {offsets = [0, 8], sizes = [10, 8], strides = [1, 1]} : vector<10x32xf32> to vector<10x8xf32>
    %49 = vector.extract_strided_slice %26 {offsets = [0, 8], sizes = [10, 8], strides = [1, 1]} : vector<10x32xf32> to vector<10x8xf32>
    %50 = vector.extract_strided_slice %27 {offsets = [0, 8], sizes = [10, 8], strides = [1, 1]} : vector<10x32xf32> to vector<10x8xf32>
    %cst_32 = arith.constant dense<0.000000e+00> : vector<10x10xf32>
    %51 = tpu.matmul %48, %49, %cst_32 {dimension_numbers = #tpu.dot_dimension_numbers<[1], [1], [0], [0], [0, 0, 1, 0], [], []>} : vector<10x8xf32>, vector<10x8xf32>, vector<10x10xf32> -> vector<10x10xf32>
    %cst_33 = arith.constant 0.353553385 : f32
    %52 = vector.broadcast %cst_33 : f32 to vector<10x10xf32>
    %53 = arith.mulf %51, %52 : vector<10x10xf32>
    %54 = arith.addf %53, %4 : vector<10x10xf32>
    %cst_34 = arith.constant dense<0xFF800000> : vector<10xf32>
    %55 = vector.multi_reduction <maximumf>, %54, %cst_34 [1] : vector<10x10xf32> to vector<10xf32>
    %56 = vector.shape_cast %55 : vector<10xf32> to vector<10x1xf32>
    %57 = vector.broadcast %56 : vector<10x1xf32> to vector<10x10xf32>
    %58 = arith.subf %54, %57 : vector<10x10xf32>
    %59 = math.exp %58 : vector<10x10xf32>
    %cst_35 = arith.constant dense<0.000000e+00> : vector<10xf32>
    %60 = vector.multi_reduction <add>, %59, %cst_35 [1] : vector<10x10xf32> to vector<10xf32>
    %61 = vector.shape_cast %60 : vector<10xf32> to vector<10x1xf32>
    %62 = tpu.reciprocal %61 {approx = true} : vector<10x1xf32> -> vector<10x1xf32>
    %63 = vector.broadcast %62 : vector<10x1xf32> to vector<10x10xf32>
    %64 = arith.mulf %59, %63 : vector<10x10xf32>
    %cst_36 = arith.constant dense<0.000000e+00> : vector<10x8xf32>
    %65 = tpu.matmul %64, %50, %cst_36 {dimension_numbers = #tpu.dot_dimension_numbers<[1], [0], [0], [1], [0, 0, 1, 1], [], []>} : vector<10x10xf32>, vector<10x8xf32>, vector<10x8xf32> -> vector<10x8xf32>
    %66 = vector.extract_strided_slice %20 {offsets = [8, 0], sizes = [8, 32], strides = [1, 1]} : vector<32x32xf32> to vector<8x32xf32>
    %cst_37 = arith.constant dense<0.000000e+00> : vector<10x32xf32>
    %67 = tpu.matmul %65, %66, %cst_37 {dimension_numbers = #tpu.dot_dimension_numbers<[1], [0], [0], [1], [0, 0, 1, 1], [], []>} : vector<10x8xf32>, vector<8x32xf32>, vector<10x32xf32> -> vector<10x32xf32>
    %68 = arith.addf %47, %67 : vector<10x32xf32>
    %69 = vector.extract_strided_slice %25 {offsets = [0, 16], sizes = [10, 8], strides = [1, 1]} : vector<10x32xf32> to vector<10x8xf32>
    %70 = vector.extract_strided_slice %26 {offsets = [0, 16], sizes = [10, 8], strides = [1, 1]} : vector<10x32xf32> to vector<10x8xf32>
    %71 = vector.extract_strided_slice %27 {offsets = [0, 16], sizes = [10, 8], strides = [1, 1]} : vector<10x32xf32> to vector<10x8xf32>
    %cst_38 = arith.constant dense<0.000000e+00> : vector<10x10xf32>
    %72 = tpu.matmul %69, %70, %cst_38 {dimension_numbers = #tpu.dot_dimension_numbers<[1], [1], [0], [0], [0, 0, 1, 0], [], []>} : vector<10x8xf32>, vector<10x8xf32>, vector<10x10xf32> -> vector<10x10xf32>
    %cst_39 = arith.constant 0.353553385 : f32
    %73 = vector.broadcast %cst_39 : f32 to vector<10x10xf32>
    %74 = arith.mulf %72, %73 : vector<10x10xf32>
    %75 = arith.addf %74, %4 : vector<10x10xf32>
    %cst_40 = arith.constant dense<0xFF800000> : vector<10xf32>
    %76 = vector.multi_reduction <maximumf>, %75, %cst_40 [1] : vector<10x10xf32> to vector<10xf32>
    %77 = vector.shape_cast %76 : vector<10xf32> to vector<10x1xf32>
    %78 = vector.broadcast %77 : vector<10x1xf32> to vector<10x10xf32>
    %79 = arith.subf %75, %78 : vector<10x10xf32>
    %80 = math.exp %79 : vector<10x10xf32>
    %cst_41 = arith.constant dense<0.000000e+00> : vector<10xf32>
    %81 = vector.multi_reduction <add>, %80, %cst_41 [1] : vector<10x10xf32> to vector<10xf32>
    %82 = vector.shape_cast %81 : vector<10xf32> to vector<10x1xf32>
    %83 = tpu.reciprocal %82 {approx = true} : vector<10x1xf32> -> vector<10x1xf32>
    %84 = vector.broadcast %83 : vector<10x1xf32> to vector<10x10xf32>
    %85 = arith.mulf %80, %84 : vector<10x10xf32>
    %cst_42 = arith.constant dense<0.000000e+00> : vector<10x8xf32>
    %86 = tpu.matmul %85, %71, %cst_42 {dimension_numbers = #tpu.dot_dimension_numbers<[1], [0], [0], [1], [0, 0, 1, 1], [], []>} : vector<10x10xf32>, vector<10x8xf32>, vector<10x8xf32> -> vector<10x8xf32>
    %87 = vector.extract_strided_slice %20 {offsets = [16, 0], sizes = [8, 32], strides = [1, 1]} : vector<32x32xf32> to vector<8x32xf32>
    %cst_43 = arith.constant dense<0.000000e+00> : vector<10x32xf32>
    %88 = tpu.matmul %86, %87, %cst_43 {dimension_numbers = #tpu.dot_dimension_numbers<[1], [0], [0], [1], [0, 0, 1, 1], [], []>} : vector<10x8xf32>, vector<8x32xf32>, vector<10x32xf32> -> vector<10x32xf32>
    %89 = arith.addf %68, %88 : vector<10x32xf32>
    %90 = vector.extract_strided_slice %25 {offsets = [0, 24], sizes = [10, 8], strides = [1, 1]} : vector<10x32xf32> to vector<10x8xf32>
    %91 = vector.extract_strided_slice %26 {offsets = [0, 24], sizes = [10, 8], strides = [1, 1]} : vector<10x32xf32> to vector<10x8xf32>
    %92 = vector.extract_strided_slice %27 {offsets = [0, 24], sizes = [10, 8], strides = [1, 1]} : vector<10x32xf32> to vector<10x8xf32>
    %cst_44 = arith.constant dense<0.000000e+00> : vector<10x10xf32>
    %93 = tpu.matmul %90, %91, %cst_44 {dimension_numbers = #tpu.dot_dimension_numbers<[1], [1], [0], [0], [0, 0, 1, 0], [], []>} : vector<10x8xf32>, vector<10x8xf32>, vector<10x10xf32> -> vector<10x10xf32>
    %cst_45 = arith.constant 0.353553385 : f32
    %94 = vector.broadcast %cst_45 : f32 to vector<10x10xf32>
    %95 = arith.mulf %93, %94 : vector<10x10xf32>
    %96 = arith.addf %95, %4 : vector<10x10xf32>
    %cst_46 = arith.constant dense<0xFF800000> : vector<10xf32>
    %97 = vector.multi_reduction <maximumf>, %96, %cst_46 [1] : vector<10x10xf32> to vector<10xf32>
    %98 = vector.shape_cast %97 : vector<10xf32> to vector<10x1xf32>
    %99 = vector.broadcast %98 : vector<10x1xf32> to vector<10x10xf32>
    %100 = arith.subf %96, %99 : vector<10x10xf32>
    %101 = math.exp %100 : vector<10x10xf32>
    %cst_47 = arith.constant dense<0.000000e+00> : vector<10xf32>
    %102 = vector.multi_reduction <add>, %101, %cst_47 [1] : vector<10x10xf32> to vector<10xf32>
    %103 = vector.shape_cast %102 : vector<10xf32> to vector<10x1xf32>
    %104 = tpu.reciprocal %103 {approx = true} : vector<10x1xf32> -> vector<10x1xf32>
    %105 = vector.broadcast %104 : vector<10x1xf32> to vector<10x10xf32>
    %106 = arith.mulf %101, %105 : vector<10x10xf32>
    %cst_48 = arith.constant dense<0.000000e+00> : vector<10x8xf32>
    %107 = tpu.matmul %106, %92, %cst_48 {dimension_numbers = #tpu.dot_dimension_numbers<[1], [0], [0], [1], [0, 0, 1, 1], [], []>} : vector<10x10xf32>, vector<10x8xf32>, vector<10x8xf32> -> vector<10x8xf32>
    %108 = vector.extract_strided_slice %20 {offsets = [24, 0], sizes = [8, 32], strides = [1, 1]} : vector<32x32xf32> to vector<8x32xf32>
    %cst_49 = arith.constant dense<0.000000e+00> : vector<10x32xf32>
    %109 = tpu.matmul %107, %108, %cst_49 {dimension_numbers = #tpu.dot_dimension_numbers<[1], [0], [0], [1], [0, 0, 1, 1], [], []>} : vector<10x8xf32>, vector<8x32xf32>, vector<10x32xf32> -> vector<10x32xf32>
    %110 = arith.addf %89, %109 : vector<10x32xf32>
    %111 = vector.broadcast %21 : vector<1x32xf32> to vector<10x32xf32>
    %112 = arith.addf %110, %111 : vector<10x32xf32>
    %113 = arith.addf %17, %112 : vector<10x32xf32>
    %c0_50 = arith.constant 0 : index
    %c0_51 = arith.constant 0 : index
    %114 = vector.load %arg53[%c0_50, %c0_51] : memref<1x32xf32, #tpu.memory_space<vmem>>, vector<1x32xf32>
    %c0_52 = arith.constant 0 : index
    %c0_53 = arith.constant 0 : index
    %115 = vector.load %arg52[%c0_52, %c0_53] : memref<1x32xf32, #tpu.memory_space<vmem>>, vector<1x32xf32>
    %cst_54 = arith.constant dense<0.000000e+00> : vector<10xf32>
    %116 = vector.multi_reduction <add>, %113, %cst_54 [1] : vector<10x32xf32> to vector<10xf32>
    %117 = vector.shape_cast %116 : vector<10xf32> to vector<10x1xf32>
    %cst_55 = arith.constant 3.200000e+01 : f32
    %118 = vector.broadcast %cst_55 : f32 to vector<10x1xf32>
    %119 = arith.divf %117, %118 : vector<10x1xf32>
    %120 = vector.broadcast %119 : vector<10x1xf32> to vector<10x32xf32>
    %121 = arith.subf %113, %120 : vector<10x32xf32>
    %122 = arith.mulf %121, %121 : vector<10x32xf32>
    %cst_56 = arith.constant dense<0.000000e+00> : vector<10xf32>
    %123 = vector.multi_reduction <add>, %122, %cst_56 [1] : vector<10x32xf32> to vector<10xf32>
    %124 = vector.shape_cast %123 : vector<10xf32> to vector<10x1xf32>
    %cst_57 = arith.constant 3.200000e+01 : f32
    %125 = vector.broadcast %cst_57 : f32 to vector<10x1xf32>
    %126 = arith.divf %124, %125 : vector<10x1xf32>
    %127 = vector.broadcast %119 : vector<10x1xf32> to vector<10x32xf32>
    %128 = arith.subf %113, %127 : vector<10x32xf32>
    %cst_58 = arith.constant 9.99999974E-6 : f32
    %129 = vector.broadcast %cst_58 : f32 to vector<10x1xf32>
    %130 = arith.addf %126, %129 : vector<10x1xf32>
    %131 = math.rsqrt %130 : vector<10x1xf32>
    %132 = vector.broadcast %131 : vector<10x1xf32> to vector<10x32xf32>
    %133 = arith.mulf %128, %132 : vector<10x32xf32>
    %134 = vector.broadcast %114 : vector<1x32xf32> to vector<10x32xf32>
    %135 = arith.mulf %133, %134 : vector<10x32xf32>
    %136 = vector.broadcast %115 : vector<1x32xf32> to vector<10x32xf32>
    %137 = arith.addf %135, %136 : vector<10x32xf32>
    %c0_59 = arith.constant 0 : index
    %c0_60 = arith.constant 0 : index
    %138 = vector.load %arg50[%c0_59, %c0_60] : memref<32x64xf32, #tpu.memory_space<vmem>>, vector<32x64xf32>
    %cst_61 = arith.constant dense<0.000000e+00> : vector<10x64xf32>
    %139 = tpu.matmul %137, %138, %cst_61 {dimension_numbers = #tpu.dot_dimension_numbers<[1], [0], [0], [1], [0, 0, 1, 1], [], []>} : vector<10x32xf32>, vector<32x64xf32>, vector<10x64xf32> -> vector<10x64xf32>
    %c0_62 = arith.constant 0 : index
    %c0_63 = arith.constant 0 : index
    %140 = vector.load %arg48[%c0_62, %c0_63] : memref<1x64xf32, #tpu.memory_space<vmem>>, vector<1x64xf32>
    %141 = vector.broadcast %140 : vector<1x64xf32> to vector<10x64xf32>
    %142 = arith.addf %139, %141 : vector<10x64xf32>
    %cst_64 = arith.constant 0.000000e+00 : f32
    %143 = vector.broadcast %cst_64 : f32 to vector<10x64xf32>
    %144 = arith.maximumf %142, %143 : vector<10x64xf32>
    %c0_65 = arith.constant 0 : index
    %c0_66 = arith.constant 0 : index
    %145 = vector.load %arg51[%c0_65, %c0_66] : memref<64x32xf32, #tpu.memory_space<vmem>>, vector<64x32xf32>
    %cst_67 = arith.constant dense<0.000000e+00> : vector<10x32xf32>
    %146 = tpu.matmul %144, %145, %cst_67 {dimension_numbers = #tpu.dot_dimension_numbers<[1], [0], [0], [1], [0, 0, 1, 1], [], []>} : vector<10x64xf32>, vector<64x32xf32>, vector<10x32xf32> -> vector<10x32xf32>
    %c0_68 = arith.constant 0 : index
    %c0_69 = arith.constant 0 : index
    %147 = vector.load %arg49[%c0_68, %c0_69] : memref<1x32xf32, #tpu.memory_space<vmem>>, vector<1x32xf32>
    %148 = vector.broadcast %147 : vector<1x32xf32> to vector<10x32xf32>
    %149 = arith.addf %146, %148 : vector<10x32xf32>
    %150 = arith.addf %137, %149 : vector<10x32xf32>
    %c0_70 = arith.constant 0 : index
    %c0_71 = arith.constant 0 : index
    %151 = vector.load %arg55[%c0_70, %c0_71] : memref<1x32xf32, #tpu.memory_space<vmem>>, vector<1x32xf32>
    %c0_72 = arith.constant 0 : index
    %c0_73 = arith.constant 0 : index
    %152 = vector.load %arg54[%c0_72, %c0_73] : memref<1x32xf32, #tpu.memory_space<vmem>>, vector<1x32xf32>
    %cst_74 = arith.constant dense<0.000000e+00> : vector<10xf32>
    %153 = vector.multi_reduction <add>, %150, %cst_74 [1] : vector<10x32xf32> to vector<10xf32>
    %154 = vector.shape_cast %153 : vector<10xf32> to vector<10x1xf32>
    %cst_75 = arith.constant 3.200000e+01 : f32
    %155 = vector.broadcast %cst_75 : f32 to vector<10x1xf32>
    %156 = arith.divf %154, %155 : vector<10x1xf32>
    %157 = vector.broadcast %156 : vector<10x1xf32> to vector<10x32xf32>
    %158 = arith.subf %150, %157 : vector<10x32xf32>
    %159 = arith.mulf %158, %158 : vector<10x32xf32>
    %cst_76 = arith.constant dense<0.000000e+00> : vector<10xf32>
    %160 = vector.multi_reduction <add>, %159, %cst_76 [1] : vector<10x32xf32> to vector<10xf32>
    %161 = vector.shape_cast %160 : vector<10xf32> to vector<10x1xf32>
    %cst_77 = arith.constant 3.200000e+01 : f32
    %162 = vector.broadcast %cst_77 : f32 to vector<10x1xf32>
    %163 = arith.divf %161, %162 : vector<10x1xf32>
    %164 = vector.broadcast %156 : vector<10x1xf32> to vector<10x32xf32>
    %165 = arith.subf %150, %164 : vector<10x32xf32>
    %cst_78 = arith.constant 9.99999974E-6 : f32
    %166 = vector.broadcast %cst_78 : f32 to vector<10x1xf32>
    %167 = arith.addf %163, %166 : vector<10x1xf32>
    %168 = math.rsqrt %167 : vector<10x1xf32>
    %169 = vector.broadcast %168 : vector<10x1xf32> to vector<10x32xf32>
    %170 = arith.mulf %165, %169 : vector<10x32xf32>
    %171 = vector.broadcast %151 : vector<1x32xf32> to vector<10x32xf32>
    %172 = arith.mulf %170, %171 : vector<10x32xf32>
    %173 = vector.broadcast %152 : vector<1x32xf32> to vector<10x32xf32>
    %174 = arith.addf %172, %173 : vector<10x32xf32>
    %c0_79 = arith.constant 0 : index
    %c0_80 = arith.constant 0 : index
    %175 = vector.load %arg70[%c0_79, %c0_80] : memref<32x96xf32, #tpu.memory_space<vmem>>, vector<32x96xf32>
    %c0_81 = arith.constant 0 : index
    %c0_82 = arith.constant 0 : index
    %176 = vector.load %arg68[%c0_81, %c0_82] : memref<1x96xf32, #tpu.memory_space<vmem>>, vector<1x96xf32>
    %c0_83 = arith.constant 0 : index
    %c0_84 = arith.constant 0 : index
    %177 = vector.load %arg71[%c0_83, %c0_84] : memref<32x32xf32, #tpu.memory_space<vmem>>, vector<32x32xf32>
    %c0_85 = arith.constant 0 : index
    %c0_86 = arith.constant 0 : index
    %178 = vector.load %arg69[%c0_85, %c0_86] : memref<1x32xf32, #tpu.memory_space<vmem>>, vector<1x32xf32>
    %cst_87 = arith.constant dense<0.000000e+00> : vector<10x96xf32>
    %179 = tpu.matmul %174, %175, %cst_87 {dimension_numbers = #tpu.dot_dimension_numbers<[1], [0], [0], [1], [0, 0, 1, 1], [], []>} : vector<10x32xf32>, vector<32x96xf32>, vector<10x96xf32> -> vector<10x96xf32>
    %180 = vector.broadcast %176 : vector<1x96xf32> to vector<10x96xf32>
    %181 = arith.addf %179, %180 : vector<10x96xf32>
    %182 = vector.extract_strided_slice %181 {offsets = [0, 0], sizes = [10, 32], strides = [1, 1]} : vector<10x96xf32> to vector<10x32xf32>
    %183 = vector.extract_strided_slice %181 {offsets = [0, 32], sizes = [10, 32], strides = [1, 1]} : vector<10x96xf32> to vector<10x32xf32>
    %184 = vector.extract_strided_slice %181 {offsets = [0, 64], sizes = [10, 32], strides = [1, 1]} : vector<10x96xf32> to vector<10x32xf32>
    %185 = vector.extract_strided_slice %182 {offsets = [0, 0], sizes = [10, 8], strides = [1, 1]} : vector<10x32xf32> to vector<10x8xf32>
    %186 = vector.extract_strided_slice %183 {offsets = [0, 0], sizes = [10, 8], strides = [1, 1]} : vector<10x32xf32> to vector<10x8xf32>
    %187 = vector.extract_strided_slice %184 {offsets = [0, 0], sizes = [10, 8], strides = [1, 1]} : vector<10x32xf32> to vector<10x8xf32>
    %cst_88 = arith.constant dense<0.000000e+00> : vector<10x10xf32>
    %188 = tpu.matmul %185, %186, %cst_88 {dimension_numbers = #tpu.dot_dimension_numbers<[1], [1], [0], [0], [0, 0, 1, 0], [], []>} : vector<10x8xf32>, vector<10x8xf32>, vector<10x10xf32> -> vector<10x10xf32>
    %cst_89 = arith.constant 0.353553385 : f32
    %189 = vector.broadcast %cst_89 : f32 to vector<10x10xf32>
    %190 = arith.mulf %188, %189 : vector<10x10xf32>
    %191 = arith.addf %190, %4 : vector<10x10xf32>
    %cst_90 = arith.constant dense<0xFF800000> : vector<10xf32>
    %192 = vector.multi_reduction <maximumf>, %191, %cst_90 [1] : vector<10x10xf32> to vector<10xf32>
    %193 = vector.shape_cast %192 : vector<10xf32> to vector<10x1xf32>
    %194 = vector.broadcast %193 : vector<10x1xf32> to vector<10x10xf32>
    %195 = arith.subf %191, %194 : vector<10x10xf32>
    %196 = math.exp %195 : vector<10x10xf32>
    %cst_91 = arith.constant dense<0.000000e+00> : vector<10xf32>
    %197 = vector.multi_reduction <add>, %196, %cst_91 [1] : vector<10x10xf32> to vector<10xf32>
    %198 = vector.shape_cast %197 : vector<10xf32> to vector<10x1xf32>
    %199 = tpu.reciprocal %198 {approx = true} : vector<10x1xf32> -> vector<10x1xf32>
    %200 = vector.broadcast %199 : vector<10x1xf32> to vector<10x10xf32>
    %201 = arith.mulf %196, %200 : vector<10x10xf32>
    %cst_92 = arith.constant dense<0.000000e+00> : vector<10x8xf32>
    %202 = tpu.matmul %201, %187, %cst_92 {dimension_numbers = #tpu.dot_dimension_numbers<[1], [0], [0], [1], [0, 0, 1, 1], [], []>} : vector<10x10xf32>, vector<10x8xf32>, vector<10x8xf32> -> vector<10x8xf32>
    %203 = vector.extract_strided_slice %177 {offsets = [0, 0], sizes = [8, 32], strides = [1, 1]} : vector<32x32xf32> to vector<8x32xf32>
    %cst_93 = arith.constant dense<0.000000e+00> : vector<10x32xf32>
    %204 = tpu.matmul %202, %203, %cst_93 {dimension_numbers = #tpu.dot_dimension_numbers<[1], [0], [0], [1], [0, 0, 1, 1], [], []>} : vector<10x8xf32>, vector<8x32xf32>, vector<10x32xf32> -> vector<10x32xf32>
    %205 = vector.extract_strided_slice %182 {offsets = [0, 8], sizes = [10, 8], strides = [1, 1]} : vector<10x32xf32> to vector<10x8xf32>
    %206 = vector.extract_strided_slice %183 {offsets = [0, 8], sizes = [10, 8], strides = [1, 1]} : vector<10x32xf32> to vector<10x8xf32>
    %207 = vector.extract_strided_slice %184 {offsets = [0, 8], sizes = [10, 8], strides = [1, 1]} : vector<10x32xf32> to vector<10x8xf32>
    %cst_94 = arith.constant dense<0.000000e+00> : vector<10x10xf32>
    %208 = tpu.matmul %205, %206, %cst_94 {dimension_numbers = #tpu.dot_dimension_numbers<[1], [1], [0], [0], [0, 0, 1, 0], [], []>} : vector<10x8xf32>, vector<10x8xf32>, vector<10x10xf32> -> vector<10x10xf32>
    %cst_95 = arith.constant 0.353553385 : f32
    %209 = vector.broadcast %cst_95 : f32 to vector<10x10xf32>
    %210 = arith.mulf %208, %209 : vector<10x10xf32>
    %211 = arith.addf %210, %4 : vector<10x10xf32>
    %cst_96 = arith.constant dense<0xFF800000> : vector<10xf32>
    %212 = vector.multi_reduction <maximumf>, %211, %cst_96 [1] : vector<10x10xf32> to vector<10xf32>
    %213 = vector.shape_cast %212 : vector<10xf32> to vector<10x1xf32>
    %214 = vector.broadcast %213 : vector<10x1xf32> to vector<10x10xf32>
    %215 = arith.subf %211, %214 : vector<10x10xf32>
    %216 = math.exp %215 : vector<10x10xf32>
    %cst_97 = arith.constant dense<0.000000e+00> : vector<10xf32>
    %217 = vector.multi_reduction <add>, %216, %cst_97 [1] : vector<10x10xf32> to vector<10xf32>
    %218 = vector.shape_cast %217 : vector<10xf32> to vector<10x1xf32>
    %219 = tpu.reciprocal %218 {approx = true} : vector<10x1xf32> -> vector<10x1xf32>
    %220 = vector.broadcast %219 : vector<10x1xf32> to vector<10x10xf32>
    %221 = arith.mulf %216, %220 : vector<10x10xf32>
    %cst_98 = arith.constant dense<0.000000e+00> : vector<10x8xf32>
    %222 = tpu.matmul %221, %207, %cst_98 {dimension_numbers = #tpu.dot_dimension_numbers<[1], [0], [0], [1], [0, 0, 1, 1], [], []>} : vector<10x10xf32>, vector<10x8xf32>, vector<10x8xf32> -> vector<10x8xf32>
    %223 = vector.extract_strided_slice %177 {offsets = [8, 0], sizes = [8, 32], strides = [1, 1]} : vector<32x32xf32> to vector<8x32xf32>
    %cst_99 = arith.constant dense<0.000000e+00> : vector<10x32xf32>
    %224 = tpu.matmul %222, %223, %cst_99 {dimension_numbers = #tpu.dot_dimension_numbers<[1], [0], [0], [1], [0, 0, 1, 1], [], []>} : vector<10x8xf32>, vector<8x32xf32>, vector<10x32xf32> -> vector<10x32xf32>
    %225 = arith.addf %204, %224 : vector<10x32xf32>
    %226 = vector.extract_strided_slice %182 {offsets = [0, 16], sizes = [10, 8], strides = [1, 1]} : vector<10x32xf32> to vector<10x8xf32>
    %227 = vector.extract_strided_slice %183 {offsets = [0, 16], sizes = [10, 8], strides = [1, 1]} : vector<10x32xf32> to vector<10x8xf32>
    %228 = vector.extract_strided_slice %184 {offsets = [0, 16], sizes = [10, 8], strides = [1, 1]} : vector<10x32xf32> to vector<10x8xf32>
    %cst_100 = arith.constant dense<0.000000e+00> : vector<10x10xf32>
    %229 = tpu.matmul %226, %227, %cst_100 {dimension_numbers = #tpu.dot_dimension_numbers<[1], [1], [0], [0], [0, 0, 1, 0], [], []>} : vector<10x8xf32>, vector<10x8xf32>, vector<10x10xf32> -> vector<10x10xf32>
    %cst_101 = arith.constant 0.353553385 : f32
    %230 = vector.broadcast %cst_101 : f32 to vector<10x10xf32>
    %231 = arith.mulf %229, %230 : vector<10x10xf32>
    %232 = arith.addf %231, %4 : vector<10x10xf32>
    %cst_102 = arith.constant dense<0xFF800000> : vector<10xf32>
    %233 = vector.multi_reduction <maximumf>, %232, %cst_102 [1] : vector<10x10xf32> to vector<10xf32>
    %234 = vector.shape_cast %233 : vector<10xf32> to vector<10x1xf32>
    %235 = vector.broadcast %234 : vector<10x1xf32> to vector<10x10xf32>
    %236 = arith.subf %232, %235 : vector<10x10xf32>
    %237 = math.exp %236 : vector<10x10xf32>
    %cst_103 = arith.constant dense<0.000000e+00> : vector<10xf32>
    %238 = vector.multi_reduction <add>, %237, %cst_103 [1] : vector<10x10xf32> to vector<10xf32>
    %239 = vector.shape_cast %238 : vector<10xf32> to vector<10x1xf32>
    %240 = tpu.reciprocal %239 {approx = true} : vector<10x1xf32> -> vector<10x1xf32>
    %241 = vector.broadcast %240 : vector<10x1xf32> to vector<10x10xf32>
    %242 = arith.mulf %237, %241 : vector<10x10xf32>
    %cst_104 = arith.constant dense<0.000000e+00> : vector<10x8xf32>
    %243 = tpu.matmul %242, %228, %cst_104 {dimension_numbers = #tpu.dot_dimension_numbers<[1], [0], [0], [1], [0, 0, 1, 1], [], []>} : vector<10x10xf32>, vector<10x8xf32>, vector<10x8xf32> -> vector<10x8xf32>
    %244 = vector.extract_strided_slice %177 {offsets = [16, 0], sizes = [8, 32], strides = [1, 1]} : vector<32x32xf32> to vector<8x32xf32>
    %cst_105 = arith.constant dense<0.000000e+00> : vector<10x32xf32>
    %245 = tpu.matmul %243, %244, %cst_105 {dimension_numbers = #tpu.dot_dimension_numbers<[1], [0], [0], [1], [0, 0, 1, 1], [], []>} : vector<10x8xf32>, vector<8x32xf32>, vector<10x32xf32> -> vector<10x32xf32>
    %246 = arith.addf %225, %245 : vector<10x32xf32>
    %247 = vector.extract_strided_slice %182 {offsets = [0, 24], sizes = [10, 8], strides = [1, 1]} : vector<10x32xf32> to vector<10x8xf32>
    %248 = vector.extract_strided_slice %183 {offsets = [0, 24], sizes = [10, 8], strides = [1, 1]} : vector<10x32xf32> to vector<10x8xf32>
    %249 = vector.extract_strided_slice %184 {offsets = [0, 24], sizes = [10, 8], strides = [1, 1]} : vector<10x32xf32> to vector<10x8xf32>
    %cst_106 = arith.constant dense<0.000000e+00> : vector<10x10xf32>
    %250 = tpu.matmul %247, %248, %cst_106 {dimension_numbers = #tpu.dot_dimension_numbers<[1], [1], [0], [0], [0, 0, 1, 0], [], []>} : vector<10x8xf32>, vector<10x8xf32>, vector<10x10xf32> -> vector<10x10xf32>
    %cst_107 = arith.constant 0.353553385 : f32
    %251 = vector.broadcast %cst_107 : f32 to vector<10x10xf32>
    %252 = arith.mulf %250, %251 : vector<10x10xf32>
    %253 = arith.addf %252, %4 : vector<10x10xf32>
    %cst_108 = arith.constant dense<0xFF800000> : vector<10xf32>
    %254 = vector.multi_reduction <maximumf>, %253, %cst_108 [1] : vector<10x10xf32> to vector<10xf32>
    %255 = vector.shape_cast %254 : vector<10xf32> to vector<10x1xf32>
    %256 = vector.broadcast %255 : vector<10x1xf32> to vector<10x10xf32>
    %257 = arith.subf %253, %256 : vector<10x10xf32>
    %258 = math.exp %257 : vector<10x10xf32>
    %cst_109 = arith.constant dense<0.000000e+00> : vector<10xf32>
    %259 = vector.multi_reduction <add>, %258, %cst_109 [1] : vector<10x10xf32> to vector<10xf32>
    %260 = vector.shape_cast %259 : vector<10xf32> to vector<10x1xf32>
    %261 = tpu.reciprocal %260 {approx = true} : vector<10x1xf32> -> vector<10x1xf32>
    %262 = vector.broadcast %261 : vector<10x1xf32> to vector<10x10xf32>
    %263 = arith.mulf %258, %262 : vector<10x10xf32>
    %cst_110 = arith.constant dense<0.000000e+00> : vector<10x8xf32>
    %264 = tpu.matmul %263, %249, %cst_110 {dimension_numbers = #tpu.dot_dimension_numbers<[1], [0], [0], [1], [0, 0, 1, 1], [], []>} : vector<10x10xf32>, vector<10x8xf32>, vector<10x8xf32> -> vector<10x8xf32>
    %265 = vector.extract_strided_slice %177 {offsets = [24, 0], sizes = [8, 32], strides = [1, 1]} : vector<32x32xf32> to vector<8x32xf32>
    %cst_111 = arith.constant dense<0.000000e+00> : vector<10x32xf32>
    %266 = tpu.matmul %264, %265, %cst_111 {dimension_numbers = #tpu.dot_dimension_numbers<[1], [0], [0], [1], [0, 0, 1, 1], [], []>} : vector<10x8xf32>, vector<8x32xf32>, vector<10x32xf32> -> vector<10x32xf32>
    %267 = arith.addf %246, %266 : vector<10x32xf32>
    %268 = vector.broadcast %178 : vector<1x32xf32> to vector<10x32xf32>
    %269 = arith.addf %267, %268 : vector<10x32xf32>
    %270 = arith.addf %174, %269 : vector<10x32xf32>
    %c0_112 = arith.constant 0 : index
    %c0_113 = arith.constant 0 : index
    %271 = vector.load %arg65[%c0_112, %c0_113] : memref<1x32xf32, #tpu.memory_space<vmem>>, vector<1x32xf32>
    %c0_114 = arith.constant 0 : index
    %c0_115 = arith.constant 0 : index
    %272 = vector.load %arg64[%c0_114, %c0_115] : memref<1x32xf32, #tpu.memory_space<vmem>>, vector<1x32xf32>
    %cst_116 = arith.constant dense<0.000000e+00> : vector<10xf32>
    %273 = vector.multi_reduction <add>, %270, %cst_116 [1] : vector<10x32xf32> to vector<10xf32>
    %274 = vector.shape_cast %273 : vector<10xf32> to vector<10x1xf32>
    %cst_117 = arith.constant 3.200000e+01 : f32
    %275 = vector.broadcast %cst_117 : f32 to vector<10x1xf32>
    %276 = arith.divf %274, %275 : vector<10x1xf32>
    %277 = vector.broadcast %276 : vector<10x1xf32> to vector<10x32xf32>
    %278 = arith.subf %270, %277 : vector<10x32xf32>
    %279 = arith.mulf %278, %278 : vector<10x32xf32>
    %cst_118 = arith.constant dense<0.000000e+00> : vector<10xf32>
    %280 = vector.multi_reduction <add>, %279, %cst_118 [1] : vector<10x32xf32> to vector<10xf32>
    %281 = vector.shape_cast %280 : vector<10xf32> to vector<10x1xf32>
    %cst_119 = arith.constant 3.200000e+01 : f32
    %282 = vector.broadcast %cst_119 : f32 to vector<10x1xf32>
    %283 = arith.divf %281, %282 : vector<10x1xf32>
    %284 = vector.broadcast %276 : vector<10x1xf32> to vector<10x32xf32>
    %285 = arith.subf %270, %284 : vector<10x32xf32>
    %cst_120 = arith.constant 9.99999974E-6 : f32
    %286 = vector.broadcast %cst_120 : f32 to vector<10x1xf32>
    %287 = arith.addf %283, %286 : vector<10x1xf32>
    %288 = math.rsqrt %287 : vector<10x1xf32>
    %289 = vector.broadcast %288 : vector<10x1xf32> to vector<10x32xf32>
    %290 = arith.mulf %285, %289 : vector<10x32xf32>
    %291 = vector.broadcast %271 : vector<1x32xf32> to vector<10x32xf32>
    %292 = arith.mulf %290, %291 : vector<10x32xf32>
    %293 = vector.broadcast %272 : vector<1x32xf32> to vector<10x32xf32>
    %294 = arith.addf %292, %293 : vector<10x32xf32>
    %c0_121 = arith.constant 0 : index
    %c0_122 = arith.constant 0 : index
    %295 = vector.load %arg62[%c0_121, %c0_122] : memref<32x64xf32, #tpu.memory_space<vmem>>, vector<32x64xf32>
    %cst_123 = arith.constant dense<0.000000e+00> : vector<10x64xf32>
    %296 = tpu.matmul %294, %295, %cst_123 {dimension_numbers = #tpu.dot_dimension_numbers<[1], [0], [0], [1], [0, 0, 1, 1], [], []>} : vector<10x32xf32>, vector<32x64xf32>, vector<10x64xf32> -> vector<10x64xf32>
    %c0_124 = arith.constant 0 : index
    %c0_125 = arith.constant 0 : index
    %297 = vector.load %arg60[%c0_124, %c0_125] : memref<1x64xf32, #tpu.memory_space<vmem>>, vector<1x64xf32>
    %298 = vector.broadcast %297 : vector<1x64xf32> to vector<10x64xf32>
    %299 = arith.addf %296, %298 : vector<10x64xf32>
    %cst_126 = arith.constant 0.000000e+00 : f32
    %300 = vector.broadcast %cst_126 : f32 to vector<10x64xf32>
    %301 = arith.maximumf %299, %300 : vector<10x64xf32>
    %c0_127 = arith.constant 0 : index
    %c0_128 = arith.constant 0 : index
    %302 = vector.load %arg63[%c0_127, %c0_128] : memref<64x32xf32, #tpu.memory_space<vmem>>, vector<64x32xf32>
    %cst_129 = arith.constant dense<0.000000e+00> : vector<10x32xf32>
    %303 = tpu.matmul %301, %302, %cst_129 {dimension_numbers = #tpu.dot_dimension_numbers<[1], [0], [0], [1], [0, 0, 1, 1], [], []>} : vector<10x64xf32>, vector<64x32xf32>, vector<10x32xf32> -> vector<10x32xf32>
    %c0_130 = arith.constant 0 : index
    %c0_131 = arith.constant 0 : index
    %304 = vector.load %arg61[%c0_130, %c0_131] : memref<1x32xf32, #tpu.memory_space<vmem>>, vector<1x32xf32>
    %305 = vector.broadcast %304 : vector<1x32xf32> to vector<10x32xf32>
    %306 = arith.addf %303, %305 : vector<10x32xf32>
    %307 = arith.addf %294, %306 : vector<10x32xf32>
    %c0_132 = arith.constant 0 : index
    %c0_133 = arith.constant 0 : index
    %308 = vector.load %arg67[%c0_132, %c0_133] : memref<1x32xf32, #tpu.memory_space<vmem>>, vector<1x32xf32>
    %c0_134 = arith.constant 0 : index
    %c0_135 = arith.constant 0 : index
    %309 = vector.load %arg66[%c0_134, %c0_135] : memref<1x32xf32, #tpu.memory_space<vmem>>, vector<1x32xf32>
    %cst_136 = arith.constant dense<0.000000e+00> : vector<10xf32>
    %310 = vector.multi_reduction <add>, %307, %cst_136 [1] : vector<10x32xf32> to vector<10xf32>
    %311 = vector.shape_cast %310 : vector<10xf32> to vector<10x1xf32>
    %cst_137 = arith.constant 3.200000e+01 : f32
    %312 = vector.broadcast %cst_137 : f32 to vector<10x1xf32>
    %313 = arith.divf %311, %312 : vector<10x1xf32>
    %314 = vector.broadcast %313 : vector<10x1xf32> to vector<10x32xf32>
    %315 = arith.subf %307, %314 : vector<10x32xf32>
    %316 = arith.mulf %315, %315 : vector<10x32xf32>
    %cst_138 = arith.constant dense<0.000000e+00> : vector<10xf32>
    %317 = vector.multi_reduction <add>, %316, %cst_138 [1] : vector<10x32xf32> to vector<10xf32>
    %318 = vector.shape_cast %317 : vector<10xf32> to vector<10x1xf32>
    %cst_139 = arith.constant 3.200000e+01 : f32
    %319 = vector.broadcast %cst_139 : f32 to vector<10x1xf32>
    %320 = arith.divf %318, %319 : vector<10x1xf32>
    %321 = vector.broadcast %313 : vector<10x1xf32> to vector<10x32xf32>
    %322 = arith.subf %307, %321 : vector<10x32xf32>
    %cst_140 = arith.constant 9.99999974E-6 : f32
    %323 = vector.broadcast %cst_140 : f32 to vector<10x1xf32>
    %324 = arith.addf %320, %323 : vector<10x1xf32>
    %325 = math.rsqrt %324 : vector<10x1xf32>
    %326 = vector.broadcast %325 : vector<10x1xf32> to vector<10x32xf32>
    %327 = arith.mulf %322, %326 : vector<10x32xf32>
    %328 = vector.broadcast %308 : vector<1x32xf32> to vector<10x32xf32>
    %329 = arith.mulf %327, %328 : vector<10x32xf32>
    %330 = vector.broadcast %309 : vector<1x32xf32> to vector<10x32xf32>
    %331 = arith.addf %329, %330 : vector<10x32xf32>
    %c0_141 = arith.constant 0 : index
    %c0_142 = arith.constant 0 : index
    %332 = vector.load %arg73[%c0_141, %c0_142] : memref<1x32xf32, #tpu.memory_space<vmem>>, vector<1x32xf32>
    %c0_143 = arith.constant 0 : index
    %c0_144 = arith.constant 0 : index
    %333 = vector.load %arg72[%c0_143, %c0_144] : memref<1x32xf32, #tpu.memory_space<vmem>>, vector<1x32xf32>
    %cst_145 = arith.constant dense<0.000000e+00> : vector<10xf32>
    %334 = vector.multi_reduction <add>, %331, %cst_145 [1] : vector<10x32xf32> to vector<10xf32>
    %335 = vector.shape_cast %334 : vector<10xf32> to vector<10x1xf32>
    %cst_146 = arith.constant 3.200000e+01 : f32
    %336 = vector.broadcast %cst_146 : f32 to vector<10x1xf32>
    %337 = arith.divf %335, %336 : vector<10x1xf32>
    %338 = vector.broadcast %337 : vector<10x1xf32> to vector<10x32xf32>
    %339 = arith.subf %331, %338 : vector<10x32xf32>
    %340 = arith.mulf %339, %339 : vector<10x32xf32>
    %cst_147 = arith.constant dense<0.000000e+00> : vector<10xf32>
    %341 = vector.multi_reduction <add>, %340, %cst_147 [1] : vector<10x32xf32> to vector<10xf32>
    %342 = vector.shape_cast %341 : vector<10xf32> to vector<10x1xf32>
    %cst_148 = arith.constant 3.200000e+01 : f32
    %343 = vector.broadcast %cst_148 : f32 to vector<10x1xf32>
    %344 = arith.divf %342, %343 : vector<10x1xf32>
    %345 = vector.broadcast %337 : vector<10x1xf32> to vector<10x32xf32>
    %346 = arith.subf %331, %345 : vector<10x32xf32>
    %cst_149 = arith.constant 9.99999974E-6 : f32
    %347 = vector.broadcast %cst_149 : f32 to vector<10x1xf32>
    %348 = arith.addf %344, %347 : vector<10x1xf32>
    %349 = math.rsqrt %348 : vector<10x1xf32>
    %350 = vector.broadcast %349 : vector<10x1xf32> to vector<10x32xf32>
    %351 = arith.mulf %346, %350 : vector<10x32xf32>
    %352 = vector.broadcast %332 : vector<1x32xf32> to vector<10x32xf32>
    %353 = arith.mulf %351, %352 : vector<10x32xf32>
    %354 = vector.broadcast %333 : vector<1x32xf32> to vector<10x32xf32>
    %355 = arith.addf %353, %354 : vector<10x32xf32>
    %c0_150 = arith.constant 0 : index
    %c0_151 = arith.constant 0 : index
    %c0_152 = arith.constant 0 : index
    %356 = vector.load %arg9[%c0_150, %c0_151, %c0_152] : memref<1x8x32xf32, #tpu.memory_space<vmem>>, vector<1x8x32xf32>
    %357 = vector.shape_cast %356 : vector<1x8x32xf32> to vector<8x32xf32>
    %cst_153 = arith.constant 5.65685415 : f32
    %358 = vector.broadcast %cst_153 : f32 to vector<8x32xf32>
    %359 = arith.mulf %357, %358 : vector<8x32xf32>
    %c0_154 = arith.constant 0 : index
    %c0_155 = arith.constant 0 : index
    %360 = vector.load %arg3[%c0_154, %c0_155] : memref<8x32xf32, #tpu.memory_space<vmem>>, vector<8x32xf32>
    %361 = arith.addf %359, %360 : vector<8x32xf32>
    %c0_156 = arith.constant 0 : index
    %c0_157 = arith.constant 0 : index
    %362 = vector.load %arg26[%c0_156, %c0_157] : memref<32x96xf32, #tpu.memory_space<vmem>>, vector<32x96xf32>
    %c0_158 = arith.constant 0 : index
    %c0_159 = arith.constant 0 : index
    %363 = vector.load %arg24[%c0_158, %c0_159] : memref<1x96xf32, #tpu.memory_space<vmem>>, vector<1x96xf32>
    %c0_160 = arith.constant 0 : index
    %c0_161 = arith.constant 0 : index
    %364 = vector.load %arg27[%c0_160, %c0_161] : memref<32x32xf32, #tpu.memory_space<vmem>>, vector<32x32xf32>
    %c0_162 = arith.constant 0 : index
    %c0_163 = arith.constant 0 : index
    %365 = vector.load %arg25[%c0_162, %c0_163] : memref<1x32xf32, #tpu.memory_space<vmem>>, vector<1x32xf32>
    %cst_164 = arith.constant dense<0.000000e+00> : vector<8x96xf32>
    %366 = tpu.matmul %361, %362, %cst_164 {dimension_numbers = #tpu.dot_dimension_numbers<[1], [0], [0], [1], [0, 0, 1, 1], [], []>} : vector<8x32xf32>, vector<32x96xf32>, vector<8x96xf32> -> vector<8x96xf32>
    %367 = vector.broadcast %363 : vector<1x96xf32> to vector<8x96xf32>
    %368 = arith.addf %366, %367 : vector<8x96xf32>
    %369 = vector.extract_strided_slice %368 {offsets = [0, 0], sizes = [8, 32], strides = [1, 1]} : vector<8x96xf32> to vector<8x32xf32>
    %370 = vector.extract_strided_slice %368 {offsets = [0, 32], sizes = [8, 32], strides = [1, 1]} : vector<8x96xf32> to vector<8x32xf32>
    %371 = vector.extract_strided_slice %368 {offsets = [0, 64], sizes = [8, 32], strides = [1, 1]} : vector<8x96xf32> to vector<8x32xf32>
    %372 = vector.extract_strided_slice %369 {offsets = [0, 0], sizes = [8, 8], strides = [1, 1]} : vector<8x32xf32> to vector<8x8xf32>
    %373 = vector.extract_strided_slice %370 {offsets = [0, 0], sizes = [8, 8], strides = [1, 1]} : vector<8x32xf32> to vector<8x8xf32>
    %374 = vector.extract_strided_slice %371 {offsets = [0, 0], sizes = [8, 8], strides = [1, 1]} : vector<8x32xf32> to vector<8x8xf32>
    %cst_165 = arith.constant dense<0.000000e+00> : vector<8x8xf32>
    %375 = tpu.matmul %372, %373, %cst_165 {dimension_numbers = #tpu.dot_dimension_numbers<[1], [1], [0], [0], [0, 0, 1, 0], [], []>} : vector<8x8xf32>, vector<8x8xf32>, vector<8x8xf32> -> vector<8x8xf32>
    %cst_166 = arith.constant 0.353553385 : f32
    %376 = vector.broadcast %cst_166 : f32 to vector<8x8xf32>
    %377 = arith.mulf %375, %376 : vector<8x8xf32>
    %378 = arith.addf %377, %9 : vector<8x8xf32>
    %cst_167 = arith.constant dense<0xFF800000> : vector<8xf32>
    %379 = vector.multi_reduction <maximumf>, %378, %cst_167 [1] : vector<8x8xf32> to vector<8xf32>
    %380 = vector.shape_cast %379 : vector<8xf32> to vector<8x1xf32>
    %381 = vector.broadcast %380 : vector<8x1xf32> to vector<8x8xf32>
    %382 = arith.subf %378, %381 : vector<8x8xf32>
    %383 = math.exp %382 : vector<8x8xf32>
    %cst_168 = arith.constant dense<0.000000e+00> : vector<8xf32>
    %384 = vector.multi_reduction <add>, %383, %cst_168 [1] : vector<8x8xf32> to vector<8xf32>
    %385 = vector.shape_cast %384 : vector<8xf32> to vector<8x1xf32>
    %386 = tpu.reciprocal %385 {approx = true} : vector<8x1xf32> -> vector<8x1xf32>
    %387 = vector.broadcast %386 : vector<8x1xf32> to vector<8x8xf32>
    %388 = arith.mulf %383, %387 : vector<8x8xf32>
    %cst_169 = arith.constant dense<0.000000e+00> : vector<8x8xf32>
    %389 = tpu.matmul %388, %374, %cst_169 {dimension_numbers = #tpu.dot_dimension_numbers<[1], [0], [0], [1], [0, 0, 1, 1], [], []>} : vector<8x8xf32>, vector<8x8xf32>, vector<8x8xf32> -> vector<8x8xf32>
    %390 = vector.extract_strided_slice %364 {offsets = [0, 0], sizes = [8, 32], strides = [1, 1]} : vector<32x32xf32> to vector<8x32xf32>
    %cst_170 = arith.constant dense<0.000000e+00> : vector<8x32xf32>
    %391 = tpu.matmul %389, %390, %cst_170 {dimension_numbers = #tpu.dot_dimension_numbers<[1], [0], [0], [1], [0, 0, 1, 1], [], []>} : vector<8x8xf32>, vector<8x32xf32>, vector<8x32xf32> -> vector<8x32xf32>
    %392 = vector.extract_strided_slice %369 {offsets = [0, 8], sizes = [8, 8], strides = [1, 1]} : vector<8x32xf32> to vector<8x8xf32>
    %393 = vector.extract_strided_slice %370 {offsets = [0, 8], sizes = [8, 8], strides = [1, 1]} : vector<8x32xf32> to vector<8x8xf32>
    %394 = vector.extract_strided_slice %371 {offsets = [0, 8], sizes = [8, 8], strides = [1, 1]} : vector<8x32xf32> to vector<8x8xf32>
    %cst_171 = arith.constant dense<0.000000e+00> : vector<8x8xf32>
    %395 = tpu.matmul %392, %393, %cst_171 {dimension_numbers = #tpu.dot_dimension_numbers<[1], [1], [0], [0], [0, 0, 1, 0], [], []>} : vector<8x8xf32>, vector<8x8xf32>, vector<8x8xf32> -> vector<8x8xf32>
    %cst_172 = arith.constant 0.353553385 : f32
    %396 = vector.broadcast %cst_172 : f32 to vector<8x8xf32>
    %397 = arith.mulf %395, %396 : vector<8x8xf32>
    %398 = arith.addf %397, %9 : vector<8x8xf32>
    %cst_173 = arith.constant dense<0xFF800000> : vector<8xf32>
    %399 = vector.multi_reduction <maximumf>, %398, %cst_173 [1] : vector<8x8xf32> to vector<8xf32>
    %400 = vector.shape_cast %399 : vector<8xf32> to vector<8x1xf32>
    %401 = vector.broadcast %400 : vector<8x1xf32> to vector<8x8xf32>
    %402 = arith.subf %398, %401 : vector<8x8xf32>
    %403 = math.exp %402 : vector<8x8xf32>
    %cst_174 = arith.constant dense<0.000000e+00> : vector<8xf32>
    %404 = vector.multi_reduction <add>, %403, %cst_174 [1] : vector<8x8xf32> to vector<8xf32>
    %405 = vector.shape_cast %404 : vector<8xf32> to vector<8x1xf32>
    %406 = tpu.reciprocal %405 {approx = true} : vector<8x1xf32> -> vector<8x1xf32>
    %407 = vector.broadcast %406 : vector<8x1xf32> to vector<8x8xf32>
    %408 = arith.mulf %403, %407 : vector<8x8xf32>
    %cst_175 = arith.constant dense<0.000000e+00> : vector<8x8xf32>
    %409 = tpu.matmul %408, %394, %cst_175 {dimension_numbers = #tpu.dot_dimension_numbers<[1], [0], [0], [1], [0, 0, 1, 1], [], []>} : vector<8x8xf32>, vector<8x8xf32>, vector<8x8xf32> -> vector<8x8xf32>
    %410 = vector.extract_strided_slice %364 {offsets = [8, 0], sizes = [8, 32], strides = [1, 1]} : vector<32x32xf32> to vector<8x32xf32>
    %cst_176 = arith.constant dense<0.000000e+00> : vector<8x32xf32>
    %411 = tpu.matmul %409, %410, %cst_176 {dimension_numbers = #tpu.dot_dimension_numbers<[1], [0], [0], [1], [0, 0, 1, 1], [], []>} : vector<8x8xf32>, vector<8x32xf32>, vector<8x32xf32> -> vector<8x32xf32>
    %412 = arith.addf %391, %411 : vector<8x32xf32>
    %413 = vector.extract_strided_slice %369 {offsets = [0, 16], sizes = [8, 8], strides = [1, 1]} : vector<8x32xf32> to vector<8x8xf32>
    %414 = vector.extract_strided_slice %370 {offsets = [0, 16], sizes = [8, 8], strides = [1, 1]} : vector<8x32xf32> to vector<8x8xf32>
    %415 = vector.extract_strided_slice %371 {offsets = [0, 16], sizes = [8, 8], strides = [1, 1]} : vector<8x32xf32> to vector<8x8xf32>
    %cst_177 = arith.constant dense<0.000000e+00> : vector<8x8xf32>
    %416 = tpu.matmul %413, %414, %cst_177 {dimension_numbers = #tpu.dot_dimension_numbers<[1], [1], [0], [0], [0, 0, 1, 0], [], []>} : vector<8x8xf32>, vector<8x8xf32>, vector<8x8xf32> -> vector<8x8xf32>
    %cst_178 = arith.constant 0.353553385 : f32
    %417 = vector.broadcast %cst_178 : f32 to vector<8x8xf32>
    %418 = arith.mulf %416, %417 : vector<8x8xf32>
    %419 = arith.addf %418, %9 : vector<8x8xf32>
    %cst_179 = arith.constant dense<0xFF800000> : vector<8xf32>
    %420 = vector.multi_reduction <maximumf>, %419, %cst_179 [1] : vector<8x8xf32> to vector<8xf32>
    %421 = vector.shape_cast %420 : vector<8xf32> to vector<8x1xf32>
    %422 = vector.broadcast %421 : vector<8x1xf32> to vector<8x8xf32>
    %423 = arith.subf %419, %422 : vector<8x8xf32>
    %424 = math.exp %423 : vector<8x8xf32>
    %cst_180 = arith.constant dense<0.000000e+00> : vector<8xf32>
    %425 = vector.multi_reduction <add>, %424, %cst_180 [1] : vector<8x8xf32> to vector<8xf32>
    %426 = vector.shape_cast %425 : vector<8xf32> to vector<8x1xf32>
    %427 = tpu.reciprocal %426 {approx = true} : vector<8x1xf32> -> vector<8x1xf32>
    %428 = vector.broadcast %427 : vector<8x1xf32> to vector<8x8xf32>
    %429 = arith.mulf %424, %428 : vector<8x8xf32>
    %cst_181 = arith.constant dense<0.000000e+00> : vector<8x8xf32>
    %430 = tpu.matmul %429, %415, %cst_181 {dimension_numbers = #tpu.dot_dimension_numbers<[1], [0], [0], [1], [0, 0, 1, 1], [], []>} : vector<8x8xf32>, vector<8x8xf32>, vector<8x8xf32> -> vector<8x8xf32>
    %431 = vector.extract_strided_slice %364 {offsets = [16, 0], sizes = [8, 32], strides = [1, 1]} : vector<32x32xf32> to vector<8x32xf32>
    %cst_182 = arith.constant dense<0.000000e+00> : vector<8x32xf32>
    %432 = tpu.matmul %430, %431, %cst_182 {dimension_numbers = #tpu.dot_dimension_numbers<[1], [0], [0], [1], [0, 0, 1, 1], [], []>} : vector<8x8xf32>, vector<8x32xf32>, vector<8x32xf32> -> vector<8x32xf32>
    %433 = arith.addf %412, %432 : vector<8x32xf32>
    %434 = vector.extract_strided_slice %369 {offsets = [0, 24], sizes = [8, 8], strides = [1, 1]} : vector<8x32xf32> to vector<8x8xf32>
    %435 = vector.extract_strided_slice %370 {offsets = [0, 24], sizes = [8, 8], strides = [1, 1]} : vector<8x32xf32> to vector<8x8xf32>
    %436 = vector.extract_strided_slice %371 {offsets = [0, 24], sizes = [8, 8], strides = [1, 1]} : vector<8x32xf32> to vector<8x8xf32>
    %cst_183 = arith.constant dense<0.000000e+00> : vector<8x8xf32>
    %437 = tpu.matmul %434, %435, %cst_183 {dimension_numbers = #tpu.dot_dimension_numbers<[1], [1], [0], [0], [0, 0, 1, 0], [], []>} : vector<8x8xf32>, vector<8x8xf32>, vector<8x8xf32> -> vector<8x8xf32>
    %cst_184 = arith.constant 0.353553385 : f32
    %438 = vector.broadcast %cst_184 : f32 to vector<8x8xf32>
    %439 = arith.mulf %437, %438 : vector<8x8xf32>
    %440 = arith.addf %439, %9 : vector<8x8xf32>
    %cst_185 = arith.constant dense<0xFF800000> : vector<8xf32>
    %441 = vector.multi_reduction <maximumf>, %440, %cst_185 [1] : vector<8x8xf32> to vector<8xf32>
    %442 = vector.shape_cast %441 : vector<8xf32> to vector<8x1xf32>
    %443 = vector.broadcast %442 : vector<8x1xf32> to vector<8x8xf32>
    %444 = arith.subf %440, %443 : vector<8x8xf32>
    %445 = math.exp %444 : vector<8x8xf32>
    %cst_186 = arith.constant dense<0.000000e+00> : vector<8xf32>
    %446 = vector.multi_reduction <add>, %445, %cst_186 [1] : vector<8x8xf32> to vector<8xf32>
    %447 = vector.shape_cast %446 : vector<8xf32> to vector<8x1xf32>
    %448 = tpu.reciprocal %447 {approx = true} : vector<8x1xf32> -> vector<8x1xf32>
    %449 = vector.broadcast %448 : vector<8x1xf32> to vector<8x8xf32>
    %450 = arith.mulf %445, %449 : vector<8x8xf32>
    %cst_187 = arith.constant dense<0.000000e+00> : vector<8x8xf32>
    %451 = tpu.matmul %450, %436, %cst_187 {dimension_numbers = #tpu.dot_dimension_numbers<[1], [0], [0], [1], [0, 0, 1, 1], [], []>} : vector<8x8xf32>, vector<8x8xf32>, vector<8x8xf32> -> vector<8x8xf32>
    %452 = vector.extract_strided_slice %364 {offsets = [24, 0], sizes = [8, 32], strides = [1, 1]} : vector<32x32xf32> to vector<8x32xf32>
    %cst_188 = arith.constant dense<0.000000e+00> : vector<8x32xf32>
    %453 = tpu.matmul %451, %452, %cst_188 {dimension_numbers = #tpu.dot_dimension_numbers<[1], [0], [0], [1], [0, 0, 1, 1], [], []>} : vector<8x8xf32>, vector<8x32xf32>, vector<8x32xf32> -> vector<8x32xf32>
    %454 = arith.addf %433, %453 : vector<8x32xf32>
    %455 = vector.broadcast %365 : vector<1x32xf32> to vector<8x32xf32>
    %456 = arith.addf %454, %455 : vector<8x32xf32>
    %457 = arith.addf %361, %456 : vector<8x32xf32>
    %c0_189 = arith.constant 0 : index
    %c0_190 = arith.constant 0 : index
    %458 = vector.load %arg19[%c0_189, %c0_190] : memref<1x32xf32, #tpu.memory_space<vmem>>, vector<1x32xf32>
    %c0_191 = arith.constant 0 : index
    %c0_192 = arith.constant 0 : index
    %459 = vector.load %arg18[%c0_191, %c0_192] : memref<1x32xf32, #tpu.memory_space<vmem>>, vector<1x32xf32>
    %cst_193 = arith.constant dense<0.000000e+00> : vector<8xf32>
    %460 = vector.multi_reduction <add>, %457, %cst_193 [1] : vector<8x32xf32> to vector<8xf32>
    %461 = vector.shape_cast %460 : vector<8xf32> to vector<8x1xf32>
    %cst_194 = arith.constant 3.200000e+01 : f32
    %462 = vector.broadcast %cst_194 : f32 to vector<8x1xf32>
    %463 = arith.divf %461, %462 : vector<8x1xf32>
    %464 = vector.broadcast %463 : vector<8x1xf32> to vector<8x32xf32>
    %465 = arith.subf %457, %464 : vector<8x32xf32>
    %466 = arith.mulf %465, %465 : vector<8x32xf32>
    %cst_195 = arith.constant dense<0.000000e+00> : vector<8xf32>
    %467 = vector.multi_reduction <add>, %466, %cst_195 [1] : vector<8x32xf32> to vector<8xf32>
    %468 = vector.shape_cast %467 : vector<8xf32> to vector<8x1xf32>
    %cst_196 = arith.constant 3.200000e+01 : f32
    %469 = vector.broadcast %cst_196 : f32 to vector<8x1xf32>
    %470 = arith.divf %468, %469 : vector<8x1xf32>
    %471 = vector.broadcast %463 : vector<8x1xf32> to vector<8x32xf32>
    %472 = arith.subf %457, %471 : vector<8x32xf32>
    %cst_197 = arith.constant 9.99999974E-6 : f32
    %473 = vector.broadcast %cst_197 : f32 to vector<8x1xf32>
    %474 = arith.addf %470, %473 : vector<8x1xf32>
    %475 = math.rsqrt %474 : vector<8x1xf32>
    %476 = vector.broadcast %475 : vector<8x1xf32> to vector<8x32xf32>
    %477 = arith.mulf %472, %476 : vector<8x32xf32>
    %478 = vector.broadcast %458 : vector<1x32xf32> to vector<8x32xf32>
    %479 = arith.mulf %477, %478 : vector<8x32xf32>
    %480 = vector.broadcast %459 : vector<1x32xf32> to vector<8x32xf32>
    %481 = arith.addf %479, %480 : vector<8x32xf32>
    %c0_198 = arith.constant 0 : index
    %c0_199 = arith.constant 0 : index
    %482 = vector.load %arg12[%c0_198, %c0_199] : memref<32x96xf32, #tpu.memory_space<vmem>>, vector<32x96xf32>
    %c0_200 = arith.constant 0 : index
    %c0_201 = arith.constant 0 : index
    %483 = vector.load %arg10[%c0_200, %c0_201] : memref<1x96xf32, #tpu.memory_space<vmem>>, vector<1x96xf32>
    %c0_202 = arith.constant 0 : index
    %c0_203 = arith.constant 0 : index
    %484 = vector.load %arg13[%c0_202, %c0_203] : memref<32x32xf32, #tpu.memory_space<vmem>>, vector<32x32xf32>
    %c0_204 = arith.constant 0 : index
    %c0_205 = arith.constant 0 : index
    %485 = vector.load %arg11[%c0_204, %c0_205] : memref<1x32xf32, #tpu.memory_space<vmem>>, vector<1x32xf32>
    %486 = vector.extract_strided_slice %482 {offsets = [0, 0], sizes = [32, 32], strides = [1, 1]} : vector<32x96xf32> to vector<32x32xf32>
    %cst_206 = arith.constant dense<0.000000e+00> : vector<8x32xf32>
    %487 = tpu.matmul %481, %486, %cst_206 {dimension_numbers = #tpu.dot_dimension_numbers<[1], [0], [0], [1], [0, 0, 1, 1], [], []>} : vector<8x32xf32>, vector<32x32xf32>, vector<8x32xf32> -> vector<8x32xf32>
    %488 = vector.extract_strided_slice %483 {offsets = [0, 0], sizes = [1, 32], strides = [1, 1]} : vector<1x96xf32> to vector<1x32xf32>
    %489 = vector.broadcast %488 : vector<1x32xf32> to vector<8x32xf32>
    %490 = arith.addf %487, %489 : vector<8x32xf32>
    %491 = vector.extract_strided_slice %482 {offsets = [0, 32], sizes = [32, 64], strides = [1, 1]} : vector<32x96xf32> to vector<32x64xf32>
    %cst_207 = arith.constant dense<0.000000e+00> : vector<10x64xf32>
    %492 = tpu.matmul %355, %491, %cst_207 {dimension_numbers = #tpu.dot_dimension_numbers<[1], [0], [0], [1], [0, 0, 1, 1], [], []>} : vector<10x32xf32>, vector<32x64xf32>, vector<10x64xf32> -> vector<10x64xf32>
    %493 = vector.extract_strided_slice %483 {offsets = [0, 32], sizes = [1, 64], strides = [1, 1]} : vector<1x96xf32> to vector<1x64xf32>
    %494 = vector.broadcast %493 : vector<1x64xf32> to vector<10x64xf32>
    %495 = arith.addf %492, %494 : vector<10x64xf32>
    %496 = vector.extract_strided_slice %495 {offsets = [0, 0], sizes = [10, 32], strides = [1, 1]} : vector<10x64xf32> to vector<10x32xf32>
    %497 = vector.extract_strided_slice %495 {offsets = [0, 32], sizes = [10, 32], strides = [1, 1]} : vector<10x64xf32> to vector<10x32xf32>
    %498 = vector.extract_strided_slice %490 {offsets = [0, 0], sizes = [8, 8], strides = [1, 1]} : vector<8x32xf32> to vector<8x8xf32>
    %499 = vector.extract_strided_slice %496 {offsets = [0, 0], sizes = [10, 8], strides = [1, 1]} : vector<10x32xf32> to vector<10x8xf32>
    %500 = vector.extract_strided_slice %497 {offsets = [0, 0], sizes = [10, 8], strides = [1, 1]} : vector<10x32xf32> to vector<10x8xf32>
    %cst_208 = arith.constant dense<0.000000e+00> : vector<8x10xf32>
    %501 = tpu.matmul %498, %499, %cst_208 {dimension_numbers = #tpu.dot_dimension_numbers<[1], [1], [0], [0], [0, 0, 1, 0], [], []>} : vector<8x8xf32>, vector<10x8xf32>, vector<8x10xf32> -> vector<8x10xf32>
    %cst_209 = arith.constant 0.353553385 : f32
    %502 = vector.broadcast %cst_209 : f32 to vector<8x10xf32>
    %503 = arith.mulf %501, %502 : vector<8x10xf32>
    %504 = vector.broadcast %11 : vector<1x10xf32> to vector<8x10xf32>
    %505 = arith.addf %503, %504 : vector<8x10xf32>
    %cst_210 = arith.constant dense<0xFF800000> : vector<8xf32>
    %506 = vector.multi_reduction <maximumf>, %505, %cst_210 [1] : vector<8x10xf32> to vector<8xf32>
    %507 = vector.shape_cast %506 : vector<8xf32> to vector<8x1xf32>
    %508 = vector.broadcast %507 : vector<8x1xf32> to vector<8x10xf32>
    %509 = arith.subf %505, %508 : vector<8x10xf32>
    %510 = math.exp %509 : vector<8x10xf32>
    %cst_211 = arith.constant dense<0.000000e+00> : vector<8xf32>
    %511 = vector.multi_reduction <add>, %510, %cst_211 [1] : vector<8x10xf32> to vector<8xf32>
    %512 = vector.shape_cast %511 : vector<8xf32> to vector<8x1xf32>
    %513 = tpu.reciprocal %512 {approx = true} : vector<8x1xf32> -> vector<8x1xf32>
    %514 = vector.broadcast %513 : vector<8x1xf32> to vector<8x10xf32>
    %515 = arith.mulf %510, %514 : vector<8x10xf32>
    %cst_212 = arith.constant dense<0.000000e+00> : vector<8x8xf32>
    %516 = tpu.matmul %515, %500, %cst_212 {dimension_numbers = #tpu.dot_dimension_numbers<[1], [0], [0], [1], [0, 0, 1, 1], [], []>} : vector<8x10xf32>, vector<10x8xf32>, vector<8x8xf32> -> vector<8x8xf32>
    %517 = vector.extract_strided_slice %484 {offsets = [0, 0], sizes = [8, 32], strides = [1, 1]} : vector<32x32xf32> to vector<8x32xf32>
    %cst_213 = arith.constant dense<0.000000e+00> : vector<8x32xf32>
    %518 = tpu.matmul %516, %517, %cst_213 {dimension_numbers = #tpu.dot_dimension_numbers<[1], [0], [0], [1], [0, 0, 1, 1], [], []>} : vector<8x8xf32>, vector<8x32xf32>, vector<8x32xf32> -> vector<8x32xf32>
    %519 = vector.extract_strided_slice %490 {offsets = [0, 8], sizes = [8, 8], strides = [1, 1]} : vector<8x32xf32> to vector<8x8xf32>
    %520 = vector.extract_strided_slice %496 {offsets = [0, 8], sizes = [10, 8], strides = [1, 1]} : vector<10x32xf32> to vector<10x8xf32>
    %521 = vector.extract_strided_slice %497 {offsets = [0, 8], sizes = [10, 8], strides = [1, 1]} : vector<10x32xf32> to vector<10x8xf32>
    %cst_214 = arith.constant dense<0.000000e+00> : vector<8x10xf32>
    %522 = tpu.matmul %519, %520, %cst_214 {dimension_numbers = #tpu.dot_dimension_numbers<[1], [1], [0], [0], [0, 0, 1, 0], [], []>} : vector<8x8xf32>, vector<10x8xf32>, vector<8x10xf32> -> vector<8x10xf32>
    %cst_215 = arith.constant 0.353553385 : f32
    %523 = vector.broadcast %cst_215 : f32 to vector<8x10xf32>
    %524 = arith.mulf %522, %523 : vector<8x10xf32>
    %525 = vector.broadcast %11 : vector<1x10xf32> to vector<8x10xf32>
    %526 = arith.addf %524, %525 : vector<8x10xf32>
    %cst_216 = arith.constant dense<0xFF800000> : vector<8xf32>
    %527 = vector.multi_reduction <maximumf>, %526, %cst_216 [1] : vector<8x10xf32> to vector<8xf32>
    %528 = vector.shape_cast %527 : vector<8xf32> to vector<8x1xf32>
    %529 = vector.broadcast %528 : vector<8x1xf32> to vector<8x10xf32>
    %530 = arith.subf %526, %529 : vector<8x10xf32>
    %531 = math.exp %530 : vector<8x10xf32>
    %cst_217 = arith.constant dense<0.000000e+00> : vector<8xf32>
    %532 = vector.multi_reduction <add>, %531, %cst_217 [1] : vector<8x10xf32> to vector<8xf32>
    %533 = vector.shape_cast %532 : vector<8xf32> to vector<8x1xf32>
    %534 = tpu.reciprocal %533 {approx = true} : vector<8x1xf32> -> vector<8x1xf32>
    %535 = vector.broadcast %534 : vector<8x1xf32> to vector<8x10xf32>
    %536 = arith.mulf %531, %535 : vector<8x10xf32>
    %cst_218 = arith.constant dense<0.000000e+00> : vector<8x8xf32>
    %537 = tpu.matmul %536, %521, %cst_218 {dimension_numbers = #tpu.dot_dimension_numbers<[1], [0], [0], [1], [0, 0, 1, 1], [], []>} : vector<8x10xf32>, vector<10x8xf32>, vector<8x8xf32> -> vector<8x8xf32>
    %538 = vector.extract_strided_slice %484 {offsets = [8, 0], sizes = [8, 32], strides = [1, 1]} : vector<32x32xf32> to vector<8x32xf32>
    %cst_219 = arith.constant dense<0.000000e+00> : vector<8x32xf32>
    %539 = tpu.matmul %537, %538, %cst_219 {dimension_numbers = #tpu.dot_dimension_numbers<[1], [0], [0], [1], [0, 0, 1, 1], [], []>} : vector<8x8xf32>, vector<8x32xf32>, vector<8x32xf32> -> vector<8x32xf32>
    %540 = arith.addf %518, %539 : vector<8x32xf32>
    %541 = vector.extract_strided_slice %490 {offsets = [0, 16], sizes = [8, 8], strides = [1, 1]} : vector<8x32xf32> to vector<8x8xf32>
    %542 = vector.extract_strided_slice %496 {offsets = [0, 16], sizes = [10, 8], strides = [1, 1]} : vector<10x32xf32> to vector<10x8xf32>
    %543 = vector.extract_strided_slice %497 {offsets = [0, 16], sizes = [10, 8], strides = [1, 1]} : vector<10x32xf32> to vector<10x8xf32>
    %cst_220 = arith.constant dense<0.000000e+00> : vector<8x10xf32>
    %544 = tpu.matmul %541, %542, %cst_220 {dimension_numbers = #tpu.dot_dimension_numbers<[1], [1], [0], [0], [0, 0, 1, 0], [], []>} : vector<8x8xf32>, vector<10x8xf32>, vector<8x10xf32> -> vector<8x10xf32>
    %cst_221 = arith.constant 0.353553385 : f32
    %545 = vector.broadcast %cst_221 : f32 to vector<8x10xf32>
    %546 = arith.mulf %544, %545 : vector<8x10xf32>
    %547 = vector.broadcast %11 : vector<1x10xf32> to vector<8x10xf32>
    %548 = arith.addf %546, %547 : vector<8x10xf32>
    %cst_222 = arith.constant dense<0xFF800000> : vector<8xf32>
    %549 = vector.multi_reduction <maximumf>, %548, %cst_222 [1] : vector<8x10xf32> to vector<8xf32>
    %550 = vector.shape_cast %549 : vector<8xf32> to vector<8x1xf32>
    %551 = vector.broadcast %550 : vector<8x1xf32> to vector<8x10xf32>
    %552 = arith.subf %548, %551 : vector<8x10xf32>
    %553 = math.exp %552 : vector<8x10xf32>
    %cst_223 = arith.constant dense<0.000000e+00> : vector<8xf32>
    %554 = vector.multi_reduction <add>, %553, %cst_223 [1] : vector<8x10xf32> to vector<8xf32>
    %555 = vector.shape_cast %554 : vector<8xf32> to vector<8x1xf32>
    %556 = tpu.reciprocal %555 {approx = true} : vector<8x1xf32> -> vector<8x1xf32>
    %557 = vector.broadcast %556 : vector<8x1xf32> to vector<8x10xf32>
    %558 = arith.mulf %553, %557 : vector<8x10xf32>
    %cst_224 = arith.constant dense<0.000000e+00> : vector<8x8xf32>
    %559 = tpu.matmul %558, %543, %cst_224 {dimension_numbers = #tpu.dot_dimension_numbers<[1], [0], [0], [1], [0, 0, 1, 1], [], []>} : vector<8x10xf32>, vector<10x8xf32>, vector<8x8xf32> -> vector<8x8xf32>
    %560 = vector.extract_strided_slice %484 {offsets = [16, 0], sizes = [8, 32], strides = [1, 1]} : vector<32x32xf32> to vector<8x32xf32>
    %cst_225 = arith.constant dense<0.000000e+00> : vector<8x32xf32>
    %561 = tpu.matmul %559, %560, %cst_225 {dimension_numbers = #tpu.dot_dimension_numbers<[1], [0], [0], [1], [0, 0, 1, 1], [], []>} : vector<8x8xf32>, vector<8x32xf32>, vector<8x32xf32> -> vector<8x32xf32>
    %562 = arith.addf %540, %561 : vector<8x32xf32>
    %563 = vector.extract_strided_slice %490 {offsets = [0, 24], sizes = [8, 8], strides = [1, 1]} : vector<8x32xf32> to vector<8x8xf32>
    %564 = vector.extract_strided_slice %496 {offsets = [0, 24], sizes = [10, 8], strides = [1, 1]} : vector<10x32xf32> to vector<10x8xf32>
    %565 = vector.extract_strided_slice %497 {offsets = [0, 24], sizes = [10, 8], strides = [1, 1]} : vector<10x32xf32> to vector<10x8xf32>
    %cst_226 = arith.constant dense<0.000000e+00> : vector<8x10xf32>
    %566 = tpu.matmul %563, %564, %cst_226 {dimension_numbers = #tpu.dot_dimension_numbers<[1], [1], [0], [0], [0, 0, 1, 0], [], []>} : vector<8x8xf32>, vector<10x8xf32>, vector<8x10xf32> -> vector<8x10xf32>
    %cst_227 = arith.constant 0.353553385 : f32
    %567 = vector.broadcast %cst_227 : f32 to vector<8x10xf32>
    %568 = arith.mulf %566, %567 : vector<8x10xf32>
    %569 = vector.broadcast %11 : vector<1x10xf32> to vector<8x10xf32>
    %570 = arith.addf %568, %569 : vector<8x10xf32>
    %cst_228 = arith.constant dense<0xFF800000> : vector<8xf32>
    %571 = vector.multi_reduction <maximumf>, %570, %cst_228 [1] : vector<8x10xf32> to vector<8xf32>
    %572 = vector.shape_cast %571 : vector<8xf32> to vector<8x1xf32>
    %573 = vector.broadcast %572 : vector<8x1xf32> to vector<8x10xf32>
    %574 = arith.subf %570, %573 : vector<8x10xf32>
    %575 = math.exp %574 : vector<8x10xf32>
    %cst_229 = arith.constant dense<0.000000e+00> : vector<8xf32>
    %576 = vector.multi_reduction <add>, %575, %cst_229 [1] : vector<8x10xf32> to vector<8xf32>
    %577 = vector.shape_cast %576 : vector<8xf32> to vector<8x1xf32>
    %578 = tpu.reciprocal %577 {approx = true} : vector<8x1xf32> -> vector<8x1xf32>
    %579 = vector.broadcast %578 : vector<8x1xf32> to vector<8x10xf32>
    %580 = arith.mulf %575, %579 : vector<8x10xf32>
    %cst_230 = arith.constant dense<0.000000e+00> : vector<8x8xf32>
    %581 = tpu.matmul %580, %565, %cst_230 {dimension_numbers = #tpu.dot_dimension_numbers<[1], [0], [0], [1], [0, 0, 1, 1], [], []>} : vector<8x10xf32>, vector<10x8xf32>, vector<8x8xf32> -> vector<8x8xf32>
    %582 = vector.extract_strided_slice %484 {offsets = [24, 0], sizes = [8, 32], strides = [1, 1]} : vector<32x32xf32> to vector<8x32xf32>
    %cst_231 = arith.constant dense<0.000000e+00> : vector<8x32xf32>
    %583 = tpu.matmul %581, %582, %cst_231 {dimension_numbers = #tpu.dot_dimension_numbers<[1], [0], [0], [1], [0, 0, 1, 1], [], []>} : vector<8x8xf32>, vector<8x32xf32>, vector<8x32xf32> -> vector<8x32xf32>
    %584 = arith.addf %562, %583 : vector<8x32xf32>
    %585 = vector.broadcast %485 : vector<1x32xf32> to vector<8x32xf32>
    %586 = arith.addf %584, %585 : vector<8x32xf32>
    %587 = arith.addf %481, %586 : vector<8x32xf32>
    %c0_232 = arith.constant 0 : index
    %c0_233 = arith.constant 0 : index
    %588 = vector.load %arg21[%c0_232, %c0_233] : memref<1x32xf32, #tpu.memory_space<vmem>>, vector<1x32xf32>
    %c0_234 = arith.constant 0 : index
    %c0_235 = arith.constant 0 : index
    %589 = vector.load %arg20[%c0_234, %c0_235] : memref<1x32xf32, #tpu.memory_space<vmem>>, vector<1x32xf32>
    %cst_236 = arith.constant dense<0.000000e+00> : vector<8xf32>
    %590 = vector.multi_reduction <add>, %587, %cst_236 [1] : vector<8x32xf32> to vector<8xf32>
    %591 = vector.shape_cast %590 : vector<8xf32> to vector<8x1xf32>
    %cst_237 = arith.constant 3.200000e+01 : f32
    %592 = vector.broadcast %cst_237 : f32 to vector<8x1xf32>
    %593 = arith.divf %591, %592 : vector<8x1xf32>
    %594 = vector.broadcast %593 : vector<8x1xf32> to vector<8x32xf32>
    %595 = arith.subf %587, %594 : vector<8x32xf32>
    %596 = arith.mulf %595, %595 : vector<8x32xf32>
    %cst_238 = arith.constant dense<0.000000e+00> : vector<8xf32>
    %597 = vector.multi_reduction <add>, %596, %cst_238 [1] : vector<8x32xf32> to vector<8xf32>
    %598 = vector.shape_cast %597 : vector<8xf32> to vector<8x1xf32>
    %cst_239 = arith.constant 3.200000e+01 : f32
    %599 = vector.broadcast %cst_239 : f32 to vector<8x1xf32>
    %600 = arith.divf %598, %599 : vector<8x1xf32>
    %601 = vector.broadcast %593 : vector<8x1xf32> to vector<8x32xf32>
    %602 = arith.subf %587, %601 : vector<8x32xf32>
    %cst_240 = arith.constant 9.99999974E-6 : f32
    %603 = vector.broadcast %cst_240 : f32 to vector<8x1xf32>
    %604 = arith.addf %600, %603 : vector<8x1xf32>
    %605 = math.rsqrt %604 : vector<8x1xf32>
    %606 = vector.broadcast %605 : vector<8x1xf32> to vector<8x32xf32>
    %607 = arith.mulf %602, %606 : vector<8x32xf32>
    %608 = vector.broadcast %588 : vector<1x32xf32> to vector<8x32xf32>
    %609 = arith.mulf %607, %608 : vector<8x32xf32>
    %610 = vector.broadcast %589 : vector<1x32xf32> to vector<8x32xf32>
    %611 = arith.addf %609, %610 : vector<8x32xf32>
    %c0_241 = arith.constant 0 : index
    %c0_242 = arith.constant 0 : index
    %612 = vector.load %arg16[%c0_241, %c0_242] : memref<32x64xf32, #tpu.memory_space<vmem>>, vector<32x64xf32>
    %cst_243 = arith.constant dense<0.000000e+00> : vector<8x64xf32>
    %613 = tpu.matmul %611, %612, %cst_243 {dimension_numbers = #tpu.dot_dimension_numbers<[1], [0], [0], [1], [0, 0, 1, 1], [], []>} : vector<8x32xf32>, vector<32x64xf32>, vector<8x64xf32> -> vector<8x64xf32>
    %c0_244 = arith.constant 0 : index
    %c0_245 = arith.constant 0 : index
    %614 = vector.load %arg14[%c0_244, %c0_245] : memref<1x64xf32, #tpu.memory_space<vmem>>, vector<1x64xf32>
    %615 = vector.broadcast %614 : vector<1x64xf32> to vector<8x64xf32>
    %616 = arith.addf %613, %615 : vector<8x64xf32>
    %cst_246 = arith.constant 0.000000e+00 : f32
    %617 = vector.broadcast %cst_246 : f32 to vector<8x64xf32>
    %618 = arith.maximumf %616, %617 : vector<8x64xf32>
    %c0_247 = arith.constant 0 : index
    %c0_248 = arith.constant 0 : index
    %619 = vector.load %arg17[%c0_247, %c0_248] : memref<64x32xf32, #tpu.memory_space<vmem>>, vector<64x32xf32>
    %cst_249 = arith.constant dense<0.000000e+00> : vector<8x32xf32>
    %620 = tpu.matmul %618, %619, %cst_249 {dimension_numbers = #tpu.dot_dimension_numbers<[1], [0], [0], [1], [0, 0, 1, 1], [], []>} : vector<8x64xf32>, vector<64x32xf32>, vector<8x32xf32> -> vector<8x32xf32>
    %c0_250 = arith.constant 0 : index
    %c0_251 = arith.constant 0 : index
    %621 = vector.load %arg15[%c0_250, %c0_251] : memref<1x32xf32, #tpu.memory_space<vmem>>, vector<1x32xf32>
    %622 = vector.broadcast %621 : vector<1x32xf32> to vector<8x32xf32>
    %623 = arith.addf %620, %622 : vector<8x32xf32>
    %624 = arith.addf %611, %623 : vector<8x32xf32>
    %c0_252 = arith.constant 0 : index
    %c0_253 = arith.constant 0 : index
    %625 = vector.load %arg23[%c0_252, %c0_253] : memref<1x32xf32, #tpu.memory_space<vmem>>, vector<1x32xf32>
    %c0_254 = arith.constant 0 : index
    %c0_255 = arith.constant 0 : index
    %626 = vector.load %arg22[%c0_254, %c0_255] : memref<1x32xf32, #tpu.memory_space<vmem>>, vector<1x32xf32>
    %cst_256 = arith.constant dense<0.000000e+00> : vector<8xf32>
    %627 = vector.multi_reduction <add>, %624, %cst_256 [1] : vector<8x32xf32> to vector<8xf32>
    %628 = vector.shape_cast %627 : vector<8xf32> to vector<8x1xf32>
    %cst_257 = arith.constant 3.200000e+01 : f32
    %629 = vector.broadcast %cst_257 : f32 to vector<8x1xf32>
    %630 = arith.divf %628, %629 : vector<8x1xf32>
    %631 = vector.broadcast %630 : vector<8x1xf32> to vector<8x32xf32>
    %632 = arith.subf %624, %631 : vector<8x32xf32>
    %633 = arith.mulf %632, %632 : vector<8x32xf32>
    %cst_258 = arith.constant dense<0.000000e+00> : vector<8xf32>
    %634 = vector.multi_reduction <add>, %633, %cst_258 [1] : vector<8x32xf32> to vector<8xf32>
    %635 = vector.shape_cast %634 : vector<8xf32> to vector<8x1xf32>
    %cst_259 = arith.constant 3.200000e+01 : f32
    %636 = vector.broadcast %cst_259 : f32 to vector<8x1xf32>
    %637 = arith.divf %635, %636 : vector<8x1xf32>
    %638 = vector.broadcast %630 : vector<8x1xf32> to vector<8x32xf32>
    %639 = arith.subf %624, %638 : vector<8x32xf32>
    %cst_260 = arith.constant 9.99999974E-6 : f32
    %640 = vector.broadcast %cst_260 : f32 to vector<8x1xf32>
    %641 = arith.addf %637, %640 : vector<8x1xf32>
    %642 = math.rsqrt %641 : vector<8x1xf32>
    %643 = vector.broadcast %642 : vector<8x1xf32> to vector<8x32xf32>
    %644 = arith.mulf %639, %643 : vector<8x32xf32>
    %645 = vector.broadcast %625 : vector<1x32xf32> to vector<8x32xf32>
    %646 = arith.mulf %644, %645 : vector<8x32xf32>
    %647 = vector.broadcast %626 : vector<1x32xf32> to vector<8x32xf32>
    %648 = arith.addf %646, %647 : vector<8x32xf32>
    %c0_261 = arith.constant 0 : index
    %c0_262 = arith.constant 0 : index
    %649 = vector.load %arg44[%c0_261, %c0_262] : memref<32x96xf32, #tpu.memory_space<vmem>>, vector<32x96xf32>
    %c0_263 = arith.constant 0 : index
    %c0_264 = arith.constant 0 : index
    %650 = vector.load %arg42[%c0_263, %c0_264] : memref<1x96xf32, #tpu.memory_space<vmem>>, vector<1x96xf32>
    %c0_265 = arith.constant 0 : index
    %c0_266 = arith.constant 0 : index
    %651 = vector.load %arg45[%c0_265, %c0_266] : memref<32x32xf32, #tpu.memory_space<vmem>>, vector<32x32xf32>
    %c0_267 = arith.constant 0 : index
    %c0_268 = arith.constant 0 : index
    %652 = vector.load %arg43[%c0_267, %c0_268] : memref<1x32xf32, #tpu.memory_space<vmem>>, vector<1x32xf32>
    %cst_269 = arith.constant dense<0.000000e+00> : vector<8x96xf32>
    %653 = tpu.matmul %648, %649, %cst_269 {dimension_numbers = #tpu.dot_dimension_numbers<[1], [0], [0], [1], [0, 0, 1, 1], [], []>} : vector<8x32xf32>, vector<32x96xf32>, vector<8x96xf32> -> vector<8x96xf32>
    %654 = vector.broadcast %650 : vector<1x96xf32> to vector<8x96xf32>
    %655 = arith.addf %653, %654 : vector<8x96xf32>
    %656 = vector.extract_strided_slice %655 {offsets = [0, 0], sizes = [8, 32], strides = [1, 1]} : vector<8x96xf32> to vector<8x32xf32>
    %657 = vector.extract_strided_slice %655 {offsets = [0, 32], sizes = [8, 32], strides = [1, 1]} : vector<8x96xf32> to vector<8x32xf32>
    %658 = vector.extract_strided_slice %655 {offsets = [0, 64], sizes = [8, 32], strides = [1, 1]} : vector<8x96xf32> to vector<8x32xf32>
    %659 = vector.extract_strided_slice %656 {offsets = [0, 0], sizes = [8, 8], strides = [1, 1]} : vector<8x32xf32> to vector<8x8xf32>
    %660 = vector.extract_strided_slice %657 {offsets = [0, 0], sizes = [8, 8], strides = [1, 1]} : vector<8x32xf32> to vector<8x8xf32>
    %661 = vector.extract_strided_slice %658 {offsets = [0, 0], sizes = [8, 8], strides = [1, 1]} : vector<8x32xf32> to vector<8x8xf32>
    %cst_270 = arith.constant dense<0.000000e+00> : vector<8x8xf32>
    %662 = tpu.matmul %659, %660, %cst_270 {dimension_numbers = #tpu.dot_dimension_numbers<[1], [1], [0], [0], [0, 0, 1, 0], [], []>} : vector<8x8xf32>, vector<8x8xf32>, vector<8x8xf32> -> vector<8x8xf32>
    %cst_271 = arith.constant 0.353553385 : f32
    %663 = vector.broadcast %cst_271 : f32 to vector<8x8xf32>
    %664 = arith.mulf %662, %663 : vector<8x8xf32>
    %665 = arith.addf %664, %9 : vector<8x8xf32>
    %cst_272 = arith.constant dense<0xFF800000> : vector<8xf32>
    %666 = vector.multi_reduction <maximumf>, %665, %cst_272 [1] : vector<8x8xf32> to vector<8xf32>
    %667 = vector.shape_cast %666 : vector<8xf32> to vector<8x1xf32>
    %668 = vector.broadcast %667 : vector<8x1xf32> to vector<8x8xf32>
    %669 = arith.subf %665, %668 : vector<8x8xf32>
    %670 = math.exp %669 : vector<8x8xf32>
    %cst_273 = arith.constant dense<0.000000e+00> : vector<8xf32>
    %671 = vector.multi_reduction <add>, %670, %cst_273 [1] : vector<8x8xf32> to vector<8xf32>
    %672 = vector.shape_cast %671 : vector<8xf32> to vector<8x1xf32>
    %673 = tpu.reciprocal %672 {approx = true} : vector<8x1xf32> -> vector<8x1xf32>
    %674 = vector.broadcast %673 : vector<8x1xf32> to vector<8x8xf32>
    %675 = arith.mulf %670, %674 : vector<8x8xf32>
    %cst_274 = arith.constant dense<0.000000e+00> : vector<8x8xf32>
    %676 = tpu.matmul %675, %661, %cst_274 {dimension_numbers = #tpu.dot_dimension_numbers<[1], [0], [0], [1], [0, 0, 1, 1], [], []>} : vector<8x8xf32>, vector<8x8xf32>, vector<8x8xf32> -> vector<8x8xf32>
    %677 = vector.extract_strided_slice %651 {offsets = [0, 0], sizes = [8, 32], strides = [1, 1]} : vector<32x32xf32> to vector<8x32xf32>
    %cst_275 = arith.constant dense<0.000000e+00> : vector<8x32xf32>
    %678 = tpu.matmul %676, %677, %cst_275 {dimension_numbers = #tpu.dot_dimension_numbers<[1], [0], [0], [1], [0, 0, 1, 1], [], []>} : vector<8x8xf32>, vector<8x32xf32>, vector<8x32xf32> -> vector<8x32xf32>
    %679 = vector.extract_strided_slice %656 {offsets = [0, 8], sizes = [8, 8], strides = [1, 1]} : vector<8x32xf32> to vector<8x8xf32>
    %680 = vector.extract_strided_slice %657 {offsets = [0, 8], sizes = [8, 8], strides = [1, 1]} : vector<8x32xf32> to vector<8x8xf32>
    %681 = vector.extract_strided_slice %658 {offsets = [0, 8], sizes = [8, 8], strides = [1, 1]} : vector<8x32xf32> to vector<8x8xf32>
    %cst_276 = arith.constant dense<0.000000e+00> : vector<8x8xf32>
    %682 = tpu.matmul %679, %680, %cst_276 {dimension_numbers = #tpu.dot_dimension_numbers<[1], [1], [0], [0], [0, 0, 1, 0], [], []>} : vector<8x8xf32>, vector<8x8xf32>, vector<8x8xf32> -> vector<8x8xf32>
    %cst_277 = arith.constant 0.353553385 : f32
    %683 = vector.broadcast %cst_277 : f32 to vector<8x8xf32>
    %684 = arith.mulf %682, %683 : vector<8x8xf32>
    %685 = arith.addf %684, %9 : vector<8x8xf32>
    %cst_278 = arith.constant dense<0xFF800000> : vector<8xf32>
    %686 = vector.multi_reduction <maximumf>, %685, %cst_278 [1] : vector<8x8xf32> to vector<8xf32>
    %687 = vector.shape_cast %686 : vector<8xf32> to vector<8x1xf32>
    %688 = vector.broadcast %687 : vector<8x1xf32> to vector<8x8xf32>
    %689 = arith.subf %685, %688 : vector<8x8xf32>
    %690 = math.exp %689 : vector<8x8xf32>
    %cst_279 = arith.constant dense<0.000000e+00> : vector<8xf32>
    %691 = vector.multi_reduction <add>, %690, %cst_279 [1] : vector<8x8xf32> to vector<8xf32>
    %692 = vector.shape_cast %691 : vector<8xf32> to vector<8x1xf32>
    %693 = tpu.reciprocal %692 {approx = true} : vector<8x1xf32> -> vector<8x1xf32>
    %694 = vector.broadcast %693 : vector<8x1xf32> to vector<8x8xf32>
    %695 = arith.mulf %690, %694 : vector<8x8xf32>
    %cst_280 = arith.constant dense<0.000000e+00> : vector<8x8xf32>
    %696 = tpu.matmul %695, %681, %cst_280 {dimension_numbers = #tpu.dot_dimension_numbers<[1], [0], [0], [1], [0, 0, 1, 1], [], []>} : vector<8x8xf32>, vector<8x8xf32>, vector<8x8xf32> -> vector<8x8xf32>
    %697 = vector.extract_strided_slice %651 {offsets = [8, 0], sizes = [8, 32], strides = [1, 1]} : vector<32x32xf32> to vector<8x32xf32>
    %cst_281 = arith.constant dense<0.000000e+00> : vector<8x32xf32>
    %698 = tpu.matmul %696, %697, %cst_281 {dimension_numbers = #tpu.dot_dimension_numbers<[1], [0], [0], [1], [0, 0, 1, 1], [], []>} : vector<8x8xf32>, vector<8x32xf32>, vector<8x32xf32> -> vector<8x32xf32>
    %699 = arith.addf %678, %698 : vector<8x32xf32>
    %700 = vector.extract_strided_slice %656 {offsets = [0, 16], sizes = [8, 8], strides = [1, 1]} : vector<8x32xf32> to vector<8x8xf32>
    %701 = vector.extract_strided_slice %657 {offsets = [0, 16], sizes = [8, 8], strides = [1, 1]} : vector<8x32xf32> to vector<8x8xf32>
    %702 = vector.extract_strided_slice %658 {offsets = [0, 16], sizes = [8, 8], strides = [1, 1]} : vector<8x32xf32> to vector<8x8xf32>
    %cst_282 = arith.constant dense<0.000000e+00> : vector<8x8xf32>
    %703 = tpu.matmul %700, %701, %cst_282 {dimension_numbers = #tpu.dot_dimension_numbers<[1], [1], [0], [0], [0, 0, 1, 0], [], []>} : vector<8x8xf32>, vector<8x8xf32>, vector<8x8xf32> -> vector<8x8xf32>
    %cst_283 = arith.constant 0.353553385 : f32
    %704 = vector.broadcast %cst_283 : f32 to vector<8x8xf32>
    %705 = arith.mulf %703, %704 : vector<8x8xf32>
    %706 = arith.addf %705, %9 : vector<8x8xf32>
    %cst_284 = arith.constant dense<0xFF800000> : vector<8xf32>
    %707 = vector.multi_reduction <maximumf>, %706, %cst_284 [1] : vector<8x8xf32> to vector<8xf32>
    %708 = vector.shape_cast %707 : vector<8xf32> to vector<8x1xf32>
    %709 = vector.broadcast %708 : vector<8x1xf32> to vector<8x8xf32>
    %710 = arith.subf %706, %709 : vector<8x8xf32>
    %711 = math.exp %710 : vector<8x8xf32>
    %cst_285 = arith.constant dense<0.000000e+00> : vector<8xf32>
    %712 = vector.multi_reduction <add>, %711, %cst_285 [1] : vector<8x8xf32> to vector<8xf32>
    %713 = vector.shape_cast %712 : vector<8xf32> to vector<8x1xf32>
    %714 = tpu.reciprocal %713 {approx = true} : vector<8x1xf32> -> vector<8x1xf32>
    %715 = vector.broadcast %714 : vector<8x1xf32> to vector<8x8xf32>
    %716 = arith.mulf %711, %715 : vector<8x8xf32>
    %cst_286 = arith.constant dense<0.000000e+00> : vector<8x8xf32>
    %717 = tpu.matmul %716, %702, %cst_286 {dimension_numbers = #tpu.dot_dimension_numbers<[1], [0], [0], [1], [0, 0, 1, 1], [], []>} : vector<8x8xf32>, vector<8x8xf32>, vector<8x8xf32> -> vector<8x8xf32>
    %718 = vector.extract_strided_slice %651 {offsets = [16, 0], sizes = [8, 32], strides = [1, 1]} : vector<32x32xf32> to vector<8x32xf32>
    %cst_287 = arith.constant dense<0.000000e+00> : vector<8x32xf32>
    %719 = tpu.matmul %717, %718, %cst_287 {dimension_numbers = #tpu.dot_dimension_numbers<[1], [0], [0], [1], [0, 0, 1, 1], [], []>} : vector<8x8xf32>, vector<8x32xf32>, vector<8x32xf32> -> vector<8x32xf32>
    %720 = arith.addf %699, %719 : vector<8x32xf32>
    %721 = vector.extract_strided_slice %656 {offsets = [0, 24], sizes = [8, 8], strides = [1, 1]} : vector<8x32xf32> to vector<8x8xf32>
    %722 = vector.extract_strided_slice %657 {offsets = [0, 24], sizes = [8, 8], strides = [1, 1]} : vector<8x32xf32> to vector<8x8xf32>
    %723 = vector.extract_strided_slice %658 {offsets = [0, 24], sizes = [8, 8], strides = [1, 1]} : vector<8x32xf32> to vector<8x8xf32>
    %cst_288 = arith.constant dense<0.000000e+00> : vector<8x8xf32>
    %724 = tpu.matmul %721, %722, %cst_288 {dimension_numbers = #tpu.dot_dimension_numbers<[1], [1], [0], [0], [0, 0, 1, 0], [], []>} : vector<8x8xf32>, vector<8x8xf32>, vector<8x8xf32> -> vector<8x8xf32>
    %cst_289 = arith.constant 0.353553385 : f32
    %725 = vector.broadcast %cst_289 : f32 to vector<8x8xf32>
    %726 = arith.mulf %724, %725 : vector<8x8xf32>
    %727 = arith.addf %726, %9 : vector<8x8xf32>
    %cst_290 = arith.constant dense<0xFF800000> : vector<8xf32>
    %728 = vector.multi_reduction <maximumf>, %727, %cst_290 [1] : vector<8x8xf32> to vector<8xf32>
    %729 = vector.shape_cast %728 : vector<8xf32> to vector<8x1xf32>
    %730 = vector.broadcast %729 : vector<8x1xf32> to vector<8x8xf32>
    %731 = arith.subf %727, %730 : vector<8x8xf32>
    %732 = math.exp %731 : vector<8x8xf32>
    %cst_291 = arith.constant dense<0.000000e+00> : vector<8xf32>
    %733 = vector.multi_reduction <add>, %732, %cst_291 [1] : vector<8x8xf32> to vector<8xf32>
    %734 = vector.shape_cast %733 : vector<8xf32> to vector<8x1xf32>
    %735 = tpu.reciprocal %734 {approx = true} : vector<8x1xf32> -> vector<8x1xf32>
    %736 = vector.broadcast %735 : vector<8x1xf32> to vector<8x8xf32>
    %737 = arith.mulf %732, %736 : vector<8x8xf32>
    %cst_292 = arith.constant dense<0.000000e+00> : vector<8x8xf32>
    %738 = tpu.matmul %737, %723, %cst_292 {dimension_numbers = #tpu.dot_dimension_numbers<[1], [0], [0], [1], [0, 0, 1, 1], [], []>} : vector<8x8xf32>, vector<8x8xf32>, vector<8x8xf32> -> vector<8x8xf32>
    %739 = vector.extract_strided_slice %651 {offsets = [24, 0], sizes = [8, 32], strides = [1, 1]} : vector<32x32xf32> to vector<8x32xf32>
    %cst_293 = arith.constant dense<0.000000e+00> : vector<8x32xf32>
    %740 = tpu.matmul %738, %739, %cst_293 {dimension_numbers = #tpu.dot_dimension_numbers<[1], [0], [0], [1], [0, 0, 1, 1], [], []>} : vector<8x8xf32>, vector<8x32xf32>, vector<8x32xf32> -> vector<8x32xf32>
    %741 = arith.addf %720, %740 : vector<8x32xf32>
    %742 = vector.broadcast %652 : vector<1x32xf32> to vector<8x32xf32>
    %743 = arith.addf %741, %742 : vector<8x32xf32>
    %744 = arith.addf %648, %743 : vector<8x32xf32>
    %c0_294 = arith.constant 0 : index
    %c0_295 = arith.constant 0 : index
    %745 = vector.load %arg37[%c0_294, %c0_295] : memref<1x32xf32, #tpu.memory_space<vmem>>, vector<1x32xf32>
    %c0_296 = arith.constant 0 : index
    %c0_297 = arith.constant 0 : index
    %746 = vector.load %arg36[%c0_296, %c0_297] : memref<1x32xf32, #tpu.memory_space<vmem>>, vector<1x32xf32>
    %cst_298 = arith.constant dense<0.000000e+00> : vector<8xf32>
    %747 = vector.multi_reduction <add>, %744, %cst_298 [1] : vector<8x32xf32> to vector<8xf32>
    %748 = vector.shape_cast %747 : vector<8xf32> to vector<8x1xf32>
    %cst_299 = arith.constant 3.200000e+01 : f32
    %749 = vector.broadcast %cst_299 : f32 to vector<8x1xf32>
    %750 = arith.divf %748, %749 : vector<8x1xf32>
    %751 = vector.broadcast %750 : vector<8x1xf32> to vector<8x32xf32>
    %752 = arith.subf %744, %751 : vector<8x32xf32>
    %753 = arith.mulf %752, %752 : vector<8x32xf32>
    %cst_300 = arith.constant dense<0.000000e+00> : vector<8xf32>
    %754 = vector.multi_reduction <add>, %753, %cst_300 [1] : vector<8x32xf32> to vector<8xf32>
    %755 = vector.shape_cast %754 : vector<8xf32> to vector<8x1xf32>
    %cst_301 = arith.constant 3.200000e+01 : f32
    %756 = vector.broadcast %cst_301 : f32 to vector<8x1xf32>
    %757 = arith.divf %755, %756 : vector<8x1xf32>
    %758 = vector.broadcast %750 : vector<8x1xf32> to vector<8x32xf32>
    %759 = arith.subf %744, %758 : vector<8x32xf32>
    %cst_302 = arith.constant 9.99999974E-6 : f32
    %760 = vector.broadcast %cst_302 : f32 to vector<8x1xf32>
    %761 = arith.addf %757, %760 : vector<8x1xf32>
    %762 = math.rsqrt %761 : vector<8x1xf32>
    %763 = vector.broadcast %762 : vector<8x1xf32> to vector<8x32xf32>
    %764 = arith.mulf %759, %763 : vector<8x32xf32>
    %765 = vector.broadcast %745 : vector<1x32xf32> to vector<8x32xf32>
    %766 = arith.mulf %764, %765 : vector<8x32xf32>
    %767 = vector.broadcast %746 : vector<1x32xf32> to vector<8x32xf32>
    %768 = arith.addf %766, %767 : vector<8x32xf32>
    %c0_303 = arith.constant 0 : index
    %c0_304 = arith.constant 0 : index
    %769 = vector.load %arg30[%c0_303, %c0_304] : memref<32x96xf32, #tpu.memory_space<vmem>>, vector<32x96xf32>
    %c0_305 = arith.constant 0 : index
    %c0_306 = arith.constant 0 : index
    %770 = vector.load %arg28[%c0_305, %c0_306] : memref<1x96xf32, #tpu.memory_space<vmem>>, vector<1x96xf32>
    %c0_307 = arith.constant 0 : index
    %c0_308 = arith.constant 0 : index
    %771 = vector.load %arg31[%c0_307, %c0_308] : memref<32x32xf32, #tpu.memory_space<vmem>>, vector<32x32xf32>
    %c0_309 = arith.constant 0 : index
    %c0_310 = arith.constant 0 : index
    %772 = vector.load %arg29[%c0_309, %c0_310] : memref<1x32xf32, #tpu.memory_space<vmem>>, vector<1x32xf32>
    %773 = vector.extract_strided_slice %769 {offsets = [0, 0], sizes = [32, 32], strides = [1, 1]} : vector<32x96xf32> to vector<32x32xf32>
    %cst_311 = arith.constant dense<0.000000e+00> : vector<8x32xf32>
    %774 = tpu.matmul %768, %773, %cst_311 {dimension_numbers = #tpu.dot_dimension_numbers<[1], [0], [0], [1], [0, 0, 1, 1], [], []>} : vector<8x32xf32>, vector<32x32xf32>, vector<8x32xf32> -> vector<8x32xf32>
    %775 = vector.extract_strided_slice %770 {offsets = [0, 0], sizes = [1, 32], strides = [1, 1]} : vector<1x96xf32> to vector<1x32xf32>
    %776 = vector.broadcast %775 : vector<1x32xf32> to vector<8x32xf32>
    %777 = arith.addf %774, %776 : vector<8x32xf32>
    %778 = vector.extract_strided_slice %769 {offsets = [0, 32], sizes = [32, 64], strides = [1, 1]} : vector<32x96xf32> to vector<32x64xf32>
    %cst_312 = arith.constant dense<0.000000e+00> : vector<10x64xf32>
    %779 = tpu.matmul %355, %778, %cst_312 {dimension_numbers = #tpu.dot_dimension_numbers<[1], [0], [0], [1], [0, 0, 1, 1], [], []>} : vector<10x32xf32>, vector<32x64xf32>, vector<10x64xf32> -> vector<10x64xf32>
    %780 = vector.extract_strided_slice %770 {offsets = [0, 32], sizes = [1, 64], strides = [1, 1]} : vector<1x96xf32> to vector<1x64xf32>
    %781 = vector.broadcast %780 : vector<1x64xf32> to vector<10x64xf32>
    %782 = arith.addf %779, %781 : vector<10x64xf32>
    %783 = vector.extract_strided_slice %782 {offsets = [0, 0], sizes = [10, 32], strides = [1, 1]} : vector<10x64xf32> to vector<10x32xf32>
    %784 = vector.extract_strided_slice %782 {offsets = [0, 32], sizes = [10, 32], strides = [1, 1]} : vector<10x64xf32> to vector<10x32xf32>
    %785 = vector.extract_strided_slice %777 {offsets = [0, 0], sizes = [8, 8], strides = [1, 1]} : vector<8x32xf32> to vector<8x8xf32>
    %786 = vector.extract_strided_slice %783 {offsets = [0, 0], sizes = [10, 8], strides = [1, 1]} : vector<10x32xf32> to vector<10x8xf32>
    %787 = vector.extract_strided_slice %784 {offsets = [0, 0], sizes = [10, 8], strides = [1, 1]} : vector<10x32xf32> to vector<10x8xf32>
    %cst_313 = arith.constant dense<0.000000e+00> : vector<8x10xf32>
    %788 = tpu.matmul %785, %786, %cst_313 {dimension_numbers = #tpu.dot_dimension_numbers<[1], [1], [0], [0], [0, 0, 1, 0], [], []>} : vector<8x8xf32>, vector<10x8xf32>, vector<8x10xf32> -> vector<8x10xf32>
    %cst_314 = arith.constant 0.353553385 : f32
    %789 = vector.broadcast %cst_314 : f32 to vector<8x10xf32>
    %790 = arith.mulf %788, %789 : vector<8x10xf32>
    %791 = vector.broadcast %11 : vector<1x10xf32> to vector<8x10xf32>
    %792 = arith.addf %790, %791 : vector<8x10xf32>
    %cst_315 = arith.constant dense<0xFF800000> : vector<8xf32>
    %793 = vector.multi_reduction <maximumf>, %792, %cst_315 [1] : vector<8x10xf32> to vector<8xf32>
    %794 = vector.shape_cast %793 : vector<8xf32> to vector<8x1xf32>
    %795 = vector.broadcast %794 : vector<8x1xf32> to vector<8x10xf32>
    %796 = arith.subf %792, %795 : vector<8x10xf32>
    %797 = math.exp %796 : vector<8x10xf32>
    %cst_316 = arith.constant dense<0.000000e+00> : vector<8xf32>
    %798 = vector.multi_reduction <add>, %797, %cst_316 [1] : vector<8x10xf32> to vector<8xf32>
    %799 = vector.shape_cast %798 : vector<8xf32> to vector<8x1xf32>
    %800 = tpu.reciprocal %799 {approx = true} : vector<8x1xf32> -> vector<8x1xf32>
    %801 = vector.broadcast %800 : vector<8x1xf32> to vector<8x10xf32>
    %802 = arith.mulf %797, %801 : vector<8x10xf32>
    %cst_317 = arith.constant dense<0.000000e+00> : vector<8x8xf32>
    %803 = tpu.matmul %802, %787, %cst_317 {dimension_numbers = #tpu.dot_dimension_numbers<[1], [0], [0], [1], [0, 0, 1, 1], [], []>} : vector<8x10xf32>, vector<10x8xf32>, vector<8x8xf32> -> vector<8x8xf32>
    %804 = vector.extract_strided_slice %771 {offsets = [0, 0], sizes = [8, 32], strides = [1, 1]} : vector<32x32xf32> to vector<8x32xf32>
    %cst_318 = arith.constant dense<0.000000e+00> : vector<8x32xf32>
    %805 = tpu.matmul %803, %804, %cst_318 {dimension_numbers = #tpu.dot_dimension_numbers<[1], [0], [0], [1], [0, 0, 1, 1], [], []>} : vector<8x8xf32>, vector<8x32xf32>, vector<8x32xf32> -> vector<8x32xf32>
    %806 = vector.extract_strided_slice %777 {offsets = [0, 8], sizes = [8, 8], strides = [1, 1]} : vector<8x32xf32> to vector<8x8xf32>
    %807 = vector.extract_strided_slice %783 {offsets = [0, 8], sizes = [10, 8], strides = [1, 1]} : vector<10x32xf32> to vector<10x8xf32>
    %808 = vector.extract_strided_slice %784 {offsets = [0, 8], sizes = [10, 8], strides = [1, 1]} : vector<10x32xf32> to vector<10x8xf32>
    %cst_319 = arith.constant dense<0.000000e+00> : vector<8x10xf32>
    %809 = tpu.matmul %806, %807, %cst_319 {dimension_numbers = #tpu.dot_dimension_numbers<[1], [1], [0], [0], [0, 0, 1, 0], [], []>} : vector<8x8xf32>, vector<10x8xf32>, vector<8x10xf32> -> vector<8x10xf32>
    %cst_320 = arith.constant 0.353553385 : f32
    %810 = vector.broadcast %cst_320 : f32 to vector<8x10xf32>
    %811 = arith.mulf %809, %810 : vector<8x10xf32>
    %812 = vector.broadcast %11 : vector<1x10xf32> to vector<8x10xf32>
    %813 = arith.addf %811, %812 : vector<8x10xf32>
    %cst_321 = arith.constant dense<0xFF800000> : vector<8xf32>
    %814 = vector.multi_reduction <maximumf>, %813, %cst_321 [1] : vector<8x10xf32> to vector<8xf32>
    %815 = vector.shape_cast %814 : vector<8xf32> to vector<8x1xf32>
    %816 = vector.broadcast %815 : vector<8x1xf32> to vector<8x10xf32>
    %817 = arith.subf %813, %816 : vector<8x10xf32>
    %818 = math.exp %817 : vector<8x10xf32>
    %cst_322 = arith.constant dense<0.000000e+00> : vector<8xf32>
    %819 = vector.multi_reduction <add>, %818, %cst_322 [1] : vector<8x10xf32> to vector<8xf32>
    %820 = vector.shape_cast %819 : vector<8xf32> to vector<8x1xf32>
    %821 = tpu.reciprocal %820 {approx = true} : vector<8x1xf32> -> vector<8x1xf32>
    %822 = vector.broadcast %821 : vector<8x1xf32> to vector<8x10xf32>
    %823 = arith.mulf %818, %822 : vector<8x10xf32>
    %cst_323 = arith.constant dense<0.000000e+00> : vector<8x8xf32>
    %824 = tpu.matmul %823, %808, %cst_323 {dimension_numbers = #tpu.dot_dimension_numbers<[1], [0], [0], [1], [0, 0, 1, 1], [], []>} : vector<8x10xf32>, vector<10x8xf32>, vector<8x8xf32> -> vector<8x8xf32>
    %825 = vector.extract_strided_slice %771 {offsets = [8, 0], sizes = [8, 32], strides = [1, 1]} : vector<32x32xf32> to vector<8x32xf32>
    %cst_324 = arith.constant dense<0.000000e+00> : vector<8x32xf32>
    %826 = tpu.matmul %824, %825, %cst_324 {dimension_numbers = #tpu.dot_dimension_numbers<[1], [0], [0], [1], [0, 0, 1, 1], [], []>} : vector<8x8xf32>, vector<8x32xf32>, vector<8x32xf32> -> vector<8x32xf32>
    %827 = arith.addf %805, %826 : vector<8x32xf32>
    %828 = vector.extract_strided_slice %777 {offsets = [0, 16], sizes = [8, 8], strides = [1, 1]} : vector<8x32xf32> to vector<8x8xf32>
    %829 = vector.extract_strided_slice %783 {offsets = [0, 16], sizes = [10, 8], strides = [1, 1]} : vector<10x32xf32> to vector<10x8xf32>
    %830 = vector.extract_strided_slice %784 {offsets = [0, 16], sizes = [10, 8], strides = [1, 1]} : vector<10x32xf32> to vector<10x8xf32>
    %cst_325 = arith.constant dense<0.000000e+00> : vector<8x10xf32>
    %831 = tpu.matmul %828, %829, %cst_325 {dimension_numbers = #tpu.dot_dimension_numbers<[1], [1], [0], [0], [0, 0, 1, 0], [], []>} : vector<8x8xf32>, vector<10x8xf32>, vector<8x10xf32> -> vector<8x10xf32>
    %cst_326 = arith.constant 0.353553385 : f32
    %832 = vector.broadcast %cst_326 : f32 to vector<8x10xf32>
    %833 = arith.mulf %831, %832 : vector<8x10xf32>
    %834 = vector.broadcast %11 : vector<1x10xf32> to vector<8x10xf32>
    %835 = arith.addf %833, %834 : vector<8x10xf32>
    %cst_327 = arith.constant dense<0xFF800000> : vector<8xf32>
    %836 = vector.multi_reduction <maximumf>, %835, %cst_327 [1] : vector<8x10xf32> to vector<8xf32>
    %837 = vector.shape_cast %836 : vector<8xf32> to vector<8x1xf32>
    %838 = vector.broadcast %837 : vector<8x1xf32> to vector<8x10xf32>
    %839 = arith.subf %835, %838 : vector<8x10xf32>
    %840 = math.exp %839 : vector<8x10xf32>
    %cst_328 = arith.constant dense<0.000000e+00> : vector<8xf32>
    %841 = vector.multi_reduction <add>, %840, %cst_328 [1] : vector<8x10xf32> to vector<8xf32>
    %842 = vector.shape_cast %841 : vector<8xf32> to vector<8x1xf32>
    %843 = tpu.reciprocal %842 {approx = true} : vector<8x1xf32> -> vector<8x1xf32>
    %844 = vector.broadcast %843 : vector<8x1xf32> to vector<8x10xf32>
    %845 = arith.mulf %840, %844 : vector<8x10xf32>
    %cst_329 = arith.constant dense<0.000000e+00> : vector<8x8xf32>
    %846 = tpu.matmul %845, %830, %cst_329 {dimension_numbers = #tpu.dot_dimension_numbers<[1], [0], [0], [1], [0, 0, 1, 1], [], []>} : vector<8x10xf32>, vector<10x8xf32>, vector<8x8xf32> -> vector<8x8xf32>
    %847 = vector.extract_strided_slice %771 {offsets = [16, 0], sizes = [8, 32], strides = [1, 1]} : vector<32x32xf32> to vector<8x32xf32>
    %cst_330 = arith.constant dense<0.000000e+00> : vector<8x32xf32>
    %848 = tpu.matmul %846, %847, %cst_330 {dimension_numbers = #tpu.dot_dimension_numbers<[1], [0], [0], [1], [0, 0, 1, 1], [], []>} : vector<8x8xf32>, vector<8x32xf32>, vector<8x32xf32> -> vector<8x32xf32>
    %849 = arith.addf %827, %848 : vector<8x32xf32>
    %850 = vector.extract_strided_slice %777 {offsets = [0, 24], sizes = [8, 8], strides = [1, 1]} : vector<8x32xf32> to vector<8x8xf32>
    %851 = vector.extract_strided_slice %783 {offsets = [0, 24], sizes = [10, 8], strides = [1, 1]} : vector<10x32xf32> to vector<10x8xf32>
    %852 = vector.extract_strided_slice %784 {offsets = [0, 24], sizes = [10, 8], strides = [1, 1]} : vector<10x32xf32> to vector<10x8xf32>
    %cst_331 = arith.constant dense<0.000000e+00> : vector<8x10xf32>
    %853 = tpu.matmul %850, %851, %cst_331 {dimension_numbers = #tpu.dot_dimension_numbers<[1], [1], [0], [0], [0, 0, 1, 0], [], []>} : vector<8x8xf32>, vector<10x8xf32>, vector<8x10xf32> -> vector<8x10xf32>
    %cst_332 = arith.constant 0.353553385 : f32
    %854 = vector.broadcast %cst_332 : f32 to vector<8x10xf32>
    %855 = arith.mulf %853, %854 : vector<8x10xf32>
    %856 = vector.broadcast %11 : vector<1x10xf32> to vector<8x10xf32>
    %857 = arith.addf %855, %856 : vector<8x10xf32>
    %cst_333 = arith.constant dense<0xFF800000> : vector<8xf32>
    %858 = vector.multi_reduction <maximumf>, %857, %cst_333 [1] : vector<8x10xf32> to vector<8xf32>
    %859 = vector.shape_cast %858 : vector<8xf32> to vector<8x1xf32>
    %860 = vector.broadcast %859 : vector<8x1xf32> to vector<8x10xf32>
    %861 = arith.subf %857, %860 : vector<8x10xf32>
    %862 = math.exp %861 : vector<8x10xf32>
    %cst_334 = arith.constant dense<0.000000e+00> : vector<8xf32>
    %863 = vector.multi_reduction <add>, %862, %cst_334 [1] : vector<8x10xf32> to vector<8xf32>
    %864 = vector.shape_cast %863 : vector<8xf32> to vector<8x1xf32>
    %865 = tpu.reciprocal %864 {approx = true} : vector<8x1xf32> -> vector<8x1xf32>
    %866 = vector.broadcast %865 : vector<8x1xf32> to vector<8x10xf32>
    %867 = arith.mulf %862, %866 : vector<8x10xf32>
    %cst_335 = arith.constant dense<0.000000e+00> : vector<8x8xf32>
    %868 = tpu.matmul %867, %852, %cst_335 {dimension_numbers = #tpu.dot_dimension_numbers<[1], [0], [0], [1], [0, 0, 1, 1], [], []>} : vector<8x10xf32>, vector<10x8xf32>, vector<8x8xf32> -> vector<8x8xf32>
    %869 = vector.extract_strided_slice %771 {offsets = [24, 0], sizes = [8, 32], strides = [1, 1]} : vector<32x32xf32> to vector<8x32xf32>
    %cst_336 = arith.constant dense<0.000000e+00> : vector<8x32xf32>
    %870 = tpu.matmul %868, %869, %cst_336 {dimension_numbers = #tpu.dot_dimension_numbers<[1], [0], [0], [1], [0, 0, 1, 1], [], []>} : vector<8x8xf32>, vector<8x32xf32>, vector<8x32xf32> -> vector<8x32xf32>
    %871 = arith.addf %849, %870 : vector<8x32xf32>
    %872 = vector.broadcast %772 : vector<1x32xf32> to vector<8x32xf32>
    %873 = arith.addf %871, %872 : vector<8x32xf32>
    %874 = arith.addf %768, %873 : vector<8x32xf32>
    %c0_337 = arith.constant 0 : index
    %c0_338 = arith.constant 0 : index
    %875 = vector.load %arg39[%c0_337, %c0_338] : memref<1x32xf32, #tpu.memory_space<vmem>>, vector<1x32xf32>
    %c0_339 = arith.constant 0 : index
    %c0_340 = arith.constant 0 : index
    %876 = vector.load %arg38[%c0_339, %c0_340] : memref<1x32xf32, #tpu.memory_space<vmem>>, vector<1x32xf32>
    %cst_341 = arith.constant dense<0.000000e+00> : vector<8xf32>
    %877 = vector.multi_reduction <add>, %874, %cst_341 [1] : vector<8x32xf32> to vector<8xf32>
    %878 = vector.shape_cast %877 : vector<8xf32> to vector<8x1xf32>
    %cst_342 = arith.constant 3.200000e+01 : f32
    %879 = vector.broadcast %cst_342 : f32 to vector<8x1xf32>
    %880 = arith.divf %878, %879 : vector<8x1xf32>
    %881 = vector.broadcast %880 : vector<8x1xf32> to vector<8x32xf32>
    %882 = arith.subf %874, %881 : vector<8x32xf32>
    %883 = arith.mulf %882, %882 : vector<8x32xf32>
    %cst_343 = arith.constant dense<0.000000e+00> : vector<8xf32>
    %884 = vector.multi_reduction <add>, %883, %cst_343 [1] : vector<8x32xf32> to vector<8xf32>
    %885 = vector.shape_cast %884 : vector<8xf32> to vector<8x1xf32>
    %cst_344 = arith.constant 3.200000e+01 : f32
    %886 = vector.broadcast %cst_344 : f32 to vector<8x1xf32>
    %887 = arith.divf %885, %886 : vector<8x1xf32>
    %888 = vector.broadcast %880 : vector<8x1xf32> to vector<8x32xf32>
    %889 = arith.subf %874, %888 : vector<8x32xf32>
    %cst_345 = arith.constant 9.99999974E-6 : f32
    %890 = vector.broadcast %cst_345 : f32 to vector<8x1xf32>
    %891 = arith.addf %887, %890 : vector<8x1xf32>
    %892 = math.rsqrt %891 : vector<8x1xf32>
    %893 = vector.broadcast %892 : vector<8x1xf32> to vector<8x32xf32>
    %894 = arith.mulf %889, %893 : vector<8x32xf32>
    %895 = vector.broadcast %875 : vector<1x32xf32> to vector<8x32xf32>
    %896 = arith.mulf %894, %895 : vector<8x32xf32>
    %897 = vector.broadcast %876 : vector<1x32xf32> to vector<8x32xf32>
    %898 = arith.addf %896, %897 : vector<8x32xf32>
    %c0_346 = arith.constant 0 : index
    %c0_347 = arith.constant 0 : index
    %899 = vector.load %arg34[%c0_346, %c0_347] : memref<32x64xf32, #tpu.memory_space<vmem>>, vector<32x64xf32>
    %cst_348 = arith.constant dense<0.000000e+00> : vector<8x64xf32>
    %900 = tpu.matmul %898, %899, %cst_348 {dimension_numbers = #tpu.dot_dimension_numbers<[1], [0], [0], [1], [0, 0, 1, 1], [], []>} : vector<8x32xf32>, vector<32x64xf32>, vector<8x64xf32> -> vector<8x64xf32>
    %c0_349 = arith.constant 0 : index
    %c0_350 = arith.constant 0 : index
    %901 = vector.load %arg32[%c0_349, %c0_350] : memref<1x64xf32, #tpu.memory_space<vmem>>, vector<1x64xf32>
    %902 = vector.broadcast %901 : vector<1x64xf32> to vector<8x64xf32>
    %903 = arith.addf %900, %902 : vector<8x64xf32>
    %cst_351 = arith.constant 0.000000e+00 : f32
    %904 = vector.broadcast %cst_351 : f32 to vector<8x64xf32>
    %905 = arith.maximumf %903, %904 : vector<8x64xf32>
    %c0_352 = arith.constant 0 : index
    %c0_353 = arith.constant 0 : index
    %906 = vector.load %arg35[%c0_352, %c0_353] : memref<64x32xf32, #tpu.memory_space<vmem>>, vector<64x32xf32>
    %cst_354 = arith.constant dense<0.000000e+00> : vector<8x32xf32>
    %907 = tpu.matmul %905, %906, %cst_354 {dimension_numbers = #tpu.dot_dimension_numbers<[1], [0], [0], [1], [0, 0, 1, 1], [], []>} : vector<8x64xf32>, vector<64x32xf32>, vector<8x32xf32> -> vector<8x32xf32>
    %c0_355 = arith.constant 0 : index
    %c0_356 = arith.constant 0 : index
    %908 = vector.load %arg33[%c0_355, %c0_356] : memref<1x32xf32, #tpu.memory_space<vmem>>, vector<1x32xf32>
    %909 = vector.broadcast %908 : vector<1x32xf32> to vector<8x32xf32>
    %910 = arith.addf %907, %909 : vector<8x32xf32>
    %911 = arith.addf %898, %910 : vector<8x32xf32>
    %c0_357 = arith.constant 0 : index
    %c0_358 = arith.constant 0 : index
    %912 = vector.load %arg41[%c0_357, %c0_358] : memref<1x32xf32, #tpu.memory_space<vmem>>, vector<1x32xf32>
    %c0_359 = arith.constant 0 : index
    %c0_360 = arith.constant 0 : index
    %913 = vector.load %arg40[%c0_359, %c0_360] : memref<1x32xf32, #tpu.memory_space<vmem>>, vector<1x32xf32>
    %cst_361 = arith.constant dense<0.000000e+00> : vector<8xf32>
    %914 = vector.multi_reduction <add>, %911, %cst_361 [1] : vector<8x32xf32> to vector<8xf32>
    %915 = vector.shape_cast %914 : vector<8xf32> to vector<8x1xf32>
    %cst_362 = arith.constant 3.200000e+01 : f32
    %916 = vector.broadcast %cst_362 : f32 to vector<8x1xf32>
    %917 = arith.divf %915, %916 : vector<8x1xf32>
    %918 = vector.broadcast %917 : vector<8x1xf32> to vector<8x32xf32>
    %919 = arith.subf %911, %918 : vector<8x32xf32>
    %920 = arith.mulf %919, %919 : vector<8x32xf32>
    %cst_363 = arith.constant dense<0.000000e+00> : vector<8xf32>
    %921 = vector.multi_reduction <add>, %920, %cst_363 [1] : vector<8x32xf32> to vector<8xf32>
    %922 = vector.shape_cast %921 : vector<8xf32> to vector<8x1xf32>
    %cst_364 = arith.constant 3.200000e+01 : f32
    %923 = vector.broadcast %cst_364 : f32 to vector<8x1xf32>
    %924 = arith.divf %922, %923 : vector<8x1xf32>
    %925 = vector.broadcast %917 : vector<8x1xf32> to vector<8x32xf32>
    %926 = arith.subf %911, %925 : vector<8x32xf32>
    %cst_365 = arith.constant 9.99999974E-6 : f32
    %927 = vector.broadcast %cst_365 : f32 to vector<8x1xf32>
    %928 = arith.addf %924, %927 : vector<8x1xf32>
    %929 = math.rsqrt %928 : vector<8x1xf32>
    %930 = vector.broadcast %929 : vector<8x1xf32> to vector<8x32xf32>
    %931 = arith.mulf %926, %930 : vector<8x32xf32>
    %932 = vector.broadcast %912 : vector<1x32xf32> to vector<8x32xf32>
    %933 = arith.mulf %931, %932 : vector<8x32xf32>
    %934 = vector.broadcast %913 : vector<1x32xf32> to vector<8x32xf32>
    %935 = arith.addf %933, %934 : vector<8x32xf32>
    %c0_366 = arith.constant 0 : index
    %c0_367 = arith.constant 0 : index
    %936 = vector.load %arg47[%c0_366, %c0_367] : memref<1x32xf32, #tpu.memory_space<vmem>>, vector<1x32xf32>
    %c0_368 = arith.constant 0 : index
    %c0_369 = arith.constant 0 : index
    %937 = vector.load %arg46[%c0_368, %c0_369] : memref<1x32xf32, #tpu.memory_space<vmem>>, vector<1x32xf32>
    %cst_370 = arith.constant dense<0.000000e+00> : vector<8xf32>
    %938 = vector.multi_reduction <add>, %935, %cst_370 [1] : vector<8x32xf32> to vector<8xf32>
    %939 = vector.shape_cast %938 : vector<8xf32> to vector<8x1xf32>
    %cst_371 = arith.constant 3.200000e+01 : f32
    %940 = vector.broadcast %cst_371 : f32 to vector<8x1xf32>
    %941 = arith.divf %939, %940 : vector<8x1xf32>
    %942 = vector.broadcast %941 : vector<8x1xf32> to vector<8x32xf32>
    %943 = arith.subf %935, %942 : vector<8x32xf32>
    %944 = arith.mulf %943, %943 : vector<8x32xf32>
    %cst_372 = arith.constant dense<0.000000e+00> : vector<8xf32>
    %945 = vector.multi_reduction <add>, %944, %cst_372 [1] : vector<8x32xf32> to vector<8xf32>
    %946 = vector.shape_cast %945 : vector<8xf32> to vector<8x1xf32>
    %cst_373 = arith.constant 3.200000e+01 : f32
    %947 = vector.broadcast %cst_373 : f32 to vector<8x1xf32>
    %948 = arith.divf %946, %947 : vector<8x1xf32>
    %949 = vector.broadcast %941 : vector<8x1xf32> to vector<8x32xf32>
    %950 = arith.subf %935, %949 : vector<8x32xf32>
    %cst_374 = arith.constant 9.99999974E-6 : f32
    %951 = vector.broadcast %cst_374 : f32 to vector<8x1xf32>
    %952 = arith.addf %948, %951 : vector<8x1xf32>
    %953 = math.rsqrt %952 : vector<8x1xf32>
    %954 = vector.broadcast %953 : vector<8x1xf32> to vector<8x32xf32>
    %955 = arith.mulf %950, %954 : vector<8x32xf32>
    %956 = vector.broadcast %936 : vector<1x32xf32> to vector<8x32xf32>
    %957 = arith.mulf %955, %956 : vector<8x32xf32>
    %958 = vector.broadcast %937 : vector<1x32xf32> to vector<8x32xf32>
    %959 = arith.addf %957, %958 : vector<8x32xf32>
    %c0_375 = arith.constant 0 : index
    %c0_376 = arith.constant 0 : index
    %960 = vector.load %arg75[%c0_375, %c0_376] : memref<32x12xf32, #tpu.memory_space<vmem>>, vector<32x12xf32>
    %cst_377 = arith.constant dense<0.000000e+00> : vector<8x12xf32>
    %961 = tpu.matmul %959, %960, %cst_377 {dimension_numbers = #tpu.dot_dimension_numbers<[1], [0], [0], [1], [0, 0, 1, 1], [], []>} : vector<8x32xf32>, vector<32x12xf32>, vector<8x12xf32> -> vector<8x12xf32>
    %c0_378 = arith.constant 0 : index
    %c0_379 = arith.constant 0 : index
    %962 = vector.load %arg74[%c0_378, %c0_379] : memref<1x12xf32, #tpu.memory_space<vmem>>, vector<1x12xf32>
    %963 = vector.broadcast %962 : vector<1x12xf32> to vector<8x12xf32>
    %964 = arith.addf %961, %963 : vector<8x12xf32>
    %c0_380 = arith.constant 0 : index
    %c0_381 = arith.constant 0 : index
    %c0_382 = arith.constant 0 : index
    %965 = vector.load %arg76[%c0_380, %c0_381, %c0_382] : memref<1x8x12xf32, #tpu.memory_space<vmem>>, vector<1x8x12xf32>
    %966 = vector.shape_cast %965 : vector<1x8x12xf32> to vector<8x12xf32>
    %967 = vector.shape_cast %964 : vector<8x12xf32> to vector<1x8x12xf32>
    tpu.vector_store %arg76[%c0_380, %c0_381, %c0_382], %967 {strides = array<i32>} : memref<1x8x12xf32, #tpu.memory_space<vmem>>, vector<1x8x12xf32>,
    return
  }
  func.func @transform_0(%arg0: i32) -> (i32, i32, i32) {
    %c0_i32 = arith.constant 0 : i32
    %c0_i32_0 = arith.constant 0 : i32
    %c0_i32_1 = arith.constant 0 : i32
    return %arg0, %c0_i32, %c0_i32_0 : i32, i32, i32
  }
  func.func @transform_1(%arg0: i32) -> (i32, i32) {
    %c0_i32 = arith.constant 0 : i32
    %c0_i32_0 = arith.constant 0 : i32
    %c0_i32_1 = arith.constant 0 : i32
    return %c0_i32, %c0_i32_0 : i32, i32
  }
  func.func @transform_2(%arg0: i32) -> (i32, i32) {
    %c0_i32 = arith.constant 0 : i32
    %c0_i32_0 = arith.constant 0 : i32
    %c0_i32_1 = arith.constant 0 : i32
    return %c0_i32, %c0_i32_0 : i32, i32
  }
  func.func @transform_3(%arg0: i32) -> (i32, i32) {
    %c0_i32 = arith.constant 0 : i32
    %c0_i32_0 = arith.constant 0 : i32
    %c0_i32_1 = arith.constant 0 : i32
    return %c0_i32, %c0_i32_0 : i32, i32
  }
  func.func @transform_4(%arg0: i32) -> (i32, i32, i32) {
    %c0_i32 = arith.constant 0 : i32
    %c0_i32_0 = arith.constant 0 : i32
    %c0_i32_1 = arith.constant 0 : i32
    return %arg0, %c0_i32, %c0_i32_0 : i32, i32, i32
  }
  func.func @transform_5(%arg0: i32) -> (i32, i32, i32) {
    %c0_i32 = arith.constant 0 : i32
    %c0_i32_0 = arith.constant 0 : i32
    %c0_i32_1 = arith.constant 0 : i32
    return %arg0, %c0_i32, %c0_i32_0 : i32, i32, i32
  }
  func.func @transform_6(%arg0: i32) -> (i32, i32) {
    %c0_i32 = arith.constant 0 : i32
    %c0_i32_0 = arith.constant 0 : i32
    %c0_i32_1 = arith.constant 0 : i32
    return %c0_i32, %c0_i32_0 : i32, i32
  }
  func.func @transform_7(%arg0: i32) -> (i32, i32, i32) {
    %c0_i32 = arith.constant 0 : i32
    %c0_i32_0 = arith.constant 0 : i32
    %c0_i32_1 = arith.constant 0 : i32
    return %arg0, %c0_i32, %c0_i32_0 : i32, i32, i32
  }
  func.func @transform_8(%arg0: i32) -> (i32, i32, i32) {
    %c0_i32 = arith.constant 0 : i32
    %c0_i32_0 = arith.constant 0 : i32
    %c0_i32_1 = arith.constant 0 : i32
    return %arg0, %c0_i32, %c0_i32_0 : i32, i32, i32
  }
  func.func @transform_9(%arg0: i32) -> (i32, i32) {
    %c0_i32 = arith.constant 0 : i32
    %c0_i32_0 = arith.constant 0 : i32
    %c0_i32_1 = arith.constant 0 : i32
    return %c0_i32, %c0_i32_0 : i32, i32
  }
  func.func @transform_10(%arg0: i32) -> (i32, i32) {
    %c0_i32 = arith.constant 0 : i32
    %c0_i32_0 = arith.constant 0 : i32
    %c0_i32_1 = arith.constant 0 : i32
    return %c0_i32, %c0_i32_0 : i32, i32
  }
  func.func @transform_11(%arg0: i32) -> (i32, i32) {
    %c0_i32 = arith.constant 0 : i32
    %c0_i32_0 = arith.constant 0 : i32
    %c0_i32_1 = arith.constant 0 : i32
    return %c0_i32, %c0_i32_0 : i32, i32
  }
  func.func @transform_12(%arg0: i32) -> (i32, i32) {
    %c0_i32 = arith.constant 0 : i32
    %c0_i32_0 = arith.constant 0 : i32
    %c0_i32_1 = arith.constant 0 : i32
    return %c0_i32, %c0_i32_0 : i32, i32
  }
  func.func @transform_13(%arg0: i32) -> (i32, i32) {
    %c0_i32 = arith.constant 0 : i32
    %c0_i32_0 = arith.constant 0 : i32
    %c0_i32_1 = arith.constant 0 : i32
    return %c0_i32, %c0_i32_0 : i32, i32
  }
  func.func @transform_14(%arg0: i32) -> (i32, i32) {
    %c0_i32 = arith.constant 0 : i32
    %c0_i32_0 = arith.constant 0 : i32
    %c0_i32_1 = arith.constant 0 : i32
    return %c0_i32, %c0_i32_0 : i32, i32
  }
  func.func @transform_15(%arg0: i32) -> (i32, i32) {
    %c0_i32 = arith.constant 0 : i32
    %c0_i32_0 = arith.constant 0 : i32
    %c0_i32_1 = arith.constant 0 : i32
    return %c0_i32, %c0_i32_0 : i32, i32
  }
  func.func @transform_16(%arg0: i32) -> (i32, i32) {
    %c0_i32 = arith.constant 0 : i32
    %c0_i32_0 = arith.constant 0 : i32
    %c0_i32_1 = arith.constant 0 : i32
    return %c0_i32, %c0_i32_0 : i32, i32
  }
  func.func @transform_17(%arg0: i32) -> (i32, i32) {
    %c0_i32 = arith.constant 0 : i32
    %c0_i32_0 = arith.constant 0 : i32
    %c0_i32_1 = arith.constant 0 : i32
    return %c0_i32, %c0_i32_0 : i32, i32
  }
  func.func @transform_18(%arg0: i32) -> (i32, i32) {
    %c0_i32 = arith.constant 0 : i32
    %c0_i32_0 = arith.constant 0 : i32
    %c0_i32_1 = arith.constant 0 : i32
    return %c0_i32, %c0_i32_0 : i32, i32
  }
  func.func @transform_19(%arg0: i32) -> (i32, i32) {
    %c0_i32 = arith.constant 0 : i32
    %c0_i32_0 = arith.constant 0 : i32
    %c0_i32_1 = arith.constant 0 : i32
    return %c0_i32, %c0_i32_0 : i32, i32
  }
  func.func @transform_20(%arg0: i32) -> (i32, i32) {
    %c0_i32 = arith.constant 0 : i32
    %c0_i32_0 = arith.constant 0 : i32
    %c0_i32_1 = arith.constant 0 : i32
    return %c0_i32, %c0_i32_0 : i32, i32
  }
  func.func @transform_21(%arg0: i32) -> (i32, i32) {
    %c0_i32 = arith.constant 0 : i32
    %c0_i32_0 = arith.constant 0 : i32
    %c0_i32_1 = arith.constant 0 : i32
    return %c0_i32, %c0_i32_0 : i32, i32
  }
  func.func @transform_22(%arg0: i32) -> (i32, i32) {
    %c0_i32 = arith.constant 0 : i32
    %c0_i32_0 = arith.constant 0 : i32
    %c0_i32_1 = arith.constant 0 : i32
    return %c0_i32, %c0_i32_0 : i32, i32
  }
  func.func @transform_23(%arg0: i32) -> (i32, i32) {
    %c0_i32 = arith.constant 0 : i32
    %c0_i32_0 = arith.constant 0 : i32
    %c0_i32_1 = arith.constant 0 : i32
    return %c0_i32, %c0_i32_0 : i32, i32
  }
  func.func @transform_24(%arg0: i32) -> (i32, i32) {
    %c0_i32 = arith.constant 0 : i32
    %c0_i32_0 = arith.constant 0 : i32
    %c0_i32_1 = arith.constant 0 : i32
    return %c0_i32, %c0_i32_0 : i32, i32
  }
  func.func @transform_25(%arg0: i32) -> (i32, i32) {
    %c0_i32 = arith.constant 0 : i32
    %c0_i32_0 = arith.constant 0 : i32
    %c0_i32_1 = arith.constant 0 : i32
    return %c0_i32, %c0_i32_0 : i32, i32
  }
  func.func @transform_26(%arg0: i32) -> (i32, i32) {
    %c0_i32 = arith.constant 0 : i32
    %c0_i32_0 = arith.constant 0 : i32
    %c0_i32_1 = arith.constant 0 : i32
    return %c0_i32, %c0_i32_0 : i32, i32
  }
  func.func @transform_27(%arg0: i32) -> (i32, i32) {
    %c0_i32 = arith.constant 0 : i32
    %c0_i32_0 = arith.constant 0 : i32
    %c0_i32_1 = arith.constant 0 : i32
    return %c0_i32, %c0_i32_0 : i32, i32
  }
  func.func @transform_28(%arg0: i32) -> (i32, i32) {
    %c0_i32 = arith.constant 0 : i32
    %c0_i32_0 = arith.constant 0 : i32
    %c0_i32_1 = arith.constant 0 : i32
    return %c0_i32, %c0_i32_0 : i32, i32
  }
  func.func @transform_29(%arg0: i32) -> (i32, i32) {
    %c0_i32 = arith.constant 0 : i32
    %c0_i32_0 = arith.constant 0 : i32
    %c0_i32_1 = arith.constant 0 : i32
    return %c0_i32, %c0_i32_0 : i32, i32
  }
  func.func @transform_30(%arg0: i32) -> (i32, i32) {
    %c0_i32 = arith.constant 0 : i32
    %c0_i32_0 = arith.constant 0 : i32
    %c0_i32_1 = arith.constant 0 : i32
    return %c0_i32, %c0_i32_0 : i32, i32
  }
  func.func @transform_31(%arg0: i32) -> (i32, i32) {
    %c0_i32 = arith.constant 0 : i32
    %c0_i32_0 = arith.constant 0 : i32
    %c0_i32_1 = arith.constant 0 : i32
    return %c0_i32, %c0_i32_0 : i32, i32
  }
  func.func @transform_32(%arg0: i32) -> (i32, i32) {
    %c0_i32 = arith.constant 0 : i32
    %c0_i32_0 = arith.constant 0 : i32
    %c0_i32_1 = arith.constant 0 : i32
    return %c0_i32, %c0_i32_0 : i32, i32
  }
  func.func @transform_33(%arg0: i32) -> (i32, i32) {
    %c0_i32 = arith.constant 0 : i32
    %c0_i32_0 = arith.constant 0 : i32
    %c0_i32_1 = arith.constant 0 : i32
    return %c0_i32, %c0_i32_0 : i32, i32
  }
  func.func @transform_34(%arg0: i32) -> (i32, i32) {
    %c0_i32 = arith.constant 0 : i32
    %c0_i32_0 = arith.constant 0 : i32
    %c0_i32_1 = arith.constant 0 : i32
    return %c0_i32, %c0_i32_0 : i32, i32
  }
  func.func @transform_35(%arg0: i32) -> (i32, i32) {
    %c0_i32 = arith.constant 0 : i32
    %c0_i32_0 = arith.constant 0 : i32
    %c0_i32_1 = arith.constant 0 : i32
    return %c0_i32, %c0_i32_0 : i32, i32
  }
  func.func @transform_36(%arg0: i32) -> (i32, i32) {
    %c0_i32 = arith.constant 0 : i32
    %c0_i32_0 = arith.constant 0 : i32
    %c0_i32_1 = arith.constant 0 : i32
    return %c0_i32, %c0_i32_0 : i32, i32
  }
  func.func @transform_37(%arg0: i32) -> (i32, i32) {
    %c0_i32 = arith.constant 0 : i32
    %c0_i32_0 = arith.constant 0 : i32
    %c0_i32_1 = arith.constant 0 : i32
    return %c0_i32, %c0_i32_0 : i32, i32
  }
  func.func @transform_38(%arg0: i32) -> (i32, i32) {
    %c0_i32 = arith.constant 0 : i32
    %c0_i32_0 = arith.constant 0 : i32
    %c0_i32_1 = arith.constant 0 : i32
    return %c0_i32, %c0_i32_0 : i32, i32
  }
  func.func @transform_39(%arg0: i32) -> (i32, i32) {
    %c0_i32 = arith.constant 0 : i32
    %c0_i32_0 = arith.constant 0 : i32
    %c0_i32_1 = arith.constant 0 : i32
    return %c0_i32, %c0_i32_0 : i32, i32
  }
  func.func @transform_40(%arg0: i32) -> (i32, i32) {
    %c0_i32 = arith.constant 0 : i32
    %c0_i32_0 = arith.constant 0 : i32
    %c0_i32_1 = arith.constant 0 : i32
    return %c0_i32, %c0_i32_0 : i32, i32
  }
  func.func @transform_41(%arg0: i32) -> (i32, i32) {
    %c0_i32 = arith.constant 0 : i32
    %c0_i32_0 = arith.constant 0 : i32
    %c0_i32_1 = arith.constant 0 : i32
    return %c0_i32, %c0_i32_0 : i32, i32
  }
  func.func @transform_42(%arg0: i32) -> (i32, i32) {
    %c0_i32 = arith.constant 0 : i32
    %c0_i32_0 = arith.constant 0 : i32
    %c0_i32_1 = arith.constant 0 : i32
    return %c0_i32, %c0_i32_0 : i32, i32
  }
  func.func @transform_43(%arg0: i32) -> (i32, i32) {
    %c0_i32 = arith.constant 0 : i32
    %c0_i32_0 = arith.constant 0 : i32
    %c0_i32_1 = arith.constant 0 : i32
    return %c0_i32, %c0_i32_0 : i32, i32
  }
  func.func @transform_44(%arg0: i32) -> (i32, i32) {
    %c0_i32 = arith.constant 0 : i32
    %c0_i32_0 = arith.constant 0 : i32
    %c0_i32_1 = arith.constant 0 : i32
    return %c0_i32, %c0_i32_0 : i32, i32
  }
  func.func @transform_45(%arg0: i32) -> (i32, i32) {
    %c0_i32 = arith.constant 0 : i32
    %c0_i32_0 = arith.constant 0 : i32
    %c0_i32_1 = arith.constant 0 : i32
    return %c0_i32, %c0_i32_0 : i32, i32
  }
  func.func @transform_46(%arg0: i32) -> (i32, i32) {
    %c0_i32 = arith.constant 0 : i32
    %c0_i32_0 = arith.constant 0 : i32
    %c0_i32_1 = arith.constant 0 : i32
    return %c0_i32, %c0_i32_0 : i32, i32
  }
  func.func @transform_47(%arg0: i32) -> (i32, i32) {
    %c0_i32 = arith.constant 0 : i32
    %c0_i32_0 = arith.constant 0 : i32
    %c0_i32_1 = arith.constant 0 : i32
    return %c0_i32, %c0_i32_0 : i32, i32
  }
  func.func @transform_48(%arg0: i32) -> (i32, i32) {
    %c0_i32 = arith.constant 0 : i32
    %c0_i32_0 = arith.constant 0 : i32
    %c0_i32_1 = arith.constant 0 : i32
    return %c0_i32, %c0_i32_0 : i32, i32
  }
  func.func @transform_49(%arg0: i32) -> (i32, i32) {
    %c0_i32 = arith.constant 0 : i32
    %c0_i32_0 = arith.constant 0 : i32
    %c0_i32_1 = arith.constant 0 : i32
    return %c0_i32, %c0_i32_0 : i32, i32
  }
  func.func @transform_50(%arg0: i32) -> (i32, i32) {
    %c0_i32 = arith.constant 0 : i32
    %c0_i32_0 = arith.constant 0 : i32
    %c0_i32_1 = arith.constant 0 : i32
    return %c0_i32, %c0_i32_0 : i32, i32
  }
  func.func @transform_51(%arg0: i32) -> (i32, i32) {
    %c0_i32 = arith.constant 0 : i32
    %c0_i32_0 = arith.constant 0 : i32
    %c0_i32_1 = arith.constant 0 : i32
    return %c0_i32, %c0_i32_0 : i32, i32
  }
  func.func @transform_52(%arg0: i32) -> (i32, i32) {
    %c0_i32 = arith.constant 0 : i32
    %c0_i32_0 = arith.constant 0 : i32
    %c0_i32_1 = arith.constant 0 : i32
    return %c0_i32, %c0_i32_0 : i32, i32
  }
  func.func @transform_53(%arg0: i32) -> (i32, i32) {
    %c0_i32 = arith.constant 0 : i32
    %c0_i32_0 = arith.constant 0 : i32
    %c0_i32_1 = arith.constant 0 : i32
    return %c0_i32, %c0_i32_0 : i32, i32
  }
  func.func @transform_54(%arg0: i32) -> (i32, i32) {
    %c0_i32 = arith.constant 0 : i32
    %c0_i32_0 = arith.constant 0 : i32
    %c0_i32_1 = arith.constant 0 : i32
    return %c0_i32, %c0_i32_0 : i32, i32
  }
  func.func @transform_55(%arg0: i32) -> (i32, i32) {
    %c0_i32 = arith.constant 0 : i32
    %c0_i32_0 = arith.constant 0 : i32
    %c0_i32_1 = arith.constant 0 : i32
    return %c0_i32, %c0_i32_0 : i32, i32
  }
  func.func @transform_56(%arg0: i32) -> (i32, i32) {
    %c0_i32 = arith.constant 0 : i32
    %c0_i32_0 = arith.constant 0 : i32
    %c0_i32_1 = arith.constant 0 : i32
    return %c0_i32, %c0_i32_0 : i32, i32
  }
  func.func @transform_57(%arg0: i32) -> (i32, i32) {
    %c0_i32 = arith.constant 0 : i32
    %c0_i32_0 = arith.constant 0 : i32
    %c0_i32_1 = arith.constant 0 : i32
    return %c0_i32, %c0_i32_0 : i32, i32
  }
  func.func @transform_58(%arg0: i32) -> (i32, i32) {
    %c0_i32 = arith.constant 0 : i32
    %c0_i32_0 = arith.constant 0 : i32
    %c0_i32_1 = arith.constant 0 : i32
    return %c0_i32, %c0_i32_0 : i32, i32
  }
  func.func @transform_59(%arg0: i32) -> (i32, i32) {
    %c0_i32 = arith.constant 0 : i32
    %c0_i32_0 = arith.constant 0 : i32
    %c0_i32_1 = arith.constant 0 : i32
    return %c0_i32, %c0_i32_0 : i32, i32
  }
  func.func @transform_60(%arg0: i32) -> (i32, i32) {
    %c0_i32 = arith.constant 0 : i32
    %c0_i32_0 = arith.constant 0 : i32
    %c0_i32_1 = arith.constant 0 : i32
    return %c0_i32, %c0_i32_0 : i32, i32
  }
  func.func @transform_61(%arg0: i32) -> (i32, i32) {
    %c0_i32 = arith.constant 0 : i32
    %c0_i32_0 = arith.constant 0 : i32
    %c0_i32_1 = arith.constant 0 : i32
    return %c0_i32, %c0_i32_0 : i32, i32
  }
  func.func @transform_62(%arg0: i32) -> (i32, i32) {
    %c0_i32 = arith.constant 0 : i32
    %c0_i32_0 = arith.constant 0 : i32
    %c0_i32_1 = arith.constant 0 : i32
    return %c0_i32, %c0_i32_0 : i32, i32
  }
  func.func @transform_63(%arg0: i32) -> (i32, i32) {
    %c0_i32 = arith.constant 0 : i32
    %c0_i32_0 = arith.constant 0 : i32
    %c0_i32_1 = arith.constant 0 : i32
    return %c0_i32, %c0_i32_0 : i32, i32
  }
  func.func @transform_64(%arg0: i32) -> (i32, i32) {
    %c0_i32 = arith.constant 0 : i32
    %c0_i32_0 = arith.constant 0 : i32
    %c0_i32_1 = arith.constant 0 : i32
    return %c0_i32, %c0_i32_0 : i32, i32
  }
  func.func @transform_65(%arg0: i32) -> (i32, i32) {
    %c0_i32 = arith.constant 0 : i32
    %c0_i32_0 = arith.constant 0 : i32
    %c0_i32_1 = arith.constant 0 : i32
    return %c0_i32, %c0_i32_0 : i32, i32
  }
  func.func @transform_66(%arg0: i32) -> (i32, i32) {
    %c0_i32 = arith.constant 0 : i32
    %c0_i32_0 = arith.constant 0 : i32
    %c0_i32_1 = arith.constant 0 : i32
    return %c0_i32, %c0_i32_0 : i32, i32
  }
  func.func @transform_67(%arg0: i32) -> (i32, i32) {
    %c0_i32 = arith.constant 0 : i32
    %c0_i32_0 = arith.constant 0 : i32
    %c0_i32_1 = arith.constant 0 : i32
    return %c0_i32, %c0_i32_0 : i32, i32
  }
  func.func @transform_68(%arg0: i32) -> (i32, i32) {
    %c0_i32 = arith.constant 0 : i32
    %c0_i32_0 = arith.constant 0 : i32
    %c0_i32_1 = arith.constant 0 : i32
    return %c0_i32, %c0_i32_0 : i32, i32
  }
  func.func @transform_69(%arg0: i32) -> (i32, i32) {
    %c0_i32 = arith.constant 0 : i32
    %c0_i32_0 = arith.constant 0 : i32
    %c0_i32_1 = arith.constant 0 : i32
    return %c0_i32, %c0_i32_0 : i32, i32
  }
  func.func @transform_70(%arg0: i32) -> (i32, i32) {
    %c0_i32 = arith.constant 0 : i32
    %c0_i32_0 = arith.constant 0 : i32
    %c0_i32_1 = arith.constant 0 : i32
    return %c0_i32, %c0_i32_0 : i32, i32
  }
  func.func @transform_71(%arg0: i32) -> (i32, i32) {
    %c0_i32 = arith.constant 0 : i32
    %c0_i32_0 = arith.constant 0 : i32
    %c0_i32_1 = arith.constant 0 : i32
    return %c0_i32, %c0_i32_0 : i32, i32
  }
  func.func @transform_72(%arg0: i32) -> (i32, i32) {
    %c0_i32 = arith.constant 0 : i32
    %c0_i32_0 = arith.constant 0 : i32
    %c0_i32_1 = arith.constant 0 : i32
    return %c0_i32, %c0_i32_0 : i32, i32
  }
  func.func @transform_73(%arg0: i32) -> (i32, i32) {
    %c0_i32 = arith.constant 0 : i32
    %c0_i32_0 = arith.constant 0 : i32
    %c0_i32_1 = arith.constant 0 : i32
    return %c0_i32, %c0_i32_0 : i32, i32
  }
  func.func @transform_74(%arg0: i32) -> (i32, i32) {
    %c0_i32 = arith.constant 0 : i32
    %c0_i32_0 = arith.constant 0 : i32
    %c0_i32_1 = arith.constant 0 : i32
    return %c0_i32, %c0_i32_0 : i32, i32
  }
  func.func @transform_75(%arg0: i32) -> (i32, i32, i32) {
    %c0_i32 = arith.constant 0 : i32
    %c0_i32_0 = arith.constant 0 : i32
    %c0_i32_1 = arith.constant 0 : i32
    return %arg0, %c0_i32, %c0_i32_0 : i32, i32, i32
  }
}

</mosaic_0001>

<bundles_post_ra>
// kernel: tpu_custom_call.1
= control target key start
LH: loop header
LB: loop body
LE: loop exit
PB: predicated region body
PF: predicated region fallthrough
CT: control target
= control target key end

     0   :  { %s14947_s6 = smov 1   ;;  %s14948_s10 = smov 2   ;;  %s17016_s0 = inlined_call_operand.smem [shape: u32[76], index: -1, kind: input, shape index: {}] }
   0x1   :  { %s15082_s5 = sld [smem:[%s17016_s0]]   ;;  %s14949_s14 = smov 3  }
   0x2   :  { %s15087_s9 = sld [smem:[%s17016_s0 + %s14947_s6]]   ;;  %s14950_s18 = smov 4  }
   0x3   :  { %s15092_s13 = sld [smem:[%s17016_s0 + %s14948_s10]]   ;;  %s14951_s22 = smov 5  }
   0x4   :  { %s15097_s17 = sld [smem:[%s17016_s0 + %s14949_s14]]   ;;  %s14952_s26 = smov 6  }
   0x5   :  { %s15102_s21 = sld [smem:[%s17016_s0 + %s14950_s18]]   ;;  %s14953_s30 = smov 7  }
   0x6   :  { %s15107_s25 = sld [smem:[%s17016_s0 + %s14951_s22]]   ;;  %s14954_s4 = smov 8  }
   0x7   :  { %17150 = sst [smem:[#allocation74_spill]] %s15082_s5  ;;  %s14955_s10 = smov 9  }
   0x8   :  { %17151 = sst [smem:[#allocation75_spill]] %s15087_s9  ;;  %s14956_s15 = smov 10  }
   0x9   :  { %17152 = sst [smem:[#allocation76_spill]] %s15092_s13  ;;  %s14957_s20 = smov 11  }
   0xa   :  { %s15112_s29 = sld [smem:[%s17016_s0 + %s14952_s26]]   ;;  %s14958_s26 = smov 12  }
   0xb   :  { %s15117_s3 = sld [smem:[%s17016_s0 + %s14953_s30]]   ;;  %s14959_s1 = smov 13  }
   0xc   :  { %17153 = sst [smem:[#allocation77_spill]] %s15107_s25  ;;  %s14960_s7 = smov 14  }
   0xd   :  { %s15122_s8 = sld [smem:[%s17016_s0 + %s14954_s4]]   ;;  %s14962_s22 = smov 16  }
   0xe   :  { %s15127_s14 = sld [smem:[%s17016_s0 + %s14955_s10]]   ;;  %s14963_s28 = smov 17  }
   0xf   :  { %s15132_s19 = sld [smem:[%s17016_s0 + %s14956_s15]]   ;;  %s14961_s15 = smov 15  }
  0x10   :  { %s15137_s24 = sld [smem:[%s17016_s0 + %s14957_s20]]  }
  0x11   :  { %17154 = sst [smem:[#allocation78_spill]] %s15117_s3 }
  0x12   :  { %s15142_s30 = sld [smem:[%s17016_s0 + %s14958_s26]]  }
  0x13   :  { %17155 = sst [smem:[#allocation79_spill]] %s15122_s8 }
  0x14   :  { %17156 = sst [smem:[#allocation80_spill]] %s15127_s14 }
  0x15   :  { %17157 = sst [smem:[#allocation81_spill]] %s15132_s19 }
  0x16   :  { %17158 = sst [smem:[#allocation82_spill]] %s15137_s24 }
  0x17   :  { %s15147_s6 = sld [smem:[%s17016_s0 + %s14959_s1]]  }
  0x18   :  { %17159 = sst [smem:[#allocation83_spill]] %s15142_s30 }
  0x19   :  { %s15152_s12 = sld [smem:[%s17016_s0 + %s14960_s7]]   ;;  %s14964_s7 = smov 18  }
  0x1a   :  { %s15157_s20 = sld [smem:[%s17016_s0 + %s14961_s15]]   ;;  %s14965_s15 = smov 19  }
  0x1b   :  { %s15162_s27 = sld [smem:[%s17016_s0 + %s14962_s22]]   ;;  %s14966_s22 = smov 20  }
  0x1c   :  { %s15167_s4 = sld [smem:[%s17016_s0 + %s14963_s28]]   ;;  %s14967_s28 = smov 21  }
  0x1d   :  { %17160 = sst [smem:[#allocation84_spill]] %s15147_s6 }
  0x1e   :  { %s15172_s30 = sld [smem:[%s17016_s0 + %s14964_s7]]   ;;  %s14968_s7 = smov 22  }
  0x1f   :  { %17161 = sst [smem:[#allocation85_spill]] %s15152_s12 }
  0x20   :  { %17162 = sst [smem:[#allocation86_spill]] %s15157_s20 }
  0x21   :  { %17163 = sst [smem:[#allocation87_spill]] %s15162_s27 }
  0x22   :  { %17164 = sst [smem:[#allocation88_spill]] %s15167_s4 }
  0x23   :  { %s15177_s20 = sld [smem:[%s17016_s0 + %s14965_s15]]   ;;  %s14969_s15 = smov 23  }
  0x24   :  { %17165 = sst [smem:[#allocation89_spill]] %s15172_s30 }
  0x25   :  { %s15182_s27 = sld [smem:[%s17016_s0 + %s14966_s22]]   ;;  %s14970_s22 = smov 24  }
  0x26   :  { %s15187_s24 = sld [smem:[%s17016_s0 + %s14967_s28]]   ;;  %s14971_s28 = smov 25  }
  0x27   :  { %s15192_s30 = sld [smem:[%s17016_s0 + %s14968_s7]]   ;;  %s14972_s7 = smov 26  }
  0x28   :  { %s15202_s25 = sld [smem:[%s17016_s0 + %s14970_s22]]   ;;  %s14974_s22 = smov 28  }
  0x29   :  { %17166 = sst [smem:[#allocation90_spill]] %s15177_s20 }
  0x2a   :  { %s15197_s20 = sld [smem:[%s17016_s0 + %s14969_s15]]   ;;  %s14973_s15 = smov 27  }
  0x2b   :  { %17167 = sst [smem:[#allocation91_spill]] %s15182_s27 }
  0x2c   :  { %s15207_s8 = sld [smem:[%s17016_s0 + %s14971_s28]]   ;;  %s14975_s28 = smov 29  }
  0x2d   :  { %17168 = sst [smem:[#allocation92_spill]] %s15192_s30 }
  0x2e   :  { %17169 = sst [smem:[#allocation93_spill]] %s15202_s25 }
  0x2f   :  { %s15212_s30 = sld [smem:[%s17016_s0 + %s14972_s7]]   ;;  %s14976_s7 = smov 30  }
  0x30   :  { %s15217_s27 = sld [smem:[%s17016_s0 + %s14973_s15]]   ;;  %s14977_s15 = smov 31  }
  0x31   :  { %s15222_s25 = sld [smem:[%s17016_s0 + %s14974_s22]]   ;;  %s14978_s22 = smov 32  }
  0x32   :  { %17170 = sst [smem:[#allocation94_spill]] %s15207_s8 }
  0x33   :  { %s15227_s8 = sld [smem:[%s17016_s0 + %s14975_s28]]   ;;  %s14979_s28 = smov 33  }
  0x34   :  { %s15237_s12 = sld [smem:[%s17016_s0 + %s14977_s15]]   ;;  %s14981_s15 = smov 35  }
  0x35   :  { %17171 = sst [smem:[#allocation95_spill]] %s15212_s30 }
  0x36   :  { %s15232_s30 = sld [smem:[%s17016_s0 + %s14976_s7]]   ;;  %s14980_s7 = smov 34  }
  0x37   :  { %17172 = sst [smem:[#allocation96_spill]] %s15222_s25 }
  0x38   :  { %s15242_s25 = sld [smem:[%s17016_s0 + %s14978_s22]]   ;;  %s14982_s22 = smov 36  }
  0x39   :  { %17173 = sst [smem:[#allocation97_spill]] %s15227_s8 }
  0x3a   :  { %17175 = sst [smem:[#allocation99_spill]] %s15237_s12 }
  0x3b   :  { %s15247_s8 = sld [smem:[%s17016_s0 + %s14979_s28]]   ;;  %s14983_s28 = smov 37  }
  0x3c   :  { %17174 = sst [smem:[#allocation98_spill]] %s15232_s30 }
  0x3d   :  { %s15252_s30 = sld [smem:[%s17016_s0 + %s14980_s7]]   ;;  %s14984_s7 = smov 38  }
  0x3e   :  { %17176 = sst [smem:[#allocation100_spill]] %s15242_s25 }
  0x3f   :  { %s15257_s19 = sld [smem:[%s17016_s0 + %s14981_s15]]   ;;  %s14985_s15 = smov 39  }
  0x40   :  { %s15262_s25 = sld [smem:[%s17016_s0 + %s14982_s22]]   ;;  %s14986_s22 = smov 40  }
  0x41   :  { %17177 = sst [smem:[#allocation101_spill]] %s15247_s8 }
  0x42   :  { %s15267_s8 = sld [smem:[%s17016_s0 + %s14983_s28]]   ;;  %s14987_s28 = smov 41  }
  0x43   :  { %17178 = sst [smem:[#allocation102_spill]] %s15252_s30 }
  0x44   :  { %s15272_s30 = sld [smem:[%s17016_s0 + %s14984_s7]]   ;;  %s14988_s7 = smov 42  }
  0x45   :  { %s15277_s14 = sld [smem:[%s17016_s0 + %s14985_s15]]   ;;  %s14989_s15 = smov 43  }
  0x46   :  { %17179 = sst [smem:[#allocation103_spill]] %s15262_s25 }
  0x47   :  { %s15282_s25 = sld [smem:[%s17016_s0 + %s14986_s22]]   ;;  %s14990_s22 = smov 44  }
  0x48   :  { %17180 = sst [smem:[#allocation104_spill]] %s15267_s8 }
  0x49   :  { %s15287_s3 = sld [smem:[%s17016_s0 + %s14987_s28]]   ;;  %s14991_s28 = smov 45  }
  0x4a   :  { %17181 = sst [smem:[#allocation105_spill]] %s15272_s30 }
  0x4b   :  { %17182 = sst [smem:[#allocation106_spill]] %s15277_s14 }
  0x4c   :  { %s15292_s30 = sld [smem:[%s17016_s0 + %s14988_s7]]   ;;  %s14992_s7 = smov 46  }
  0x4d   :  { %17183 = sst [smem:[#allocation107_spill]] %s15282_s25 }
  0x4e   :  { %s15297_s14 = sld [smem:[%s17016_s0 + %s14989_s15]]   ;;  %s14993_s15 = smov 47  }
  0x4f   :  { %17184 = sst [smem:[#allocation108_spill]] %s15287_s3 }
  0x50   :  { %s15302_s25 = sld [smem:[%s17016_s0 + %s14990_s22]]   ;;  %s14994_s22 = smov 48  }
  0x51   :  { %s15307_s3 = sld [smem:[%s17016_s0 + %s14991_s28]]   ;;  %s14995_s28 = smov 49  }
  0x52   :  { %17185 = sst [smem:[#allocation109_spill]] %s15292_s30 }
  0x53   :  { %s15312_s30 = sld [smem:[%s17016_s0 + %s14992_s7]]   ;;  %s14996_s7 = smov 50  }
  0x54   :  { %17186 = sst [smem:[#allocation110_spill]] %s15297_s14 }
  0x55   :  { %s15317_s14 = sld [smem:[%s17016_s0 + %s14993_s15]]   ;;  %s14997_s15 = smov 51  }
  0x56   :  { %17187 = sst [smem:[#allocation111_spill]] %s15302_s25 }
  0x57   :  { %17188 = sst [smem:[#allocation112_spill]] %s15307_s3 }
  0x58   :  { %s15322_s25 = sld [smem:[%s17016_s0 + %s14994_s22]]   ;;  %s14998_s22 = smov 52  }
  0x59   :  { %17189 = sst [smem:[#allocation113_spill]] %s15312_s30 }
  0x5a   :  { %s15327_s3 = sld [smem:[%s17016_s0 + %s14995_s28]]   ;;  %s14999_s28 = smov 53  }
  0x5b   :  { %17190 = sst [smem:[#allocation114_spill]] %s15317_s14 }
  0x5c   :  { %s15332_s30 = sld [smem:[%s17016_s0 + %s14996_s7]]   ;;  %s15000_s7 = smov 54  }
  0x5d   :  { %s15337_s14 = sld [smem:[%s17016_s0 + %s14997_s15]]   ;;  %s15001_s15 = smov 55  }
  0x5e   :  { %17191 = sst [smem:[#allocation115_spill]] %s15322_s25 }
  0x5f   :  { %s15342_s25 = sld [smem:[%s17016_s0 + %s14998_s22]]   ;;  %s15002_s22 = smov 56  }
  0x60   :  { %17192 = sst [smem:[#allocation116_spill]] %s15327_s3 }
  0x61   :  { %s15347_s3 = sld [smem:[%s17016_s0 + %s14999_s28]]   ;;  %s15003_s28 = smov 57  }
  0x62   :  { %17193 = sst [smem:[#allocation117_spill]] %s15332_s30 }
  0x63   :  { %17194 = sst [smem:[#allocation118_spill]] %s15337_s14 }
  0x64   :  { %s15352_s30 = sld [smem:[%s17016_s0 + %s15000_s7]]   ;;  %s15004_s7 = smov 58  }
  0x65   :  { %17195 = sst [smem:[#allocation119_spill]] %s15342_s25 }
  0x66   :  { %s15357_s14 = sld [smem:[%s17016_s0 + %s15001_s15]]   ;;  %s15005_s15 = smov 59  }
  0x67   :  { %17196 = sst [smem:[#allocation120_spill]] %s15347_s3 }
  0x68   :  { %s15362_s25 = sld [smem:[%s17016_s0 + %s15002_s22]]   ;;  %s15006_s22 = smov 60  }
  0x69   :  { %s15367_s3 = sld [smem:[%s17016_s0 + %s15003_s28]]   ;;  %s15007_s28 = smov 61  }
  0x6a   :  { %17197 = sst [smem:[#allocation121_spill]] %s15352_s30 }
  0x6b   :  { %s15372_s30 = sld [smem:[%s17016_s0 + %s15004_s7]]   ;;  %s15008_s7 = smov 62  }
  0x6c   :  { %17198 = sst [smem:[#allocation122_spill]] %s15357_s14 }
  0x6d   :  { %s15377_s14 = sld [smem:[%s17016_s0 + %s15005_s15]]   ;;  %s15009_s15 = smov 63  }
  0x6e   :  { %17199 = sst [smem:[#allocation123_spill]] %s15362_s25 }
  0x6f   :  { %17200 = sst [smem:[#allocation124_spill]] %s15367_s3 }
  0x70   :  { %s15382_s25 = sld [smem:[%s17016_s0 + %s15006_s22]]   ;;  %s15010_s22 = smov 64  }
  0x71   :  { %17201 = sst [smem:[#allocation125_spill]] %s15372_s30 }
  0x72   :  { %s15387_s3 = sld [smem:[%s17016_s0 + %s15007_s28]]   ;;  %s15011_s28 = smov 65  }
  0x73   :  { %17202 = sst [smem:[#allocation126_spill]] %s15377_s14 }
  0x74   :  { %s15392_s30 = sld [smem:[%s17016_s0 + %s15008_s7]]   ;;  %s15012_s7 = smov 66  }
  0x75   :  { %s15397_s14 = sld [smem:[%s17016_s0 + %s15009_s15]]   ;;  %s15013_s15 = smov 67  }
  0x76   :  { %17203 = sst [smem:[#allocation127_spill]] %s15382_s25 }
  0x77   :  { %s15402_s25 = sld [smem:[%s17016_s0 + %s15010_s22]]   ;;  %s15014_s22 = smov 68  }
  0x78   :  { %17204 = sst [smem:[#allocation128_spill]] %s15387_s3 }
  0x79   :  { %s15407_s3 = sld [smem:[%s17016_s0 + %s15011_s28]]   ;;  %s15015_s28 = smov 69  }
  0x7a   :  { %17205 = sst [smem:[#allocation129_spill]] %s15392_s30 }
  0x7b   :  { %17206 = sst [smem:[#allocation130_spill]] %s15397_s14 }
  0x7c   :  { %s15412_s30 = sld [smem:[%s17016_s0 + %s15012_s7]]   ;;  %s15016_s7 = smov 70  }
  0x7d   :  { %17207 = sst [smem:[#allocation131_spill]] %s15402_s25 }
  0x7e   :  { %s15417_s14 = sld [smem:[%s17016_s0 + %s15013_s15]]   ;;  %s15017_s15 = smov 71  }
  0x7f   :  { %17208 = sst [smem:[#allocation132_spill]] %s15407_s3 }
  0x80   :  { %s15422_s25 = sld [smem:[%s17016_s0 + %s15014_s22]]   ;;  %s15018_s22 = smov 72  }
  0x81   :  { %s15427_s3 = sld [smem:[%s17016_s0 + %s15015_s28]]   ;;  %s15019_s28 = smov 73  }
  0x82   :  { %17209 = sst [smem:[#allocation133_spill]] %s15412_s30 }
  0x83   :  { %s15432_s30 = sld [smem:[%s17016_s0 + %s15016_s7]]   ;;  %s15020_s7 = smov 74  }
  0x84   :  { %17210 = sst [smem:[#allocation134_spill]] %s15417_s14 }
  0x85   :  { %s15437_s14 = sld [smem:[%s17016_s0 + %s15017_s15]]   ;;  %s15021_s15 = smov 75  }
  0x86   :  { %17211 = sst [smem:[#allocation135_spill]] %s15422_s25 }
  0x87   :  { %17212 = sst [smem:[#allocation136_spill]] %s15427_s3 }
  0x88   :  { %s15442_s25 = sld [smem:[%s17016_s0 + %s15018_s22]]  }
  0x89   :  { %17213 = sst [smem:[#allocation137_spill]] %s15432_s30 }
  0x8a   :  { %s15447_s3 = sld [smem:[%s17016_s0 + %s15019_s28]]  }
  0x8b   :  { %17214 = sst [smem:[#allocation138_spill]] %s15437_s14 }
  0x8c   :  { %s15452_s30 = sld [smem:[%s17016_s0 + %s15020_s7]]  }
  0x8d   :  { %s15457_s14 = sld [smem:[%s17016_s0 + %s15021_s15]]  }
  0x8e   :  { %17215 = sst [smem:[#allocation139_spill]] %s15442_s25 }
  0x90   :  { %17216 = sst [smem:[#allocation140_spill]] %s15447_s3 }
  0x92   :  { %17217 = sst [smem:[#allocation141_spill]] %s15452_s30 }
  0x93   :  { %17218 = sst [smem:[#allocation142_spill]] %s15457_s14 }
  0x94   :  { %156 = vsyncpa [#allocation3], 0 }
  0x95   :  { %158 = vsyncpa [#allocation3 + $0x1], 0 }
  0x96   :  { %159 = vsyncpa [#allocation6], 0 }
  0x97   :  { %160 = vsyncpa [#allocation9], 0 }
  0x98   :  { %161 = vsyncpa [#allocation17], 0 }
  0x99   :  { %162 = vsyncpa [#allocation20], 0 }
  0x9a   :  { %163 = vsyncpa [#allocation23], 0 }
  0x9b   :  { %164 = vsyncpa [#allocation26], 0 }
  0x9c   :  { %165 = vsyncpa [#allocation29], 0 }
  0x9d   :  { %166 = vsyncpa [#allocation32], 0 }
  0x9e   :  { %167 = vsyncpa [#allocation35], 0 }
  0x9f   :  { %168 = vsyncpa [#allocation38], 0 }
  0xa0   :  { %169 = vsyncpa [#allocation41], 0 }
  0xa1   :  { %170 = vsyncpa [#allocation44], 0 }
  0xa2   :  { %171 = vsyncpa [#allocation47], 0 }
  0xa3   :  { %172 = vsyncpa [#allocation50], 0 }
  0xa4   :  { %173 = vsyncpa [#allocation4], 0 }
  0xa5   :  { %175 = vsyncpa [#allocation4 + $0x1], 0  ;;  %s15459_s0 = smov 0   ;;  %s15461_s22 = smov 0  }
  0xa6   :  { %s15463_s23 = smov 0   ;;  %s15465_s26 = smov 0  }
  0xa7 LB: > { %s17219_s3 = sld [smem:[#allocation140_spill]]  ;;  %s17221_s12 = sld [smem:[#allocation99_spill]]  ;;  %s14945_s26 = sphi %s15465_s26, %s17394_s26   ;;  %s14941_s23 = sphi %s15463_s23, %s17397_s23   ;;  %s14937_s22 = sphi %s15461_s22, %s17396_s22   ;;  %s14933_s0 = sphi %s15459_s0, %s17395_s0  }
  0xa8   : > { %s17220_s13 = sld [smem:[#allocation76_spill]]  ;;  %s17222_s8 = sld [smem:[#allocation104_spill]] }
  0xa9   : > { %s17223_s6 = sld [smem:[#allocation84_spill]]  ;;  %s17224_s4 = sld [smem:[#allocation88_spill]] }
  0xaa   : > { %s17225_s5 = sld [smem:[#allocation74_spill]]  ;;  %s17226_s9 = sld [smem:[#allocation75_spill]] }
  0xab   : > { %17227 = sst [smem:[#allocation143_spill]] %s14933_s0  ;;  %s15022_s28 = smov [#allocation5]  }
  0xac   : > { %17228 = sst [smem:[#allocation144_spill]] %s14937_s22  ;;  %s1824_s1 = sshll.u32 %s15022_s28, 4  ;;  %s1825_s1 = int_to_ptr.vmem [resolvable:$true] %s1824_s1 }
  0xad   : > { %17229 = sst [smem:[#allocation145_spill]] %s14941_s23  ;;  %s15480_s2 = sadd.s32 4294967295, %s14945_s26  }
  0xae   : > { %17230 = sst [smem:[#allocation146_spill]] %s15480_s2  ;;  %p11484_p0 = scmp.ge.s32.totalorder %s14945_s26, 1 }
  0xaf   : > { %p17056_p1 = scmp.eq.s32.totalorder %s15480_s2, 0  ;;  %p1812_p2 = scmp.lt.s32.totalorder %s14945_s26, 3 }
  0xb0   : > { %s13843_s15 = scalar_lea.hbm %s17226_s9, 256 }
  0xb1   : > { %p15485_p3 = pnand %p11484_p0, %p1812_p2  ;;  %p13844_p7 = scmp.ne.s32.totalorder %s17226_s9, %s13843_s15 }
  0xb2   : > { %p13850_p11 = scmp.lt.u32.totalorder %s13843_s15, %s17226_s9 }
  0xb3   : > { %s17231_s7 = scalar_select %p15485_p3, 1, 0 }
  0xb4   : > { %p13186_p5 = pneg %p15485_p3 }
  0xb5   : > { %17232 = sst [smem:[#allocation147_spill]] %s17231_s7 }
  0xb6   : > { %p15494_p6 = pnand %p13186_p5, %p17056_p1 }
  0xb8   : > { %s17233_s10 = scalar_select %p15494_p6, 1, 0 }
  0xb9   : > { %p15503_p8 = pneg %p15494_p6 }
  0xbb   : > { %s17234_s16 = scalar_select %p15503_p8, 1, 0 }
  0xbc   : > { %p13846_p9 = pnand %p15503_p8, %p13844_p7 }
  0xbe   : > { %p13847_p10 = pneg %p13846_p9 }
  0xc0   : > { %p13852_p12 = pnand %p13850_p11, %p13847_p10 }
  0xc2   : > { %13855 = shalt.err (!%p13852_p12)
}
  0xc3   : > { %s13856_s18 = scalar_lea.vmem %s1825_s1, 256  ;;  %p13864_p5 = scmp.lt.s32.totalorder %s1825_s1, %s1825_s1 }
  0xc4   : > { %p13857_p13 = scmp.ne.s32.totalorder %s1825_s1, %s13856_s18  ;;  %p13865_p4 = scmp.lt.s32.totalorder %s13856_s18, %s13856_s18 }
  0xc6   : > { %p13859_p0 = pnand %p13857_p13, %p15503_p8  ;;  %p13866_p1 = por %p13865_p4, %p13864_p5 }
  0xc8   : > { %p13860_p2 = pneg %p13859_p0 }
  0xca   : > { %p13867_p3 = pnand %p13866_p1, %p13860_p2 }
  0xcc   : > { %13870 = shalt.err (!%p13867_p3)
}
  0xcd   : > { %s17060_s28 = smov 128   ;;  %s17061_s15 = smov 8  }
  0xce   : > { %13189 = dma.hbm_to_vmem [thread:$0]  (!%p15494_p6), %s17226_s9, 256, %s1825_s1, [#allocation6], %s17060_s28, %s17060_s28, %s17061_s15  }
  0xcf   : > { %s15519_s18 = sadd.s32 1, %s14945_s26   ;;  %s188_s11 = sadd.s32 1, %s14941_s23 }
  0xd0   : > { %17235 = sst [smem:[#allocation148_spill]] %s15519_s18  ;;  %s185_s14 = ssub.s32 %s14945_s26, %s15519_s18 }
  0xd1   : > { %p195_p1 = scmp.ne.s32.totalorder %s14941_s23, %s14937_s22  ;;  %p186_p3 = scmp.eq.s32.totalorder %s185_s14, 0 }
  0xd2   : > { %p196_p4 = scmp.eq.s32.totalorder %s14945_s26, 0  ;;  %p201_p7 = scmp.ne.s32.totalorder %s14937_s22, %s14933_s0 }
  0xd3   : > { %p1799_p9 = scmp.eq.s32.totalorder %s15480_s2, 1  ;;  %p17237_p11 = scmp.eq.s32.totalorder %s15480_s2, 0 }
  0xd4   : > { %s15531_s30 = scalar_select %p186_p3, %s14941_s23, %s188_s11  }
  0xd5   : > { %p197_p10 = por %p196_p4, %p195_p1  ;;  %p15535_p12 = por %p17237_p11, %p201_p7 }
  0xd6   : > { %17236 = sst [smem:[#allocation149_spill]] %s15531_s30  ;;  %p15539_p13 = por %p1799_p9, %p195_p1 }
  0xd7   : > { %s17238_s25 = scalar_select %p15535_p12, 1, 0 }
  0xd8   : > { %s17240_s1 = scalar_select %p15539_p13, 1, 0 }
  0xd9   : > { %17239 = sst [smem:[#allocation150_spill]] %s17238_s25  ;;  %s17242_s28 = sadd.s32 4294967294, %s14945_s26  }
  0xda   : > { %17241 = sst [smem:[#allocation151_spill]] %s17240_s1  ;;  %p1805_p0 = scmp.eq.s32.totalorder %s17242_s28, 1 }
  0xdb   : > { %p13324_p2 = scmp.lt.s32.totalorder %s14945_s26, 2  ;;  %s2279_s15 = sand.u32 1, %s14945_s26  }
  0xdc   : > { %p15547_p5 = por %p1805_p0, %p201_p7  ;;  %s15552_s11 = sand.u32 1, %s14941_s23  }
  0xdd   : > { %s15555_s9 = sshll.u32 %s14945_s26, 4  ;;  %s2282_s28 = scalar_lea.vmem [#allocation2], %s15552_s11 }
  0xde   : > { %s17243_s14 = scalar_select %p15547_p5, 1, 0 }
  0xdf   : > { %s15559_s30 = scalar_lea.hbm %s17225_s5, %s15555_s9  ;;  %s2289_s18 = sshll.u32 %s2282_s28, 4  ;;  %s15566_s18 = int_to_ptr.vmem [resolvable:$true] %s2289_s18 }
  0xe0   : > { %17244 = sst [smem:[#allocation152_spill]] %s17243_s14  ;;  %p15562_p1 = pnand %p13324_p2, %p197_p10 }
  0xe1   : > { %s15025_s23 = smov [#allocation7]   ;;  %s15570_s1 = scalar_lea.sflag [#allocation3], %s2279_s15 }
  0xe2   : > { %s17245_s0 = scalar_select %p15562_p1, 1, 0 }
  0xe3   : > { %s15568_s14 = sshll.u32 %s15025_s23, 4  ;;  %s13871_s25 = scalar_lea.hbm %s15559_s30, 16  ;;  %s1839_s14 = int_to_ptr.vmem [resolvable:$true] %s15568_s14 }
  0xe4   : > { %p13872_p3 = scmp.ne.s32.totalorder %s15559_s30, %s13871_s25  ;;  %p15576_p4 = pneg %p15562_p1 }
  0xe5   : > { %s13876_s28 = scalar_lea.hbm %s17225_s5, 32  ;;  %p13877_p10 = scmp.lt.u32.totalorder %s15559_s30, %s17225_s5 }
  0xe6   : > { %s17246_s22 = scalar_select %p15576_p4, 1, 0 }
  0xe7   : > { %p13874_p7 = pnand %p15576_p4, %p13872_p3  ;;  %p13878_p11 = scmp.lt.u32.totalorder %s13876_s28, %s13871_s25 }
  0xe8   : > { %p13880_p2 = scmp.lt.u32.totalorder %s13871_s25, %s15559_s30 }
  0xe9   : > { %p13875_p9 = pneg %p13874_p7  ;;  %p13879_p0 = por %p13878_p11, %p13877_p10 }
  0xeb   : > { %p13881_p5 = por %p13880_p2, %p13879_p0 }
  0xed   : > { %p13882_p13 = pnand %p13881_p5, %p13875_p9 }
  0xef   : > { %13885 = shalt.err (!%p13882_p13)
}
  0xf0   : > { %s13886_s23 = scalar_lea.vmem %s15566_s18, 16  ;;  %s15026_s15 = smov [#allocation2]  }
  0xf1   : > { %p13887_p12 = scmp.ne.s32.totalorder %s15566_s18, %s13886_s23  ;;  %s13891_s2 = sshll.u32 %s15026_s15, 4  ;;  %s13892_s2 = int_to_ptr.vmem [resolvable:$false] %s13891_s2 }
  0xf2   : > { %s13893_s7 = scalar_lea.vmem %s13892_s2, 32  ;;  %p13894_p3 = scmp.lt.s32.totalorder %s15566_s18, %s13892_s2 }
  0xf3   : > { %p13889_p6 = pnand %p13887_p12, %p15576_p4  ;;  %p13895_p7 = scmp.lt.s32.totalorder %s13893_s7, %s13886_s23 }
  0xf5   : > { %p13890_p8 = pneg %p13889_p6  ;;  %p13896_p10 = por %p13895_p7, %p13894_p3 }
  0xf7   : > { %p13897_p11 = pnand %p13896_p10, %p13890_p8 }
  0xf9   : > { %13900 = shalt.err (!%p13897_p11)
}
  0xfa   : > { %13280 = dma.hbm_to_vmem [thread:$0]  (!%p15562_p1), %s15559_s30, 16, %s15566_s18, %s15570_s1  }
  0xfb   : > { %s13901_s25 = scalar_lea.hbm %s17220_s13, 128  ;;  %p17247_p12 = scmp.ne.s32.totalorder %s17234_s16, 0 }
  0xfc   : > { %p13902_p6 = scmp.ne.s32.totalorder %s17220_s13, %s13901_s25  ;;  %p13908_p9 = scmp.lt.u32.totalorder %s13901_s25, %s17220_s13 }
  0xfe   : > { %p13904_p13 = pnand %p13902_p6, %p17247_p12 }
 0x100   : > { %p13905_p5 = pneg %p13904_p13 }
 0x102   : > { %p13910_p8 = pnand %p13908_p9, %p13905_p5 }
 0x104   : > { %13913 = shalt.err (!%p13910_p8)
}
 0x105   : > { %s13914_s2 = scalar_lea.vmem %s1839_s14, 128  ;;  %p13922_p7 = scmp.lt.s32.totalorder %s1839_s14, %s1839_s14 }
 0x106   : > { %p13915_p0 = scmp.ne.s32.totalorder %s1839_s14, %s13914_s2  ;;  %p13923_p10 = scmp.lt.s32.totalorder %s13914_s2, %s13914_s2 }
 0x108   : > { %p13917_p2 = pnand %p13915_p0, %p17247_p12  ;;  %p13924_p11 = por %p13923_p10, %p13922_p7 }
 0x10a   : > { %p13918_p3 = pneg %p13917_p2 }
 0x10c   : > { %p13925_p4 = pnand %p13924_p11, %p13918_p3 }
 0x10e   : > { %13928 = shalt.err (!%p13925_p4)
}
 0x10f   : > { %p17248_p1 = scmp.ne.s32.totalorder %s17233_s10, 0  ;;  %s15609_s30 = scalar_lea.hbm %s15102_s21, %s15555_s9 }
 0x110   : > { %s2299_s7 = scalar_lea.vmem [#allocation10], %s15552_s11  ;;  %s13929_s28 = scalar_lea.hbm %s15609_s30, 16 }
 0x111   : > { %13192 = dma.hbm_to_vmem [thread:$0]  (!%p17248_p1), %s17220_s13, 128, %s1839_s14, [#allocation6]  }
 0x112   : > { %s2306_s18 = sshll.u32 %s2299_s7, 4  ;;  %p13930_p4 = scmp.ne.s32.totalorder %s15609_s30, %s13929_s28  ;;  %s2307_s18 = int_to_ptr.vmem [resolvable:$true] %s2306_s18 }
 0x113   : > { %p17249_p6 = scmp.ne.s32.totalorder %s17246_s22, 0  ;;  %s13934_s23 = scalar_lea.hbm %s15102_s21, 32 }
 0x114   : > { %p13935_p9 = scmp.lt.u32.totalorder %s15609_s30, %s15102_s21  ;;  %p13936_p8 = scmp.lt.u32.totalorder %s13934_s23, %s13929_s28 }
 0x115   : > { %p13932_p13 = pnand %p13930_p4, %p17249_p6  ;;  %p13938_p2 = scmp.lt.u32.totalorder %s13929_s28, %s15609_s30 }
 0x116   : > { %p13937_p0 = por %p13936_p8, %p13935_p9 }
 0x117   : > { %p13933_p5 = pneg %p13932_p13 }
 0x118   : > { %p13939_p3 = por %p13938_p2, %p13937_p0 }
 0x11a   : > { %p13940_p7 = pnand %p13939_p3, %p13933_p5 }
 0x11c   : > { %13943 = shalt.err (!%p13940_p7)
}
 0x11d   : > { %s13944_s14 = scalar_lea.vmem %s2307_s18, 16  ;;  %s15027_s15 = smov [#allocation10]  }
 0x11e   : > { %p13945_p10 = scmp.ne.s32.totalorder %s2307_s18, %s13944_s14  ;;  %s13949_s25 = sshll.u32 %s15027_s15, 4  ;;  %s13950_s25 = int_to_ptr.vmem [resolvable:$false] %s13949_s25 }
 0x11f   : > { %s13951_s2 = scalar_lea.vmem %s13950_s25, 32  ;;  %p13952_p4 = scmp.lt.s32.totalorder %s2307_s18, %s13950_s25 }
 0x120   : > { %p13947_p11 = pnand %p13945_p10, %p17249_p6  ;;  %p13953_p13 = scmp.lt.s32.totalorder %s13951_s2, %s13944_s14 }
 0x122   : > { %p13948_p1 = pneg %p13947_p11  ;;  %p13954_p12 = por %p13953_p13, %p13952_p4 }
 0x124   : > { %p13955_p8 = pnand %p13954_p12, %p13948_p1 }
 0x126   : > { %13958 = shalt.err (!%p13955_p8)
}
 0x127   : > { %p17250_p9 = scmp.ne.s32.totalorder %s17245_s0, 0  ;;  %s15028_s7 = smov [#allocation8]  }
 0x128   : > { %s1848_s28 = sshll.u32 %s15028_s7, 4  ;;  %s15029_s23 = smov [#allocation11]   ;;  %s1849_s28 = int_to_ptr.vmem [resolvable:$true] %s1848_s28 }
 0x129   : > { %13283 = dma.hbm_to_vmem [thread:$0]  (!%p17250_p9), %s15609_s30, 16, %s2307_s18, %s15570_s1  }
 0x12a   : > { %s1862_s15 = sshll.u32 %s15029_s23, 4  ;;  %s13959_s5 = scalar_lea.hbm %s15097_s17, 256  ;;  %s1863_s15 = int_to_ptr.vmem [resolvable:$true] %s1862_s15 }
 0x12b   : > { %p13960_p5 = scmp.ne.s32.totalorder %s15097_s17, %s13959_s5  ;;  %p17251_p0 = scmp.ne.s32.totalorder %s17234_s16, 0 }
 0x12c   : > { %p13966_p12 = scmp.lt.u32.totalorder %s13959_s5, %s15097_s17 }
 0x12d   : > { %p13962_p2 = pnand %p13960_p5, %p17251_p0 }
 0x12f   : > { %p13963_p1 = pneg %p13962_p2 }
 0x131   : > { %p13968_p3 = pnand %p13966_p12, %p13963_p1 }
 0x133   : > { %13971 = shalt.err (!%p13968_p3)
}
 0x134   : > { %s13972_s14 = scalar_lea.vmem %s1849_s28, 256  ;;  %p13980_p4 = scmp.lt.s32.totalorder %s1849_s28, %s1849_s28 }
 0x135   : > { %p13973_p7 = scmp.ne.s32.totalorder %s1849_s28, %s13972_s14  ;;  %p13981_p13 = scmp.lt.s32.totalorder %s13972_s14, %s13972_s14 }
 0x137   : > { %p13975_p10 = pnand %p13973_p7, %p17251_p0  ;;  %p13982_p8 = por %p13981_p13, %p13980_p4 }
 0x139   : > { %p13976_p11 = pneg %p13975_p10 }
 0x13b   : > { %p13983_p9 = pnand %p13982_p8, %p13976_p11 }
 0x13d   : > { %13986 = shalt.err (!%p13983_p9)
}
 0x13e   : > { %p17252_p6 = scmp.ne.s32.totalorder %s17233_s10, 0  ;;  %s17253_s30 = smov 8  }
 0x13f   : > { %s17254_s18 = smov 128   ;;  %s13987_s5 = scalar_lea.hbm %s15112_s29, 128 }
 0x140   : > { %13195 = dma.hbm_to_vmem [thread:$0]  (!%p17252_p6), %s15097_s17, 256, %s1849_s28, [#allocation9], %s17254_s18, %s17254_s18, %s17253_s30  }
 0x141   : > { %p13988_p5 = scmp.ne.s32.totalorder %s15112_s29, %s13987_s5  ;;  %p13994_p12 = scmp.lt.u32.totalorder %s13987_s5, %s15112_s29 }
 0x143   : > { %p13990_p2 = pnand %p13988_p5, %p17251_p0 }
 0x145   : > { %p13991_p1 = pneg %p13990_p2 }
 0x147   : > { %p13996_p3 = pnand %p13994_p12, %p13991_p1 }
 0x149   : > { %13999 = shalt.err (!%p13996_p3)
}
 0x14a   : > { %s14000_s25 = scalar_lea.vmem %s1863_s15, 128  ;;  %p14008_p11 = scmp.lt.s32.totalorder %s1863_s15, %s1863_s15 }
 0x14b   : > { %p14001_p9 = scmp.ne.s32.totalorder %s1863_s15, %s14000_s25  ;;  %p14009_p4 = scmp.lt.s32.totalorder %s14000_s25, %s14000_s25 }
 0x14d   : > { %p14003_p7 = pnand %p14001_p9, %p17251_p0  ;;  %p14010_p13 = por %p14009_p4, %p14008_p11 }
 0x14f   : > { %p14004_p10 = pneg %p14003_p7 }
 0x151   : > { %p14011_p8 = pnand %p14010_p13, %p14004_p10 }
 0x153   : > { %14014 = shalt.err (!%p14011_p8)
}
 0x154   : > { %13198 = dma.hbm_to_vmem [thread:$0]  (!%p17252_p6), %s15112_s29, 128, %s1863_s15, [#allocation6]  }
 0x155   : > { %s15030_s2 = smov [#allocation16]   ;;  %s15031_s28 = smov [#allocation19]  }
 0x156   : > { %s1901_s7 = sshll.u32 %s15030_s2, 4  ;;  %s1929_s23 = sshll.u32 %s15031_s28, 4  ;;  %s1902_s7 = int_to_ptr.vmem [resolvable:$true] %s1901_s7  ;;  %s1930_s23 = int_to_ptr.vmem [resolvable:$true] %s1929_s23 }
 0x157   : > { %s14015_s14 = scalar_lea.hbm %s17223_s6, 16 }
 0x158   : > { %p14016_p5 = scmp.ne.s32.totalorder %s17223_s6, %s14015_s14  ;;  %p14022_p12 = scmp.lt.u32.totalorder %s14015_s14, %s17223_s6 }
 0x15a   : > { %p14018_p2 = pnand %p14016_p5, %p17251_p0 }
 0x15c   : > { %p14019_p1 = pneg %p14018_p2 }
 0x15e   : > { %p14024_p3 = pnand %p14022_p12, %p14019_p1 }
 0x160   : > { %14027 = shalt.err (!%p14024_p3)
}
 0x161   : > { %s14028_s30 = scalar_lea.vmem %s1902_s7, 16  ;;  %s14035_s15 = scalar_lea.vmem %s1902_s7, 32 }
 0x162   : > { %p14029_p9 = scmp.ne.s32.totalorder %s1902_s7, %s14028_s30  ;;  %p14036_p11 = scmp.lt.s32.totalorder %s1902_s7, %s1902_s7 }
 0x163   : > { %p14037_p4 = scmp.lt.s32.totalorder %s14035_s15, %s14028_s30 }
 0x164   : > { %p14031_p7 = pnand %p14029_p9, %p17251_p0 }
 0x165   : > { %p14038_p13 = por %p14037_p4, %p14036_p11 }
 0x166   : > { %p14032_p10 = pneg %p14031_p7 }
 0x168   : > { %p14039_p8 = pnand %p14038_p13, %p14032_p10 }
 0x16a   : > { %14042 = shalt.err (!%p14039_p8)
}
 0x16b   : > { %13207 = dma.hbm_to_vmem [thread:$0]  (!%p17252_p6), %s17223_s6, 16, %s1902_s7, [#allocation17]  }
 0x16c   : > { %s14043_s18 = scalar_lea.hbm %s17224_s4, 16 }
 0x16d   : > { %p14044_p5 = scmp.ne.s32.totalorder %s17224_s4, %s14043_s18  ;;  %p14050_p12 = scmp.lt.u32.totalorder %s14043_s18, %s17224_s4 }
 0x16f   : > { %p14046_p2 = pnand %p14044_p5, %p17251_p0 }
 0x171   : > { %p14047_p1 = pneg %p14046_p2 }
 0x173   : > { %p14052_p3 = pnand %p14050_p12, %p14047_p1 }
 0x175   : > { %14055 = shalt.err (!%p14052_p3)
}
 0x176   : > { %s14056_s5 = scalar_lea.vmem %s1930_s23, 16  ;;  %s14063_s25 = scalar_lea.vmem %s1930_s23, 32 }
 0x177   : > { %p14057_p9 = scmp.ne.s32.totalorder %s1930_s23, %s14056_s5  ;;  %p14064_p11 = scmp.lt.s32.totalorder %s1930_s23, %s1930_s23 }
 0x178   : > { %p14065_p4 = scmp.lt.s32.totalorder %s14063_s25, %s14056_s5 }
 0x179   : > { %p14059_p7 = pnand %p14057_p9, %p17251_p0 }
 0x17a   : > { %p14066_p13 = por %p14065_p4, %p14064_p11 }
 0x17b   : > { %p14060_p10 = pneg %p14059_p7 }
 0x17d   : > { %p14067_p8 = pnand %p14066_p13, %p14060_p10 }
 0x17f   : > { %14070 = shalt.err (!%p14067_p8)
}
 0x180   : > { %13213 = dma.hbm_to_vmem [thread:$0]  (!%p17252_p6), %s17224_s4, 16, %s1930_s23, [#allocation20]  }
 0x181   : > { %s15032_s2 = smov [#allocation22]   ;;  %s15033_s28 = smov [#allocation25]  }
 0x182   : > { %s1957_s7 = sshll.u32 %s15032_s2, 4  ;;  %s1979_s14 = sshll.u32 %s15033_s28, 4  ;;  %s1958_s7 = int_to_ptr.vmem [resolvable:$true] %s1957_s7  ;;  %s1980_s14 = int_to_ptr.vmem [resolvable:$true] %s1979_s14 }
 0x183   : > { %s14071_s30 = scalar_lea.hbm %s15187_s24, 16 }
 0x184   : > { %p14072_p5 = scmp.ne.s32.totalorder %s15187_s24, %s14071_s30  ;;  %p14078_p12 = scmp.lt.u32.totalorder %s14071_s30, %s15187_s24 }
 0x186   : > { %p14074_p2 = pnand %p14072_p5, %p17251_p0 }
 0x188   : > { %p14075_p1 = pneg %p14074_p2 }
 0x18a   : > { %p14080_p3 = pnand %p14078_p12, %p14075_p1 }
 0x18c   : > { %14083 = shalt.err (!%p14080_p3)
}
 0x18d   : > { %s14084_s15 = scalar_lea.vmem %s1958_s7, 16  ;;  %s14091_s23 = scalar_lea.vmem %s1958_s7, 32 }
 0x18e   : > { %p14085_p9 = scmp.ne.s32.totalorder %s1958_s7, %s14084_s15  ;;  %p14092_p11 = scmp.lt.s32.totalorder %s1958_s7, %s1958_s7 }
 0x18f   : > { %p14093_p4 = scmp.lt.s32.totalorder %s14091_s23, %s14084_s15 }
 0x190   : > { %p14087_p7 = pnand %p14085_p9, %p17251_p0 }
 0x191   : > { %p14094_p13 = por %p14093_p4, %p14092_p11 }
 0x192   : > { %p14088_p10 = pneg %p14087_p7 }
 0x194   : > { %p14095_p8 = pnand %p14094_p13, %p14088_p10 }
 0x196   : > { %14098 = shalt.err (!%p14095_p8)
}
 0x197   : > { %13219 = dma.hbm_to_vmem [thread:$0]  (!%p17252_p6), %s15187_s24, 16, %s1958_s7, [#allocation23]  }
 0x198   : > { %s14099_s18 = scalar_lea.hbm %s15197_s20, 16 }
 0x199   : > { %p14100_p5 = scmp.ne.s32.totalorder %s15197_s20, %s14099_s18  ;;  %p14106_p12 = scmp.lt.u32.totalorder %s14099_s18, %s15197_s20 }
 0x19b   : > { %p14102_p2 = pnand %p14100_p5, %p17251_p0 }
 0x19d   : > { %p14103_p1 = pneg %p14102_p2 }
 0x19f   : > { %p14108_p3 = pnand %p14106_p12, %p14103_p1 }
 0x1a1   : > { %14111 = shalt.err (!%p14108_p3)
}
 0x1a2   : > { %s14112_s5 = scalar_lea.vmem %s1980_s14, 16  ;;  %s14119_s25 = scalar_lea.vmem %s1980_s14, 32 }
 0x1a3   : > { %p14113_p9 = scmp.ne.s32.totalorder %s1980_s14, %s14112_s5  ;;  %p14120_p11 = scmp.lt.s32.totalorder %s1980_s14, %s1980_s14 }
 0x1a4   : > { %p14121_p4 = scmp.lt.s32.totalorder %s14119_s25, %s14112_s5 }
 0x1a5   : > { %p14115_p7 = pnand %p14113_p9, %p17251_p0 }
 0x1a6   : > { %p14122_p13 = por %p14121_p4, %p14120_p11 }
 0x1a7   : > { %p14116_p10 = pneg %p14115_p7 }
 0x1a9   : > { %p14123_p8 = pnand %p14122_p13, %p14116_p10 }
 0x1ab   : > { %14126 = shalt.err (!%p14123_p8)
}
 0x1ac   : > { %13225 = dma.hbm_to_vmem [thread:$0]  (!%p17252_p6), %s15197_s20, 16, %s1980_s14, [#allocation26]  }
 0x1ad   : > { %s15034_s2 = smov [#allocation28]   ;;  %s15035_s28 = smov [#allocation31]  }
 0x1ae   : > { %s2007_s7 = sshll.u32 %s15034_s2, 4  ;;  %s2035_s30 = sshll.u32 %s15035_s28, 4  ;;  %s2008_s7 = int_to_ptr.vmem [resolvable:$true] %s2007_s7  ;;  %s2036_s30 = int_to_ptr.vmem [resolvable:$true] %s2035_s30 }
 0x1af   : > { %s14127_s15 = scalar_lea.hbm %s15217_s27, 16 }
 0x1b0   : > { %p14128_p5 = scmp.ne.s32.totalorder %s15217_s27, %s14127_s15  ;;  %p14134_p12 = scmp.lt.u32.totalorder %s14127_s15, %s15217_s27 }
 0x1b2   : > { %p14130_p2 = pnand %p14128_p5, %p17251_p0 }
 0x1b4   : > { %p14131_p1 = pneg %p14130_p2 }
 0x1b6   : > { %p14136_p3 = pnand %p14134_p12, %p14131_p1 }
 0x1b8   : > { %14139 = shalt.err (!%p14136_p3)
}
 0x1b9   : > { %s14140_s23 = scalar_lea.vmem %s2008_s7, 16  ;;  %s14147_s14 = scalar_lea.vmem %s2008_s7, 32 }
 0x1ba   : > { %p14141_p9 = scmp.ne.s32.totalorder %s2008_s7, %s14140_s23  ;;  %p14148_p11 = scmp.lt.s32.totalorder %s2008_s7, %s2008_s7 }
 0x1bb   : > { %p14149_p4 = scmp.lt.s32.totalorder %s14147_s14, %s14140_s23 }
 0x1bc   : > { %p14143_p7 = pnand %p14141_p9, %p17251_p0 }
 0x1bd   : > { %p14150_p13 = por %p14149_p4, %p14148_p11 }
 0x1be   : > { %p14144_p10 = pneg %p14143_p7 }
 0x1c0   : > { %p14151_p8 = pnand %p14150_p13, %p14144_p10 }
 0x1c2   : > { %14154 = shalt.err (!%p14151_p8)
}
 0x1c3   : > { %13231 = dma.hbm_to_vmem [thread:$0]  (!%p17252_p6), %s15217_s27, 16, %s2008_s7, [#allocation29]  }
 0x1c4   : > { %s14155_s18 = scalar_lea.hbm %s17221_s12, 16 }
 0x1c5   : > { %p14156_p5 = scmp.ne.s32.totalorder %s17221_s12, %s14155_s18  ;;  %p14162_p12 = scmp.lt.u32.totalorder %s14155_s18, %s17221_s12 }
 0x1c7   : > { %p14158_p2 = pnand %p14156_p5, %p17251_p0 }
 0x1c9   : > { %p14159_p1 = pneg %p14158_p2 }
 0x1cb   : > { %p14164_p3 = pnand %p14162_p12, %p14159_p1 }
 0x1cd   : > { %14167 = shalt.err (!%p14164_p3)
}
 0x1ce   : > { %s14168_s5 = scalar_lea.vmem %s2036_s30, 16  ;;  %s14175_s25 = scalar_lea.vmem %s2036_s30, 32 }
 0x1cf   : > { %p14169_p9 = scmp.ne.s32.totalorder %s2036_s30, %s14168_s5  ;;  %p14176_p11 = scmp.lt.s32.totalorder %s2036_s30, %s2036_s30 }
 0x1d0   : > { %p14177_p4 = scmp.lt.s32.totalorder %s14175_s25, %s14168_s5 }
 0x1d1   : > { %p14171_p7 = pnand %p14169_p9, %p17251_p0 }
 0x1d2   : > { %p14178_p13 = por %p14177_p4, %p14176_p11 }
 0x1d3   : > { %p14172_p10 = pneg %p14171_p7 }
 0x1d5   : > { %p14179_p8 = pnand %p14178_p13, %p14172_p10 }
 0x1d7   : > { %14182 = shalt.err (!%p14179_p8)
}
 0x1d8   : > { %13237 = dma.hbm_to_vmem [thread:$0]  (!%p17252_p6), %s17221_s12, 16, %s2036_s30, [#allocation32]  }
 0x1d9   : > { %s15036_s2 = smov [#allocation34]   ;;  %s15037_s28 = smov [#allocation37]  }
 0x1da   : > { %s2063_s7 = sshll.u32 %s15036_s2, 4  ;;  %s2085_s15 = sshll.u32 %s15037_s28, 4  ;;  %s2064_s7 = int_to_ptr.vmem [resolvable:$true] %s2063_s7  ;;  %s2086_s15 = int_to_ptr.vmem [resolvable:$true] %s2085_s15 }
 0x1db   : > { %s14183_s23 = scalar_lea.hbm %s15257_s19, 16 }
 0x1dc   : > { %p14184_p5 = scmp.ne.s32.totalorder %s15257_s19, %s14183_s23  ;;  %p14190_p12 = scmp.lt.u32.totalorder %s14183_s23, %s15257_s19 }
 0x1de   : > { %p14186_p2 = pnand %p14184_p5, %p17251_p0 }
 0x1e0   : > { %p14187_p1 = pneg %p14186_p2 }
 0x1e2   : > { %p14192_p3 = pnand %p14190_p12, %p14187_p1 }
 0x1e4   : > { %14195 = shalt.err (!%p14192_p3)
}
 0x1e5   : > { %s14196_s14 = scalar_lea.vmem %s2064_s7, 16  ;;  %s14203_s30 = scalar_lea.vmem %s2064_s7, 32 }
 0x1e6   : > { %p14197_p9 = scmp.ne.s32.totalorder %s2064_s7, %s14196_s14  ;;  %p14204_p11 = scmp.lt.s32.totalorder %s2064_s7, %s2064_s7 }
 0x1e7   : > { %p14205_p4 = scmp.lt.s32.totalorder %s14203_s30, %s14196_s14 }
 0x1e8   : > { %p14199_p7 = pnand %p14197_p9, %p17251_p0 }
 0x1e9   : > { %p14206_p13 = por %p14205_p4, %p14204_p11 }
 0x1ea   : > { %p14200_p10 = pneg %p14199_p7 }
 0x1ec   : > { %p14207_p8 = pnand %p14206_p13, %p14200_p10 }
 0x1ee   : > { %14210 = shalt.err (!%p14207_p8)
}
 0x1ef   : > { %13243 = dma.hbm_to_vmem [thread:$0]  (!%p17252_p6), %s15257_s19, 16, %s2064_s7, [#allocation35]  }
 0x1f0   : > { %s14211_s18 = scalar_lea.hbm %s17222_s8, 16 }
 0x1f1   : > { %p14212_p5 = scmp.ne.s32.totalorder %s17222_s8, %s14211_s18  ;;  %p14218_p12 = scmp.lt.u32.totalorder %s14211_s18, %s17222_s8 }
 0x1f3   : > { %p14214_p2 = pnand %p14212_p5, %p17251_p0 }
 0x1f5   : > { %p14215_p1 = pneg %p14214_p2 }
 0x1f7   : > { %p14220_p3 = pnand %p14218_p12, %p14215_p1 }
 0x1f9   : > { %14223 = shalt.err (!%p14220_p3)
}
 0x1fa   : > { %s14224_s5 = scalar_lea.vmem %s2086_s15, 16  ;;  %s14231_s25 = scalar_lea.vmem %s2086_s15, 32 }
 0x1fb   : > { %p14225_p9 = scmp.ne.s32.totalorder %s2086_s15, %s14224_s5  ;;  %p14232_p11 = scmp.lt.s32.totalorder %s2086_s15, %s2086_s15 }
 0x1fc   : > { %p14233_p4 = scmp.lt.s32.totalorder %s14231_s25, %s14224_s5 }
 0x1fd   : > { %p14227_p7 = pnand %p14225_p9, %p17251_p0 }
 0x1fe   : > { %p14234_p13 = por %p14233_p4, %p14232_p11 }
 0x1ff   : > { %p14228_p10 = pneg %p14227_p7 }
 0x201   : > { %p14235_p8 = pnand %p14234_p13, %p14228_p10 }
 0x203   : > { %14238 = shalt.err (!%p14235_p8)
}
 0x204   : > { %s17255_s2 = sld [smem:[#allocation106_spill]]  ;;  %s15038_s7 = smov [#allocation40]  }
 0x205   : > { %13249 = dma.hbm_to_vmem [thread:$0]  (!%p17252_p6), %s17222_s8, 16, %s2086_s15, [#allocation38]  }
 0x206   : > { %s2107_s28 = sshll.u32 %s15038_s7, 4  ;;  %s15039_s23 = smov [#allocation43]   ;;  %s2108_s28 = int_to_ptr.vmem [resolvable:$true] %s2107_s28 }
 0x207   : > { %s2129_s14 = sshll.u32 %s15039_s23, 4  ;;  %s2130_s14 = int_to_ptr.vmem [resolvable:$true] %s2129_s14 }
 0x20a   : > { %s14239_s30 = scalar_lea.hbm %s17255_s2, 16 }
 0x20b   : > { %p14240_p5 = scmp.ne.s32.totalorder %s17255_s2, %s14239_s30  ;;  %p14246_p12 = scmp.lt.u32.totalorder %s14239_s30, %s17255_s2 }
 0x20d   : > { %p14242_p2 = pnand %p14240_p5, %p17251_p0 }
 0x20f   : > { %p14243_p1 = pneg %p14242_p2 }
 0x211   : > { %p14248_p3 = pnand %p14246_p12, %p14243_p1 }
 0x213   : > { %14251 = shalt.err (!%p14248_p3)
}
 0x214   : > { %s14252_s18 = scalar_lea.vmem %s2108_s28, 16  ;;  %s14259_s15 = scalar_lea.vmem %s2108_s28, 32 }
 0x215   : > { %p14253_p9 = scmp.ne.s32.totalorder %s2108_s28, %s14252_s18  ;;  %p14260_p11 = scmp.lt.s32.totalorder %s2108_s28, %s2108_s28 }
 0x216   : > { %p14261_p4 = scmp.lt.s32.totalorder %s14259_s15, %s14252_s18 }
 0x217   : > { %p14255_p7 = pnand %p14253_p9, %p17251_p0 }
 0x218   : > { %p14262_p13 = por %p14261_p4, %p14260_p11 }
 0x219   : > { %p14256_p10 = pneg %p14255_p7 }
 0x21b   : > { %p14263_p8 = pnand %p14262_p13, %p14256_p10 }
 0x21d   : > { %14266 = shalt.err (!%p14263_p8)
}
 0x21e   : > { %s17256_s5 = sld [smem:[#allocation108_spill]] }
 0x21f   : > { %13255 = dma.hbm_to_vmem [thread:$0]  (!%p17252_p6), %s17255_s2, 16, %s2108_s28, [#allocation41]  }
 0x224   : > { %s14267_s25 = scalar_lea.hbm %s17256_s5, 16 }
 0x225   : > { %p14268_p5 = scmp.ne.s32.totalorder %s17256_s5, %s14267_s25  ;;  %p14274_p12 = scmp.lt.u32.totalorder %s14267_s25, %s17256_s5 }
 0x227   : > { %p14270_p2 = pnand %p14268_p5, %p17251_p0 }
 0x229   : > { %p14271_p1 = pneg %p14270_p2 }
 0x22b   : > { %p14276_p3 = pnand %p14274_p12, %p14271_p1 }
 0x22d   : > { %14279 = shalt.err (!%p14276_p3)
}
 0x22e   : > { %s14280_s7 = scalar_lea.vmem %s2130_s14, 16  ;;  %s14287_s23 = scalar_lea.vmem %s2130_s14, 32 }
 0x22f   : > { %p14281_p9 = scmp.ne.s32.totalorder %s2130_s14, %s14280_s7  ;;  %p14288_p11 = scmp.lt.s32.totalorder %s2130_s14, %s2130_s14 }
 0x230   : > { %p14289_p4 = scmp.lt.s32.totalorder %s14287_s23, %s14280_s7 }
 0x231   : > { %p14283_p7 = pnand %p14281_p9, %p17251_p0 }
 0x232   : > { %p14290_p13 = por %p14289_p4, %p14288_p11 }
 0x233   : > { %p14284_p10 = pneg %p14283_p7 }
 0x235   : > { %p14291_p8 = pnand %p14290_p13, %p14284_p10 }
 0x237   : > { %14294 = shalt.err (!%p14291_p8)
}
 0x238   : > { %s17257_s28 = sld [smem:[#allocation112_spill]]  ;;  %s15040_s30 = smov [#allocation46]  }
 0x239   : > { %13261 = dma.hbm_to_vmem [thread:$0]  (!%p17252_p6), %s17256_s5, 16, %s2130_s14, [#allocation44]  }
 0x23a   : > { %s2157_s18 = sshll.u32 %s15040_s30, 4  ;;  %s15041_s15 = smov [#allocation49]   ;;  %s2158_s18 = int_to_ptr.vmem [resolvable:$true] %s2157_s18 }
 0x23b   : > { %s2179_s25 = sshll.u32 %s15041_s15, 4  ;;  %s2180_s25 = int_to_ptr.vmem [resolvable:$true] %s2179_s25 }
 0x23e   : > { %s14295_s2 = scalar_lea.hbm %s17257_s28, 16 }
 0x23f   : > { %p14296_p5 = scmp.ne.s32.totalorder %s17257_s28, %s14295_s2  ;;  %p14302_p12 = scmp.lt.u32.totalorder %s14295_s2, %s17257_s28 }
 0x241   : > { %p14298_p2 = pnand %p14296_p5, %p17251_p0 }
 0x243   : > { %p14299_p1 = pneg %p14298_p2 }
 0x245   : > { %p14304_p3 = pnand %p14302_p12, %p14299_p1 }
 0x247   : > { %14307 = shalt.err (!%p14304_p3)
}
 0x248   : > { %s14308_s7 = scalar_lea.vmem %s2158_s18, 16  ;;  %s14315_s14 = scalar_lea.vmem %s2158_s18, 32 }
 0x249   : > { %p14309_p9 = scmp.ne.s32.totalorder %s2158_s18, %s14308_s7  ;;  %p14316_p11 = scmp.lt.s32.totalorder %s2158_s18, %s2158_s18 }
 0x24a   : > { %p14317_p4 = scmp.lt.s32.totalorder %s14315_s14, %s14308_s7 }
 0x24b   : > { %p14311_p7 = pnand %p14309_p9, %p17251_p0 }
 0x24c   : > { %p14318_p13 = por %p14317_p4, %p14316_p11 }
 0x24d   : > { %p14312_p10 = pneg %p14311_p7 }
 0x24f   : > { %p14319_p8 = pnand %p14318_p13, %p14312_p10 }
 0x251   : > { %14322 = shalt.err (!%p14319_p8)
}
 0x252   : > { %s17258_s23 = sld [smem:[#allocation114_spill]] }
 0x253   : > { %13267 = dma.hbm_to_vmem [thread:$0]  (!%p17252_p6), %s17257_s28, 16, %s2158_s18, [#allocation47]  }
 0x258   : > { %s17259_s30 = smov %s17258_s23  ;;  %s14323_s2 = scalar_lea.hbm %s17258_s23, 16 }
 0x259   : > { %p14324_p5 = scmp.ne.s32.totalorder %s17259_s30, %s14323_s2  ;;  %p14330_p12 = scmp.lt.u32.totalorder %s14323_s2, %s17259_s30 }
 0x25b   : > { %p14326_p2 = pnand %p14324_p5, %p17251_p0 }
 0x25d   : > { %p14327_p1 = pneg %p14326_p2 }
 0x25f   : > { %p14332_p3 = pnand %p14330_p12, %p14327_p1 }
 0x261   : > { %14335 = shalt.err (!%p14332_p3)
}
 0x262   : > { %s14336_s15 = scalar_lea.vmem %s2180_s25, 16  ;;  %s14343_s7 = scalar_lea.vmem %s2180_s25, 32 }
 0x263   : > { %p14337_p9 = scmp.ne.s32.totalorder %s2180_s25, %s14336_s15  ;;  %p14344_p11 = scmp.lt.s32.totalorder %s2180_s25, %s2180_s25 }
 0x264   : > { %p14345_p4 = scmp.lt.s32.totalorder %s14343_s7, %s14336_s15 }
 0x265   : > { %p14339_p7 = pnand %p14337_p9, %p17251_p0 }
 0x266   : > { %p14346_p13 = por %p14345_p4, %p14344_p11 }
 0x267   : > { %p14340_p10 = pneg %p14339_p7 }
 0x269   : > { %p14347_p8 = pnand %p14346_p13, %p14340_p10 }
 0x26b   : > { %14350 = shalt.err (!%p14347_p8)
}
 0x26c   : > { %s17260_s18 = sld [smem:[#allocation78_spill]]  ;;  %s2324_s23 = scalar_lea.vmem [#allocation12], %s15552_s11 }
 0x26d   : > { %13273 = dma.hbm_to_vmem [thread:$0]  (!%p17252_p6), %s17259_s30, 16, %s2180_s25, [#allocation50]  }
 0x26e   : > { %s2331_s2 = sshll.u32 %s2324_s23, 4  ;;  %p17261_p2 = scmp.ne.s32.totalorder %s17246_s22, 0  ;;  %s2332_s2 = int_to_ptr.vmem [resolvable:$true] %s2331_s2 }
 0x272   : > { %s15771_s14 = scalar_lea.hbm %s17260_s18, %s15555_s9  ;;  %s14356_s7 = scalar_lea.hbm %s17260_s18, 32 }
 0x273   : > { %s14351_s15 = scalar_lea.hbm %s15771_s14, 16  ;;  %p14357_p3 = scmp.lt.u32.totalorder %s15771_s14, %s17260_s18 }
 0x274   : > { %p14352_p5 = scmp.ne.s32.totalorder %s15771_s14, %s14351_s15  ;;  %p14358_p9 = scmp.lt.u32.totalorder %s14356_s7, %s14351_s15 }
 0x275   : > { %p14360_p10 = scmp.lt.u32.totalorder %s14351_s15, %s15771_s14 }
 0x276   : > { %p14354_p1 = pnand %p14352_p5, %p17261_p2  ;;  %p14359_p7 = por %p14358_p9, %p14357_p3 }
 0x278   : > { %p14355_p12 = pneg %p14354_p1  ;;  %p14361_p11 = por %p14360_p10, %p14359_p7 }
 0x27a   : > { %p14362_p4 = pnand %p14361_p11, %p14355_p12 }
 0x27c   : > { %14365 = shalt.err (!%p14362_p4)
}
 0x27d   : > { %s14366_s9 = scalar_lea.vmem %s2332_s2, 16  ;;  %s15042_s25 = smov [#allocation12]  }
 0x27e   : > { %p14367_p13 = scmp.ne.s32.totalorder %s2332_s2, %s14366_s9  ;;  %s14371_s23 = sshll.u32 %s15042_s25, 4  ;;  %s14372_s23 = int_to_ptr.vmem [resolvable:$false] %s14371_s23 }
 0x27f   : > { %s14373_s4 = scalar_lea.vmem %s14372_s23, 32  ;;  %p14374_p5 = scmp.lt.s32.totalorder %s2332_s2, %s14372_s23 }
 0x280   : > { %p14369_p8 = pnand %p14367_p13, %p17261_p2  ;;  %p14375_p1 = scmp.lt.s32.totalorder %s14373_s4, %s14366_s9 }
 0x282   : > { %p14370_p6 = pneg %p14369_p8  ;;  %p14376_p0 = por %p14375_p1, %p14374_p5 }
 0x284   : > { %p14377_p3 = pnand %p14376_p0, %p14370_p6 }
 0x286   : > { %14380 = shalt.err (!%p14377_p3)
}
 0x287   : > { %p17262_p9 = scmp.ne.s32.totalorder %s17245_s0, 0  ;;  %s17263_s15 = sld [smem:[#allocation80_spill]] }
 0x288   : > { %s15043_s7 = smov [#allocation14]   ;;  %s15044_s25 = smov [#allocation15]  }
 0x289   : > { %13286 = dma.hbm_to_vmem [thread:$0]  (!%p17262_p9), %s15771_s14, 16, %s2332_s2, %s15570_s1  }
 0x28a   : > { %s1873_s5 = sshll.u32 %s15043_s7, 4  ;;  %s1884_s6 = sshll.u32 %s15044_s25, 4  ;;  %s1874_s5 = int_to_ptr.vmem [resolvable:$true] %s1873_s5  ;;  %s1885_s6 = int_to_ptr.vmem [resolvable:$true] %s1884_s6 }
 0x28b   : > { %p17264_p7 = scmp.ne.s32.totalorder %s17234_s16, 0 }
 0x28d   : > { %s14381_s8 = scalar_lea.hbm %s17263_s15, 16 }
 0x28e   : > { %p14382_p12 = scmp.ne.s32.totalorder %s17263_s15, %s14381_s8  ;;  %p14388_p0 = scmp.lt.u32.totalorder %s14381_s8, %s17263_s15 }
 0x290   : > { %p14384_p10 = pnand %p14382_p12, %p17264_p7 }
 0x292   : > { %p14385_p6 = pneg %p14384_p10 }
 0x294   : > { %p14390_p11 = pnand %p14388_p0, %p14385_p6 }
 0x296   : > { %14393 = shalt.err (!%p14390_p11)
}
 0x297   : > { %s14394_s4 = scalar_lea.vmem %s1874_s5, 16  ;;  %s14401_s14 = scalar_lea.vmem %s1874_s5, 32 }
 0x298   : > { %p14395_p4 = scmp.ne.s32.totalorder %s1874_s5, %s14394_s4  ;;  %p14402_p5 = scmp.lt.s32.totalorder %s1874_s5, %s1874_s5 }
 0x299   : > { %p14403_p1 = scmp.lt.s32.totalorder %s14401_s14, %s14394_s4 }
 0x29a   : > { %p14397_p13 = pnand %p14395_p4, %p17264_p7 }
 0x29b   : > { %p14404_p3 = por %p14403_p1, %p14402_p5 }
 0x29c   : > { %p14398_p8 = pneg %p14397_p13 }
 0x29e   : > { %p14405_p9 = pnand %p14404_p3, %p14398_p8 }
 0x2a0   : > { %14408 = shalt.err (!%p14405_p9)
}
 0x2a1   : > { %p17265_p2 = scmp.ne.s32.totalorder %s17233_s10, 0  ;;  %s17266_s2 = sld [smem:[#allocation81_spill]] }
 0x2a3   : > { %13201 = dma.hbm_to_vmem [thread:$0]  (!%p17265_p2), %s17263_s15, 16, %s1874_s5, [#allocation6]  }
 0x2a7   : > { %s14409_s8 = scalar_lea.hbm %s17266_s2, 16 }
 0x2a8   : > { %p14410_p12 = scmp.ne.s32.totalorder %s17266_s2, %s14409_s8  ;;  %p14416_p0 = scmp.lt.u32.totalorder %s14409_s8, %s17266_s2 }
 0x2aa   : > { %p14412_p10 = pnand %p14410_p12, %p17264_p7 }
 0x2ac   : > { %p14413_p6 = pneg %p14412_p10 }
 0x2ae   : > { %p14418_p11 = pnand %p14416_p0, %p14413_p6 }
 0x2b0   : > { %14421 = shalt.err (!%p14418_p11)
}
 0x2b1   : > { %s14422_s9 = scalar_lea.vmem %s1885_s6, 16  ;;  %s14429_s23 = scalar_lea.vmem %s1885_s6, 32 }
 0x2b2   : > { %p14423_p9 = scmp.ne.s32.totalorder %s1885_s6, %s14422_s9  ;;  %p14430_p8 = scmp.lt.s32.totalorder %s1885_s6, %s1885_s6 }
 0x2b3   : > { %p14431_p5 = scmp.lt.s32.totalorder %s14429_s23, %s14422_s9 }
 0x2b4   : > { %p14425_p4 = pnand %p14423_p9, %p17264_p7 }
 0x2b5   : > { %p14432_p1 = por %p14431_p5, %p14430_p8 }
 0x2b6   : > { %p14426_p13 = pneg %p14425_p4 }
 0x2b8   : > { %p14433_p3 = pnand %p14432_p1, %p14426_p13 }
 0x2ba   : > { %14436 = shalt.err (!%p14433_p3)
}
 0x2bb   : > { %s17267_s5 = sld [smem:[#allocation85_spill]]  ;;  %s15045_s7 = smov [#allocation18]  }
 0x2bc   : > { %13204 = dma.hbm_to_vmem [thread:$0]  (!%p17265_p2), %s17266_s2, 16, %s1885_s6, [#allocation9]  }
 0x2bd   : > { %s1912_s25 = sshll.u32 %s15045_s7, 4  ;;  %s15046_s4 = smov [#allocation21]   ;;  %s1913_s25 = int_to_ptr.vmem [resolvable:$true] %s1912_s25 }
 0x2be   : > { %s1946_s14 = sshll.u32 %s15046_s4, 4  ;;  %s1947_s14 = int_to_ptr.vmem [resolvable:$true] %s1946_s14 }
 0x2c1   : > { %s14437_s8 = scalar_lea.hbm %s17267_s5, 16 }
 0x2c2   : > { %p14438_p12 = scmp.ne.s32.totalorder %s17267_s5, %s14437_s8  ;;  %p14444_p0 = scmp.lt.u32.totalorder %s14437_s8, %s17267_s5 }
 0x2c4   : > { %p14440_p10 = pnand %p14438_p12, %p17264_p7 }
 0x2c6   : > { %p14441_p6 = pneg %p14440_p10 }
 0x2c8   : > { %p14446_p11 = pnand %p14444_p0, %p14441_p6 }
 0x2ca   : > { %14449 = shalt.err (!%p14446_p11)
}
 0x2cb   : > { %s14450_s9 = scalar_lea.vmem %s1913_s25, 16  ;;  %s14457_s6 = scalar_lea.vmem %s1913_s25, 32 }
 0x2cc   : > { %p14451_p9 = scmp.ne.s32.totalorder %s1913_s25, %s14450_s9  ;;  %p14458_p8 = scmp.lt.s32.totalorder %s1913_s25, %s1913_s25 }
 0x2cd   : > { %p14459_p5 = scmp.lt.s32.totalorder %s14457_s6, %s14450_s9 }
 0x2ce   : > { %p14453_p4 = pnand %p14451_p9, %p17264_p7 }
 0x2cf   : > { %p14460_p1 = por %p14459_p5, %p14458_p8 }
 0x2d0   : > { %p14454_p13 = pneg %p14453_p4 }
 0x2d2   : > { %p14461_p3 = pnand %p14460_p1, %p14454_p13 }
 0x2d4   : > { %14464 = shalt.err (!%p14461_p3)
}
 0x2d5   : > { %s17268_s23 = sld [smem:[#allocation91_spill]] }
 0x2d6   : > { %13210 = dma.hbm_to_vmem [thread:$0]  (!%p17265_p2), %s17267_s5, 16, %s1913_s25, [#allocation17]  }
 0x2db   : > { %s17269_s7 = smov %s17268_s23  ;;  %s14465_s4 = scalar_lea.hbm %s17268_s23, 16 }
 0x2dc   : > { %p14466_p12 = scmp.ne.s32.totalorder %s17269_s7, %s14465_s4  ;;  %p14472_p0 = scmp.lt.u32.totalorder %s14465_s4, %s17269_s7 }
 0x2de   : > { %p14468_p10 = pnand %p14466_p12, %p17264_p7 }
 0x2e0   : > { %p14469_p6 = pneg %p14468_p10 }
 0x2e2   : > { %p14474_p11 = pnand %p14472_p0, %p14469_p6 }
 0x2e4   : > { %14477 = shalt.err (!%p14474_p11)
}
 0x2e5   : > { %s14478_s8 = scalar_lea.vmem %s1947_s14, 16  ;;  %s14485_s9 = scalar_lea.vmem %s1947_s14, 32 }
 0x2e6   : > { %p14479_p9 = scmp.ne.s32.totalorder %s1947_s14, %s14478_s8  ;;  %p14486_p8 = scmp.lt.s32.totalorder %s1947_s14, %s1947_s14 }
 0x2e7   : > { %p14487_p5 = scmp.lt.s32.totalorder %s14485_s9, %s14478_s8 }
 0x2e8   : > { %p14481_p4 = pnand %p14479_p9, %p17264_p7 }
 0x2e9   : > { %p14488_p1 = por %p14487_p5, %p14486_p8 }
 0x2ea   : > { %p14482_p13 = pneg %p14481_p4 }
 0x2ec   : > { %p14489_p3 = pnand %p14488_p1, %p14482_p13 }
 0x2ee   : > { %14492 = shalt.err (!%p14489_p3)
}
 0x2ef   : > { %s17270_s25 = sld [smem:[#allocation92_spill]]  ;;  %s15047_s6 = smov [#allocation24]  }
 0x2f0   : > { %13216 = dma.hbm_to_vmem [thread:$0]  (!%p17265_p2), %s17269_s7, 16, %s1947_s14, [#allocation20]  }
 0x2f1   : > { %s1968_s23 = sshll.u32 %s15047_s6, 4  ;;  %s15048_s4 = smov [#allocation27]   ;;  %s1969_s23 = int_to_ptr.vmem [resolvable:$true] %s1968_s23 }
 0x2f2   : > { %s1990_s2 = sshll.u32 %s15048_s4, 4  ;;  %s1991_s2 = int_to_ptr.vmem [resolvable:$true] %s1990_s2 }
 0x2f5   : > { %s14493_s5 = scalar_lea.hbm %s17270_s25, 16 }
 0x2f6   : > { %p14494_p12 = scmp.ne.s32.totalorder %s17270_s25, %s14493_s5  ;;  %p14500_p0 = scmp.lt.u32.totalorder %s14493_s5, %s17270_s25 }
 0x2f8   : > { %p14496_p10 = pnand %p14494_p12, %p17264_p7 }
 0x2fa   : > { %p14497_p6 = pneg %p14496_p10 }
 0x2fc   : > { %p14502_p11 = pnand %p14500_p0, %p14497_p6 }
 0x2fe   : > { %14505 = shalt.err (!%p14502_p11)
}
 0x2ff   : > { %s14506_s8 = scalar_lea.vmem %s1969_s23, 16  ;;  %s14513_s14 = scalar_lea.vmem %s1969_s23, 32 }
 0x300   : > { %p14507_p9 = scmp.ne.s32.totalorder %s1969_s23, %s14506_s8  ;;  %p14514_p8 = scmp.lt.s32.totalorder %s1969_s23, %s1969_s23 }
 0x301   : > { %p14515_p5 = scmp.lt.s32.totalorder %s14513_s14, %s14506_s8 }
 0x302   : > { %p14509_p4 = pnand %p14507_p9, %p17264_p7 }
 0x303   : > { %p14516_p1 = por %p14515_p5, %p14514_p8 }
 0x304   : > { %p14510_p13 = pneg %p14509_p4 }
 0x306   : > { %p14517_p3 = pnand %p14516_p1, %p14510_p13 }
 0x308   : > { %14520 = shalt.err (!%p14517_p3)
}
 0x309   : > { %s17271_s9 = sld [smem:[#allocation93_spill]] }
 0x30a   : > { %13222 = dma.hbm_to_vmem [thread:$0]  (!%p17265_p2), %s17270_s25, 16, %s1969_s23, [#allocation23]  }
 0x30f   : > { %s14521_s5 = scalar_lea.hbm %s17271_s9, 16 }
 0x310   : > { %p14522_p12 = scmp.ne.s32.totalorder %s17271_s9, %s14521_s5  ;;  %p14528_p0 = scmp.lt.u32.totalorder %s14521_s5, %s17271_s9 }
 0x312   : > { %p14524_p10 = pnand %p14522_p12, %p17264_p7 }
 0x314   : > { %p14525_p6 = pneg %p14524_p10 }
 0x316   : > { %p14530_p11 = pnand %p14528_p0, %p14525_p6 }
 0x318   : > { %14533 = shalt.err (!%p14530_p11)
}
 0x319   : > { %s14534_s6 = scalar_lea.vmem %s1991_s2, 16  ;;  %s14541_s4 = scalar_lea.vmem %s1991_s2, 32 }
 0x31a   : > { %p14535_p9 = scmp.ne.s32.totalorder %s1991_s2, %s14534_s6  ;;  %p14542_p8 = scmp.lt.s32.totalorder %s1991_s2, %s1991_s2 }
 0x31b   : > { %p14543_p5 = scmp.lt.s32.totalorder %s14541_s4, %s14534_s6 }
 0x31c   : > { %p14537_p4 = pnand %p14535_p9, %p17264_p7 }
 0x31d   : > { %p14544_p1 = por %p14543_p5, %p14542_p8 }
 0x31e   : > { %p14538_p13 = pneg %p14537_p4 }
 0x320   : > { %p14545_p3 = pnand %p14544_p1, %p14538_p13 }
 0x322   : > { %14548 = shalt.err (!%p14545_p3)
}
 0x323   : > { %s17272_s23 = sld [smem:[#allocation96_spill]]  ;;  %s15049_s14 = smov [#allocation30]  }
 0x324   : > { %13228 = dma.hbm_to_vmem [thread:$0]  (!%p17265_p2), %s17271_s9, 16, %s1991_s2, [#allocation26]  }
 0x325   : > { %s2018_s5 = sshll.u32 %s15049_s14, 4  ;;  %s15050_s7 = smov [#allocation33]   ;;  %s2019_s5 = int_to_ptr.vmem [resolvable:$true] %s2018_s5 }
 0x326   : > { %s2046_s12 = sshll.u32 %s15050_s7, 4  ;;  %s2047_s12 = int_to_ptr.vmem [resolvable:$true] %s2046_s12 }
 0x329   : > { %s17273_s8 = smov %s17272_s23  ;;  %s14549_s13 = scalar_lea.hbm %s17272_s23, 16 }
 0x32a   : > { %p14550_p12 = scmp.ne.s32.totalorder %s17273_s8, %s14549_s13  ;;  %p14556_p0 = scmp.lt.u32.totalorder %s14549_s13, %s17273_s8 }
 0x32c   : > { %p14552_p10 = pnand %p14550_p12, %p17264_p7 }
 0x32e   : > { %p14553_p6 = pneg %p14552_p10 }
 0x330   : > { %p14558_p11 = pnand %p14556_p0, %p14553_p6 }
 0x332   : > { %14561 = shalt.err (!%p14558_p11)
}
 0x333   : > { %s14562_s6 = scalar_lea.vmem %s2019_s5, 16  ;;  %s14569_s2 = scalar_lea.vmem %s2019_s5, 32 }
 0x334   : > { %p14563_p9 = scmp.ne.s32.totalorder %s2019_s5, %s14562_s6  ;;  %p14570_p8 = scmp.lt.s32.totalorder %s2019_s5, %s2019_s5 }
 0x335   : > { %p14571_p5 = scmp.lt.s32.totalorder %s14569_s2, %s14562_s6 }
 0x336   : > { %p14565_p4 = pnand %p14563_p9, %p17264_p7 }
 0x337   : > { %p14572_p1 = por %p14571_p5, %p14570_p8 }
 0x338   : > { %p14566_p13 = pneg %p14565_p4 }
 0x33a   : > { %p14573_p3 = pnand %p14572_p1, %p14566_p13 }
 0x33c   : > { %14576 = shalt.err (!%p14573_p3)
}
 0x33d   : > { %s17274_s7 = sld [smem:[#allocation100_spill]] }
 0x33e   : > { %13234 = dma.hbm_to_vmem [thread:$0]  (!%p17265_p2), %s17273_s8, 16, %s2019_s5, [#allocation29]  }
 0x343   : > { %s14577_s13 = scalar_lea.hbm %s17274_s7, 16 }
 0x344   : > { %p14578_p12 = scmp.ne.s32.totalorder %s17274_s7, %s14577_s13  ;;  %p14584_p0 = scmp.lt.u32.totalorder %s14577_s13, %s17274_s7 }
 0x346   : > { %p14580_p10 = pnand %p14578_p12, %p17264_p7 }
 0x348   : > { %p14581_p6 = pneg %p14580_p10 }
 0x34a   : > { %p14586_p11 = pnand %p14584_p0, %p14581_p6 }
 0x34c   : > { %14589 = shalt.err (!%p14586_p11)
}
 0x34d   : > { %s14590_s4 = scalar_lea.vmem %s2047_s12, 16  ;;  %s14597_s23 = scalar_lea.vmem %s2047_s12, 32 }
 0x34e   : > { %p14591_p9 = scmp.ne.s32.totalorder %s2047_s12, %s14590_s4  ;;  %p14598_p8 = scmp.lt.s32.totalorder %s2047_s12, %s2047_s12 }
 0x34f   : > { %p14599_p5 = scmp.lt.s32.totalorder %s14597_s23, %s14590_s4 }
 0x350   : > { %p14593_p4 = pnand %p14591_p9, %p17264_p7 }
 0x351   : > { %p14600_p1 = por %p14599_p5, %p14598_p8 }
 0x352   : > { %p14594_p13 = pneg %p14593_p4 }
 0x354   : > { %p14601_p3 = pnand %p14600_p1, %p14594_p13 }
 0x356   : > { %14604 = shalt.err (!%p14601_p3)
}
 0x357   : > { %s17275_s14 = sld [smem:[#allocation103_spill]]  ;;  %s15051_s5 = smov [#allocation36]  }
 0x358   : > { %13240 = dma.hbm_to_vmem [thread:$0]  (!%p17265_p2), %s17274_s7, 16, %s2047_s12, [#allocation32]  }
 0x359   : > { %s2074_s6 = sshll.u32 %s15051_s5, 4  ;;  %s15052_s2 = smov [#allocation39]   ;;  %s2075_s6 = int_to_ptr.vmem [resolvable:$true] %s2074_s6 }
 0x35a   : > { %s2096_s13 = sshll.u32 %s15052_s2, 4  ;;  %s2097_s13 = int_to_ptr.vmem [resolvable:$true] %s2096_s13 }
 0x35d   : > { %s14605_s8 = scalar_lea.hbm %s17275_s14, 16 }
 0x35e   : > { %p14606_p12 = scmp.ne.s32.totalorder %s17275_s14, %s14605_s8  ;;  %p14612_p0 = scmp.lt.u32.totalorder %s14605_s8, %s17275_s14 }
 0x360   : > { %p14608_p10 = pnand %p14606_p12, %p17264_p7 }
 0x362   : > { %p14609_p6 = pneg %p14608_p10 }
 0x364   : > { %p14614_p11 = pnand %p14612_p0, %p14609_p6 }
 0x366   : > { %14617 = shalt.err (!%p14614_p11)
}
 0x367   : > { %s14618_s4 = scalar_lea.vmem %s2075_s6, 16  ;;  %s14625_s12 = scalar_lea.vmem %s2075_s6, 32 }
 0x368   : > { %p14619_p9 = scmp.ne.s32.totalorder %s2075_s6, %s14618_s4  ;;  %p14626_p8 = scmp.lt.s32.totalorder %s2075_s6, %s2075_s6 }
 0x369   : > { %p14627_p5 = scmp.lt.s32.totalorder %s14625_s12, %s14618_s4 }
 0x36a   : > { %p14621_p4 = pnand %p14619_p9, %p17264_p7 }
 0x36b   : > { %p14628_p1 = por %p14627_p5, %p14626_p8 }
 0x36c   : > { %p14622_p13 = pneg %p14621_p4 }
 0x36e   : > { %p14629_p3 = pnand %p14628_p1, %p14622_p13 }
 0x370   : > { %14632 = shalt.err (!%p14629_p3)
}
 0x371   : > { %s17276_s23 = sld [smem:[#allocation105_spill]] }
 0x372   : > { %13246 = dma.hbm_to_vmem [thread:$0]  (!%p17265_p2), %s17275_s14, 16, %s2075_s6, [#allocation35]  }
 0x377   : > { %s17277_s5 = smov %s17276_s23  ;;  %s14633_s8 = scalar_lea.hbm %s17276_s23, 16 }
 0x378   : > { %p14634_p12 = scmp.ne.s32.totalorder %s17277_s5, %s14633_s8  ;;  %p14640_p0 = scmp.lt.u32.totalorder %s14633_s8, %s17277_s5 }
 0x37a   : > { %p14636_p10 = pnand %p14634_p12, %p17264_p7 }
 0x37c   : > { %p14637_p6 = pneg %p14636_p10 }
 0x37e   : > { %p14642_p11 = pnand %p14640_p0, %p14637_p6 }
 0x380   : > { %14645 = shalt.err (!%p14642_p11)
}
 0x381   : > { %s14646_s2 = scalar_lea.vmem %s2097_s13, 16  ;;  %s14653_s4 = scalar_lea.vmem %s2097_s13, 32 }
 0x382   : > { %p14647_p9 = scmp.ne.s32.totalorder %s2097_s13, %s14646_s2  ;;  %p14654_p8 = scmp.lt.s32.totalorder %s2097_s13, %s2097_s13 }
 0x383   : > { %p14655_p5 = scmp.lt.s32.totalorder %s14653_s4, %s14646_s2 }
 0x384   : > { %p14649_p4 = pnand %p14647_p9, %p17264_p7 }
 0x385   : > { %p14656_p1 = por %p14655_p5, %p14654_p8 }
 0x386   : > { %p14650_p13 = pneg %p14649_p4 }
 0x388   : > { %p14657_p3 = pnand %p14656_p1, %p14650_p13 }
 0x38a   : > { %14660 = shalt.err (!%p14657_p3)
}
 0x38b   : > { %s17278_s6 = sld [smem:[#allocation107_spill]]  ;;  %s15053_s12 = smov [#allocation42]  }
 0x38c   : > { %13252 = dma.hbm_to_vmem [thread:$0]  (!%p17265_p2), %s17277_s5, 16, %s2097_s13, [#allocation38]  }
 0x38d   : > { %s2118_s23 = sshll.u32 %s15053_s12, 4  ;;  %s15054_s8 = smov [#allocation45]   ;;  %s2119_s23 = int_to_ptr.vmem [resolvable:$true] %s2118_s23 }
 0x38e   : > { %s2140_s7 = sshll.u32 %s15054_s8, 4  ;;  %s2141_s7 = int_to_ptr.vmem [resolvable:$true] %s2140_s7 }
 0x391   : > { %s14661_s9 = scalar_lea.hbm %s17278_s6, 16 }
 0x392   : > { %p14662_p12 = scmp.ne.s32.totalorder %s17278_s6, %s14661_s9  ;;  %p14668_p0 = scmp.lt.u32.totalorder %s14661_s9, %s17278_s6 }
 0x394   : > { %p14664_p10 = pnand %p14662_p12, %p17264_p7 }
 0x396   : > { %p14665_p6 = pneg %p14664_p10 }
 0x398   : > { %p14670_p11 = pnand %p14668_p0, %p14665_p6 }
 0x39a   : > { %14673 = shalt.err (!%p14670_p11)
}
 0x39b   : > { %s14674_s2 = scalar_lea.vmem %s2119_s23, 16  ;;  %s14681_s13 = scalar_lea.vmem %s2119_s23, 32 }
 0x39c   : > { %p14675_p9 = scmp.ne.s32.totalorder %s2119_s23, %s14674_s2  ;;  %p14682_p8 = scmp.lt.s32.totalorder %s2119_s23, %s2119_s23 }
 0x39d   : > { %p14683_p5 = scmp.lt.s32.totalorder %s14681_s13, %s14674_s2 }
 0x39e   : > { %p14677_p4 = pnand %p14675_p9, %p17264_p7 }
 0x39f   : > { %p14684_p1 = por %p14683_p5, %p14682_p8 }
 0x3a0   : > { %p14678_p13 = pneg %p14677_p4 }
 0x3a2   : > { %p14685_p3 = pnand %p14684_p1, %p14678_p13 }
 0x3a4   : > { %14688 = shalt.err (!%p14685_p3)
}
 0x3a5   : > { %s17279_s4 = sld [smem:[#allocation109_spill]] }
 0x3a6   : > { %13258 = dma.hbm_to_vmem [thread:$0]  (!%p17265_p2), %s17278_s6, 16, %s2119_s23, [#allocation41]  }
 0x3ab   : > { %s14689_s9 = scalar_lea.hbm %s17279_s4, 16 }
 0x3ac   : > { %p14690_p12 = scmp.ne.s32.totalorder %s17279_s4, %s14689_s9  ;;  %p14696_p0 = scmp.lt.u32.totalorder %s14689_s9, %s17279_s4 }
 0x3ae   : > { %p14692_p10 = pnand %p14690_p12, %p17264_p7 }
 0x3b0   : > { %p14693_p6 = pneg %p14692_p10 }
 0x3b2   : > { %p14698_p11 = pnand %p14696_p0, %p14693_p6 }
 0x3b4   : > { %14701 = shalt.err (!%p14698_p11)
}
 0x3b5   : > { %s14702_s12 = scalar_lea.vmem %s2141_s7, 16  ;;  %s14709_s8 = scalar_lea.vmem %s2141_s7, 32 }
 0x3b6   : > { %p14703_p9 = scmp.ne.s32.totalorder %s2141_s7, %s14702_s12  ;;  %p14710_p8 = scmp.lt.s32.totalorder %s2141_s7, %s2141_s7 }
 0x3b7   : > { %p14711_p5 = scmp.lt.s32.totalorder %s14709_s8, %s14702_s12 }
 0x3b8   : > { %p14705_p4 = pnand %p14703_p9, %p17264_p7 }
 0x3b9   : > { %p14712_p1 = por %p14711_p5, %p14710_p8 }
 0x3ba   : > { %p14706_p13 = pneg %p14705_p4 }
 0x3bc   : > { %p14713_p3 = pnand %p14712_p1, %p14706_p13 }
 0x3be   : > { %14716 = shalt.err (!%p14713_p3)
}
 0x3bf   : > { %s17280_s23 = sld [smem:[#allocation113_spill]]  ;;  %s15055_s13 = smov [#allocation48]  }
 0x3c0   : > { %13264 = dma.hbm_to_vmem [thread:$0]  (!%p17265_p2), %s17279_s4, 16, %s2141_s7, [#allocation44]  }
 0x3c1   : > { %s2168_s9 = sshll.u32 %s15055_s13, 4  ;;  %s15056_s5 = smov [#allocation51]   ;;  %s2169_s9 = int_to_ptr.vmem [resolvable:$true] %s2168_s9 }
 0x3c2   : > { %s2265_s6 = sshll.u32 %s15056_s5, 4  ;;  %s2266_s6 = int_to_ptr.vmem [resolvable:$true] %s2265_s6 }
 0x3c5   : > { %s17281_s2 = smov %s17280_s23  ;;  %s14717_s14 = scalar_lea.hbm %s17280_s23, 16 }
 0x3c6   : > { %p14718_p12 = scmp.ne.s32.totalorder %s17281_s2, %s14717_s14  ;;  %p14724_p0 = scmp.lt.u32.totalorder %s14717_s14, %s17281_s2 }
 0x3c8   : > { %p14720_p10 = pnand %p14718_p12, %p17264_p7 }
 0x3ca   : > { %p14721_p6 = pneg %p14720_p10 }
 0x3cc   : > { %p14726_p11 = pnand %p14724_p0, %p14721_p6 }
 0x3ce   : > { %14729 = shalt.err (!%p14726_p11)
}
 0x3cf   : > { %s14730_s12 = scalar_lea.vmem %s2169_s9, 16  ;;  %s14737_s7 = scalar_lea.vmem %s2169_s9, 32 }
 0x3d0   : > { %p14731_p9 = scmp.ne.s32.totalorder %s2169_s9, %s14730_s12  ;;  %p14738_p8 = scmp.lt.s32.totalorder %s2169_s9, %s2169_s9 }
 0x3d1   : > { %p14739_p5 = scmp.lt.s32.totalorder %s14737_s7, %s14730_s12 }
 0x3d2   : > { %p14733_p4 = pnand %p14731_p9, %p17264_p7 }
 0x3d3   : > { %p14740_p1 = por %p14739_p5, %p14738_p8 }
 0x3d4   : > { %p14734_p13 = pneg %p14733_p4 }
 0x3d6   : > { %p14741_p3 = pnand %p14740_p1, %p14734_p13 }
 0x3d8   : > { %14744 = shalt.err (!%p14741_p3)
}
 0x3d9   : > { %13270 = dma.hbm_to_vmem [thread:$0]  (!%p17265_p2), %s17281_s2, 16, %s2169_s9, [#allocation47]  }
 0x3da   : > { %s11519_s14 = sshll.u32 %s15552_s11, 3  ;;  %s14745_s5 = scalar_lea.hbm %s17219_s3, 16 }
 0x3db   : > { %p14746_p12 = scmp.ne.s32.totalorder %s17219_s3, %s14745_s5  ;;  %p14752_p0 = scmp.lt.u32.totalorder %s14745_s5, %s17219_s3 }
 0x3dd   : > { %p14748_p10 = pnand %p14746_p12, %p17264_p7 }
 0x3df   : > { %p14749_p6 = pneg %p14748_p10 }
 0x3e1   : > { %p14754_p11 = pnand %p14752_p0, %p14749_p6 }
 0x3e3   : > { %14757 = shalt.err (!%p14754_p11)
}
 0x3e4   : > { %s14758_s8 = scalar_lea.vmem %s2266_s6, 16  ;;  %s14765_s23 = scalar_lea.vmem %s2266_s6, 32 }
 0x3e5   : > { %p14759_p9 = scmp.ne.s32.totalorder %s2266_s6, %s14758_s8  ;;  %p14766_p8 = scmp.lt.s32.totalorder %s2266_s6, %s2266_s6 }
 0x3e6   : > { %p14767_p5 = scmp.lt.s32.totalorder %s14765_s23, %s14758_s8 }
 0x3e7   : > { %p14761_p4 = pnand %p14759_p9, %p17264_p7 }
 0x3e8   : > { %p14768_p1 = por %p14767_p5, %p14766_p8 }
 0x3e9   : > { %p14762_p13 = pneg %p14761_p4 }
 0x3eb   : > { %p14769_p3 = pnand %p14768_p1, %p14762_p13 }
 0x3ed   : > { %14772 = shalt.err (!%p14769_p3)
}
 0x3ee   : > { %s17282_s11 = sld [smem:[#allocation79_spill]]  ;;  %s11520_s13 = sshll.u32 %s14945_s26, 7 }
 0x3ef   : > { %13276 = dma.hbm_to_vmem [thread:$0]  (!%p17265_p2), %s17219_s3, 16, %s2266_s6, [#allocation50]  }
 0x3f0   : > { %s2342_s16 = scalar_lea.vmem [#allocation13], %s11519_s14  ;;  %p17283_p12 = scmp.ne.s32.totalorder %s17246_s22, 0 }
 0x3f1   : > { %s2349_s12 = sshll.u32 %s2342_s16, 4  ;;  %s2350_s12 = int_to_ptr.vmem [resolvable:$true] %s2349_s12 }
 0x3f4   : > { %s15931_s9 = scalar_lea.hbm %s17282_s11, %s11520_s13  ;;  %s14778_s10 = scalar_lea.hbm %s17282_s11, 256 }
 0x3f5   : > { %s14773_s7 = scalar_lea.hbm %s15931_s9, 128  ;;  %p14779_p0 = scmp.lt.u32.totalorder %s15931_s9, %s17282_s11 }
 0x3f6   : > { %p14774_p7 = scmp.ne.s32.totalorder %s15931_s9, %s14773_s7  ;;  %p14780_p11 = scmp.lt.u32.totalorder %s14778_s10, %s14773_s7 }
 0x3f7   : > { %p14782_p2 = scmp.lt.u32.totalorder %s14773_s7, %s15931_s9 }
 0x3f8   : > { %p14776_p10 = pnand %p14774_p7, %p17283_p12  ;;  %p14781_p9 = por %p14780_p11, %p14779_p0 }
 0x3fa   : > { %p14777_p6 = pneg %p14776_p10  ;;  %p14783_p4 = por %p14782_p2, %p14781_p9 }
 0x3fc   : > { %p14784_p13 = pnand %p14783_p4, %p14777_p6 }
 0x3fe   : > { %14787 = shalt.err (!%p14784_p13)
}
 0x3ff   : > { %s14788_s6 = scalar_lea.vmem %s2350_s12, 128  ;;  %s15057_s14 = smov [#allocation13]  }
 0x400   : > { %p14789_p8 = scmp.ne.s32.totalorder %s2350_s12, %s14788_s6  ;;  %s14793_s5 = sshll.u32 %s15057_s14, 4  ;;  %s14794_s5 = int_to_ptr.vmem [resolvable:$false] %s14793_s5 }
 0x401   : > { %s14795_s8 = scalar_lea.vmem %s14794_s5, 256  ;;  %p14796_p3 = scmp.lt.s32.totalorder %s2350_s12, %s14794_s5 }
 0x402   : > { %p14791_p5 = pnand %p14789_p8, %p17283_p12  ;;  %p14797_p7 = scmp.lt.s32.totalorder %s14795_s8, %s14788_s6 }
 0x404   : > { %p14792_p1 = pneg %p14791_p5  ;;  %p14798_p10 = por %p14797_p7, %p14796_p3 }
 0x406   : > { %p14799_p0 = pnand %p14798_p10, %p14792_p1 }
 0x408   : > { %14802 = shalt.err (!%p14799_p0)
}
 0x409   : > { %p17284_p11 = scmp.ne.s32.totalorder %s17245_s0, 0  ;;  %s17285_s23 = sld [smem:[#allocation147_spill]] }
 0x40b   : > { %13289 = dma.hbm_to_vmem [thread:$0]  (!%p17284_p11), %s15931_s9, 128, %s2350_s12, %s15570_s1  }
 0x40f   : > { %p17286_p6 = scmp.ne.s32.totalorder %s17285_s23, 0 }
 0x410   : > { %s17287_s22 = sld [smem:[#allocation146_spill]] (!%p17286_p6)  ;;  %s17288_s13 = sld [smem:[#allocation144_spill]] (!%p17286_p6) }
 0x411   : > { %2358 = sbr.rel (%p17286_p6) target bundleno = 20036 (0x4e44), region = 320  ;;  %s17289_s16 = sld [smem:[#allocation150_spill]] (!%p17286_p6) }
 0x416   : > { %s2360_s7 = sand.u32 (!%p17286_p6), 1, %s17287_s22   ;;  %s15951_s10 = sand.u32 (!%p17286_p6), 1, %s17288_s13  }
 0x417   : > { %s2361_s14 = scalar_lea.sflag (!%p17286_p6), [#allocation3], %s2360_s7  ;;  %p17290_p12 = scmp.ne.s32.totalorder (!%p17286_p6), %s17289_s16, 0 }
 0x419   : > { %14848 = dma.done.wait (%p17290_p12), %s2361_s14, 16  }
 0x41a   : > { %14850 = vsyncadd (%p17290_p12), %s2361_s14, 4294967280  ;;  %p17291_p9 = scmp.eq.s32.totalorder %s17287_s22, 0 }
 0x41c   : > { %14852 = dma.done.wait (%p17291_p9), [#allocation6], 384   ;;  %p17292_p2 = pmov %p17291_p9 }
 0x41e   : > { %14854 = vsyncadd (%p17292_p2), [#allocation6], 4294966912  ;;  %p17293_p4 = pmov %p17292_p2 }
 0x41f   : > { %p17294_p13 = pmov %p17292_p2 }
 0x420   : > { %14856 = dma.done.wait (%p17293_p4), [#allocation9], 256  }
 0x421   : > { %14858 = vsyncadd (%p17294_p13), [#allocation9], 4294967040  ;;  %s2383_s0 = scalar_lea.vmem [#allocation10], %s15951_s10 }
 0x422   : > { %14860 = dma.done.wait (%p17290_p12), %s2361_s14, 16  }
 0x423   : > { %14862 = vsyncadd (%p17290_p12), %s2361_s14, 4294967280  ;;  %p17295_p8 = pmov %p17292_p2 }
 0x424   : > { %p17296_p5 = pmov %p17292_p2 }
 0x425   : > { %14864 = dma.done.wait (%p17295_p8), [#allocation6], 128  }
 0x426   : > { %14866 = vsyncadd (%p17296_p5), [#allocation6], 4294967168 }
 0x427   : > { %14868 = dma.done.wait (%p17290_p12), %s2361_s14, 144  }
 0x428   : > { %14870 = vsyncadd (%p17290_p12), %s2361_s14, 4294967152  ;;  %s17108_s9 = sshll.u32 %s15951_s10, 3  ;;  %p17297_p1 = pmov %p17292_p2 }
 0x429   : > { %s15983_s12 = scalar_lea.vmem [#allocation13], %s17108_s9 }
 0x42a   : > { %14872 = dma.done.wait (%p17297_p1), [#allocation6], 16   ;;  %p17298_p3 = pmov %p17297_p1 }
 0x42b   : > { %p17299_p7 = pmov %p17297_p1 }
 0x42c   : > { %14874 = vsyncadd (%p17298_p3), [#allocation6], 4294967280 }
 0x42d   : > { %14876 = dma.done.wait (%p17299_p7), [#allocation9], 16   ;;  %p17300_p10 = pmov %p17297_p1 }
 0x42e   : > { %p17301_p0 = pmov %p17297_p1 }
 0x42f   : > { %14878 = vsyncadd (%p17300_p10), [#allocation9], 4294967280 }
 0x430   : > { %14880 = dma.done.wait (%p17301_p0), [#allocation17], 32   ;;  %p17302_p11 = pmov %p17301_p0 }
 0x431   : > { %p17303_p6 = pmov %p17301_p0 }
 0x432   : > { %14882 = vsyncadd (%p17302_p11), [#allocation17], 4294967264 }
 0x433   : > { %14884 = dma.done.wait (%p17303_p6), [#allocation20], 32   ;;  %p17304_p12 = pmov %p17301_p0 }
 0x434   : > { %p17305_p9 = pmov %p17301_p0 }
 0x435   : > { %14886 = vsyncadd (%p17304_p12), [#allocation20], 4294967264 }
 0x436   : > { %14888 = dma.done.wait (%p17305_p9), [#allocation23], 32   ;;  %p17306_p2 = pmov %p17301_p0 }
 0x437   : > { %p17307_p4 = pmov %p17301_p0 }
 0x438   : > { %14890 = vsyncadd (%p17306_p2), [#allocation23], 4294967264 }
 0x439   : > { %14892 = dma.done.wait (%p17307_p4), [#allocation26], 32   ;;  %p17308_p13 = pmov %p17301_p0 }
 0x43a   : > { %p17309_p8 = pmov %p17301_p0 }
 0x43b   : > { %14894 = vsyncadd (%p17308_p13), [#allocation26], 4294967264 }
 0x43c   : > { %14896 = dma.done.wait (%p17309_p8), [#allocation29], 32   ;;  %p17310_p5 = pmov %p17301_p0 }
 0x43d   : > { %p17311_p1 = pmov %p17301_p0 }
 0x43e   : > { %14898 = vsyncadd (%p17310_p5), [#allocation29], 4294967264 }
 0x43f   : > { %14900 = dma.done.wait (%p17311_p1), [#allocation32], 32   ;;  %p17312_p3 = pmov %p17301_p0 }
 0x440   : > { %p17313_p7 = pmov %p17301_p0 }
 0x441   : > { %14902 = vsyncadd (%p17312_p3), [#allocation32], 4294967264 }
 0x442   : > { %14904 = dma.done.wait (%p17313_p7), [#allocation35], 32   ;;  %p17314_p10 = pmov %p17301_p0 }
 0x444   : > { %14906 = vsyncadd (%p17314_p10), [#allocation35], 4294967264 }
 0x445   : > { %14908 = dma.done.wait (%p17301_p0), [#allocation38], 32   ;;  %p17315_p11 = pmov %p17301_p0 }
 0x446   : > { %p17316_p6 = pmov %p17301_p0 }
 0x447   : > { %14910 = vsyncadd (%p17315_p11), [#allocation38], 4294967264 }
 0x448   : > { %14912 = dma.done.wait (%p17316_p6), [#allocation41], 32   ;;  %p17317_p12 = pmov %p17301_p0 }
 0x449   : > { %p17318_p9 = pmov %p17301_p0 }
 0x44a   : > { %14914 = vsyncadd (%p17317_p12), [#allocation41], 4294967264 }
 0x44b   : > { %14916 = dma.done.wait (%p17318_p9), [#allocation44], 32   ;;  %p17319_p2 = pmov %p17301_p0 }
 0x44c   : > { %p17320_p4 = pmov %p17301_p0 }
 0x44d   : > { %14918 = vsyncadd (%p17319_p2), [#allocation44], 4294967264 }
 0x44e   : > { %14920 = dma.done.wait (%p17320_p4), [#allocation47], 32   ;;  %p17321_p13 = pmov %p17301_p0 }
 0x44f   : > { %p17322_p8 = pmov %p17301_p0 }
 0x450   : > { %14922 = vsyncadd (%p17321_p13), [#allocation47], 4294967264 }
 0x451   : > { %14924 = dma.done.wait (%p17322_p8), [#allocation50], 32   ;;  %p17323_p5 = pmov %p17301_p0 }
 0x452   : > { %s17324_s5 = sld [smem:[#allocation77_spill]]  ;;  %s17325_s8 = sld [smem:[#allocation124_spill]]  ;;  %v2722_v9 = vld [vmem:[#allocation5] sm:$0xff]  ;;  %vm2742_vm0 = vcmask 261120   ;;  %v2723_v12 = vld [vmem:[#allocation5 + $0x8] sm:$0x3] }
 0x453   : > { %14926 = vsyncadd (%p17323_p5), [#allocation50], 4294967264  ;;  %p2692_p1 = scmp.lt.s32.totalorder %s17287_s22, 1  ;;  %s17326_s7 = sld [smem:[#allocation122_spill]]  ;;  %vm2830_vm1 = vcmask 64512   ;;  %v2697_v39 = vld [vmem:[#allocation8] sm:$0xff] }
 0x454   : > { %s17123_s14 = smov 120   ;;  %vm16083_vm2 = vmpackc.low %vm2830_vm1, %vm2830_vm1  ;;  %v2698_v37 = vld [vmem:[#allocation8 + $0x8] sm:$0x3]  ;;  %v11556_v38 = vld [vmem:[%s2383_s0] ss:$0 sm:$0xff]  ;;  %vm2922_vm3 = vcmask 74752  }
 0x455   : > { %s2693_s23 = scalar_select %p2692_p1, %s17287_s22, 1  ;;  %v16107_v40 = vadd.f32 %v11556_v38, %v2698_v37  ;;  %v16109_v42 = vadd.f32 %v11556_v38, %v2697_v39  ;;  %vm2918_vm4 = vcmask 80896   ;;  %vm2953_vm5 = vcmask 1041408  }
 0x456   : > { %s17109_s0 = smov 56   ;;  %s17119_s9 = smov 64   ;;  %vm15069_vm6 = vmmov 1   ;;  %vm3989_vm8 = vcmask 254976   ;;  %vm4139_vm9 = vcmask 523264   ;;  %vm15071_vm10 = vmmov 0  }
 0x457   : > { %s11785_s13 = sshll.u32 %s2693_s23, 4  ;;  %s17129_s23 = smov 88   ;;  %vm16148_vm7 = vmpackc.low %vm2953_vm5, %vm15069_vm6  ;;  %vm10975_vm11 = vcmask 97280  }
 0x458   : > { %s2696_s16 = scalar_lea.vmem %s17324_s5, %s11785_s13  ;;  %v2726_v0 = vld [vmem:[%s17325_s8] sm:$0xff]  ;;  %v2727_v1 = vld [vmem:[%s17325_s8 + $0x8] sm:$0xff]  ;;  %v2728_v2 = vld [vmem:[%s17325_s8 + $0x10] sm:$0xff]  ;;  %s17127_s5 = smov 96  }
 0x459   : > { %v12738_v3 = vpack.c.bf16 %v2727_v1, %v2726_v0  ;;  %v2729_v4 = vld [vmem:[%s17325_s8 + $0x18] sm:$0xff]  ;;  %v2718_v5 = vld [vmem:[%s2696_s16] sm:$0xff]  ;;  %v2719_v6 = vld [vmem:[%s2696_s16 + $0x8] sm:$0x3]  ;;  %s17121_s13 = smov 112   ;;  %s17125_s16 = smov 80  }
 0x45a   : > { %v12742_v7 = vpack.c.bf16 %v2729_v4, %v2728_v2  ;;  %v2720_v8 = vmul.f32 5.656854, %v2718_v5  ;;  %v2721_v10 = vmul.f32 5.656854, %v2719_v6  ;;  %v11558_v14 = vld [vmem:[%s17326_s7] ss:$0 sm:$0xff] }
 0x45b   : > { %12739 = vmatprep.subr.bf16.mxu0 %v12738_v3  ;;  %s17117_s7 = smov 72   ;;  %s17115_s6 = smov 104  }
 0x45c   : > { %12741 = vmatpush3.bf16.msra.mxu0 %v12738_v3  ;;  %v16048_v11 = vadd.f32 %v2722_v9, %v2720_v8  ;;  %v16052_v13 = vadd.f32 %v2723_v12, %v2721_v10  ;;  %s17113_s1 = smov 48   ;;  %s17351_s2 = smov 48  }
 0x45d   : > { %12743 = vmatprep.subr.bf16.mxu0 %v12742_v7  ;;  %s17352_s3 = smov 40   ;;  %s17353_s4 = sld [smem:[#allocation135_spill]] }
 0x45e   : > { %12103 = vmatprep.mubr.msk.f32.mxu0 %vm2742_vm0, %v16048_v11  ;;  %s17367_s8 = sld [smem:[#allocation132_spill]] }
 0x460   : > { %12745 = vmatpush3.bf16.msra.mxu0 %v12742_v7 }
 0x463   : > { %12104 = vmatmul.mubr.msk.f32.vlgmr.msra.gmra.mrb[0].mxu0 %vm2742_vm0, %v16052_v13 }
 0x536   : > { %v12105_v15 = vpop.f32.mrb[0].mxu0 }
 0x537   : > { %v16057_v16 = vadd.f32 %v12105_v15, %v11558_v14  ;;  %v2815_v17 = vpop.f32.mrb[1].mxu0 }
 0x538   : > { %v16059_v18 = vadd.f32 %v11558_v14, %v2815_v17 }
 0x53a   : > { %3031 = vrot.lane.b32.xlu1 %v16059_v18, %s17123_s14  ;;  %12110 = vmatprep.mubr.msk.f32.mxu1 %vm2830_vm1, %v16059_v18  ;;  %v16067_v19 = vpack.i.bf16 %v16057_v16, %v16059_v18 }
 0x53c   : > { %13511 = vrot.lane.b32.xlu0 %v16067_v19, %s17127_s5 }
 0x53e   : > { %3033 = vrot.lane.b32.xlu1 %v16057_v16, %s17123_s14  ;;  %s17343_s14 = sld [smem:[#allocation134_spill]] }
 0x540   : > { %13516 = vrot.lane.b32.xlu0 %v16067_v19, %s17129_s23 }
 0x542   : > { %3398 = vrot.lane.b32.xlu1 %v16059_v18, %s17121_s13 }
 0x544   : > { %13521 = vrot.lane.b32.xlu0 %v16067_v19, %s17125_s16 }
 0x548   : > { %3400 = vrot.lane.b32.xlu0 %v16057_v16, %s17121_s13  ;;  %s17338_s13 = sld [smem:[#allocation118_spill]] }
 0x5ac   : > { %v3032_v30 = vpop.permute.xlu1 %3031 }
 0x5ae   : > { %v13512_v20 = vpop.permute.xlu0 %13511 }
 0x5af   : > { %v13514_v21 = vunpack.i.h.bf16 %v13512_v20  ;;  %v13513_v22 = vunpack.i.l.bf16 %v13512_v20 }
 0x5b0   : > { %v3034_v34 = vpop.permute.xlu1 %3033 }
 0x5b1   : > { %v12746_v24 = vpack.c.bf16 %v13514_v21, %v13513_v22 }
 0x5b2   : > { %v13517_v25 = vpop.permute.xlu0 %13516 }
 0x5b3   : > { %v13519_v26 = vunpack.i.h.bf16 %v13517_v25  ;;  %v13518_v27 = vunpack.i.l.bf16 %v13517_v25  ;;  %12748 = vmatprep.subr.msk.bf16.mxu1 %vm16083_vm2, %v12746_v24 }
 0x5b4   : > { %12751 = vmatpush3.bf16.xpose.msk.msra.mxu1 %vm16083_vm2, %v12746_v24  ;;  %v3399_v35 = vpop.permute.xlu1 %3398 }
 0x5b5   : > { %v12758_v28 = vpack.c.bf16 %v13519_v26, %v13518_v27 }
 0x5b6   : > { %v13522_v29 = vpop.permute.xlu0 %13521 }
 0x5b7   : > { %v13524_v31 = vunpack.i.h.bf16 %v13522_v29  ;;  %v13523_v32 = vunpack.i.l.bf16 %v13522_v29  ;;  %12760 = vmatprep.subr.msk.bf16.mxu1 %vm16083_vm2, %v12758_v28 }
 0x5b9   : > { %v12770_v33 = vpack.c.bf16 %v13524_v31, %v13523_v32 }
 0x5ba   : > { %v3401_v36 = vpop.permute.xlu0 %3400 }
 0x5bb   : > { %12111 = vmatmul.mubr.msk.f32.vlgmr.msra.gmra.mrb[0].mxu1 %vm2830_vm1, %v16057_v16 }
 0x5bc   : > { %12763 = vmatpush3.bf16.xpose.msk.msra.mxu1 %vm16083_vm2, %v12758_v28  ;;  %12124 = vmatprep.mubr.msk.f32.mxu1 %vm2830_vm1, %v3032_v30 }
 0x5bd   : > { %12772 = vmatprep.subr.msk.bf16.mxu1 %vm16083_vm2, %v12770_v33 }
 0x5c3   : > { %12125 = vmatmul.mubr.msk.f32.vlgmr.msra.gmra.mrb[2].mxu1 %vm2830_vm1, %v3034_v34 }
 0x5c4   : > { %12775 = vmatpush3.bf16.xpose.msk.msra.mxu1 %vm16083_vm2, %v12770_v33  ;;  %12148 = vmatprep.mubr.msk.f32.mxu1 %vm2830_vm1, %v3399_v35 }
 0x5cb   : > { %12149 = vmatmul.mubr.msk.f32.vlgmr.msra.gmra.mrb[4].mxu1 %vm2830_vm1, %v3401_v36 }
 0x68e   : > { %v12112_v41 = vpop.f32.mrb[0].mxu1 }
 0x68f   : > { %v2915_v43 = vmul.f32 0.35355338, %v12112_v41  ;;  %v2905_v44 = vpop.f32.mrb[1].mxu1 }
 0x690   : > { %v2914_v45 = vmul.f32 0.35355338, %v2905_v44 }
 0x691   : > { %v2917_v46 = vadd.f32 %v2915_v43, %v16107_v40 }
 0x692   : > { %v2916_v47 = vadd.f32 %v2914_v45, %v16109_v42 }
 0x693   : > { %v2923_v48 = vsel %vm2922_vm3, %v2917_v46, -inf }
 0x694   : > { %2924 = vmax.xlane.f32.xlu0 %v2923_v48  ;;  %v2919_v49 = vsel %vm2918_vm4, %v2916_v47, -inf }
 0x695   : > { %2920 = vmax.xlane.f32.xlu1 %v2919_v49 }
 0x696   : > { %v12126_v50 = vpop.f32.mrb[2].mxu1 }
 0x697   : > { %v3123_v51 = vmul.f32 0.35355338, %v12126_v50  ;;  %v3113_v52 = vpop.f32.mrb[3].mxu1 }
 0x698   : > { %v3122_v53 = vmul.f32 0.35355338, %v3113_v52 }
 0x699   : > { %v3125_v54 = vadd.f32 %v3123_v51, %v16107_v40 }
 0x69a   : > { %v3124_v55 = vadd.f32 %v3122_v53, %v16109_v42 }
 0x69b   : > { %v3129_v56 = vsel %vm2922_vm3, %v3125_v54, -inf }
 0x69c   : > { %3130 = vmax.xlane.f32.xlu1 %v3129_v56  ;;  %v3126_v57 = vsel %vm2918_vm4, %v3124_v55, -inf }
 0x69d   : > { %3127 = vmax.xlane.f32.xlu0 %v3126_v57 }
 0x69e   : > { %v12150_v58 = vpop.f32.mrb[4].mxu1 }
 0x69f   : > { %v3480_v59 = vpop.f32.mrb[5].mxu1  ;;  %v3490_v22 = vmul.f32 0.35355338, %v12150_v58 }
 0x6a0   : > { %v3489_v21 = vmul.f32 0.35355338, %v3480_v59 }
 0x6a1   : > { %v3492_v25 = vadd.f32 %v3490_v22, %v16107_v40 }
 0x6a2   : > { %v3491_v24 = vadd.f32 %v3489_v21, %v16109_v42 }
 0x6a3   : > { %v3496_v27 = vsel %vm2922_vm3, %v3492_v25, -inf }
 0x6a4   : > { %v3493_v26 = vsel %vm2918_vm4, %v3491_v24, -inf }
 0x721   : > { %v2925_v60 = vpop.xlane.xlu0 %2924 }
 0x722   : > { %v2927_v61 = vsub.f32 %v2917_v46, %v2925_v60  ;;  %v2921_v62 = vpop.xlane.xlu1 %2920 }
 0x723   : > { %v2926_v63 = vsub.f32 %v2916_v47, %v2921_v62 }
 0x724   : > { %v2930_v0 = vmul.f32 1.442695, %v2927_v61 }
 0x725   : > { %v2928_v1 = vmul.f32 1.442695, %v2926_v63 }
 0x726   : > { %13680 = vpow2.f32 %v2930_v0 }
 0x727   : > { %13682 = vpow2.f32 %v2928_v1 }
 0x729   : > { %v3131_v2 = vpop.xlane.xlu1 %3130 }
 0x72a   : > { %v3133_v3 = vsub.f32 %v3125_v54, %v3131_v2  ;;  %v3128_v4 = vpop.xlane.xlu0 %3127 }
 0x72b   : > { %v3132_v5 = vsub.f32 %v3124_v55, %v3128_v4 }
 0x72c   : > { %v3136_v6 = vmul.f32 1.442695, %v3133_v3 }
 0x72d   : > { %v3134_v7 = vmul.f32 1.442695, %v3132_v5 }
 0x72e   : > { %13684 = vpow2.f32 %v3136_v6 }
 0x72f   : > { %13686 = vpow2.f32 %v3134_v7 }
 0x730   : > { %v16119_v8 = vpop.eup %13680 }
 0x731   : > { %v13683_v9 = vpop.eup %13682  ;;  %v2935_v10 = vsel %vm2922_vm3, %v16119_v8, 0.0 }
 0x732   : > { %2936 = vadd.xlane.f32.xlu1 %v2935_v10  ;;  %v2932_v12 = vsel %vm2918_vm4, %v13683_v9, 0.0 }
 0x733   : > { %2933 = vadd.xlane.f32.xlu0 %v2932_v12 }
 0x738   : > { %v16124_v14 = vpop.eup %13684 }
 0x739   : > { %v13687_v15 = vpop.eup %13686  ;;  %v3141_v17 = vsel %vm2922_vm3, %v16124_v14, 0.0 }
 0x73a   : > { %3142 = vadd.xlane.f32.xlu1 %v3141_v17  ;;  %v3138_v20 = vsel %vm2918_vm4, %v13687_v15, 0.0 }
 0x73b   : > { %3139 = vadd.xlane.f32.xlu0 %v3138_v20 }
 0x74b   : > { %13531 = vrot.lane.b32.xlu1 %v16067_v19, %s17109_s0  ;;  %s17111_s0 = smov 40  }
 0x74f   : > { %13536 = vrot.lane.b32.xlu1 %v16067_v19, %s17117_s7 }
 0x751   : > { %13526 = vrot.lane.b32.xlu0 %v16067_v19, %s17119_s9  ;;  %s17337_s9 = sld [smem:[#allocation119_spill]] }
 0x753   : > { %3688 = vrot.lane.b32.xlu1 %v16057_v16, %s17115_s6 }
 0x755   : > { %3686 = vrot.lane.b32.xlu0 %v16059_v18, %s17115_s6  ;;  %s17334_s6 = sld [smem:[#allocation116_spill]] }
 0x774   : > { %3494 = vmax.xlane.f32.xlu0 %v3493_v26 }
 0x777   : > { %3497 = vmax.xlane.f32.xlu1 %v3496_v27 }
 0x788   : > { %13541 = vrot.lane.b32.xlu1 %v16067_v19, %s17113_s1 }
 0x78c   : > { %13546 = vrot.lane.b32.xlu1 %v16067_v19, %s17111_s0  ;;  %s17331_s0 = sld [smem:[#allocation125_spill]] }
 0x792   : > { %s17332_s1 = smov %s17331_s0  ;;  %v2732_v0 = vld [vmem:[%s17331_s0 + $0x8] sm:$0xff]  ;;  %s17333_s0 = sld [smem:[#allocation123_spill]] }
 0x793   : > { %v2731_v1 = vld [vmem:[%s17332_s1] sm:$0xff] }
 0x7bf   : > { %v2937_v18 = vpop.xlane.xlu1 %2936 }
 0x7c0   : > { %v2934_v16 = vpop.xlane.xlu0 %2933 }
 0x7c1   : > { %13688 = vrcp.f32 %v2934_v16 }
 0x7c2   : > { %13690 = vrcp.f32 %v2937_v18  ;;  %v2733_v18 = vld [vmem:[%s17332_s1 + $0x10] sm:$0xff] }
 0x7c7   : > { %v3143_v28 = vpop.xlane.xlu1 %3142 }
 0x7c8   : > { %v3140_v29 = vpop.xlane.xlu0 %3139 }
 0x7c9   : > { %13692 = vrcp.f32 %v3140_v29 }
 0x7ca   : > { %13694 = vrcp.f32 %v3143_v28 }
 0x7cb   : > { %v13689_v30 = vpop.eup %13688  ;;  %v13532_v31 = vpop.permute.xlu1 %13531 }
 0x7cc   : > { %v13527_v32 = vpop.permute.xlu0 %13526  ;;  %v2940_v33 = vmul.f32 %v13689_v30, %v13683_v9  ;;  %v13534_v34 = vunpack.i.h.bf16 %v13532_v31  ;;  %v13533_v35 = vunpack.i.l.bf16 %v13532_v31  ;;  %v13691_v41 = vpop.eup %13690 }
 0x7cd   : > { %v13529_v36 = vunpack.i.h.bf16 %v13527_v32  ;;  %v13528_v37 = vunpack.i.l.bf16 %v13527_v32  ;;  %v2941_v49 = vmul.f32 %v13691_v41, %v16119_v8 }
 0x7ce   : > { %12117 = vmatprep.mubr.msk.f32.mxu0 %vm2918_vm4, %v2940_v33  ;;  %v12764_v46 = vpack.c.bf16 %v13534_v34, %v13533_v35 }
 0x7cf   : > { %v12752_v38 = vpack.c.bf16 %v13529_v36, %v13528_v37  ;;  %v13537_v39 = vpop.permute.xlu1 %13536 }
 0x7d0   : > { %v13539_v43 = vunpack.i.h.bf16 %v13537_v39  ;;  %v13538_v44 = vunpack.i.l.bf16 %v13537_v39  ;;  %v3687_v45 = vpop.permute.xlu0 %3686 }
 0x7d1   : > { %12754 = vmatprep.subr.msk.bf16.mxu0 %vm16148_vm7, %v12752_v38  ;;  %12167 = vmatprep.mubr.msk.f32.mxu1 %vm2830_vm1, %v3687_v45 }
 0x7d2   : > { %v12782_v47 = vpack.c.bf16 %v13539_v43, %v13538_v44  ;;  %12757 = vmatpush3.bf16.msk.msra.mxu0 %vm16148_vm7, %v12752_v38 }
 0x7d3   : > { %v13693_v48 = vpop.eup %13692  ;;  %12766 = vmatprep.subr.msk.bf16.mxu0 %vm16148_vm7, %v12764_v46  ;;  %v3689_v53 = vpop.permute.xlu1 %3688 }
 0x7d4   : > { %v13695_v50 = vpop.eup %13694  ;;  %12784 = vmatprep.subr.msk.bf16.mxu1 %vm16083_vm2, %v12782_v47  ;;  %v3146_v51 = vmul.f32 %v13693_v48, %v13687_v15 }
 0x7d5   : > { %12118 = vmatmul.mubr.msk.f32.vlgmr.msra.gmra.mrb[2].mxu0 %vm2918_vm4, %v2941_v49  ;;  %12787 = vmatpush3.bf16.xpose.msk.msra.mxu1 %vm16083_vm2, %v12782_v47  ;;  %v3147_v52 = vmul.f32 %v13695_v50, %v16124_v14  ;;  %v2734_v47 = vld [vmem:[%s17332_s1 + $0x18] sm:$0xff]  ;;  %s17350_s1 = sld [smem:[#allocation137_spill]] }
 0x7d6   : > { %12769 = vmatpush3.bf16.msk.msra.mxu0 %vm16148_vm7, %v12764_v46  ;;  %12131 = vmatprep.mubr.msk.f32.mxu0 %vm2918_vm4, %v3146_v51 }
 0x7d7   : > { %12134 = vmatprep.subr.mxu0 %v2732_v0 }
 0x7d9   : > { %12132 = vmatmul.mubr.msk.f32.vlgmr.msra.gmra.mrb[4].mxu0 %vm2918_vm4, %v3147_v52 }
 0x7da   : > { %12135 = vmatpush3.msra.mxu0 %v2732_v0 }
 0x7db   : > { %12139 = vmatprep.subr.mxu0 %v2731_v1 }
 0x7dc   : > { %12168 = vmatmul.mubr.msk.f32.vlgmr.msra.gmra.mrb[6].mxu1 %vm2830_vm1, %v3689_v53 }
 0x801   : > { %v3495_v54 = vpop.xlane.xlu0 %3494 }
 0x802   : > { %v3499_v55 = vsub.f32 %v3491_v24, %v3495_v54 }
 0x804   : > { %v3501_v56 = vmul.f32 1.442695, %v3499_v55  ;;  %v3498_v57 = vpop.xlane.xlu1 %3497 }
 0x805   : > { %v3500_v58 = vsub.f32 %v3492_v25, %v3498_v57 }
 0x806   : > { %13696 = vpow2.f32 %v3501_v56  ;;  %v11597_v56 = vld [vmem:[%s17333_s0] ss:$0 sm:$0xff]  ;;  %s17335_s0 = sld [smem:[#allocation117_spill]] }
 0x807   : > { %v3503_v59 = vmul.f32 1.442695, %v3500_v58 }
 0x808   : > { %v13542_v3 = vpop.permute.xlu1 %13541 }
 0x809   : > { %13698 = vpow2.f32 %v3503_v59  ;;  %v13544_v7 = vunpack.i.h.bf16 %v13542_v3  ;;  %v13543_v8 = vunpack.i.l.bf16 %v13542_v3 }
 0x80b   : > { %v12776_v12 = vpack.c.bf16 %v13544_v7, %v13543_v8 }
 0x80c   : > { %v13547_v24 = vpop.permute.xlu1 %13546  ;;  %s17336_s7 = smov %s17335_s0 }
 0x80d   : > { %v13549_v28 = vunpack.i.h.bf16 %v13547_v24  ;;  %v13548_v29 = vunpack.i.l.bf16 %v13547_v24 }
 0x80f   : > { %v12788_v32 = vpack.c.bf16 %v13549_v28, %v13548_v29 }
 0x810   : > { %v13697_v60 = vpop.eup %13696 }
 0x811   : > { %v3505_v61 = vsel %vm2918_vm4, %v13697_v60, 0.0 }
 0x812   : > { %3506 = vadd.xlane.f32.xlu0 %v3505_v61 }
 0x813   : > { %v13699_v62 = vpop.eup %13698 }
 0x814   : > { %v3508_v63 = vsel %vm2922_vm3, %v13699_v62, 0.0 }
 0x816   : > { %3509 = vadd.xlane.f32.xlu0 %v3508_v63 }
 0x89f   : > { %v3507_v2 = vpop.xlane.xlu0 %3506 }
 0x8a0   : > { %13700 = vrcp.f32 %v3507_v2 }
 0x8a3   : > { %v3510_v5 = vpop.xlane.xlu0 %3509 }
 0x8a4   : > { %13702 = vrcp.f32 %v3510_v5 }
 0x8a8   : > { %v12119_v4 = vpop.f32.mrb[2].mxu0 }
 0x8a9   : > { %v3022_v6 = vpop.f32.mrb[3].mxu0 }
 0x8aa   : > { %v13701_v21 = vpop.eup %13700 }
 0x8ab   : > { %v3513_v16 = vmul.f32 %v13701_v21, %v13697_v60  ;;  %v4125_v21 = vld [vmem:[%s17336_s7 + $0x8] sm:$0xff] }
 0x8ac   : > { %v12133_v9 = vpop.f32.mrb[4].mxu0 }
 0x8ad   : > { %v3227_v10 = vpop.f32.mrb[5].mxu0 }
 0x8ae   : > { %12136 = vmatprep.mubr.msk.f32.mxu0 %vm2830_vm1, %v3227_v10  ;;  %v13703_v27 = vpop.eup %13702  ;;  %v4031_v10 = vld [vmem:[%s17334_s6 + $0x8] sm:$0xff] }
 0x8af   : > { %12137 = vmatmul.mubr.msk.f32.vlgmr.msra.gmra.mrb[6].mxu0 %vm2830_vm1, %v12133_v9  ;;  %v12169_v14 = vpop.f32.mrb[6].mxu1  ;;  %v3514_v31 = vmul.f32 %v13703_v27, %v13699_v62  ;;  %v4030_v9 = vld [vmem:[%s17334_s6] sm:$0xff] }
 0x8b0   : > { %12140 = vmatpush3.msra.mxu0 %v2731_v1  ;;  %12141 = vmatprep.mubr.msk.f32.mxu0 %vm2830_vm1, %v3022_v6  ;;  %v3768_v15 = vpop.f32.mrb[7].mxu1  ;;  %v3778_v17 = vmul.f32 0.35355338, %v12169_v14  ;;  %v12794_v14 = vpack.c.bf16 %v4031_v10, %v4030_v9  ;;  %v4128_v27 = vld [vmem:[%s17336_s7 + $0x20] sm:$0xff] }
 0x8b1   : > { %12778 = vmatprep.subr.msk.bf16.mxu0 %vm16148_vm7, %v12776_v12  ;;  %v3777_v20 = vmul.f32 0.35355338, %v3768_v15  ;;  %v4033_v15 = vld [vmem:[%s17334_s6 + $0x18] sm:$0xff] }
 0x8b2   : > { %v3780_v26 = vadd.f32 %v3778_v17, %v16107_v40  ;;  %12795 = vmatprep.subr.bf16.mxu1 %v12794_v14 }
 0x8b3   : > { %v3779_v22 = vadd.f32 %v3777_v20, %v16109_v42  ;;  %12797 = vmatpush3.bf16.msra.mxu1 %v12794_v14  ;;  %v4124_v20 = vld [vmem:[%s17335_s0] sm:$0xff]  ;;  %s17339_s0 = sld [smem:[#allocation115_spill]] }
 0x8b4   : > { %v3784_v30 = vsel %vm2922_vm3, %v3780_v26, -inf  ;;  %v12802_v24 = vpack.c.bf16 %v4125_v21, %v4124_v20 }
 0x8b5   : > { %v3781_v25 = vsel %vm2918_vm4, %v3779_v22, -inf }
 0x8b6   : > { %3782 = vmax.xlane.f32.xlu0 %v3781_v25  ;;  %v4127_v25 = vld [vmem:[%s17336_s7 + $0x18] sm:$0xff] }
 0x8b7   : > { %12142 = vmatmul.mubr.msk.f32.vlgmr.msra.gmra.mrb[6].mxu0 %vm2830_vm1, %v12119_v4 }
 0x8b8   : > { %12781 = vmatpush3.bf16.msk.msra.mxu0 %vm16148_vm7, %v12776_v12  ;;  %12155 = vmatprep.mubr.msk.f32.mxu0 %vm2918_vm4, %v3513_v16  ;;  %v4032_v12 = vld [vmem:[%s17334_s6 + $0x10] sm:$0xff]  ;;  %v4129_v16 = vld [vmem:[%s17336_s7 + $0x28] sm:$0xff]  ;;  %s17356_s6 = sld [smem:[#allocation131_spill]] }
 0x8b9   : > { %12158 = vmatprep.subr.mxu0 %v2733_v18  ;;  %v12798_v17 = vpack.c.bf16 %v4033_v15, %v4032_v12 }
 0x8ba   : > { %3785 = vmax.xlane.f32.xlu0 %v3784_v30 }
 0x8bb   : > { %12156 = vmatmul.mubr.msk.f32.vlgmr.msra.gmra.mrb[8].mxu0 %vm2918_vm4, %v3514_v31  ;;  %12799 = vmatprep.subr.bf16.mxu1 %v12798_v17 }
 0x8bc   : > { %12159 = vmatpush3.msra.mxu0 %v2733_v18  ;;  %12801 = vmatpush3.bf16.msra.mxu1 %v12798_v17  ;;  %v12810_v18 = vpack.c.bf16 %v4129_v16, %v4128_v27 }
 0x8bd   : > { %12790 = vmatprep.subr.msk.bf16.mxu0 %vm16148_vm7, %v12788_v32 }
 0x943   : > { %v3783_v33 = vpop.xlane.xlu0 %3782 }
 0x944   : > { %v3787_v34 = vsub.f32 %v3779_v22, %v3783_v33  ;;  %v4126_v22 = vld [vmem:[%s17336_s7 + $0x10] sm:$0xff] }
 0x946   : > { %v3789_v35 = vmul.f32 1.442695, %v3787_v34 }
 0x947   : > { %v3786_v36 = vpop.xlane.xlu0 %3785 }
 0x948   : > { %13704 = vpow2.f32 %v3789_v35  ;;  %v3788_v37 = vsub.f32 %v3780_v26, %v3786_v36  ;;  %v12806_v26 = vpack.c.bf16 %v4127_v25, %v4126_v22  ;;  %v11598_v35 = vld [vmem:[%s17337_s9] ss:$0 sm:$0xff]  ;;  %s17340_s9 = sld [smem:[#allocation136_spill]] }
 0x94a   : > { %v3791_v38 = vmul.f32 1.442695, %v3788_v37  ;;  %v11599_v37 = vld [vmem:[%s17338_s13] ss:$0 sm:$0xff]  ;;  %s17341_s13 = sld [smem:[#allocation121_spill]] }
 0x94c   : > { %13706 = vpow2.f32 %v3791_v38 }
 0x94e   : > { %v4267_v9 = vld [vmem:[%s17340_s9] sm:$0xff]  ;;  %v4268_v10 = vld [vmem:[%s17340_s9 + $0x8] sm:$0xff]  ;;  %v4269_v12 = vld [vmem:[%s17340_s9 + $0x10] sm:$0xff] }
 0x94f   : > { %v12818_v14 = vpack.c.bf16 %v4268_v10, %v4267_v9  ;;  %v4270_v15 = vld [vmem:[%s17340_s9 + $0x18] sm:$0xff] }
 0x950   : > { %v12822_v17 = vpack.c.bf16 %v4270_v15, %v4269_v12  ;;  %v11606_v16 = vld [vmem:[%s17341_s13] ss:$0 sm:$0xff]  ;;  %s17345_s13 = smov 112  }
 0x951   : > { %12819 = vmatprep.subr.bf16.mxu1 %v12818_v14 }
 0x952   : > { %v13705_v39 = vpop.eup %13704 }
 0x953   : > { %v3793_v41 = vsel %vm2918_vm4, %v13705_v39, 0.0 }
 0x954   : > { %3794 = vadd.xlane.f32.xlu0 %v3793_v41 }
 0x956   : > { %v13707_v43 = vpop.eup %13706 }
 0x957   : > { %v3796_v44 = vsel %vm2922_vm3, %v13707_v43, 0.0 }
 0x958   : > { %3797 = vadd.xlane.f32.xlu0 %v3796_v44 }
 0x98e   : > { %v12157_v45 = vpop.f32.mrb[8].mxu0 }
 0x98f   : > { %v3594_v46 = vpop.f32.mrb[9].mxu0 }
 0x990   : > { %12160 = vmatprep.mubr.msk.f32.mxu0 %vm2830_vm1, %v3594_v46  ;;  %v4130_v46 = vld [vmem:[%s17336_s7 + $0x30] sm:$0xff] }
 0x991   : > { %12161 = vmatmul.mubr.msk.f32.vlgmr.msra.gmra.mrb[6].mxu0 %vm2830_vm1, %v12157_v45 }
 0x992   : > { %12793 = vmatpush3.bf16.msk.msra.mxu0 %vm16148_vm7, %v12788_v32 }
 0x993   : > { %12177 = vmatprep.subr.mxu0 %v2734_v47 }
 0x9e1   : > { %v3795_v48 = vpop.xlane.xlu0 %3794 }
 0x9e2   : > { %13708 = vrcp.f32 %v3795_v48 }
 0x9e5   : > { %v3798_v49 = vpop.xlane.xlu0 %3797 }
 0x9e6   : > { %13710 = vrcp.f32 %v3798_v49  ;;  %v11600_v49 = vld [vmem:[#allocation49] ss:$0 sm:$0xff] }
 0x9ec   : > { %v13709_v50 = vpop.eup %13708 }
 0x9ed   : > { %v3801_v51 = vmul.f32 %v13709_v50, %v13705_v39 }
 0x9ef   : > { %12174 = vmatprep.mubr.msk.f32.mxu0 %vm2918_vm4, %v3801_v51 }
 0x9f0   : > { %v13711_v52 = vpop.eup %13710 }
 0x9f1   : > { %v3802_v53 = vmul.f32 %v13711_v52, %v13707_v43 }
 0x9f3   : > { %12175 = vmatmul.mubr.msk.f32.vlgmr.msra.gmra.mrb[10].mxu0 %vm2918_vm4, %v3802_v53 }
 0x9f4   : > { %12178 = vmatpush3.msra.mxu0 %v2734_v47  ;;  %v4131_v47 = vld [vmem:[%s17336_s7 + $0x38] sm:$0xff]  ;;  %s17357_s7 = sld [smem:[#allocation130_spill]] }
 0x9f5   : > { %12803 = vmatprep.subr.bf16.mxu0 %v12802_v24  ;;  %v12814_v48 = vpack.c.bf16 %v4131_v47, %v4130_v46 }
 0xac6   : > { %v12176_v54 = vpop.f32.mrb[10].mxu0 }
 0xac7   : > { %v3882_v55 = vpop.f32.mrb[11].mxu0 }
 0xac8   : > { %12179 = vmatprep.mubr.msk.f32.mxu0 %vm2830_vm1, %v3882_v55 }
 0xac9   : > { %12180 = vmatmul.mubr.msk.f32.vlgmr.msra.gmra.mrb[6].mxu0 %vm2830_vm1, %v12176_v54 }
 0xaca   : > { %12805 = vmatpush3.bf16.msra.mxu0 %v12802_v24 }
 0xacb   : > { %12807 = vmatprep.subr.bf16.mxu0 %v12806_v26 }
 0xace   : > { %12809 = vmatpush3.bf16.msra.mxu0 %v12806_v26 }
 0xacf   : > { %12811 = vmatprep.subr.bf16.mxu0 %v12810_v18 }
 0xad2   : > { %12813 = vmatpush3.bf16.msra.mxu0 %v12810_v18 }
 0xad3   : > { %12815 = vmatprep.subr.bf16.mxu0 %v12814_v48 }
 0xad6   : > { %12817 = vmatpush3.bf16.msra.mxu0 %v12814_v48 }
 0xb9c   : > { %v12181_v57 = vpop.f32.mrb[6].mxu0 }
 0xb9d   : > { %v3981_v58 = vadd.f32 %v12181_v57, %v11597_v56  ;;  %v3963_v59 = vpop.f32.mrb[7].mxu0 }
 0xb9e   : > { %v3980_v60 = vadd.f32 %v11597_v56, %v3963_v59  ;;  %v11603_v56 = vld [vmem:[%s17339_s0] ss:$0 sm:$0xff]  ;;  %s17342_s0 = sld [smem:[#allocation120_spill]] }
 0xb9f   : > { %v3983_v61 = vadd.f32 %v3981_v58, %v16052_v13 }
 0xba0   : > { %v3982_v62 = vadd.f32 %v3980_v60, %v16048_v11 }
 0xba1   : > { %v3990_v63 = vsel %vm3989_vm8, %v3983_v61, 0.0 }
 0xba2   : > { %3991 = vadd.xlane.f32.xlu1 %v3990_v63  ;;  %v3986_v0 = vsel %vm2742_vm0, %v3982_v62, 0.0 }
 0xba3   : > { %3987 = vadd.xlane.f32.xlu0 %v3986_v0 }
 0xc2f   : > { %v3992_v1 = vpop.xlane.xlu1 %3991 }
 0xc30   : > { %v3995_v2 = vmul.f32 0.03125, %v3992_v1  ;;  %v3988_v3 = vpop.xlane.xlu0 %3987 }
 0xc31   : > { %v3994_v4 = vmul.f32 0.03125, %v3988_v3 }
 0xc32   : > { %v3997_v5 = vsub.f32 %v3983_v61, %v3995_v2 }
 0xc33   : > { %v3996_v6 = vsub.f32 %v3982_v62, %v3994_v4 }
 0xc34   : > { %v3999_v13 = vmul.f32 %v3997_v5, %v3997_v5 }
 0xc35   : > { %v3998_v7 = vmul.f32 %v3996_v6, %v3996_v6 }
 0xc36   : > { %v4003_v8 = vsel %vm3989_vm8, %v3999_v13, 0.0 }
 0xc37   : > { %v4000_v11 = vsel %vm2742_vm0, %v3998_v7, 0.0 }
 0xc38   : > { %4001 = vadd.xlane.f32.xlu0 %v4000_v11 }
 0xc3c   : > { %4004 = vadd.xlane.f32.xlu0 %v4003_v8 }
 0xcc5   : > { %v4002_v28 = vpop.xlane.xlu0 %4001 }
 0xcc6   : > { %v4006_v29 = vmul.f32 0.03125, %v4002_v28  ;;  %v11607_v28 = vld [vmem:[%s17342_s0] ss:$0 sm:$0xff]  ;;  %s17346_s0 = smov 64  }
 0xcc8   : > { %v4008_v30 = vadd.f32 1e-05, %v4006_v29 }
 0xcc9   : > { %v4005_v31 = vpop.xlane.xlu0 %4004 }
 0xcca   : > { %13712 = vrsqrt.f32 %v4008_v30  ;;  %v4007_v32 = vmul.f32 0.03125, %v4005_v31 }
 0xccc   : > { %v4009_v33 = vadd.f32 1e-05, %v4007_v32 }
 0xcce   : > { %13714 = vrsqrt.f32 %v4009_v33 }
 0xcd4   : > { %v13713_v34 = vpop.eup %13712 }
 0xcd5   : > { %v4012_v36 = vmul.f32 %v13713_v34, %v3996_v6 }
 0xcd7   : > { %v4020_v38 = vmul.f32 %v11598_v35, %v4012_v36 }
 0xcd8   : > { %v13715_v39 = vpop.eup %13714 }
 0xcd9   : > { %v4013_v41 = vmul.f32 %v13715_v39, %v3997_v5  ;;  %v4028_v43 = vadd.f32 %v11599_v37, %v4020_v38 }
 0xcdb   : > { %v4021_v44 = vmul.f32 %v11598_v35, %v4013_v41  ;;  %12190 = vmatprep.mubr.msk.f32.mxu1 %vm2742_vm0, %v4028_v43  ;;  %v11608_v35 = vld [vmem:[%s17343_s14] ss:$0 sm:$0xff]  ;;  %s17344_s14 = smov 120  }
 0xcdd   : > { %v4029_v45 = vadd.f32 %v11599_v37, %v4021_v44 }
 0xcdf   : > { %12191 = vmatmul.mubr.msk.f32.vlgmr.msra.gmra.mrb[8].mxu1 %vm2742_vm0, %v4029_v45 }
 0xce0   : > { %12821 = vmatpush3.bf16.msra.mxu1 %v12818_v14 }
 0xce1   : > { %12823 = vmatprep.subr.bf16.mxu1 %v12822_v17 }
 0xce4   : > { %12825 = vmatpush3.bf16.msra.mxu1 %v12822_v17 }
 0xdb2   : > { %v12192_v50 = vpop.f32.mrb[8].mxu1 }
 0xdb3   : > { %v4119_v51 = vadd.f32 %v12192_v50, %v11600_v49  ;;  %v4113_v52 = vpop.f32.mrb[9].mxu1 }
 0xdb4   : > { %v4114_v53 = vadd.f32 %v11600_v49, %v4113_v52 }
 0xdb5   : > { %v4123_v55 = vmax.f32 %v4119_v51, 0.0 }
 0xdb6   : > { %v4122_v54 = vmax.f32 %v4114_v53, 0.0 }
 0xdb8   : > { %12209 = vmatprep.mubr.msk.f32.mxu0 %vm4139_vm9, %v4122_v54 }
 0xdb9   : > { %12210 = vmatmul.mubr.msk.f32.vlgmr.msra.gmra.mrb[12].mxu0 %vm4139_vm9, %v4123_v55 }
 0xe8c   : > { %v12211_v57 = vpop.f32.mrb[12].mxu0 }
 0xe8d   : > { %v4212_v58 = vpop.f32.mrb[13].mxu0  ;;  %v4218_v59 = vadd.f32 %v12211_v57, %v11603_v56 }
 0xe8e   : > { %v4213_v60 = vadd.f32 %v11603_v56, %v4212_v58 }
 0xe8f   : > { %v4222_v63 = vadd.f32 %v4218_v59, %v4029_v45 }
 0xe90   : > { %v4221_v61 = vadd.f32 %v4213_v60, %v4028_v43 }
 0xe91   : > { %v4228_v0 = vsel %vm3989_vm8, %v4222_v63, 0.0 }
 0xe92   : > { %v4225_v62 = vsel %vm2742_vm0, %v4221_v61, 0.0 }
 0xe93   : > { %4226 = vadd.xlane.f32.xlu0 %v4225_v62 }
 0xe97   : > { %4229 = vadd.xlane.f32.xlu0 %v4228_v0 }
 0xf20   : > { %v4227_v1 = vpop.xlane.xlu0 %4226 }
 0xf21   : > { %v4231_v2 = vmul.f32 0.03125, %v4227_v1 }
 0xf23   : > { %v4233_v3 = vsub.f32 %v4221_v61, %v4231_v2 }
 0xf24   : > { %v4230_v4 = vpop.xlane.xlu0 %4229 }
 0xf25   : > { %v4232_v5 = vmul.f32 0.03125, %v4230_v4  ;;  %v4235_v6 = vmul.f32 %v4233_v3, %v4233_v3 }
 0xf27   : > { %v4234_v7 = vsub.f32 %v4222_v63, %v4232_v5  ;;  %v4237_v11 = vsel %vm2742_vm0, %v4235_v6, 0.0 }
 0xf28   : > { %4238 = vadd.xlane.f32.xlu0 %v4237_v11 }
 0xf29   : > { %v4236_v13 = vmul.f32 %v4234_v7, %v4234_v7 }
 0xf2b   : > { %v4240_v8 = vsel %vm3989_vm8, %v4236_v13, 0.0 }
 0xf2c   : > { %4241 = vadd.xlane.f32.xlu0 %v4240_v8 }
 0xfb5   : > { %v4239_v20 = vpop.xlane.xlu0 %4238 }
 0xfb6   : > { %v4243_v21 = vmul.f32 0.03125, %v4239_v20 }
 0xfb8   : > { %v4245_v22 = vadd.f32 1e-05, %v4243_v21 }
 0xfb9   : > { %v4242_v24 = vpop.xlane.xlu0 %4241 }
 0xfba   : > { %13716 = vrsqrt.f32 %v4245_v22  ;;  %v4244_v25 = vmul.f32 0.03125, %v4242_v24 }
 0xfbc   : > { %v4246_v26 = vadd.f32 1e-05, %v4244_v25 }
 0xfbe   : > { %13718 = vrsqrt.f32 %v4246_v26 }
 0xfc4   : > { %v13717_v27 = vpop.eup %13716 }
 0xfc5   : > { %v4249_v18 = vmul.f32 %v13717_v27, %v4233_v3 }
 0xfc7   : > { %v4257_v29 = vmul.f32 %v11606_v16, %v4249_v18 }
 0xfc8   : > { %v13719_v30 = vpop.eup %13718 }
 0xfc9   : > { %v4250_v31 = vmul.f32 %v13719_v30, %v4234_v7  ;;  %v16239_v32 = vadd.f32 %v11607_v28, %v4257_v29 }
 0xfcb   : > { %v4258_v33 = vmul.f32 %v11606_v16, %v4250_v31  ;;  %12220 = vmatprep.mubr.msk.f32.mxu1 %vm2742_vm0, %v16239_v32 }
 0xfcd   : > { %v16243_v34 = vadd.f32 %v11607_v28, %v4258_v33 }
 0xfcf   : > { %12221 = vmatmul.mubr.msk.f32.vlgmr.msra.gmra.mrb[10].mxu1 %vm2742_vm0, %v16243_v34 }
0x10a2   : > { %v12222_v36 = vpop.f32.mrb[10].mxu1 }
0x10a3   : > { %v16248_v37 = vadd.f32 %v12222_v36, %v11608_v35  ;;  %v4355_v38 = vpop.f32.mrb[11].mxu1 }
0x10a4   : > { %v16250_v39 = vadd.f32 %v11608_v35, %v4355_v38 }
0x10a6   : > { %12227 = vmatprep.mubr.msk.f32.mxu1 %vm2830_vm1, %v16250_v39  ;;  %v16256_v41 = vpack.i.bf16 %v16248_v37, %v16250_v39 }
0x10a8   : > { %13556 = vrot.lane.b32.xlu1 %v16256_v41, %s17129_s23  ;;  %13551 = vrot.lane.b32.xlu0 %v16256_v41, %s17127_s5  ;;  %s17348_s5 = smov 104   ;;  %s17349_s23 = smov 56  }
0x10ac   : > { %13561 = vrot.lane.b32.xlu1 %v16256_v41, %s17125_s16  ;;  %4567 = vrot.lane.b32.xlu0 %v16250_v39, %s17344_s14  ;;  %s17347_s16 = smov 72  }
0x10b0   : > { %4936 = vrot.lane.b32.xlu1 %v16248_v37, %s17345_s13  ;;  %4569 = vrot.lane.b32.xlu0 %v16248_v37, %s17344_s14 }
0x10b4   : > { %4934 = vrot.lane.b32.xlu0 %v16250_v39, %s17345_s13 }
0x111a   : > { %v13557_v43 = vpop.permute.xlu1 %13556  ;;  %v13552_v44 = vpop.permute.xlu0 %13551 }
0x111b   : > { %v13559_v45 = vunpack.i.h.bf16 %v13557_v43  ;;  %v13558_v46 = vunpack.i.l.bf16 %v13557_v43  ;;  %v13554_v47 = vunpack.i.h.bf16 %v13552_v44  ;;  %v13553_v48 = vunpack.i.l.bf16 %v13552_v44 }
0x111d   : > { %v12826_v49 = vpack.c.bf16 %v13554_v47, %v13553_v48  ;;  %v12838_v50 = vpack.c.bf16 %v13559_v45, %v13558_v46 }
0x111e   : > { %v13562_v51 = vpop.permute.xlu1 %13561  ;;  %v4568_v54 = vpop.permute.xlu0 %4567 }
0x111f   : > { %12828 = vmatprep.subr.msk.bf16.mxu1 %vm16083_vm2, %v12826_v49  ;;  %v13564_v52 = vunpack.i.h.bf16 %v13562_v51  ;;  %v13563_v53 = vunpack.i.l.bf16 %v13562_v51 }
0x1120   : > { %12831 = vmatpush3.bf16.xpose.msk.msra.mxu1 %vm16083_vm2, %v12826_v49 }
0x1121   : > { %12840 = vmatprep.subr.msk.bf16.mxu1 %vm16083_vm2, %v12838_v50  ;;  %v12850_v55 = vpack.c.bf16 %v13564_v52, %v13563_v53 }
0x1122   : > { %v4570_v56 = vpop.permute.xlu0 %4569  ;;  %v4937_v58 = vpop.permute.xlu1 %4936 }
0x1126   : > { %v4935_v57 = vpop.permute.xlu0 %4934 }
0x1127   : > { %12228 = vmatmul.mubr.msk.f32.vlgmr.msra.gmra.mrb[12].mxu1 %vm2830_vm1, %v16248_v37 }
0x1128   : > { %12843 = vmatpush3.bf16.xpose.msk.msra.mxu1 %vm16083_vm2, %v12838_v50  ;;  %12241 = vmatprep.mubr.msk.f32.mxu1 %vm2830_vm1, %v4568_v54 }
0x1129   : > { %12852 = vmatprep.subr.msk.bf16.mxu1 %vm16083_vm2, %v12850_v55 }
0x112f   : > { %12242 = vmatmul.mubr.msk.f32.vlgmr.msra.gmra.mrb[14].mxu1 %vm2830_vm1, %v4570_v56 }
0x1130   : > { %12855 = vmatpush3.bf16.xpose.msk.msra.mxu1 %vm16083_vm2, %v12850_v55  ;;  %12265 = vmatprep.mubr.msk.f32.mxu1 %vm2830_vm1, %v4935_v57 }
0x1137   : > { %12266 = vmatmul.mubr.msk.f32.vlgmr.msra.gmra.mrb[16].mxu1 %vm2830_vm1, %v4937_v58 }
0x11fa   : > { %v12229_v59 = vpop.f32.mrb[12].mxu1 }
0x11fb   : > { %v4454_v60 = vmul.f32 0.35355338, %v12229_v59  ;;  %v4444_v61 = vpop.f32.mrb[13].mxu1 }
0x11fc   : > { %v4453_v62 = vmul.f32 0.35355338, %v4444_v61 }
0x11fd   : > { %v4456_v63 = vadd.f32 %v4454_v60, %v16107_v40 }
0x11fe   : > { %v4455_v0 = vadd.f32 %v4453_v62, %v16109_v42 }
0x11ff   : > { %v4460_v1 = vsel %vm2922_vm3, %v4456_v63, -inf }
0x1200   : > { %4461 = vmax.xlane.f32.xlu1 %v4460_v1  ;;  %v4457_v2 = vsel %vm2918_vm4, %v4455_v0, -inf }
0x1201   : > { %4458 = vmax.xlane.f32.xlu0 %v4457_v2 }
0x1202   : > { %v12243_v3 = vpop.f32.mrb[14].mxu1 }
0x1203   : > { %v4649_v4 = vpop.f32.mrb[15].mxu1  ;;  %v4659_v5 = vmul.f32 0.35355338, %v12243_v3 }
0x1204   : > { %v4658_v6 = vmul.f32 0.35355338, %v4649_v4 }
0x1205   : > { %v4661_v13 = vadd.f32 %v4659_v5, %v16107_v40 }
0x1206   : > { %v4660_v7 = vadd.f32 %v4658_v6, %v16109_v42 }
0x1207   : > { %v4665_v10 = vsel %vm2922_vm3, %v4661_v13, -inf }
0x1208   : > { %v4662_v11 = vsel %vm2918_vm4, %v4660_v7, -inf }
0x1209   : > { %4663 = vmax.xlane.f32.xlu0 %v4662_v11 }
0x120a   : > { %v12267_v8 = vpop.f32.mrb[16].mxu1 }
0x120b   : > { %v5016_v9 = vpop.f32.mrb[17].mxu1  ;;  %v5026_v38 = vmul.f32 0.35355338, %v12267_v8 }
0x120c   : > { %v5025_v43 = vmul.f32 0.35355338, %v5016_v9 }
0x120d   : > { %4666 = vmax.xlane.f32.xlu0 %v4665_v10  ;;  %v5028_v45 = vadd.f32 %v5026_v38, %v16107_v40 }
0x120e   : > { %v5027_v44 = vadd.f32 %v5025_v43, %v16109_v42 }
0x120f   : > { %v5032_v47 = vsel %vm2922_vm3, %v5028_v45, -inf }
0x1210   : > { %v5029_v46 = vsel %vm2918_vm4, %v5027_v44, -inf }
0x128d   : > { %v4462_v12 = vpop.xlane.xlu1 %4461 }
0x128e   : > { %v4464_v14 = vsub.f32 %v4456_v63, %v4462_v12  ;;  %v4459_v15 = vpop.xlane.xlu0 %4458 }
0x128f   : > { %v4463_v17 = vsub.f32 %v4455_v0, %v4459_v15 }
0x1290   : > { %v4467_v20 = vmul.f32 1.442695, %v4464_v14 }
0x1291   : > { %v4465_v21 = vmul.f32 1.442695, %v4463_v17 }
0x1292   : > { %13720 = vpow2.f32 %v4467_v20 }
0x1293   : > { %13722 = vpow2.f32 %v4465_v21  ;;  %v4273_v21 = vld [vmem:[%s17350_s1 + $0x8] sm:$0xff] }
0x1296   : > { %v4664_v22 = vpop.xlane.xlu0 %4663 }
0x1297   : > { %v4668_v24 = vsub.f32 %v4660_v7, %v4664_v22  ;;  %v4272_v22 = vld [vmem:[%s17350_s1] sm:$0xff] }
0x1299   : > { %v4670_v25 = vmul.f32 1.442695, %v4668_v24 }
0x129a   : > { %v4667_v26 = vpop.xlane.xlu0 %4666 }
0x129b   : > { %13724 = vpow2.f32 %v4670_v25  ;;  %v4669_v27 = vsub.f32 %v4661_v13, %v4667_v26 }
0x129c   : > { %v13721_v16 = vpop.eup %13720 }
0x129d   : > { %v13723_v18 = vpop.eup %13722  ;;  %v4672_v28 = vmul.f32 1.442695, %v4669_v27  ;;  %v4472_v29 = vsel %vm2922_vm3, %v13721_v16, 0.0 }
0x129e   : > { %4473 = vadd.xlane.f32.xlu0 %v4472_v29  ;;  %v4469_v30 = vsel %vm2918_vm4, %v13723_v18, 0.0 }
0x129f   : > { %13726 = vpow2.f32 %v4672_v28  ;;  %4470 = vadd.xlane.f32.xlu1 %v4469_v30 }
0x12a5   : > { %v13725_v31 = vpop.eup %13724 }
0x12a6   : > { %v4674_v33 = vsel %vm2918_vm4, %v13725_v31, 0.0 }
0x12a7   : > { %4675 = vadd.xlane.f32.xlu1 %v4674_v33 }
0x12a9   : > { %v13727_v35 = vpop.eup %13726 }
0x12aa   : > { %v4677_v36 = vsel %vm2922_vm3, %v13727_v35, 0.0 }
0x12ab   : > { %4678 = vadd.xlane.f32.xlu0 %v4677_v36 }
0x12b8   : > { %13566 = vrot.lane.b32.xlu1 %v16256_v41, %s17346_s0 }
0x12bc   : > { %13576 = vrot.lane.b32.xlu1 %v16256_v41, %s17347_s16 }
0x12c0   : > { %5222 = vrot.lane.b32.xlu1 %v16250_v39, %s17348_s5 }
0x12c1   : > { %13571 = vrot.lane.b32.xlu0 %v16256_v41, %s17349_s23 }
0x12c5   : > { %5224 = vrot.lane.b32.xlu0 %v16248_v37, %s17348_s5 }
0x12e4   : > { %5030 = vmax.xlane.f32.xlu1 %v5029_v46  ;;  %5033 = vmax.xlane.f32.xlu0 %v5032_v47 }
0x132b   : > { %v4474_v39 = vpop.xlane.xlu0 %4473 }
0x132c   : > { %v4471_v48 = vpop.xlane.xlu1 %4470 }
0x132d   : > { %13728 = vrcp.f32 %v4471_v48 }
0x132e   : > { %13730 = vrcp.f32 %v4474_v39 }
0x1334   : > { %v4676_v49 = vpop.xlane.xlu1 %4675 }
0x1335   : > { %13732 = vrcp.f32 %v4676_v49 }
0x1337   : > { %v13729_v50 = vpop.eup %13728 }
0x1338   : > { %v13567_v37 = vpop.permute.xlu1 %13566  ;;  %v4679_v51 = vpop.xlane.xlu0 %4678  ;;  %v4477_v52 = vmul.f32 %v13729_v50, %v13723_v18 }
0x1339   : > { %v13569_v53 = vunpack.i.h.bf16 %v13567_v37  ;;  %v13568_v54 = vunpack.i.l.bf16 %v13567_v37  ;;  %13734 = vrcp.f32 %v4679_v51  ;;  %v13731_v56 = vpop.eup %13730 }
0x133a   : > { %12234 = vmatprep.mubr.msk.f32.mxu0 %vm2918_vm4, %v4477_v52  ;;  %v4478_v2 = vmul.f32 %v13731_v56, %v13721_v16 }
0x133b   : > { %v12832_v55 = vpack.c.bf16 %v13569_v53, %v13568_v54 }
0x133c   : > { %v13577_v57 = vpop.permute.xlu1 %13576  ;;  %v13572_v58 = vpop.permute.xlu0 %13571 }
0x133d   : > { %v13579_v59 = vunpack.i.h.bf16 %v13577_v57  ;;  %v13578_v60 = vunpack.i.l.bf16 %v13577_v57  ;;  %v13574_v61 = vunpack.i.h.bf16 %v13572_v58  ;;  %v13573_v62 = vunpack.i.l.bf16 %v13572_v58  ;;  %12834 = vmatprep.subr.msk.bf16.mxu0 %vm16148_vm7, %v12832_v55 }
0x133e   : > { %12837 = vmatpush3.bf16.msk.msra.mxu0 %vm16148_vm7, %v12832_v55 }
0x133f   : > { %v13733_v63 = vpop.eup %13732  ;;  %v12862_v0 = vpack.c.bf16 %v13579_v59, %v13578_v60  ;;  %v12844_v1 = vpack.c.bf16 %v13574_v61, %v13573_v62 }
0x1340   : > { %v5223_v3 = vpop.permute.xlu1 %5222  ;;  %v4682_v4 = vmul.f32 %v13733_v63, %v13725_v31  ;;  %v5225_v7 = vpop.permute.xlu0 %5224 }
0x1341   : > { %12235 = vmatmul.mubr.msk.f32.vlgmr.msra.gmra.mrb[14].mxu0 %vm2918_vm4, %v4478_v2  ;;  %12846 = vmatprep.subr.msk.bf16.mxu0 %vm16148_vm7, %v12844_v1  ;;  %v4275_v2 = vld [vmem:[%s17350_s1 + $0x18] sm:$0xff] }
0x1342   : > { %12864 = vmatprep.subr.msk.bf16.mxu1 %vm16083_vm2, %v12862_v0  ;;  %12284 = vmatprep.mubr.msk.f32.mxu1 %vm2830_vm1, %v5223_v3 }
0x1343   : > { %v13735_v5 = vpop.eup %13734  ;;  %12849 = vmatpush3.bf16.msk.msra.mxu0 %vm16148_vm7, %v12844_v1  ;;  %12248 = vmatprep.mubr.msk.f32.mxu0 %vm2918_vm4, %v4682_v4 }
0x1344   : > { %12867 = vmatpush3.bf16.xpose.msk.msra.mxu1 %vm16083_vm2, %v12862_v0  ;;  %v4683_v6 = vmul.f32 %v13735_v5, %v13727_v35  ;;  %12251 = vmatprep.subr.mxu0 %v4273_v21 }
0x1346   : > { %12249 = vmatmul.mubr.msk.f32.vlgmr.msra.gmra.mrb[16].mxu0 %vm2918_vm4, %v4683_v6 }
0x1347   : > { %12252 = vmatpush3.msra.mxu0 %v4273_v21 }
0x1348   : > { %12256 = vmatprep.subr.mxu0 %v4272_v22 }
0x134b   : > { %12285 = vmatmul.mubr.msk.f32.vlgmr.msra.gmra.mrb[18].mxu1 %vm2830_vm1, %v5225_v7 }
0x1371   : > { %v5031_v11 = vpop.xlane.xlu1 %5030  ;;  %v5034_v13 = vpop.xlane.xlu0 %5033 }
0x1372   : > { %v5035_v8 = vsub.f32 %v5027_v44, %v5031_v11  ;;  %v5036_v9 = vsub.f32 %v5028_v45, %v5034_v13  ;;  %v11647_v11 = vld [vmem:[%s17353_s4] ss:$0 sm:$0xff]  ;;  %s17355_s4 = sld [smem:[#allocation129_spill]] }
0x1374   : > { %v5037_v10 = vmul.f32 1.442695, %v5035_v8  ;;  %v5039_v12 = vmul.f32 1.442695, %v5036_v9 }
0x1376   : > { %13736 = vpow2.f32 %v5037_v10 }
0x1377   : > { %13738 = vpow2.f32 %v5039_v12 }
0x1380   : > { %v13737_v14 = vpop.eup %13736 }
0x1381   : > { %v13739_v15 = vpop.eup %13738  ;;  %v5041_v17 = vsel %vm2918_vm4, %v13737_v14, 0.0 }
0x1382   : > { %5042 = vadd.xlane.f32.xlu0 %v5041_v17  ;;  %v5044_v20 = vsel %vm2922_vm3, %v13739_v15, 0.0 }
0x1383   : > { %5045 = vadd.xlane.f32.xlu1 %v5044_v20 }
0x1398   : > { %13581 = vrot.lane.b32.xlu0 %v16256_v41, %s17351_s2 }
0x140f   : > { %v5043_v24 = vpop.xlane.xlu0 %5042 }
0x1410   : > { %v5046_v16 = vpop.xlane.xlu1 %5045  ;;  %13740 = vrcp.f32 %v5043_v24 }
0x1411   : > { %13742 = vrcp.f32 %v5046_v16 }
0x1413   : > { %v13582_v26 = vpop.permute.xlu0 %13581 }
0x1414   : > { %v12236_v25 = vpop.f32.mrb[14].mxu0  ;;  %v13584_v18 = vunpack.i.h.bf16 %v13582_v26  ;;  %v13583_v28 = vunpack.i.l.bf16 %v13582_v26 }
0x1415   : > { %v4558_v27 = vpop.f32.mrb[15].mxu0 }
0x1416   : > { %v12856_v31 = vpack.c.bf16 %v13584_v18, %v13583_v28 }
0x1419   : > { %v12250_v29 = vpop.f32.mrb[16].mxu0 }
0x141a   : > { %v4763_v30 = vpop.f32.mrb[17].mxu0  ;;  %v13741_v43 = vpop.eup %13740 }
0x141b   : > { %12253 = vmatprep.mubr.msk.f32.mxu0 %vm2830_vm1, %v4763_v30  ;;  %v13743_v45 = vpop.eup %13742  ;;  %v5049_v47 = vmul.f32 %v13741_v43, %v13737_v14  ;;  %v5660_v43 = vld [vmem:[%s17355_s4 + $0x10] sm:$0xff] }
0x141c   : > { %12254 = vmatmul.mubr.msk.f32.vlgmr.msra.gmra.mrb[18].mxu0 %vm2830_vm1, %v12250_v29  ;;  %v5050_v39 = vmul.f32 %v13743_v45, %v13739_v15  ;;  %v5661_v45 = vld [vmem:[%s17355_s4 + $0x18] sm:$0xff] }
0x141d   : > { %12257 = vmatpush3.msra.mxu0 %v4272_v22  ;;  %12258 = vmatprep.mubr.msk.f32.mxu0 %vm2830_vm1, %v4558_v27 }
0x141e   : > { %v12286_v33 = vpop.f32.mrb[18].mxu1  ;;  %12858 = vmatprep.subr.msk.bf16.mxu0 %vm16148_vm7, %v12856_v31 }
0x141f   : > { %v5304_v35 = vpop.f32.mrb[19].mxu1  ;;  %v5314_v36 = vmul.f32 0.35355338, %v12286_v33 }
0x1420   : > { %v5313_v38 = vmul.f32 0.35355338, %v5304_v35  ;;  %v15070_v35 = vmov 0.0|0.0  }
0x1421   : > { %v5316_v48 = vadd.f32 %v5314_v36, %v16107_v40  ;;  %v5658_v36 = vld [vmem:[%s17355_s4] sm:$0xff] }
0x1422   : > { %v5315_v44 = vadd.f32 %v5313_v38, %v16109_v42  ;;  %v4274_v42 = vld [vmem:[%s17350_s1 + $0x10] sm:$0xff]  ;;  %s17354_s1 = sld [smem:[#allocation128_spill]]  ;;  %v5659_v38 = vld [vmem:[%s17355_s4 + $0x8] sm:$0xff] }
0x1423   : > { %v5320_v49 = vsel %vm2922_vm3, %v5316_v48, -inf }
0x1424   : > { %v5317_v46 = vsel %vm2918_vm4, %v5315_v44, -inf  ;;  %12259 = vmatmul.mubr.msk.f32.vlgmr.msra.gmra.mrb[18].mxu0 %vm2830_vm1, %v12236_v25 }
0x1425   : > { %5318 = vmax.xlane.f32.xlu1 %v5317_v46  ;;  %12861 = vmatpush3.bf16.msk.msra.mxu0 %vm16148_vm7, %v12856_v31  ;;  %v12886_v46 = vpack.c.bf16 %v5661_v45, %v5660_v43 }
0x1426   : > { %12272 = vmatprep.mubr.msk.f32.mxu0 %vm2918_vm4, %v5049_v47  ;;  %12275 = vmatprep.subr.mxu0 %v4274_v42  ;;  %v5662_v47 = vld [vmem:[%s17355_s4 + $0x20] sm:$0xff] }
0x1428   : > { %12273 = vmatmul.mubr.msk.f32.vlgmr.msra.gmra.mrb[20].mxu0 %vm2918_vm4, %v5050_v39  ;;  %v5564_v18 = vld [vmem:[%s17354_s1] sm:$0xff]  ;;  %v5565_v28 = vld [vmem:[%s17354_s1 + $0x8] sm:$0xff]  ;;  %v5566_v30 = vld [vmem:[%s17354_s1 + $0x10] sm:$0xff] }
0x1429   : > { %5321 = vmax.xlane.f32.xlu1 %v5320_v49  ;;  %12276 = vmatpush3.msra.mxu0 %v4274_v42  ;;  %v12874_v29 = vpack.c.bf16 %v5565_v28, %v5564_v18  ;;  %v5567_v31 = vld [vmem:[%s17354_s1 + $0x18] sm:$0xff]  ;;  %s17358_s1 = sld [smem:[#allocation94_spill]]  ;;  %v2708_v18 = vld [vmem:[#allocation11] sm:$0xff] }
0x142a   : > { %v12878_v33 = vpack.c.bf16 %v5567_v31, %v5566_v30 }
0x142b   : > { %12875 = vmatprep.subr.bf16.mxu1 %v12874_v29 }
0x142c   : > { %12877 = vmatpush3.bf16.msra.mxu1 %v12874_v29 }
0x142d   : > { %12879 = vmatprep.subr.bf16.mxu1 %v12878_v33 }
0x1430   : > { %12881 = vmatpush3.bf16.msra.mxu1 %v12878_v33 }
0x1431   : > { %12898 = vmatprep.subr.bf16.mxu1 %v15070_v35 }
0x14b2   : > { %v5319_v50 = vpop.xlane.xlu1 %5318 }
0x14b3   : > { %v5323_v37 = vsub.f32 %v5315_v44, %v5319_v50  ;;  %v12882_v44 = vpack.c.bf16 %v5659_v38, %v5658_v36 }
0x14b5   : > { %v5325_v40 = vmul.f32 1.442695, %v5323_v37 }
0x14b6   : > { %v5322_v51 = vpop.xlane.xlu1 %5321 }
0x14b7   : > { %v5324_v52 = vsub.f32 %v5316_v48, %v5322_v51  ;;  %v5663_v48 = vld [vmem:[%s17355_s4 + $0x28] sm:$0xff] }
0x14b8   : > { %v12890_v39 = vpack.c.bf16 %v5663_v48, %v5662_v47 }
0x14b9   : > { %v5327_v53 = vmul.f32 1.442695, %v5324_v52 }
0x14bb   : > { %13744 = vpow2.f32 %v5327_v53  ;;  %v11648_v53 = vld [vmem:[%s17356_s6] ss:$0 sm:$0xff]  ;;  %s17359_s6 = sld [smem:[#allocation126_spill]] }
0x14bc   : > { %13746 = vpow2.f32 %v5325_v40 }
0x14c5   : > { %v13745_v54 = vpop.eup %13744 }
0x14c6   : > { %v5332_v55 = vsel %vm2922_vm3, %v13745_v54, 0.0  ;;  %v13747_v56 = vpop.eup %13746 }
0x14c7   : > { %5333 = vadd.xlane.f32.xlu1 %v5332_v55  ;;  %v5329_v57 = vsel %vm2918_vm4, %v13747_v56, 0.0  ;;  %v11649_v55 = vld [vmem:[%s17357_s7] ss:$0 sm:$0xff]  ;;  %s17361_s7 = smov 96  }
0x14cb   : > { %5330 = vadd.xlane.f32.xlu1 %v5329_v57 }
0x14dc   : > { %13586 = vrot.lane.b32.xlu1 %v16256_v41, %s17352_s3 }
0x14fb   : > { %v12274_v58 = vpop.f32.mrb[20].mxu0 }
0x14fc   : > { %v5130_v59 = vpop.f32.mrb[21].mxu0 }
0x14fd   : > { %12277 = vmatprep.mubr.msk.f32.mxu0 %vm2830_vm1, %v5130_v59 }
0x14fe   : > { %12278 = vmatmul.mubr.msk.f32.vlgmr.msra.gmra.mrb[18].mxu0 %vm2830_vm1, %v12274_v58 }
0x1554   : > { %v5334_v60 = vpop.xlane.xlu1 %5333 }
0x1555   : > { %13748 = vrcp.f32 %v5334_v60  ;;  %v5848_v60 = vld [vmem:[%s17358_s1] sm:$0xff] }
0x1558   : > { %v5331_v61 = vpop.xlane.xlu1 %5330 }
0x1559   : > { %13750 = vrcp.f32 %v5331_v61  ;;  %v5849_v61 = vld [vmem:[%s17358_s1 + $0x8] sm:$0xff] }
0x155c   : > { %v13587_v62 = vpop.permute.xlu1 %13586 }
0x155d   : > { %v13589_v63 = vunpack.i.h.bf16 %v13587_v62  ;;  %v13588_v0 = vunpack.i.l.bf16 %v13587_v62 }
0x155f   : > { %v12868_v1 = vpack.c.bf16 %v13589_v63, %v13588_v0  ;;  %v13749_v41 = vpop.eup %13748  ;;  %v12899_v63 = vpack.c.bf16 %v5849_v61, %v5848_v60  ;;  %v5844_v0 = vld [vmem:[%s15983_s12] sm:$0xff]  ;;  %s17360_s12 = smov 88  }
0x1560   : > { %v5338_v5 = vmul.f32 %v13749_v41, %v13745_v54  ;;  %v5851_v41 = vld [vmem:[%s17358_s1 + $0x18] sm:$0xff] }
0x1561   : > { %12870 = vmatprep.subr.msk.bf16.mxu0 %vm16148_vm7, %v12868_v1 }
0x1562   : > { %12873 = vmatpush3.bf16.msk.msra.mxu0 %vm16148_vm7, %v12868_v1 }
0x1563   : > { %v13751_v3 = vpop.eup %13750  ;;  %12294 = vmatprep.subr.mxu0 %v4275_v2 }
0x1564   : > { %v5337_v4 = vmul.f32 %v13751_v3, %v13747_v56  ;;  %v5845_v3 = vmul.f32 5.656854, %v5844_v0 }
0x1566   : > { %12291 = vmatprep.mubr.msk.f32.mxu0 %vm2918_vm4, %v5337_v4 }
0x1567   : > { %12292 = vmatmul.mubr.msk.f32.vlgmr.msra.gmra.mrb[22].mxu0 %vm2918_vm4, %v5338_v5  ;;  %v15072_v5 = vmov 0.0  }
0x1568   : > { %12295 = vmatpush3.msra.mxu0 %v4275_v2  ;;  %v5850_v2 = vld [vmem:[%s17358_s1 + $0x10] sm:$0xff]  ;;  %s17364_s1 = sld [smem:[#allocation95_spill]] }
0x1569   : > { %12883 = vmatprep.subr.bf16.mxu0 %v12882_v44  ;;  %v12902_v4 = vpack.c.bf16 %v5851_v41, %v5850_v2 }
0x156e   : > { %v5853_v0 = vld [vmem:[%s17364_s1] sm:$0xff] }
0x163a   : > { %v12293_v6 = vpop.f32.mrb[22].mxu0 }
0x163b   : > { %v5418_v7 = vpop.f32.mrb[23].mxu0 }
0x163c   : > { %12296 = vmatprep.mubr.msk.f32.mxu0 %vm2830_vm1, %v5418_v7 }
0x163d   : > { %12297 = vmatmul.mubr.msk.f32.vlgmr.msra.gmra.mrb[18].mxu0 %vm2830_vm1, %v12293_v6  ;;  %v5846_v6 = vld [vmem:[#allocation7] sm:$0xff] }
0x163e   : > { %12885 = vmatpush3.bf16.msra.mxu0 %v12882_v44  ;;  %v16406_v7 = vadd.f32 %v5846_v6, %v5845_v3 }
0x163f   : > { %12887 = vmatprep.subr.bf16.mxu0 %v12886_v46 }
0x1642   : > { %12889 = vmatpush3.bf16.msra.mxu0 %v12886_v46 }
0x1643   : > { %12891 = vmatprep.subr.bf16.mxu0 %v12890_v39 }
0x1646   : > { %12893 = vmatpush3.bf16.msra.mxu0 %v12890_v39 }
0x1710   : > { %v12298_v13 = vpop.f32.mrb[18].mxu0 }
0x1711   : > { %v5517_v8 = vadd.f32 %v12298_v13, %v11647_v11  ;;  %v5499_v9 = vpop.f32.mrb[19].mxu0  ;;  %v5665_v13 = vld [vmem:[%s17355_s4 + $0x38] sm:$0xff] }
0x1712   : > { %v5516_v10 = vadd.f32 %v11647_v11, %v5499_v9  ;;  %v5664_v11 = vld [vmem:[%s17355_s4 + $0x30] sm:$0xff]  ;;  %v11650_v9 = vld [vmem:[%s17359_s6] ss:$0 sm:$0xff]  ;;  %s17362_s6 = scalar_lea.vmem [#allocation12], %s15951_s10  ;;  %s17365_s4 = sld [smem:[#allocation127_spill]] }
0x1713   : > { %v5519_v12 = vadd.f32 %v5517_v8, %v16243_v34  ;;  %v12894_v8 = vpack.c.bf16 %v5665_v13, %v5664_v11  ;;  %v11557_v28 = vld [vmem:[%s17362_s6] ss:$0 sm:$0xff]  ;;  %s17363_s6 = smov 80  }
0x1714   : > { %v5518_v14 = vadd.f32 %v5516_v10, %v16239_v32  ;;  %v16446_v29 = vadd.f32 %v11557_v28, %v2708_v18 }
0x1715   : > { %v5525_v15 = vsel %vm3989_vm8, %v5519_v12, 0.0  ;;  %12895 = vmatprep.subr.bf16.mxu0 %v12894_v8 }
0x1716   : > { %5526 = vadd.xlane.f32.xlu1 %v5525_v15  ;;  %v5522_v17 = vsel %vm2742_vm0, %v5518_v14, 0.0  ;;  %12897 = vmatpush3.bf16.msra.mxu0 %v12894_v8 }
0x1717   : > { %5523 = vadd.xlane.f32.xlu0 %v5522_v17  ;;  %12350 = vmatprep.subr.mxu0 %v15072_v5 }
0x17a3   : > { %v5527_v20 = vpop.xlane.xlu1 %5526 }
0x17a4   : > { %v5529_v21 = vmul.f32 0.03125, %v5527_v20  ;;  %v5524_v22 = vpop.xlane.xlu0 %5523 }
0x17a5   : > { %v5528_v24 = vmul.f32 0.03125, %v5524_v22 }
0x17a6   : > { %v5531_v25 = vsub.f32 %v5519_v12, %v5529_v21  ;;  %v11660_v21 = vld [vmem:[#allocation25] ss:$0 sm:$0xff] }
0x17a7   : > { %v5530_v26 = vsub.f32 %v5518_v14, %v5528_v24 }
0x17a8   : > { %v5533_v32 = vmul.f32 %v5531_v25, %v5531_v25 }
0x17a9   : > { %v5532_v27 = vmul.f32 %v5530_v26, %v5530_v26 }
0x17aa   : > { %v5537_v16 = vsel %vm3989_vm8, %v5533_v32, 0.0 }
0x17ab   : > { %v5534_v34 = vsel %vm2742_vm0, %v5532_v27, 0.0 }
0x17ac   : > { %5535 = vadd.xlane.f32.xlu0 %v5534_v34 }
0x17b0   : > { %5538 = vadd.xlane.f32.xlu0 %v5537_v16 }
0x1839   : > { %v5536_v49 = vpop.xlane.xlu0 %5535 }
0x183a   : > { %v5540_v42 = vmul.f32 0.03125, %v5536_v49 }
0x183c   : > { %v5542_v50 = vadd.f32 1e-05, %v5540_v42 }
0x183d   : > { %v5539_v37 = vpop.xlane.xlu0 %5538 }
0x183e   : > { %13752 = vrsqrt.f32 %v5542_v50  ;;  %v5541_v51 = vmul.f32 0.03125, %v5539_v37 }
0x1840   : > { %v5543_v52 = vadd.f32 1e-05, %v5541_v51 }
0x1842   : > { %13754 = vrsqrt.f32 %v5543_v52 }
0x1848   : > { %v13753_v40 = vpop.eup %13752 }
0x1849   : > { %v5546_v54 = vmul.f32 %v13753_v40, %v5530_v26 }
0x184b   : > { %v5554_v56 = vmul.f32 %v11648_v53, %v5546_v54 }
0x184c   : > { %v13755_v57 = vpop.eup %13754 }
0x184d   : > { %v5547_v58 = vmul.f32 %v13755_v57, %v5531_v25  ;;  %v16390_v59 = vadd.f32 %v11649_v55, %v5554_v56 }
0x184f   : > { %v5555_v62 = vmul.f32 %v11648_v53, %v5547_v58  ;;  %12307 = vmatprep.mubr.msk.f32.mxu1 %vm2742_vm0, %v16390_v59 }
0x1851   : > { %v16397_v1 = vadd.f32 %v11649_v55, %v5555_v62  ;;  %v5854_v55 = vld [vmem:[%s17364_s1 + $0x8] sm:$0xff] }
0x1853   : > { %12308 = vmatmul.mubr.msk.f32.vlgmr.msra.gmra.mrb[20].mxu1 %vm2742_vm0, %v16397_v1 }
0x1854   : > { %12900 = vmatpush3.bf16.msra.mxu1 %v12899_v63  ;;  %12337 = vmatprep.mubr.msk.f32.mxu1 %vm15071_vm10, %v15072_v5 }
0x1855   : > { %12901 = vmatprep.subr.bf16.mxu1 %v15070_v35 }
0x1858   : > { %12903 = vmatpush3.bf16.msra.mxu1 %v12902_v4 }
0x1859   : > { %12340 = vmatprep.subr.mxu1 %v15072_v5 }
0x185b   : > { %12338 = vmatmul.mubr.msk.f32.vlgmr.msra.gmra.mrb[22].mxu1 %vm2742_vm0, %v16406_v7 }
0x185c   : > { %12342 = vmatprep.mubr.msk.f32.mxu1 %vm15071_vm10, %v15072_v5 }
0x1926   : > { %v12309_v10 = vpop.f32.mrb[20].mxu1 }
0x1927   : > { %v5653_v12 = vadd.f32 %v12309_v10, %v11650_v9  ;;  %v5647_v14 = vpop.f32.mrb[21].mxu1 }
0x1928   : > { %v5648_v15 = vadd.f32 %v11650_v9, %v5647_v14 }
0x1929   : > { %v5657_v20 = vmax.f32 %v5653_v12, 0.0 }
0x192a   : > { %v5656_v17 = vmax.f32 %v5648_v15, 0.0 }
0x192c   : > { %12326 = vmatprep.mubr.msk.f32.mxu0 %vm4139_vm9, %v5656_v17 }
0x192d   : > { %12327 = vmatmul.mubr.msk.f32.vlgmr.msra.gmra.mrb[24].mxu0 %vm4139_vm9, %v5657_v20 }
0x192e   : > { %v5933_v22 = vpop.f32.mrb[22].mxu1  ;;  %12352 = vmatprep.mubr.msk.f32.mxu0 %vm15071_vm10, %v15072_v5 }
0x192f   : > { %v16421_v24 = vadd.f32 %v11660_v21, %v5933_v22  ;;  %v12339_v25 = vpop.f32.mrb[23].mxu1 }
0x1931   : > { %6105 = vrot.lane.b32.xlu1 %v16421_v24, %s17360_s12  ;;  %5938 = vrot.lane.b32.xlu0 %v16421_v24, %s17361_s7 }
0x1935   : > { %6103 = vrot.lane.b32.xlu0 %v16421_v24, %s17344_s14 }
0x19a3   : > { %v6106_v26 = vpop.permute.xlu1 %6105  ;;  %v5939_v27 = vpop.permute.xlu0 %5938 }
0x19a4   : > { %12341 = vmatpush3.xpose.msk.msra.mxu1 %vm2830_vm1, %v5939_v27  ;;  %12351 = vmatpush3.xpose.msk.msra.mxu0 %vm2830_vm1, %v6106_v26 }
0x19a5   : > { %12345 = vmatprep.subr.mxu1 %v15072_v5  ;;  %12360 = vmatprep.subr.mxu0 %v15072_v5 }
0x19a7   : > { %12343 = vmatmul.mubr.msk.f32.vlgmr.msra.gmra.mrb[24].mxu1 %vm2830_vm1, %v16421_v24  ;;  %v6104_v34 = vpop.permute.xlu0 %6103 }
0x19a8   : > { %12353 = vmatmul.mubr.msk.f32.vlgmr.msra.gmra.mrb[26].mxu0 %vm2830_vm1, %v6104_v34  ;;  %12347 = vmatprep.mubr.msk.f32.mxu1 %vm15071_vm10, %v15072_v5 }
0x19a9   : > { %12362 = vmatprep.mubr.msk.f32.mxu0 %vm15071_vm10, %v15072_v5  ;;  %12361 = vmatpush3.msra.mxu0 %v5854_v55 }
0x19aa   : > { %12370 = vmatprep.subr.mxu0 %v15072_v5 }
0x1a00   : > { %v16440_v32 = vpop.f32.mrb[24].mxu0 }
0x1a01   : > { %v16442_v16 = vpop.f32.mrb[25].mxu0 }
0x1a7a   : > { %v6010_v30 = vpop.f32.mrb[24].mxu1 }
0x1a7b   : > { %v6014_v31 = vmul.f32 0.35355338, %v6010_v30  ;;  %v12344_v33 = vpop.f32.mrb[25].mxu1  ;;  %v6177_v36 = vpop.f32.mrb[26].mxu0 }
0x1a7c   : > { %v6181_v38 = vmul.f32 0.35355338, %v6177_v36  ;;  %v12354_v43 = vpop.f32.mrb[27].mxu0 }
0x1a7d   : > { %v6015_v44 = vadd.f32 %v6014_v31, %v16446_v29 }
0x1a7e   : > { %v6182_v45 = vadd.f32 %v6181_v38, %v16446_v29  ;;  %v5855_v38 = vld [vmem:[%s17364_s1 + $0x10] sm:$0xff] }
0x1a7f   : > { %v6016_v46 = vsel %vm2830_vm1, %v6015_v44, -inf }
0x1a80   : > { %6017 = vmax.xlane.f32.xlu0 %v6016_v46  ;;  %v6183_v47 = vsel %vm2830_vm1, %v6182_v45, -inf }
0x1a81   : > { %6184 = vmax.xlane.f32.xlu1 %v6183_v47 }
0x1a92   : > { %6027 = vrot.lane.b32.xlu1 %v16421_v24, %s17346_s0 }
0x1a96   : > { %6418 = vrot.lane.b32.xlu1 %v16421_v24, %s17363_s6 }
0x1a9a   : > { %6416 = vrot.lane.b32.xlu1 %v16421_v24, %s17345_s13 }
0x1b0d   : > { %v6018_v48 = vpop.xlane.xlu0 %6017 }
0x1b0e   : > { %v6019_v39 = vsub.f32 %v6015_v44, %v6018_v48  ;;  %v6185_v49 = vpop.xlane.xlu1 %6184 }
0x1b0f   : > { %v6186_v42 = vsub.f32 %v6182_v45, %v6185_v49  ;;  %v11653_v45 = vld [vmem:[%s17365_s4] ss:$0 sm:$0xff]  ;;  %s17366_s4 = sld [smem:[#allocation133_spill]] }
0x1b10   : > { %v6020_v50 = vmul.f32 1.442695, %v6019_v39  ;;  %v5746_v47 = vadd.f32 %v11653_v45, %v16442_v16 }
0x1b11   : > { %v6187_v37 = vmul.f32 1.442695, %v6186_v42  ;;  %v5751_v42 = vadd.f32 %v16440_v32, %v11653_v45  ;;  %v11678_v45 = vld [vmem:[#allocation27] ss:$0 sm:$0xff] }
0x1b12   : > { %13756 = vpow2.f32 %v6020_v50  ;;  %v6028_v51 = vpop.permute.xlu1 %6027 }
0x1b13   : > { %12346 = vmatpush3.msra.mxu1 %v6028_v51  ;;  %13758 = vpow2.f32 %v6187_v37  ;;  %v5754_v37 = vadd.f32 %v5746_v47, %v16390_v59 }
0x1b14   : > { %12355 = vmatprep.subr.mxu1 %v15072_v5 }
0x1b15   : > { %v5758_v51 = vsel %vm2742_vm0, %v5754_v37, 0.0 }
0x1b16   : > { %v6419_v3 = vpop.permute.xlu1 %6418 }
0x1b1a   : > { %v6417_v11 = vpop.permute.xlu1 %6416 }
0x1b1c   : > { %v13757_v52 = vpop.eup %13756 }
0x1b1d   : > { %v6022_v40 = vsel %vm2830_vm1, %v13757_v52, 0.0  ;;  %v13759_v53 = vpop.eup %13758 }
0x1b1e   : > { %6023 = vadd.xlane.f32.xlu0 %v6022_v40  ;;  %v6189_v54 = vsel %vm2830_vm1, %v13759_v53, 0.0 }
0x1b22   : > { %6190 = vadd.xlane.f32.xlu0 %v6189_v54 }
0x1b38   : > { %6194 = vrot.lane.b32.xlu0 %v16421_v24, %s17349_s23 }
0x1bab   : > { %v6024_v56 = vpop.xlane.xlu0 %6023 }
0x1bac   : > { %13760 = vrcp.f32 %v6024_v56 }
0x1baf   : > { %v6191_v57 = vpop.xlane.xlu0 %6190 }
0x1bb0   : > { %13762 = vrcp.f32 %v6191_v57 }
0x1bb3   : > { %v6195_v61 = vpop.permute.xlu0 %6194 }
0x1bb6   : > { %v13761_v58 = vpop.eup %13760 }
0x1bb7   : > { %v6026_v60 = vmul.f32 %v13761_v58, %v13757_v52  ;;  %v5755_v52 = vadd.f32 %v5751_v42, %v16397_v1 }
0x1bb9   : > { %12348 = vmatmul.mubr.msk.f32.vlgmr.msra.gmra.mrb[26].mxu1 %vm2830_vm1, %v6026_v60  ;;  %v5761_v40 = vsel %vm3989_vm8, %v5755_v52, 0.0 }
0x1bba   : > { %v13763_v62 = vpop.eup %13762  ;;  %12356 = vmatpush3.msra.mxu1 %v6195_v61  ;;  %12357 = vmatprep.mubr.msk.f32.mxu1 %vm15071_vm10, %v15072_v5 }
0x1bbb   : > { %v6193_v63 = vmul.f32 %v13763_v62, %v13759_v53  ;;  %12365 = vmatprep.subr.mxu1 %v15072_v5 }
0x1bbd   : > { %12358 = vmatmul.mubr.msk.f32.vlgmr.msra.gmra.mrb[28].mxu1 %vm2830_vm1, %v6193_v63 }
0x1bbe   : > { %12367 = vmatprep.mubr.msk.f32.mxu1 %vm15071_vm10, %v15072_v5  ;;  %12366 = vmatpush3.msra.mxu1 %v5853_v0 }
0x1bbf   : > { %12375 = vmatprep.subr.mxu1 %v15072_v5 }
0x1c8c   : > { %v6099_v2 = vpop.f32.mrb[26].mxu1 }
0x1c8d   : > { %v12349_v41 = vpop.f32.mrb[27].mxu1  ;;  %12368 = vmatmul.mubr.msk.f32.vlgmr.msra.gmra.mrb[30].mxu1 %vm2830_vm1, %v6099_v2 }
0x1c8e   : > { %12377 = vmatprep.mubr.msk.f32.mxu1 %vm15071_vm10, %v15072_v5 }
0x1c90   : > { %v6266_v4 = vpop.f32.mrb[28].mxu1 }
0x1c91   : > { %v12359_v6 = vpop.f32.mrb[29].mxu1  ;;  %12363 = vmatmul.mubr.msk.f32.vlgmr.msra.gmra.mrb[28].mxu0 %vm2830_vm1, %v6266_v4 }
0x1c92   : > { %12371 = vmatpush3.xpose.msk.msra.mxu0 %vm2830_vm1, %v6419_v3  ;;  %12372 = vmatprep.mubr.msk.f32.mxu0 %vm15071_vm10, %v15072_v5 }
0x1c93   : > { %12380 = vmatprep.subr.mxu0 %v15072_v5 }
0x1c95   : > { %12373 = vmatmul.mubr.msk.f32.vlgmr.msra.gmra.mrb[30].mxu0 %vm2830_vm1, %v6417_v11 }
0x1c96   : > { %12382 = vmatprep.mubr.msk.f32.mxu0 %vm15071_vm10, %v15072_v5  ;;  %12381 = vmatpush3.msra.mxu0 %v5855_v38 }
0x1c97   : > { %12390 = vmatprep.subr.mxu0 %v15072_v5 }
0x1d60   : > { %v6412_v13 = vpop.f32.mrb[30].mxu1 }
0x1d61   : > { %v12369_v8 = vpop.f32.mrb[31].mxu1 }
0x1d64   : > { %v6339_v9 = vpop.f32.mrb[28].mxu0 }
0x1d65   : > { %v16485_v10 = vadd.f32 %v6412_v13, %v6339_v9  ;;  %v12364_v12 = vpop.f32.mrb[29].mxu0 }
0x1d68   : > { %v6490_v14 = vpop.f32.mrb[30].mxu0 }
0x1d69   : > { %v6494_v15 = vmul.f32 0.35355338, %v6490_v14  ;;  %v12374_v17 = vpop.f32.mrb[31].mxu0 }
0x1d6b   : > { %v6495_v20 = vadd.f32 %v6494_v15, %v16446_v29  ;;  %v11656_v15 = vld [vmem:[%s17366_s4] ss:$0 sm:$0xff]  ;;  %s17369_s4 = sld [smem:[#allocation139_spill]] }
0x1d6d   : > { %v6496_v21 = vsel %vm2830_vm1, %v6495_v20, -inf }
0x1d6e   : > { %6497 = vmax.xlane.f32.xlu0 %v6496_v21  ;;  %v11657_v21 = vld [vmem:[%s17367_s8] ss:$0 sm:$0xff]  ;;  %s17368_s8 = sld [smem:[#allocation82_spill]] }
0x1d84   : > { %6507 = vrot.lane.b32.xlu0 %v16421_v24, %s17351_s2 }
0x1d88   : > { %6657 = vrot.lane.b32.xlu0 %v16421_v24, %s17348_s5 }
0x1dfb   : > { %v6498_v22 = vpop.xlane.xlu0 %6497 }
0x1dfc   : > { %v6499_v25 = vsub.f32 %v6495_v20, %v6498_v22 }
0x1dfe   : > { %v6500_v26 = vmul.f32 1.442695, %v6499_v25 }
0x1dff   : > { %v6508_v27 = vpop.permute.xlu0 %6507 }
0x1e00   : > { %13764 = vpow2.f32 %v6500_v26  ;;  %12376 = vmatpush3.msra.mxu1 %v6508_v27 }
0x1e01   : > { %12385 = vmatprep.subr.mxu1 %v15072_v5 }
0x1e03   : > { %v6658_v36 = vpop.permute.xlu0 %6657 }
0x1e0a   : > { %v13765_v34 = vpop.eup %13764 }
0x1e0b   : > { %v6502_v18 = vsel %vm2830_vm1, %v13765_v34, 0.0 }
0x1e0c   : > { %6503 = vadd.xlane.f32.xlu1 %v6502_v18 }
0x1e1d   : > { %6659 = vrot.lane.b32.xlu1 %v16421_v24, %s17347_s16 }
0x1e99   : > { %v6504_v28 = vpop.xlane.xlu1 %6503 }
0x1e9a   : > { %13766 = vrcp.f32 %v6504_v28 }
0x1e9d   : > { %v6660_v33 = vpop.permute.xlu1 %6659 }
0x1ea4   : > { %v13767_v30 = vpop.eup %13766 }
0x1ea5   : > { %v6506_v31 = vmul.f32 %v13767_v30, %v13765_v34 }
0x1ea7   : > { %12378 = vmatmul.mubr.msk.f32.vlgmr.msra.gmra.mrb[32].mxu1 %vm2830_vm1, %v6506_v31  ;;  %v5856_v31 = vld [vmem:[%s17364_s1 + $0x18] sm:$0xff]  ;;  %s17370_s1 = sld [smem:[#allocation138_spill]] }
0x1ea8   : > { %12386 = vmatpush3.xpose.msk.msra.mxu1 %vm2830_vm1, %v6660_v33  ;;  %12387 = vmatprep.mubr.msk.f32.mxu1 %vm15071_vm10, %v15072_v5 }
0x1ea9   : > { %12395 = vmatprep.subr.mxu1 %v15072_v5 }
0x1eab   : > { %12388 = vmatmul.mubr.msk.f32.vlgmr.msra.gmra.mrb[34].mxu1 %vm2830_vm1, %v6658_v36 }
0x1eac   : > { %12397 = vmatprep.mubr.msk.f32.mxu1 %vm15071_vm10, %v15072_v5  ;;  %12396 = vmatpush3.msra.mxu1 %v5856_v31 }
0x1f7a   : > { %v6579_v43 = vpop.f32.mrb[32].mxu1 }
0x1f7b   : > { %v12379_v44 = vpop.f32.mrb[33].mxu1  ;;  %12383 = vmatmul.mubr.msk.f32.vlgmr.msra.gmra.mrb[32].mxu0 %vm2830_vm1, %v6579_v43 }
0x1f7c   : > { %12392 = vmatprep.mubr.msk.f32.mxu0 %vm15071_vm10, %v15072_v5 }
0x1f7e   : > { %v6731_v46 = vpop.f32.mrb[34].mxu1 }
0x1f7f   : > { %v6735_v48 = vmul.f32 0.35355338, %v6731_v46  ;;  %v12389_v39 = vpop.f32.mrb[35].mxu1 }
0x1f81   : > { %v6736_v49 = vadd.f32 %v6735_v48, %v16446_v29 }
0x1f83   : > { %v6737_v50 = vsel %vm2830_vm1, %v6736_v49, -inf }
0x1f84   : > { %6738 = vmax.xlane.f32.xlu1 %v6737_v50 }
0x1f88   : > { %5759 = vadd.xlane.f32.xlu1 %v5758_v51 }
0x1f8c   : > { %5762 = vadd.xlane.f32.xlu1 %v5761_v40 }
0x2011   : > { %v6739_v16 = vpop.xlane.xlu1 %6738 }
0x2012   : > { %v6740_v53 = vsub.f32 %v6736_v49, %v6739_v16 }
0x2014   : > { %v6741_v54 = vmul.f32 1.442695, %v6740_v53 }
0x2015   : > { %v5760_v55 = vpop.xlane.xlu1 %5759 }
0x2016   : > { %13768 = vpow2.f32 %v6741_v54  ;;  %v5764_v56 = vmul.f32 0.03125, %v5760_v55  ;;  %v6935_v54 = vld [vmem:[%s17368_s8] sm:$0xff]  ;;  %v6936_v55 = vld [vmem:[%s17368_s8 + $0x8] sm:$0xff] }
0x2018   : > { %v5766_v32 = vsub.f32 %v5754_v37, %v5764_v56  ;;  %v6937_v56 = vld [vmem:[%s17368_s8 + $0x10] sm:$0xff] }
0x2019   : > { %v5763_v57 = vpop.xlane.xlu1 %5762 }
0x201a   : > { %v5765_v58 = vmul.f32 0.03125, %v5763_v57  ;;  %v5768_v60 = vmul.f32 %v5766_v32, %v5766_v32  ;;  %v12905_v57 = vpack.c.bf16 %v6936_v55, %v6935_v54 }
0x201c   : > { %v5767_v59 = vsub.f32 %v5755_v52, %v5765_v58  ;;  %v5770_v61 = vsel %vm2742_vm0, %v5768_v60, 0.0  ;;  %v6938_v58 = vld [vmem:[%s17368_s8 + $0x18] sm:$0xff]  ;;  %s17376_s8 = sld [smem:[#allocation90_spill]] }
0x201d   : > { %5771 = vadd.xlane.f32.xlu1 %v5770_v61  ;;  %v13595_v60 = vpack.i.bf16 %v6938_v58, %v6937_v56 }
0x201e   : > { %v5769_v62 = vmul.f32 %v5767_v59, %v5767_v59 }
0x2020   : > { %v13769_v1 = vpop.eup %13768  ;;  %v5773_v63 = vsel %vm3989_vm8, %v5769_v62, 0.0 }
0x2021   : > { %5774 = vadd.xlane.f32.xlu1 %v5773_v63  ;;  %v6743_v0 = vsel %vm2830_vm1, %v13769_v1, 0.0 }
0x2022   : > { %6744 = vadd.xlane.f32.xlu0 %v6743_v0 }
0x2038   : > { %6748 = vrot.lane.b32.xlu0 %v16421_v24, %s17352_s3 }
0x204e   : > { %v6652_v2 = vpop.f32.mrb[32].mxu0 }
0x204f   : > { %v6656_v41 = vadd.f32 %v6652_v2, %v16485_v10  ;;  %v12384_v3 = vpop.f32.mrb[33].mxu0 }
0x20aa   : > { %v5772_v4 = vpop.xlane.xlu1 %5771 }
0x20ab   : > { %v5776_v6 = vmul.f32 0.03125, %v5772_v4 }
0x20ad   : > { %v5778_v11 = vadd.f32 1e-05, %v5776_v6 }
0x20ae   : > { %v5775_v13 = vpop.xlane.xlu1 %5774 }
0x20af   : > { %13770 = vrsqrt.f32 %v5778_v11  ;;  %v5777_v8 = vmul.f32 0.03125, %v5775_v13  ;;  %v6745_v9 = vpop.xlane.xlu0 %6744  ;;  %v11658_v11 = vld [vmem:[%s17369_s4] ss:$0 sm:$0xff]  ;;  %s17372_s4 = scalar_lea.vmem [#allocation2], %s15951_s10 }
0x20b0   : > { %13772 = vrcp.f32 %v6745_v9 }
0x20b1   : > { %v5779_v12 = vadd.f32 1e-05, %v5777_v8  ;;  %v11659_v8 = vld [vmem:[%s17370_s1] ss:$0 sm:$0xff]  ;;  %s17371_s1 = sld [smem:[#allocation89_spill]] }
0x20b3   : > { %13774 = vrsqrt.f32 %v5779_v12  ;;  %v6749_v14 = vpop.permute.xlu0 %6748 }
0x20b4   : > { %12391 = vmatpush3.msra.mxu0 %v6749_v14 }
0x20b5   : > { %12904 = vmatprep.subr.bf16.mxu0 %v15070_v35 }
0x20b9   : > { %v13771_v24 = vpop.eup %13770 }
0x20ba   : > { %v13773_v10 = vpop.eup %13772  ;;  %v5782_v17 = vmul.f32 %v13771_v24, %v5766_v32  ;;  %v13590_v32 = vpack.i.bf16 %v6936_v55, %v6935_v54 }
0x20bb   : > { %v6747_v20 = vmul.f32 %v13773_v10, %v13769_v1 }
0x20bc   : > { %v5790_v22 = vmul.f32 %v11656_v15, %v5782_v17  ;;  %v12908_v17 = vpack.c.bf16 %v6938_v58, %v6937_v56 }
0x20bd   : > { %v13775_v25 = vpop.eup %13774  ;;  %12393 = vmatmul.mubr.msk.f32.vlgmr.msra.gmra.mrb[34].mxu0 %vm2830_vm1, %v6747_v20  ;;  %v11681_v20 = vld [vmem:[#allocation14] ss:$0 sm:$0xff] }
0x20be   : > { %v5798_v26 = vadd.f32 %v11657_v21, %v5790_v22  ;;  %v5783_v27 = vmul.f32 %v13775_v25, %v5767_v59  ;;  %12408 = vmatprep.mubr.msk.f32.mxu0 %vm15071_vm10, %v15072_v5  ;;  %12906 = vmatpush3.bf16.msra.mxu0 %v12905_v57 }
0x20bf   : > { %12907 = vmatprep.subr.bf16.mxu0 %v15070_v35 }
0x20c0   : > { %v5802_v34 = vsel %vm2742_vm0, %v5798_v26, 0.0  ;;  %v5791_v18 = vmul.f32 %v11656_v15, %v5783_v27 }
0x20c1   : > { %5803 = vadd.xlane.f32.xlu1 %v5802_v34 }
0x20c2   : > { %v5799_v28 = vadd.f32 %v11657_v21, %v5791_v18  ;;  %12909 = vmatpush3.bf16.msra.mxu0 %v12908_v17 }
0x20c3   : > { %12918 = vmatprep.subr.bf16.mxu0 %v15070_v35 }
0x20c4   : > { %v5805_v30 = vsel %vm3989_vm8, %v5799_v28, 0.0 }
0x20c5   : > { %5806 = vadd.xlane.f32.xlu0 %v5805_v30 }
0x20db   : > { %13596 = vrot.lane.b32.xlu0 %v13595_v60, %s17361_s7 }
0x214e   : > { %v5804_v38 = vpop.xlane.xlu1 %5803 }
0x214f   : > { %v5808_v43 = vmul.f32 0.03125, %v5804_v38  ;;  %v11679_v38 = vld [vmem:[%s17371_s1] ss:$0 sm:$0xff]  ;;  %s17373_s1 = sld [smem:[#allocation83_spill]] }
0x2151   : > { %v5810_v39 = vsub.f32 %v5798_v26, %v5808_v43 }
0x2152   : > { %v5807_v44 = vpop.xlane.xlu0 %5806 }
0x2153   : > { %v5809_v49 = vmul.f32 0.03125, %v5807_v44  ;;  %v5812_v52 = vmul.f32 %v5810_v39, %v5810_v39  ;;  %v11680_v44 = vld [vmem:[#allocation19] ss:$0 sm:$0xff] }
0x2155   : > { %v5811_v37 = vsub.f32 %v5799_v28, %v5809_v49  ;;  %v5814_v40 = vsel %vm2742_vm0, %v5812_v52, 0.0 }
0x2156   : > { %v13597_v22 = vpop.permute.xlu0 %13596 }
0x2157   : > { %v5813_v16 = vmul.f32 %v5811_v37, %v5811_v37  ;;  %v13599_v27 = vunpack.i.h.bf16 %v13597_v22  ;;  %v13598_v34 = vunpack.i.l.bf16 %v13597_v22 }
0x2159   : > { %v5817_v53 = vsel %vm3989_vm8, %v5813_v16, 0.0  ;;  %v16579_v16 = vld [vmem:[%s17372_s4] ss:$0 sm:$0xff]  ;;  %s17374_s4 = sld [smem:[#allocation86_spill]] }
0x2190   : > { %v6820_v33 = vpop.f32.mrb[34].mxu0 }
0x2191   : > { %v12394_v36 = vpop.f32.mrb[35].mxu0  ;;  %12398 = vmatmul.mubr.msk.f32.vlgmr.msra.gmra.mrb[36].mxu1 %vm2830_vm1, %v6820_v33  ;;  %v12914_v33 = vpack.c.bf16 %v13599_v27, %v13598_v34 }
0x2264   : > { %v6893_v46 = vpop.f32.mrb[36].mxu1 }
0x2265   : > { %v6897_v47 = vadd.f32 %v6893_v46, %v6656_v41  ;;  %v12399_v48 = vpop.f32.mrb[37].mxu1 }
0x2267   : > { %v6904_v42 = vadd.f32 %v11678_v45, %v6897_v47 }
0x2269   : > { %v6905_v50 = vadd.f32 %v6904_v42, %v16406_v7 }
0x226b   : > { %v6908_v51 = vsel %vm2742_vm0, %v6905_v50, 0.0 }
0x226c   : > { %6909 = vadd.xlane.f32.xlu1 %v6908_v51 }
0x2270   : > { %5815 = vadd.xlane.f32.xlu1 %v5814_v40 }
0x2274   : > { %5818 = vadd.xlane.f32.xlu1 %v5817_v53 }
0x22f9   : > { %v6910_v7 = vpop.xlane.xlu1 %6909 }
0x22fa   : > { %v6911_v59 = vmul.f32 0.03125, %v6910_v7 }
0x22fc   : > { %v6912_v61 = vsub.f32 %v6905_v50, %v6911_v59 }
0x22fd   : > { %v5816_v62 = vpop.xlane.xlu1 %5815 }
0x22fe   : > { %v5820_v1 = vmul.f32 0.03125, %v5816_v62  ;;  %v6913_v63 = vmul.f32 %v6912_v61, %v6912_v61 }
0x2300   : > { %v5822_v0 = vadd.f32 1e-05, %v5820_v1  ;;  %v6914_v2 = vsel %vm2742_vm0, %v6913_v63, 0.0 }
0x2301   : > { %6915 = vadd.xlane.f32.xlu1 %v6914_v2  ;;  %v5819_v41 = vpop.xlane.xlu1 %5818 }
0x2302   : > { %13776 = vrsqrt.f32 %v5822_v0  ;;  %v5821_v3 = vmul.f32 0.03125, %v5819_v41 }
0x2304   : > { %v5823_v4 = vadd.f32 1e-05, %v5821_v3 }
0x2306   : > { %13778 = vrsqrt.f32 %v5823_v4 }
0x230c   : > { %v13777_v6 = vpop.eup %13776 }
0x230d   : > { %v5826_v13 = vmul.f32 %v13777_v6, %v5810_v39 }
0x230f   : > { %v5834_v9 = vmul.f32 %v11658_v11, %v5826_v13 }
0x2310   : > { %v13779_v12 = vpop.eup %13778 }
0x2311   : > { %v5827_v14 = vmul.f32 %v13779_v12, %v5811_v37  ;;  %v16548_v24 = vadd.f32 %v11659_v8, %v5834_v9 }
0x2312   : > { %13591 = vrot.lane.b32.xlu1 %v13590_v32, %s17361_s7 }
0x2313   : > { %v5835_v15 = vmul.f32 %v11658_v11, %v5827_v14  ;;  %12419 = vmatprep.mubr.msk.f32.mxu1 %vm2742_vm0, %v16548_v24 }
0x2315   : > { %v16553_v10 = vadd.f32 %v11659_v8, %v5835_v15  ;;  %v6940_v8 = vld [vmem:[%s17373_s1] sm:$0xff] }
0x2316   : > { %7040 = vrot.lane.b32.xlu1 %v11681_v20, %s17361_s7 }
0x238e   : > { %v6916_v21 = vpop.xlane.xlu1 %6915 }
0x238f   : > { %v6917_v25 = vmul.f32 0.03125, %v6916_v21 }
0x2391   : > { %v6918_v26 = vadd.f32 1e-05, %v6917_v25 }
0x2392   : > { %v13592_v18 = vpop.permute.xlu1 %13591 }
0x2393   : > { %13780 = vrsqrt.f32 %v6918_v26  ;;  %v13594_v28 = vunpack.i.h.bf16 %v13592_v18  ;;  %v13593_v30 = vunpack.i.l.bf16 %v13592_v18 }
0x2395   : > { %v12910_v31 = vpack.c.bf16 %v13594_v28, %v13593_v30 }
0x2396   : > { %v7041_v47 = vpop.permute.xlu1 %7040 }
0x2397   : > { %12911 = vmatprep.subr.bf16.mxu1 %v12910_v31 }
0x2398   : > { %12913 = vmatpush3.bf16.msra.mxu1 %v12910_v31 }
0x2399   : > { %12915 = vmatprep.subr.bf16.mxu1 %v12914_v33 }
0x239c   : > { %12917 = vmatpush3.bf16.msra.mxu1 %v12914_v33 }
0x239d   : > { %v13781_v36 = vpop.eup %13780  ;;  %12922 = vmatprep.subr.bf16.mxu1 %v15070_v35 }
0x239e   : > { %v6920_v43 = vmul.f32 %v13781_v36, %v6912_v61 }
0x239f   : > { %12420 = vmatmul.mubr.msk.f32.vlgmr.msra.gmra.mrb[38].mxu1 %vm2742_vm0, %v16553_v10 }
0x23a0   : > { %v6927_v45 = vmul.f32 %v11679_v38, %v6920_v43  ;;  %12433 = vmatprep.mubr.msk.f32.mxu1 %vm15071_vm10, %v15072_v5 }
0x23a2   : > { %v16563_v46 = vadd.f32 %v11680_v44, %v6927_v45  ;;  %v6941_v45 = vld [vmem:[%s17373_s1 + $0x8] sm:$0xff] }
0x23a4   : > { %12409 = vmatmul.mubr.msk.f32.vlgmr.msra.gmra.mrb[36].mxu0 %vm2742_vm0, %v16563_v46 }
0x23a5   : > { %12426 = vmatprep.mubr.msk.f32.mxu0 %vm15071_vm10, %v15072_v5 }
0x2472   : > { %v12421_v48 = vpop.f32.mrb[38].mxu1 }
0x2473   : > { %v7121_v39 = vadd.f32 %v12421_v48, %v7041_v47  ;;  %v7115_v49 = vpop.f32.mrb[39].mxu1 }
0x2474   : > { %v7116_v42 = vadd.f32 %v7115_v49, %v7041_v47 }
0x2476   : > { %v12919_v50 = vpack.c.bf16 %v7121_v39, %v7116_v42  ;;  %v16569_v37 = vpack.i.bf16 %v7121_v39, %v7116_v42 }
0x2477   : > { %v7020_v51 = vpop.f32.mrb[36].mxu0 }
0x2478   : > { %v12410_v52 = vpop.f32.mrb[37].mxu0  ;;  %12921 = vmatpush3.bf16.xpose.msk.msra.mxu0 %vm16083_vm2, %v12919_v50  ;;  %v7021_v40 = vadd.f32 %v11681_v20, %v7020_v51 }
0x2479   : > { %12930 = vmatprep.subr.bf16.mxu0 %v15070_v35 }
0x247f   : > { %12427 = vmatmul.mubr.msk.f32.vlgmr.msra.gmra.mrb[38].mxu0 %vm2830_vm1, %v7021_v40 }
0x2480   : > { %12447 = vmatprep.mubr.msk.f32.mxu0 %vm15071_vm10, %v15072_v5 }
0x2552   : > { %v7199_v53 = vpop.f32.mrb[38].mxu0 }
0x2553   : > { %v7203_v54 = vmul.f32 0.35355338, %v7199_v53  ;;  %v12428_v55 = vpop.f32.mrb[39].mxu0 }
0x2555   : > { %v7210_v56 = vadd.f32 %v16579_v16, %v7203_v54 }
0x2557   : > { %v7211_v32 = vsel %vm2918_vm4, %v7210_v56, -inf }
0x2558   : > { %7212 = vmax.xlane.f32.xlu1 %v7211_v32 }
0x2569   : > { %13601 = vrot.lane.b32.xlu1 %v16569_v37, %s17361_s7 }
0x256d   : > { %7302 = vrot.lane.b32.xlu1 %v7021_v40, %s17344_s14 }
0x25e5   : > { %v7213_v57 = vpop.xlane.xlu1 %7212 }
0x25e6   : > { %v7214_v58 = vsub.f32 %v7210_v56, %v7213_v57 }
0x25e8   : > { %v7215_v60 = vmul.f32 1.442695, %v7214_v58 }
0x25e9   : > { %v13602_v7 = vpop.permute.xlu1 %13601 }
0x25ea   : > { %13782 = vpow2.f32 %v7215_v60  ;;  %v13604_v59 = vunpack.i.h.bf16 %v13602_v7  ;;  %v13603_v61 = vunpack.i.l.bf16 %v13602_v7 }
0x25ec   : > { %v12923_v62 = vpack.c.bf16 %v13604_v59, %v13603_v61 }
0x25ed   : > { %v7303_v13 = vpop.permute.xlu1 %7302 }
0x25ee   : > { %12925 = vmatpush3.bf16.msk.msra.mxu1 %vm16148_vm7, %v12923_v62 }
0x25ef   : > { %12926 = vmatprep.subr.bf16.mxu1 %v15070_v35 }
0x25f4   : > { %v13783_v1 = vpop.eup %13782 }
0x25f5   : > { %v7217_v63 = vsel %vm2918_vm4, %v13783_v1, 0.0 }
0x25f6   : > { %7218 = vadd.xlane.f32.xlu0 %v7217_v63 }
0x260c   : > { %13606 = vrot.lane.b32.xlu0 %v16569_v37, %s17344_s14 }
0x2683   : > { %v7219_v0 = vpop.xlane.xlu0 %7218 }
0x2684   : > { %13784 = vrcp.f32 %v7219_v0 }
0x2687   : > { %v13607_v2 = vpop.permute.xlu0 %13606 }
0x2688   : > { %v13609_v41 = vunpack.i.h.bf16 %v13607_v2  ;;  %v13608_v3 = vunpack.i.l.bf16 %v13607_v2 }
0x268a   : > { %v12927_v11 = vpack.c.bf16 %v13609_v41, %v13608_v3 }
0x268e   : > { %v13785_v4 = vpop.eup %13784 }
0x268f   : > { %v7221_v6 = vmul.f32 %v13785_v4, %v13783_v1 }
0x2691   : > { %12434 = vmatmul.mubr.msk.f32.vlgmr.msra.gmra.mrb[40].mxu1 %vm2918_vm4, %v7221_v6 }
0x2692   : > { %12929 = vmatpush3.bf16.xpose.msk.msra.mxu1 %vm16083_vm2, %v12927_v11  ;;  %12440 = vmatprep.mubr.msk.f32.mxu1 %vm15071_vm10, %v15072_v5 }
0x2693   : > { %12455 = vmatprep.subr.mxu1 %v15072_v5 }
0x2699   : > { %12441 = vmatmul.mubr.msk.f32.vlgmr.msra.gmra.mrb[42].mxu1 %vm2830_vm1, %v7303_v13 }
0x269a   : > { %12457 = vmatprep.mubr.msk.f32.mxu1 %vm15071_vm10, %v15072_v5  ;;  %12456 = vmatpush3.msra.mxu1 %v6940_v8 }
0x269b   : > { %12938 = vmatprep.subr.bf16.mxu1 %v15070_v35 }
0x2764   : > { %v7298_v9 = vpop.f32.mrb[40].mxu1 }
0x2765   : > { %v12435_v12 = vpop.f32.mrb[41].mxu1  ;;  %12458 = vmatmul.mubr.msk.f32.vlgmr.msra.gmra.mrb[44].mxu1 %vm2830_vm1, %v7298_v9 }
0x2766   : > { %12471 = vmatprep.mubr.msk.f32.mxu1 %vm15071_vm10, %v15072_v5 }
0x276c   : > { %v7380_v14 = vpop.f32.mrb[42].mxu1 }
0x276d   : > { %v7384_v15 = vmul.f32 0.35355338, %v7380_v14  ;;  %v12442_v17 = vpop.f32.mrb[43].mxu1 }
0x276f   : > { %v7385_v20 = vadd.f32 %v16579_v16, %v7384_v15 }
0x2771   : > { %v7386_v21 = vsel %vm2918_vm4, %v7385_v20, -inf }
0x2772   : > { %7387 = vmax.xlane.f32.xlu1 %v7386_v21 }
0x2783   : > { %13611 = vrot.lane.b32.xlu1 %v16569_v37, %s17360_s12 }
0x2787   : > { %7623 = vrot.lane.b32.xlu1 %v7021_v40, %s17345_s13 }
0x278b   : > { %13621 = vrot.lane.b32.xlu1 %v16569_v37, %s17348_s5 }
0x278f   : > { %7872 = vrot.lane.b32.xlu1 %v7021_v40, %s17348_s5 }
0x27ff   : > { %v7388_v22 = vpop.xlane.xlu1 %7387 }
0x2800   : > { %v7389_v25 = vsub.f32 %v7385_v20, %v7388_v22 }
0x2802   : > { %v7390_v26 = vmul.f32 1.442695, %v7389_v25 }
0x2803   : > { %v13612_v27 = vpop.permute.xlu1 %13611 }
0x2804   : > { %13786 = vpow2.f32 %v7390_v26  ;;  %v13614_v34 = vunpack.i.h.bf16 %v13612_v27  ;;  %v13613_v18 = vunpack.i.l.bf16 %v13612_v27  ;;  %v6942_v26 = vld [vmem:[%s17373_s1 + $0x10] sm:$0xff] }
0x2806   : > { %v12931_v28 = vpack.c.bf16 %v13614_v34, %v13613_v18 }
0x2807   : > { %v7624_v48 = vpop.permute.xlu1 %7623 }
0x2808   : > { %12933 = vmatpush3.bf16.msk.msra.mxu0 %vm16148_vm7, %v12931_v28 }
0x2809   : > { %12450 = vmatprep.subr.mxu0 %v15072_v5 }
0x280b   : > { %v13622_v51 = vpop.permute.xlu1 %13621 }
0x280c   : > { %v13624_v40 = vunpack.i.h.bf16 %v13622_v51  ;;  %v13623_v53 = vunpack.i.l.bf16 %v13622_v51 }
0x280e   : > { %v13787_v30 = vpop.eup %13786  ;;  %v12943_v54 = vpack.c.bf16 %v13624_v40, %v13623_v53 }
0x280f   : > { %v7392_v31 = vsel %vm2918_vm4, %v13787_v30, 0.0  ;;  %v7873_v55 = vpop.permute.xlu1 %7872 }
0x2810   : > { %7393 = vadd.xlane.f32.xlu0 %v7392_v31 }
0x2826   : > { %13616 = vrot.lane.b32.xlu0 %v16569_v37, %s17345_s13 }
0x2838   : > { %v7619_v33 = vpop.f32.mrb[44].mxu1 }
0x2839   : > { %v12459_v36 = vpop.f32.mrb[45].mxu1 }
0x289d   : > { %v7394_v38 = vpop.xlane.xlu0 %7393 }
0x289e   : > { %13788 = vrcp.f32 %v7394_v38  ;;  %v6943_v38 = vld [vmem:[%s17373_s1 + $0x18] sm:$0xff]  ;;  %s17375_s1 = sld [smem:[#allocation87_spill]] }
0x28a1   : > { %v13617_v47 = vpop.permute.xlu0 %13616 }
0x28a2   : > { %v13619_v39 = vunpack.i.h.bf16 %v13617_v47  ;;  %v13618_v49 = vunpack.i.l.bf16 %v13617_v47 }
0x28a4   : > { %v12935_v42 = vpack.c.bf16 %v13619_v39, %v13618_v49  ;;  %v11710_v39 = vld [vmem:[#allocation15] ss:$0 sm:$0xff] }
0x28a8   : > { %v13789_v43 = vpop.eup %13788 }
0x28a9   : > { %v7396_v44 = vmul.f32 %v13789_v43, %v13787_v30 }
0x28ab   : > { %12448 = vmatmul.mubr.msk.f32.vlgmr.msra.gmra.mrb[40].mxu0 %vm2918_vm4, %v7396_v44 }
0x28ac   : > { %12451 = vmatpush3.msra.mxu0 %v6941_v45  ;;  %12452 = vmatprep.mubr.msk.f32.mxu0 %vm15071_vm10, %v15072_v5 }
0x28ad   : > { %12934 = vmatprep.subr.bf16.mxu0 %v15070_v35 }
0x297e   : > { %v7473_v50 = vpop.f32.mrb[40].mxu0 }
0x297f   : > { %v12449_v52 = vpop.f32.mrb[41].mxu0  ;;  %12453 = vmatmul.mubr.msk.f32.vlgmr.msra.gmra.mrb[42].mxu0 %vm2830_vm1, %v7473_v50 }
0x2980   : > { %12937 = vmatpush3.bf16.xpose.msk.msra.mxu0 %vm16083_vm2, %v12935_v42  ;;  %12464 = vmatprep.mubr.msk.f32.mxu0 %vm15071_vm10, %v15072_v5 }
0x2981   : > { %12942 = vmatprep.subr.bf16.mxu0 %v15070_v35 }
0x2987   : > { %12465 = vmatmul.mubr.msk.f32.vlgmr.msra.gmra.mrb[44].mxu0 %vm2830_vm1, %v7624_v48 }
0x2988   : > { %12945 = vmatpush3.bf16.xpose.msk.msra.mxu0 %vm16083_vm2, %v12943_v54  ;;  %12483 = vmatprep.mubr.msk.f32.mxu0 %vm15071_vm10, %v15072_v5 }
0x2989   : > { %12950 = vmatprep.subr.bf16.mxu0 %v15070_v35 }
0x298f   : > { %12484 = vmatmul.mubr.msk.f32.vlgmr.msra.gmra.mrb[46].mxu0 %vm2830_vm1, %v7873_v55 }
0x2990   : > { %12506 = vmatprep.mubr.msk.f32.mxu0 %vm15071_vm10, %v15072_v5 }
0x2a52   : > { %v7546_v56 = vpop.f32.mrb[42].mxu0 }
0x2a53   : > { %v16640_v32 = vadd.f32 %v7619_v33, %v7546_v56  ;;  %v12454_v57 = vpop.f32.mrb[43].mxu0 }
0x2a54   : > { %v8158_v57 = vld [vmem:[%s17374_s4] sm:$0xff] }
0x2a5a   : > { %v7701_v58 = vpop.f32.mrb[44].mxu0 }
0x2a5b   : > { %v7705_v60 = vmul.f32 0.35355338, %v7701_v58  ;;  %v12466_v7 = vpop.f32.mrb[45].mxu0  ;;  %v8159_v58 = vld [vmem:[%s17374_s4 + $0x8] sm:$0xff] }
0x2a5c   : > { %v8161_v7 = vld [vmem:[%s17374_s4 + $0x18] sm:$0xff] }
0x2a5d   : > { %v7706_v59 = vadd.f32 %v16579_v16, %v7705_v60  ;;  %v12951_v60 = vpack.c.bf16 %v8159_v58, %v8158_v57  ;;  %v11719_v58 = vld [vmem:[#allocation43] ss:$0 sm:$0xff] }
0x2a5f   : > { %v7707_v61 = vsel %vm2918_vm4, %v7706_v59, -inf  ;;  %12952 = vmatpush3.bf16.msra.mxu0 %v12951_v60 }
0x2a60   : > { %7708 = vmax.xlane.f32.xlu0 %v7707_v61  ;;  %12953 = vmatprep.subr.bf16.mxu0 %v15070_v35  ;;  %v8243_v61 = vld [vmem:[%s17375_s1] sm:$0xff] }
0x2a62   : > { %v7950_v62 = vpop.f32.mrb[46].mxu0 }
0x2a63   : > { %v12485_v1 = vpop.f32.mrb[47].mxu0  ;;  %v7954_v11 = vmul.f32 0.35355338, %v7950_v62  ;;  %v8244_v62 = vld [vmem:[%s17375_s1 + $0x8] sm:$0xff] }
0x2a64   : > { %v8245_v1 = vld [vmem:[%s17375_s1 + $0x10] sm:$0xff] }
0x2a65   : > { %v7955_v8 = vadd.f32 %v16579_v16, %v7954_v11 }
0x2a67   : > { %v7956_v12 = vsel %vm2918_vm4, %v7955_v8, -inf }
0x2a76   : > { %13626 = vrot.lane.b32.xlu0 %v16569_v37, %s17363_s6 }
0x2aed   : > { %v7709_v63 = vpop.xlane.xlu0 %7708 }
0x2aee   : > { %v7710_v0 = vsub.f32 %v7706_v59, %v7709_v63  ;;  %v12957_v63 = vpack.c.bf16 %v8244_v62, %v8243_v61 }
0x2af0   : > { %v7711_v2 = vmul.f32 1.442695, %v7710_v0  ;;  %v8246_v0 = vld [vmem:[%s17375_s1 + $0x18] sm:$0xff] }
0x2af1   : > { %v13627_v41 = vpop.permute.xlu0 %13626 }
0x2af2   : > { %13790 = vpow2.f32 %v7711_v2  ;;  %v13629_v3 = vunpack.i.h.bf16 %v13627_v41  ;;  %v13628_v4 = vunpack.i.l.bf16 %v13627_v41  ;;  %v12960_v2 = vpack.c.bf16 %v8246_v0, %v8245_v1  ;;  %v8247_v41 = vld [vmem:[%s17375_s1 + $0x20] sm:$0xff] }
0x2af4   : > { %v12939_v6 = vpack.c.bf16 %v13629_v3, %v13628_v4  ;;  %v8248_v3 = vld [vmem:[%s17375_s1 + $0x28] sm:$0xff] }
0x2af5   : > { %v12963_v4 = vpack.c.bf16 %v8248_v3, %v8247_v41 }
0x2af6   : > { %12941 = vmatpush3.bf16.msk.msra.mxu1 %vm16148_vm7, %v12939_v6 }
0x2af7   : > { %12474 = vmatprep.subr.mxu1 %v15072_v5 }
0x2afc   : > { %v13791_v13 = vpop.eup %13790 }
0x2afd   : > { %v7713_v9 = vsel %vm2918_vm4, %v13791_v13, 0.0 }
0x2afe   : > { %7714 = vadd.xlane.f32.xlu1 %v7713_v9  ;;  %v11711_v9 = vld [vmem:[#allocation21] ss:$0 sm:$0xff] }
0x2b02   : > { %7957 = vmax.xlane.f32.xlu1 %v7956_v12 }
0x2b8b   : > { %v7715_v14 = vpop.xlane.xlu1 %7714 }
0x2b8c   : > { %13792 = vrcp.f32 %v7715_v14  ;;  %v11712_v14 = vld [vmem:[%s17376_s8] ss:$0 sm:$0xff]  ;;  %s17377_s8 = sld [smem:[#allocation110_spill]] }
0x2b8f   : > { %v7958_v15 = vpop.xlane.xlu1 %7957 }
0x2b90   : > { %v7959_v17 = vsub.f32 %v7955_v8, %v7958_v15 }
0x2b92   : > { %v7960_v20 = vmul.f32 1.442695, %v7959_v17 }
0x2b94   : > { %13794 = vpow2.f32 %v7960_v20  ;;  %v8249_v20 = vld [vmem:[%s17375_s1 + $0x30] sm:$0xff] }
0x2b96   : > { %v13793_v21 = vpop.eup %13792 }
0x2b97   : > { %v7717_v22 = vmul.f32 %v13793_v21, %v13791_v13  ;;  %v8250_v21 = vld [vmem:[%s17375_s1 + $0x38] sm:$0xff]  ;;  %s17378_s1 = sld [smem:[#allocation111_spill]] }
0x2b99   : > { %12472 = vmatmul.mubr.msk.f32.vlgmr.msra.gmra.mrb[46].mxu1 %vm2918_vm4, %v7717_v22  ;;  %v12966_v22 = vpack.c.bf16 %v8250_v21, %v8249_v20 }
0x2b9a   : > { %12476 = vmatprep.mubr.msk.f32.mxu1 %vm15071_vm10, %v15072_v5  ;;  %12475 = vmatpush3.msra.mxu1 %v6942_v26 }
0x2b9b   : > { %12946 = vmatprep.subr.bf16.mxu1 %v15070_v35 }
0x2b9e   : > { %v13795_v16 = vpop.eup %13794 }
0x2b9f   : > { %v7962_v25 = vsel %vm2918_vm4, %v13795_v16, 0.0 }
0x2ba0   : > { %7963 = vadd.xlane.f32.xlu1 %v7962_v25 }
0x2bb1   : > { %13631 = vrot.lane.b32.xlu1 %v16569_v37, %s17347_s16 }
0x2c2d   : > { %v7964_v27 = vpop.xlane.xlu1 %7963 }
0x2c2e   : > { %13796 = vrcp.f32 %v7964_v27 }
0x2c31   : > { %v13632_v34 = vpop.permute.xlu1 %13631 }
0x2c32   : > { %v13634_v18 = vunpack.i.h.bf16 %v13632_v34  ;;  %v13633_v28 = vunpack.i.l.bf16 %v13632_v34 }
0x2c34   : > { %v12947_v31 = vpack.c.bf16 %v13634_v18, %v13633_v28  ;;  %v11715_v18 = vld [vmem:[#allocation18] ss:$0 sm:$0xff] }
0x2c38   : > { %v13797_v30 = vpop.eup %13796 }
0x2c39   : > { %v7966_v37 = vmul.f32 %v13797_v30, %v13795_v16  ;;  %v11713_v16 = vld [vmem:[#allocation16] ss:$0 sm:$0xff] }
0x2c6c   : > { %v7794_v33 = vpop.f32.mrb[46].mxu1 }
0x2c6d   : > { %v12473_v36 = vpop.f32.mrb[47].mxu1  ;;  %12477 = vmatmul.mubr.msk.f32.vlgmr.msra.gmra.mrb[48].mxu1 %vm2830_vm1, %v7794_v33 }
0x2c6e   : > { %12949 = vmatpush3.bf16.msk.msra.mxu1 %vm16148_vm7, %v12947_v31  ;;  %12490 = vmatprep.mubr.msk.f32.mxu1 %vm15071_vm10, %v15072_v5 }
0x2c6f   : > { %12493 = vmatprep.subr.mxu1 %v15072_v5 }
0x2c71   : > { %12491 = vmatmul.mubr.msk.f32.vlgmr.msra.gmra.mrb[50].mxu1 %vm2918_vm4, %v7966_v37 }
0x2c72   : > { %12495 = vmatprep.mubr.msk.f32.mxu1 %vm15071_vm10, %v15072_v5  ;;  %12494 = vmatpush3.msra.mxu1 %v6943_v38 }
0x2c73   : > { %12956 = vmatprep.subr.bf16.mxu1 %v15070_v35 }
0x2d40   : > { %v7867_v43 = vpop.f32.mrb[48].mxu1 }
0x2d41   : > { %v7871_v44 = vadd.f32 %v7867_v43, %v16640_v32  ;;  %v12478_v45 = vpop.f32.mrb[49].mxu1 }
0x2d44   : > { %v8043_v47 = vpop.f32.mrb[50].mxu1 }
0x2d45   : > { %v12492_v48 = vpop.f32.mrb[51].mxu1  ;;  %12496 = vmatmul.mubr.msk.f32.vlgmr.msra.gmra.mrb[52].mxu1 %vm2830_vm1, %v8043_v47  ;;  %v8361_v47 = vld [vmem:[%s17377_s8] sm:$0xff] }
0x2d46   : > { %12525 = vmatprep.mubr.msk.f32.mxu1 %vm15071_vm10, %v15072_v5  ;;  %12958 = vmatpush3.bf16.msra.mxu1 %v12957_v63  ;;  %v8362_v48 = vld [vmem:[%s17377_s8 + $0x8] sm:$0xff] }
0x2d47   : > { %12959 = vmatprep.subr.bf16.mxu1 %v15070_v35 }
0x2d4a   : > { %12961 = vmatpush3.bf16.msra.mxu1 %v12960_v2 }
0x2d4b   : > { %12962 = vmatprep.subr.bf16.mxu1 %v15070_v35 }
0x2d4e   : > { %12964 = vmatpush3.bf16.msra.mxu1 %v12963_v4 }
0x2d4f   : > { %12965 = vmatprep.subr.bf16.mxu1 %v15070_v35 }
0x2d52   : > { %12967 = vmatpush3.bf16.msra.mxu1 %v12966_v22 }
0x2d53   : > { %12544 = vmatprep.subr.mxu1 %v15072_v5 }
0x2e18   : > { %v8116_v49 = vpop.f32.mrb[52].mxu1 }
0x2e19   : > { %v8120_v42 = vadd.f32 %v8116_v49, %v7871_v44  ;;  %v12497_v50 = vpop.f32.mrb[53].mxu1  ;;  %v8363_v49 = vld [vmem:[%s17377_s8 + $0x10] sm:$0xff] }
0x2e1b   : > { %v8127_v51 = vadd.f32 %v11710_v39, %v8120_v42  ;;  %v12969_v39 = vpack.c.bf16 %v8362_v48, %v8361_v47  ;;  %v8364_v42 = vld [vmem:[%s17377_s8 + $0x18] sm:$0xff] }
0x2e1c   : > { %v12972_v50 = vpack.c.bf16 %v8364_v42, %v8363_v49 }
0x2e1d   : > { %v8128_v52 = vadd.f32 %v8127_v51, %v16563_v46  ;;  %v8160_v46 = vld [vmem:[%s17374_s4 + $0x10] sm:$0xff] }
0x2e1e   : > { %v12954_v59 = vpack.c.bf16 %v8161_v7, %v8160_v46 }
0x2e1f   : > { %v8131_v40 = vsel %vm2742_vm0, %v8128_v52, 0.0 }
0x2e20   : > { %8132 = vadd.xlane.f32.xlu0 %v8131_v40  ;;  %12955 = vmatpush3.bf16.msra.mxu0 %v12954_v59 }
0x2e21   : > { %12968 = vmatprep.subr.bf16.mxu0 %v15070_v35 }
0x2ead   : > { %v8133_v53 = vpop.xlane.xlu0 %8132 }
0x2eae   : > { %v8134_v54 = vmul.f32 0.03125, %v8133_v53 }
0x2eb0   : > { %v8135_v55 = vsub.f32 %v8128_v52, %v8134_v54  ;;  %v11717_v54 = vld [vmem:[#allocation24] ss:$0 sm:$0xff] }
0x2eb2   : > { %v8136_v56 = vmul.f32 %v8135_v55, %v8135_v55 }
0x2eb4   : > { %v8137_v32 = vsel %vm2742_vm0, %v8136_v56, 0.0  ;;  %v11718_v56 = vld [vmem:[#allocation22] ss:$0 sm:$0xff] }
0x2eb5   : > { %8138 = vadd.xlane.f32.xlu1 %v8137_v32 }
0x2f42   : > { %v8139_v6 = vpop.xlane.xlu1 %8138 }
0x2f43   : > { %v8140_v11 = vmul.f32 0.03125, %v8139_v6 }
0x2f45   : > { %v8141_v13 = vadd.f32 1e-05, %v8140_v11 }
0x2f47   : > { %13798 = vrsqrt.f32 %v8141_v13 }
0x2f51   : > { %v13799_v8 = vpop.eup %13798 }
0x2f52   : > { %v8143_v12 = vmul.f32 %v13799_v8, %v8135_v55 }
0x2f54   : > { %v8150_v15 = vmul.f32 %v11711_v9, %v8143_v12 }
0x2f56   : > { %v8157_v17 = vadd.f32 %v11712_v14, %v8150_v15 }
0x2f58   : > { %12507 = vmatmul.mubr.msk.f32.vlgmr.msra.gmra.mrb[48].mxu0 %vm2742_vm0, %v8157_v17 }
0x2f59   : > { %12536 = vmatprep.mubr.msk.f32.mxu0 %vm15071_vm10, %v15072_v5  ;;  %12970 = vmatpush3.bf16.msra.mxu0 %v12969_v39 }
0x2f5a   : > { %12971 = vmatprep.subr.bf16.mxu0 %v15070_v35 }
0x2f5d   : > { %12973 = vmatpush3.bf16.msra.mxu0 %v12972_v50 }
0x2f5e   : > { %12539 = vmatprep.subr.mxu0 %v15072_v5 }
0x302b   : > { %v8238_v25 = vpop.f32.mrb[48].mxu0 }
0x302c   : > { %v8239_v26 = vadd.f32 %v11713_v16, %v8238_v25  ;;  %v12508_v27 = vpop.f32.mrb[49].mxu0  ;;  %v8367_v25 = vld [vmem:[%s17378_s1 + $0x8] sm:$0xff] }
0x302e   : > { %v8242_v34 = vmax.f32 %v8239_v26, 0.0 }
0x3030   : > { %12526 = vmatmul.mubr.msk.f32.vlgmr.msra.gmra.mrb[54].mxu1 %vm4139_vm9, %v8242_v34 }
0x3031   : > { %12546 = vmatprep.mubr.msk.f32.mxu1 %vm15071_vm10, %v15072_v5 }
0x3103   : > { %v8327_v28 = vpop.f32.mrb[54].mxu1 }
0x3104   : > { %v8328_v30 = vadd.f32 %v11715_v18, %v8327_v28  ;;  %v12527_v31 = vpop.f32.mrb[55].mxu1 }
0x3106   : > { %v8331_v33 = vadd.f32 %v8328_v30, %v8157_v17 }
0x3108   : > { %v8334_v36 = vsel %vm2742_vm0, %v8331_v33, 0.0 }
0x3109   : > { %8335 = vadd.xlane.f32.xlu0 %v8334_v36  ;;  %v8366_v36 = vld [vmem:[%s17378_s1] sm:$0xff] }
0x3196   : > { %v8336_v37 = vpop.xlane.xlu0 %8335 }
0x3197   : > { %v8337_v38 = vmul.f32 0.03125, %v8336_v37 }
0x3199   : > { %v8338_v43 = vsub.f32 %v8331_v33, %v8337_v38 }
0x319b   : > { %v8339_v44 = vmul.f32 %v8338_v43, %v8338_v43 }
0x319d   : > { %v8340_v45 = vsel %vm2742_vm0, %v8339_v44, 0.0 }
0x319e   : > { %8341 = vadd.xlane.f32.xlu0 %v8340_v45 }
0x322b   : > { %v8342_v51 = vpop.xlane.xlu0 %8341 }
0x322c   : > { %v8343_v52 = vmul.f32 0.03125, %v8342_v51 }
0x322e   : > { %v8344_v40 = vadd.f32 1e-05, %v8343_v52 }
0x3230   : > { %13800 = vrsqrt.f32 %v8344_v40 }
0x323a   : > { %v13801_v53 = vpop.eup %13800 }
0x323b   : > { %v8346_v55 = vmul.f32 %v13801_v53, %v8338_v43 }
0x323d   : > { %v8353_v32 = vmul.f32 %v11717_v54, %v8346_v55 }
0x323f   : > { %v16711_v57 = vadd.f32 %v11718_v56, %v8353_v32 }
0x3241   : > { %12537 = vmatmul.mubr.msk.f32.vlgmr.msra.gmra.mrb[50].mxu0 %vm2742_vm0, %v16711_v57 }
0x3242   : > { %12541 = vmatprep.mubr.msk.f32.mxu0 %vm15071_vm10, %v15072_v5 }
0x3314   : > { %v8446_v60 = vpop.f32.mrb[50].mxu0 }
0x3315   : > { %v16717_v46 = vadd.f32 %v11719_v58, %v8446_v60  ;;  %v12538_v7 = vpop.f32.mrb[51].mxu0 }
0x3317   : > { %8618 = vrot.lane.b32.xlu1 %v16717_v46, %s17360_s12  ;;  %8451 = vrot.lane.b32.xlu0 %v16717_v46, %s17361_s7 }
0x331b   : > { %8616 = vrot.lane.b32.xlu0 %v16717_v46, %s17344_s14 }
0x3389   : > { %v8452_v59 = vpop.permute.xlu0 %8451  ;;  %v8619_v61 = vpop.permute.xlu1 %8618 }
0x338a   : > { %12540 = vmatpush3.xpose.msk.msra.mxu0 %vm2830_vm1, %v8452_v59 }
0x338b   : > { %12549 = vmatprep.subr.mxu0 %v15072_v5 }
0x338d   : > { %12542 = vmatmul.mubr.msk.f32.vlgmr.msra.gmra.mrb[52].mxu0 %vm2830_vm1, %v16717_v46  ;;  %v8617_v62 = vpop.permute.xlu0 %8616 }
0x338e   : > { %12550 = vmatpush3.xpose.msk.msra.mxu0 %vm2830_vm1, %v8619_v61  ;;  %12551 = vmatprep.mubr.msk.f32.mxu0 %vm15071_vm10, %v15072_v5 }
0x338f   : > { %12559 = vmatprep.subr.mxu0 %v15072_v5 }
0x3391   : > { %12552 = vmatmul.mubr.msk.f32.vlgmr.msra.gmra.mrb[54].mxu0 %vm2830_vm1, %v8617_v62 }
0x3392   : > { %12561 = vmatprep.mubr.msk.f32.mxu0 %vm15071_vm10, %v15072_v5  ;;  %12560 = vmatpush3.msra.mxu0 %v8367_v25 }
0x3393   : > { %12569 = vmatprep.subr.mxu0 %v15072_v5 }
0x3460   : > { %v8523_v1 = vpop.f32.mrb[52].mxu0 }
0x3461   : > { %v8527_v63 = vmul.f32 0.35355338, %v8523_v1  ;;  %v12543_v0 = vpop.f32.mrb[53].mxu0 }
0x3462   : > { %v8368_v0 = vld [vmem:[%s17378_s1 + $0x10] sm:$0xff] }
0x3463   : > { %v8528_v2 = vadd.f32 %v8527_v63, %v16446_v29 }
0x3464   : > { %v8690_v41 = vpop.f32.mrb[54].mxu0 }
0x3465   : > { %v8694_v3 = vmul.f32 0.35355338, %v8690_v41  ;;  %v12553_v4 = vpop.f32.mrb[55].mxu0  ;;  %v8529_v6 = vsel %vm2830_vm1, %v8528_v2, -inf }
0x3466   : > { %8530 = vmax.xlane.f32.xlu1 %v8529_v6 }
0x3467   : > { %v8695_v11 = vadd.f32 %v8694_v3, %v16446_v29 }
0x3469   : > { %v8696_v13 = vsel %vm2830_vm1, %v8695_v11, -inf }
0x346a   : > { %8697 = vmax.xlane.f32.xlu0 %v8696_v13 }
0x34f3   : > { %v8531_v8 = vpop.xlane.xlu1 %8530 }
0x34f4   : > { %v8532_v9 = vsub.f32 %v8528_v2, %v8531_v8 }
0x34f6   : > { %v8533_v12 = vmul.f32 1.442695, %v8532_v9 }
0x34f7   : > { %v8698_v14 = vpop.xlane.xlu0 %8697 }
0x34f8   : > { %13802 = vpow2.f32 %v8533_v12  ;;  %v8699_v15 = vsub.f32 %v8695_v11, %v8698_v14 }
0x34fa   : > { %v8700_v17 = vmul.f32 1.442695, %v8699_v15 }
0x34fc   : > { %13804 = vpow2.f32 %v8700_v17 }
0x3502   : > { %v13803_v20 = vpop.eup %13802 }
0x3503   : > { %v8535_v21 = vsel %vm2830_vm1, %v13803_v20, 0.0 }
0x3504   : > { %8536 = vadd.xlane.f32.xlu0 %v8535_v21 }
0x3506   : > { %v13805_v22 = vpop.eup %13804 }
0x3507   : > { %v8702_v16 = vsel %vm2830_vm1, %v13805_v22, 0.0 }
0x3508   : > { %8703 = vadd.xlane.f32.xlu1 %v8702_v16 }
0x3519   : > { %8707 = vrot.lane.b32.xlu1 %v16717_v46, %s17349_s23  ;;  %s17381_s23 = sld [smem:[#allocation98_spill]] }
0x351a   : > { %8540 = vrot.lane.b32.xlu0 %v16717_v46, %s17346_s0  ;;  %s17387_s0 = sld [smem:[#allocation151_spill]] }
0x351d   : > { %8931 = vrot.lane.b32.xlu1 %v16717_v46, %s17363_s6 }
0x351e   : > { %8929 = vrot.lane.b32.xlu0 %v16717_v46, %s17345_s13 }
0x3520   : > { %p17389_p7 = scmp.ne.s32.totalorder %s17387_s0, 0 }
0x3591   : > { %v8537_v26 = vpop.xlane.xlu0 %8536 }
0x3592   : > { %13806 = vrcp.f32 %v8537_v26 }
0x3595   : > { %v8704_v27 = vpop.xlane.xlu1 %8703  ;;  %v8541_v34 = vpop.permute.xlu0 %8540 }
0x3596   : > { %13808 = vrcp.f32 %v8704_v27  ;;  %12545 = vmatpush3.msra.mxu1 %v8541_v34  ;;  %v11737_v34 = vld [vmem:[#allocation45] ss:$0 sm:$0xff] }
0x3597   : > { %12554 = vmatprep.subr.mxu1 %v15072_v5 }
0x3599   : > { %v8708_v30 = vpop.permute.xlu1 %8707  ;;  %v8930_v47 = vpop.permute.xlu0 %8929 }
0x359c   : > { %v13807_v18 = vpop.eup %13806 }
0x359d   : > { %v8539_v28 = vmul.f32 %v13807_v18, %v13803_v20  ;;  %v8932_v44 = vpop.permute.xlu1 %8931  ;;  %v8369_v20 = vld [vmem:[%s17378_s1 + $0x18] sm:$0xff] }
0x359f   : > { %12547 = vmatmul.mubr.msk.f32.vlgmr.msra.gmra.mrb[56].mxu1 %vm2830_vm1, %v8539_v28 }
0x35a0   : > { %v13809_v31 = vpop.eup %13808  ;;  %12555 = vmatpush3.msra.mxu1 %v8708_v30  ;;  %12556 = vmatprep.mubr.msk.f32.mxu1 %vm15071_vm10, %v15072_v5 }
0x35a1   : > { %v8706_v33 = vmul.f32 %v13809_v31, %v13805_v22  ;;  %12564 = vmatprep.subr.mxu1 %v15072_v5 }
0x35a3   : > { %12557 = vmatmul.mubr.msk.f32.vlgmr.msra.gmra.mrb[58].mxu1 %vm2830_vm1, %v8706_v33 }
0x35a4   : > { %12566 = vmatprep.mubr.msk.f32.mxu1 %vm15071_vm10, %v15072_v5  ;;  %12565 = vmatpush3.msra.mxu1 %v8366_v36 }
0x35a5   : > { %12574 = vmatprep.subr.mxu1 %v15072_v5 }
0x3672   : > { %v8612_v37 = vpop.f32.mrb[56].mxu1 }
0x3673   : > { %v12548_v38 = vpop.f32.mrb[57].mxu1  ;;  %12567 = vmatmul.mubr.msk.f32.vlgmr.msra.gmra.mrb[60].mxu1 %vm2830_vm1, %v8612_v37 }
0x3674   : > { %12576 = vmatprep.mubr.msk.f32.mxu1 %vm15071_vm10, %v15072_v5 }
0x3676   : > { %v8779_v43 = vpop.f32.mrb[58].mxu1 }
0x3677   : > { %v12558_v45 = vpop.f32.mrb[59].mxu1  ;;  %12562 = vmatmul.mubr.msk.f32.vlgmr.msra.gmra.mrb[56].mxu0 %vm2830_vm1, %v8779_v43 }
0x3678   : > { %12570 = vmatpush3.xpose.msk.msra.mxu0 %vm2830_vm1, %v8932_v44  ;;  %12571 = vmatprep.mubr.msk.f32.mxu0 %vm15071_vm10, %v15072_v5 }
0x3679   : > { %12579 = vmatprep.subr.mxu0 %v15072_v5 }
0x367b   : > { %12572 = vmatmul.mubr.msk.f32.vlgmr.msra.gmra.mrb[58].mxu0 %vm2830_vm1, %v8930_v47 }
0x367c   : > { %12581 = vmatprep.mubr.msk.f32.mxu0 %vm15071_vm10, %v15072_v5  ;;  %12580 = vmatpush3.msra.mxu0 %v8368_v0 }
0x367d   : > { %12589 = vmatprep.subr.mxu0 %v15072_v5 }
0x3746   : > { %v8925_v48 = vpop.f32.mrb[60].mxu1 }
0x3747   : > { %v12568_v39 = vpop.f32.mrb[61].mxu1 }
0x374a   : > { %v8852_v49 = vpop.f32.mrb[56].mxu0 }
0x374b   : > { %v8926_v42 = vadd.f32 %v8925_v48, %v8852_v49  ;;  %v12563_v50 = vpop.f32.mrb[57].mxu0 }
0x374e   : > { %v9003_v51 = vpop.f32.mrb[58].mxu0 }
0x374f   : > { %v9007_v52 = vmul.f32 0.35355338, %v9003_v51  ;;  %v12573_v40 = vpop.f32.mrb[59].mxu0  ;;  %v11740_v51 = vld [vmem:[#allocation28] ss:$0 sm:$0xff] }
0x3751   : > { %v9008_v53 = vadd.f32 %v9007_v52, %v16446_v29 }
0x3753   : > { %v9009_v54 = vsel %vm2830_vm1, %v9008_v53, -inf }
0x3754   : > { %9010 = vmax.xlane.f32.xlu1 %v9009_v54 }
0x3765   : > { %9172 = vrot.lane.b32.xlu1 %v16717_v46, %s17347_s16 }
0x3769   : > { %9170 = vrot.lane.b32.xlu1 %v16717_v46, %s17348_s5 }
0x37e1   : > { %v9011_v55 = vpop.xlane.xlu1 %9010 }
0x37e2   : > { %v9012_v56 = vsub.f32 %v9008_v53, %v9011_v55 }
0x37e4   : > { %v9013_v32 = vmul.f32 1.442695, %v9012_v56 }
0x37e5   : > { %v9173_v62 = vpop.permute.xlu1 %9172 }
0x37e6   : > { %13810 = vpow2.f32 %v9013_v32 }
0x37e9   : > { %v9171_v63 = vpop.permute.xlu1 %9170 }
0x37f0   : > { %v13811_v58 = vpop.eup %13810 }
0x37f1   : > { %v9015_v60 = vsel %vm2830_vm1, %v13811_v58, 0.0 }
0x37f2   : > { %9016 = vadd.xlane.f32.xlu0 %v9015_v60 }
0x3808   : > { %9020 = vrot.lane.b32.xlu0 %v16717_v46, %s17351_s2  ;;  %s17380_s2 = scalar_lea.vmem [#allocation2], %s15951_s10 }
0x387f   : > { %v9017_v7 = vpop.xlane.xlu0 %9016 }
0x3880   : > { %13812 = vrcp.f32 %v9017_v7 }
0x3883   : > { %v9021_v59 = vpop.permute.xlu0 %9020 }
0x3884   : > { %12575 = vmatpush3.msra.mxu1 %v9021_v59 }
0x3885   : > { %12584 = vmatprep.subr.mxu1 %v15072_v5 }
0x388a   : > { %v13813_v61 = vpop.eup %13812 }
0x388b   : > { %v9019_v1 = vmul.f32 %v13813_v61, %v13811_v58 }
0x388d   : > { %12577 = vmatmul.mubr.msk.f32.vlgmr.msra.gmra.mrb[62].mxu1 %vm2830_vm1, %v9019_v1 }
0x388e   : > { %12585 = vmatpush3.xpose.msk.msra.mxu1 %vm2830_vm1, %v9173_v62  ;;  %12586 = vmatprep.mubr.msk.f32.mxu1 %vm15071_vm10, %v15072_v5  ;;  %v11738_v62 = vld [vmem:[#allocation36] ss:$0 sm:$0xff] }
0x388f   : > { %12594 = vmatprep.subr.mxu1 %v15072_v5 }
0x3891   : > { %12587 = vmatmul.mubr.msk.f32.vlgmr.msra.gmra.mrb[64].mxu1 %vm2830_vm1, %v9171_v63  ;;  %v11739_v63 = vld [vmem:[#allocation34] ss:$0 sm:$0xff] }
0x3892   : > { %12596 = vmatprep.mubr.msk.f32.mxu1 %vm15071_vm10, %v15072_v5  ;;  %12595 = vmatpush3.msra.mxu1 %v8369_v20  ;;  %v16842_v20 = vld [vmem:[%s17380_s2] ss:$0 sm:$0xff] }
0x3960   : > { %v9092_v2 = vpop.f32.mrb[62].mxu1 }
0x3961   : > { %v12578_v41 = vpop.f32.mrb[63].mxu1  ;;  %12582 = vmatmul.mubr.msk.f32.vlgmr.msra.gmra.mrb[60].mxu0 %vm2830_vm1, %v9092_v2 }
0x3962   : > { %12591 = vmatprep.mubr.msk.f32.mxu0 %vm15071_vm10, %v15072_v5 }
0x3964   : > { %v9244_v3 = vpop.f32.mrb[64].mxu1 }
0x3965   : > { %v9248_v4 = vmul.f32 0.35355338, %v9244_v3  ;;  %v12588_v6 = vpop.f32.mrb[65].mxu1 }
0x3967   : > { %v9249_v11 = vadd.f32 %v9248_v4, %v16446_v29 }
0x3969   : > { %v9250_v13 = vsel %vm2830_vm1, %v9249_v11, -inf }
0x396a   : > { %9251 = vmax.xlane.f32.xlu0 %v9250_v13 }
0x3980   : > { %9261 = vrot.lane.b32.xlu0 %v16717_v46, %s17352_s3  ;;  %s17379_s3 = sld [smem:[#allocation97_spill]] }
0x3986   : > { %v9450_v37 = vld [vmem:[%s17379_s3 + $0x10] sm:$0xff]  ;;  %v9451_v38 = vld [vmem:[%s17379_s3 + $0x18] sm:$0xff]  ;;  %v9448_v39 = vld [vmem:[%s17379_s3] sm:$0xff] }
0x3987   : > { %v13640_v43 = vpack.i.bf16 %v9451_v38, %v9450_v37  ;;  %v9449_v49 = vld [vmem:[%s17379_s3 + $0x8] sm:$0xff]  ;;  %v12978_v50 = vpack.c.bf16 %v9451_v38, %v9450_v37  ;;  %s10978_s3 = scalar_lea.sflag [#allocation4], %s15951_s10 }
0x3989   : > { %13641 = vrot.lane.b32.xlu0 %v13640_v43, %s17361_s7 }
0x398d   : > { %9553 = vrot.lane.b32.xlu0 %v11740_v51, %s17361_s7 }
0x39f7   : > { %v9252_v8 = vpop.xlane.xlu0 %9251 }
0x39f8   : > { %v9253_v9 = vsub.f32 %v9249_v11, %v9252_v8 }
0x39fa   : > { %v9254_v12 = vmul.f32 1.442695, %v9253_v9 }
0x39fb   : > { %v9262_v14 = vpop.permute.xlu0 %9261 }
0x39fc   : > { %13814 = vpow2.f32 %v9254_v12  ;;  %12590 = vmatpush3.msra.mxu0 %v9262_v14 }
0x39fd   : > { %12974 = vmatprep.subr.bf16.mxu0 %v15070_v35 }
0x39ff   : > { %v13642_v40 = vpop.permute.xlu0 %13641 }
0x3a00   : > { %v13644_v55 = vunpack.i.h.bf16 %v13642_v40  ;;  %v13643_v56 = vunpack.i.l.bf16 %v13642_v40 }
0x3a02   : > { %v12984_v59 = vpack.c.bf16 %v13644_v55, %v13643_v56 }
0x3a03   : > { %v9554_v41 = vpop.permute.xlu0 %9553 }
0x3a06   : > { %v13815_v15 = vpop.eup %13814 }
0x3a07   : > { %v9256_v17 = vsel %vm2830_vm1, %v13815_v15, 0.0 }
0x3a08   : > { %9257 = vadd.xlane.f32.xlu1 %v9256_v17 }
0x3a34   : > { %v9165_v29 = vpop.f32.mrb[60].mxu0 }
0x3a35   : > { %v9169_v21 = vadd.f32 %v9165_v29, %v8926_v42  ;;  %v12583_v22 = vpop.f32.mrb[61].mxu0  ;;  %v13635_v42 = vpack.i.bf16 %v9449_v49, %v9448_v39 }
0x3a95   : > { %v9258_v16 = vpop.xlane.xlu1 %9257 }
0x3a96   : > { %13816 = vrcp.f32 %v9258_v16 }
0x3aa0   : > { %v13817_v46 = vpop.eup %13816 }
0x3aa1   : > { %v9260_v25 = vmul.f32 %v13817_v46, %v13815_v15 }
0x3aa3   : > { %12592 = vmatmul.mubr.msk.f32.vlgmr.msra.gmra.mrb[62].mxu0 %vm2830_vm1, %v9260_v25 }
0x3aa4   : > { %12607 = vmatprep.mubr.msk.f32.mxu0 %vm15071_vm10, %v15072_v5 }
0x3b76   : > { %v9333_v26 = vpop.f32.mrb[62].mxu0 }
0x3b77   : > { %v12593_v27 = vpop.f32.mrb[63].mxu0  ;;  %12597 = vmatmul.mubr.msk.f32.vlgmr.msra.gmra.mrb[66].mxu1 %vm2830_vm1, %v9333_v26 }
0x3b78   : > { %12618 = vmatprep.mubr.msk.f32.mxu1 %vm2742_vm0, %v16548_v24 }
0x3c4a   : > { %v9406_v18 = vpop.f32.mrb[66].mxu1 }
0x3c4b   : > { %v9410_v28 = vadd.f32 %v9406_v18, %v9169_v21  ;;  %v12598_v30 = vpop.f32.mrb[67].mxu1 }
0x3c4d   : > { %v9417_v31 = vadd.f32 %v11737_v34, %v9410_v28 }
0x3c4f   : > { %v9418_v33 = vadd.f32 %v9417_v31, %v16711_v57  ;;  %v12975_v57 = vpack.c.bf16 %v9449_v49, %v9448_v39 }
0x3c51   : > { %v9421_v36 = vsel %vm2742_vm0, %v9418_v33, 0.0  ;;  %12976 = vmatpush3.bf16.msra.mxu0 %v12975_v57 }
0x3c52   : > { %9422 = vadd.xlane.f32.xlu1 %v9421_v36  ;;  %12977 = vmatprep.subr.bf16.mxu0 %v15070_v35 }
0x3c55   : > { %12979 = vmatpush3.bf16.msra.mxu0 %v12978_v50 }
0x3c56   : > { %12988 = vmatprep.subr.bf16.mxu0 %v15070_v35 }
0x3cdf   : > { %v9423_v44 = vpop.xlane.xlu1 %9422 }
0x3ce0   : > { %v9424_v45 = vmul.f32 0.03125, %v9423_v44 }
0x3ce2   : > { %v9425_v24 = vsub.f32 %v9418_v33, %v9424_v45  ;;  %v9453_v45 = vld [vmem:[%s17381_s23] sm:$0xff] }
0x3ce4   : > { %v9426_v47 = vmul.f32 %v9425_v24, %v9425_v24 }
0x3ce6   : > { %v9427_v48 = vsel %vm2742_vm0, %v9426_v47, 0.0 }
0x3ce7   : > { %9428 = vadd.xlane.f32.xlu1 %v9427_v48 }
0x3cf8   : > { %13636 = vrot.lane.b32.xlu1 %v13635_v42, %s17361_s7 }
0x3d74   : > { %v9429_v52 = vpop.xlane.xlu1 %9428 }
0x3d75   : > { %v9430_v53 = vmul.f32 0.03125, %v9429_v52 }
0x3d77   : > { %v9431_v54 = vadd.f32 1e-05, %v9430_v53 }
0x3d78   : > { %v13637_v32 = vpop.permute.xlu1 %13636 }
0x3d79   : > { %13818 = vrsqrt.f32 %v9431_v54  ;;  %v13639_v58 = vunpack.i.h.bf16 %v13637_v32  ;;  %v13638_v60 = vunpack.i.l.bf16 %v13637_v32 }
0x3d7b   : > { %v12980_v7 = vpack.c.bf16 %v13639_v58, %v13638_v60 }
0x3d7d   : > { %12981 = vmatprep.subr.bf16.mxu1 %v12980_v7 }
0x3d7e   : > { %12983 = vmatpush3.bf16.msra.mxu1 %v12980_v7 }
0x3d7f   : > { %12985 = vmatprep.subr.bf16.mxu1 %v12984_v59 }
0x3d82   : > { %12987 = vmatpush3.bf16.msra.mxu1 %v12984_v59 }
0x3d83   : > { %v13819_v61 = vpop.eup %13818  ;;  %12992 = vmatprep.subr.bf16.mxu1 %v15070_v35 }
0x3d84   : > { %v9433_v1 = vmul.f32 %v13819_v61, %v9425_v24 }
0x3d85   : > { %12619 = vmatmul.mubr.msk.f32.vlgmr.msra.gmra.mrb[68].mxu1 %vm2742_vm0, %v16553_v10 }
0x3d86   : > { %v9440_v0 = vmul.f32 %v11738_v62, %v9433_v1  ;;  %12632 = vmatprep.mubr.msk.f32.mxu1 %vm15071_vm10, %v15072_v5 }
0x3d88   : > { %v16826_v2 = vadd.f32 %v11739_v63, %v9440_v0 }
0x3d8a   : > { %12608 = vmatmul.mubr.msk.f32.vlgmr.msra.gmra.mrb[64].mxu0 %vm2742_vm0, %v16826_v2 }
0x3d8b   : > { %12625 = vmatprep.mubr.msk.f32.mxu0 %vm15071_vm10, %v15072_v5 }
0x3e58   : > { %v12620_v3 = vpop.f32.mrb[68].mxu1 }
0x3e59   : > { %v9628_v4 = vadd.f32 %v12620_v3, %v9554_v41  ;;  %v9622_v6 = vpop.f32.mrb[69].mxu1 }
0x3e5a   : > { %v9623_v11 = vadd.f32 %v9622_v6, %v9554_v41 }
0x3e5c   : > { %v12989_v10 = vpack.c.bf16 %v9628_v4, %v9623_v11  ;;  %v16832_v13 = vpack.i.bf16 %v9628_v4, %v9623_v11 }
0x3e5d   : > { %v9533_v8 = vpop.f32.mrb[64].mxu0 }
0x3e5e   : > { %v12609_v9 = vpop.f32.mrb[65].mxu0  ;;  %12991 = vmatpush3.bf16.xpose.msk.msra.mxu0 %vm16083_vm2, %v12989_v10  ;;  %v9534_v12 = vadd.f32 %v11740_v51, %v9533_v8 }
0x3e5f   : > { %13000 = vmatprep.subr.bf16.mxu0 %v15070_v35 }
0x3e65   : > { %12626 = vmatmul.mubr.msk.f32.vlgmr.msra.gmra.mrb[66].mxu0 %vm2830_vm1, %v9534_v12 }
0x3e66   : > { %12646 = vmatprep.mubr.msk.f32.mxu0 %vm15071_vm10, %v15072_v5 }
0x3f38   : > { %v9706_v14 = vpop.f32.mrb[66].mxu0 }
0x3f39   : > { %v9710_v15 = vmul.f32 0.35355338, %v9706_v14  ;;  %v12627_v17 = vpop.f32.mrb[67].mxu0 }
0x3f3b   : > { %v9711_v29 = vadd.f32 %v16842_v20, %v9710_v15 }
0x3f3d   : > { %v9712_v21 = vsel %vm2918_vm4, %v9711_v29, -inf }
0x3f3e   : > { %9713 = vmax.xlane.f32.xlu0 %v9712_v21 }
0x3f54   : > { %13646 = vrot.lane.b32.xlu0 %v16832_v13, %s17361_s7  ;;  %s17382_s7 = smov %s17381_s23 }
0x3f55   : > { %v9454_v62 = vld [vmem:[%s17382_s7 + $0x8] sm:$0xff] }
0x3f58   : > { %9803 = vrot.lane.b32.xlu0 %v9534_v12, %s17344_s14 }
0x3fcb   : > { %v9714_v22 = vpop.xlane.xlu0 %9713 }
0x3fcc   : > { %v9715_v16 = vsub.f32 %v9711_v29, %v9714_v22 }
0x3fce   : > { %v9716_v46 = vmul.f32 1.442695, %v9715_v16 }
0x3fcf   : > { %v13647_v25 = vpop.permute.xlu0 %13646 }
0x3fd0   : > { %13820 = vpow2.f32 %v9716_v46  ;;  %v13649_v26 = vunpack.i.h.bf16 %v13647_v25  ;;  %v13648_v27 = vunpack.i.l.bf16 %v13647_v25 }
0x3fd2   : > { %v12993_v34 = vpack.c.bf16 %v13649_v26, %v13648_v27 }
0x3fd3   : > { %v9804_v44 = vpop.permute.xlu0 %9803 }
0x3fd4   : > { %12995 = vmatpush3.bf16.msk.msra.mxu1 %vm16148_vm7, %v12993_v34 }
0x3fd5   : > { %12996 = vmatprep.subr.bf16.mxu1 %v15070_v35 }
0x3fda   : > { %v13821_v18 = vpop.eup %13820 }
0x3fdb   : > { %v9718_v28 = vsel %vm2918_vm4, %v13821_v18, 0.0 }
0x3fdc   : > { %9719 = vadd.xlane.f32.xlu1 %v9718_v28 }
0x3fed   : > { %13651 = vrot.lane.b32.xlu1 %v16832_v13, %s17344_s14  ;;  %s17385_s14 = sld [smem:[#allocation141_spill]] }
0x4069   : > { %v9720_v30 = vpop.xlane.xlu1 %9719 }
0x406a   : > { %13822 = vrcp.f32 %v9720_v30 }
0x406d   : > { %v13652_v31 = vpop.permute.xlu1 %13651 }
0x406e   : > { %v13654_v33 = vunpack.i.h.bf16 %v13652_v31  ;;  %v13653_v36 = vunpack.i.l.bf16 %v13652_v31 }
0x4070   : > { %v12997_v43 = vpack.c.bf16 %v13654_v33, %v13653_v36 }
0x4074   : > { %v13823_v37 = vpop.eup %13822 }
0x4075   : > { %v9722_v38 = vmul.f32 %v13823_v37, %v13821_v18 }
0x4077   : > { %12633 = vmatmul.mubr.msk.f32.vlgmr.msra.gmra.mrb[70].mxu1 %vm2918_vm4, %v9722_v38 }
0x4078   : > { %12999 = vmatpush3.bf16.xpose.msk.msra.mxu1 %vm16083_vm2, %v12997_v43  ;;  %12639 = vmatprep.mubr.msk.f32.mxu1 %vm15071_vm10, %v15072_v5 }
0x4079   : > { %12654 = vmatprep.subr.mxu1 %v15072_v5 }
0x407f   : > { %12640 = vmatmul.mubr.msk.f32.vlgmr.msra.gmra.mrb[72].mxu1 %vm2830_vm1, %v9804_v44 }
0x4080   : > { %12656 = vmatprep.mubr.msk.f32.mxu1 %vm15071_vm10, %v15072_v5  ;;  %12655 = vmatpush3.msra.mxu1 %v9453_v45 }
0x4081   : > { %13008 = vmatprep.subr.bf16.mxu1 %v15070_v35 }
0x414a   : > { %v9799_v24 = vpop.f32.mrb[70].mxu1 }
0x414b   : > { %v12634_v47 = vpop.f32.mrb[71].mxu1  ;;  %12657 = vmatmul.mubr.msk.f32.vlgmr.msra.gmra.mrb[74].mxu1 %vm2830_vm1, %v9799_v24 }
0x414c   : > { %12670 = vmatprep.mubr.msk.f32.mxu1 %vm15071_vm10, %v15072_v5 }
0x4152   : > { %v9881_v48 = vpop.f32.mrb[72].mxu1 }
0x4153   : > { %v9885_v39 = vmul.f32 0.35355338, %v9881_v48  ;;  %v12641_v49 = vpop.f32.mrb[73].mxu1 }
0x4155   : > { %v9886_v42 = vadd.f32 %v16842_v20, %v9885_v39 }
0x4157   : > { %v9887_v57 = vsel %vm2918_vm4, %v9886_v42, -inf }
0x4158   : > { %9888 = vmax.xlane.f32.xlu1 %v9887_v57 }
0x4169   : > { %13661 = vrot.lane.b32.xlu1 %v16832_v13, %s17345_s13 }
0x416d   : > { %10124 = vrot.lane.b32.xlu1 %v9534_v12, %s17345_s13  ;;  %s17386_s13 = sld [smem:[#allocation142_spill]] }
0x4171   : > { %10373 = vrot.lane.b32.xlu1 %v9534_v12, %s17348_s5 }
0x41e5   : > { %v9889_v50 = vpop.xlane.xlu1 %9888 }
0x41e6   : > { %v9890_v51 = vsub.f32 %v9886_v42, %v9889_v50  ;;  %v9455_v42 = vld [vmem:[%s17382_s7 + $0x10] sm:$0xff] }
0x41e8   : > { %v9891_v52 = vmul.f32 1.442695, %v9890_v51 }
0x41e9   : > { %v13662_v1 = vpop.permute.xlu1 %13661 }
0x41ea   : > { %13824 = vpow2.f32 %v9891_v52  ;;  %v13664_v63 = vunpack.i.h.bf16 %v13662_v1  ;;  %v13663_v0 = vunpack.i.l.bf16 %v13662_v1 }
0x41ec   : > { %v13005_v41 = vpack.c.bf16 %v13664_v63, %v13663_v0 }
0x41ed   : > { %v10125_v8 = vpop.permute.xlu1 %10124 }
0x41f1   : > { %v10374_v12 = vpop.permute.xlu1 %10373 }
0x41f4   : > { %v13825_v40 = vpop.eup %13824 }
0x41f5   : > { %v9893_v53 = vsel %vm2918_vm4, %v13825_v40, 0.0 }
0x41f6   : > { %9894 = vadd.xlane.f32.xlu0 %v9893_v53 }
0x420c   : > { %13656 = vrot.lane.b32.xlu0 %v16832_v13, %s17360_s12  ;;  %s11782_s12 = sshll.u32 %s17287_s22, 7  ;;  %s15073_s22 = smov [#allocation52]  }
0x420d   : > { %s16976_s1 = scalar_lea.hbm %s17386_s13, %s11782_s12 }
0x4210   : > { %13666 = vrot.lane.b32.xlu0 %v16832_v13, %s17348_s5  ;;  %s17383_s5 = sld [smem:[#allocation101_spill]] }
0x421e   : > { %v10120_v54 = vpop.f32.mrb[74].mxu1 }
0x421f   : > { %v12658_v55 = vpop.f32.mrb[75].mxu1 }
0x4283   : > { %v9895_v56 = vpop.xlane.xlu0 %9894 }
0x4284   : > { %13826 = vrcp.f32 %v9895_v56  ;;  %v9456_v56 = vld [vmem:[%s17382_s7 + $0x18] sm:$0xff] }
0x4287   : > { %v13657_v32 = vpop.permute.xlu0 %13656 }
0x4288   : > { %v13659_v58 = vunpack.i.h.bf16 %v13657_v32  ;;  %v13658_v60 = vunpack.i.l.bf16 %v13657_v32 }
0x428a   : > { %v13001_v7 = vpack.c.bf16 %v13659_v58, %v13658_v60 }
0x428b   : > { %v13667_v4 = vpop.permute.xlu0 %13666 }
0x428c   : > { %13003 = vmatpush3.bf16.msk.msra.mxu0 %vm16148_vm7, %v13001_v7  ;;  %v13669_v11 = vunpack.i.h.bf16 %v13667_v4  ;;  %v13668_v10 = vunpack.i.l.bf16 %v13667_v4 }
0x428d   : > { %12649 = vmatprep.subr.mxu0 %v15072_v5 }
0x428e   : > { %v13827_v59 = vpop.eup %13826  ;;  %v13013_v9 = vpack.c.bf16 %v13669_v11, %v13668_v10 }
0x428f   : > { %v9897_v61 = vmul.f32 %v13827_v59, %v13825_v40  ;;  %v11768_v59 = vld [vmem:[#allocation30] ss:$0 sm:$0xff] }
0x4291   : > { %12647 = vmatmul.mubr.msk.f32.vlgmr.msra.gmra.mrb[68].mxu0 %vm2918_vm4, %v9897_v61 }
0x4292   : > { %12650 = vmatpush3.msra.mxu0 %v9454_v62  ;;  %12651 = vmatprep.mubr.msk.f32.mxu0 %vm15071_vm10, %v15072_v5 }
0x4293   : > { %13004 = vmatprep.subr.bf16.mxu0 %v15070_v35 }
0x4364   : > { %v9974_v3 = vpop.f32.mrb[68].mxu0 }
0x4365   : > { %v12648_v6 = vpop.f32.mrb[69].mxu0  ;;  %12652 = vmatmul.mubr.msk.f32.vlgmr.msra.gmra.mrb[70].mxu0 %vm2830_vm1, %v9974_v3 }
0x4366   : > { %13007 = vmatpush3.bf16.xpose.msk.msra.mxu0 %vm16083_vm2, %v13005_v41  ;;  %12663 = vmatprep.mubr.msk.f32.mxu0 %vm15071_vm10, %v15072_v5 }
0x4367   : > { %13012 = vmatprep.subr.bf16.mxu0 %v15070_v35 }
0x436d   : > { %12664 = vmatmul.mubr.msk.f32.vlgmr.msra.gmra.mrb[72].mxu0 %vm2830_vm1, %v10125_v8  ;;  %v10659_v8 = vld [vmem:[%s17383_s5] sm:$0xff] }
0x436e   : > { %13015 = vmatpush3.bf16.xpose.msk.msra.mxu0 %vm16083_vm2, %v13013_v9  ;;  %12682 = vmatprep.mubr.msk.f32.mxu0 %vm15071_vm10, %v15072_v5  ;;  %v10660_v9 = vld [vmem:[%s17383_s5 + $0x8] sm:$0xff] }
0x436f   : > { %13020 = vmatprep.subr.bf16.mxu0 %v15070_v35 }
0x4375   : > { %12683 = vmatmul.mubr.msk.f32.vlgmr.msra.gmra.mrb[74].mxu0 %vm2830_vm1, %v10374_v12  ;;  %v13021_v12 = vpack.c.bf16 %v10660_v9, %v10659_v8 }
0x4376   : > { %12705 = vmatprep.mubr.msk.f32.mxu0 %vm15071_vm10, %v15072_v5 }
0x4377   : > { %13022 = vmatpush3.bf16.msra.mxu0 %v13021_v12 }
0x4378   : > { %13023 = vmatprep.subr.bf16.mxu0 %v15070_v35 }
0x4438   : > { %v10047_v14 = vpop.f32.mrb[70].mxu0 }
0x4439   : > { %v16903_v15 = vadd.f32 %v10120_v54, %v10047_v14  ;;  %v12653_v17 = vpop.f32.mrb[71].mxu0  ;;  %v10662_v14 = vld [vmem:[%s17383_s5 + $0x18] sm:$0xff] }
0x4440   : > { %v10202_v29 = vpop.f32.mrb[72].mxu0 }
0x4441   : > { %v10206_v21 = vmul.f32 0.35355338, %v10202_v29  ;;  %v12665_v22 = vpop.f32.mrb[73].mxu0 }
0x4443   : > { %v10207_v23 = vadd.f32 %v16842_v20, %v10206_v21 }
0x4445   : > { %v10208_v16 = vsel %vm2918_vm4, %v10207_v23, -inf }
0x4446   : > { %10209 = vmax.xlane.f32.xlu0 %v10208_v16 }
0x4448   : > { %v10451_v46 = vpop.f32.mrb[74].mxu0 }
0x4449   : > { %v12684_v25 = vpop.f32.mrb[75].mxu0  ;;  %v10455_v33 = vmul.f32 0.35355338, %v10451_v46 }
0x444b   : > { %v10456_v37 = vadd.f32 %v16842_v20, %v10455_v33  ;;  %v11770_v33 = vld [vmem:[#allocation37] ss:$0 sm:$0xff] }
0x444d   : > { %v10457_v43 = vsel %vm2918_vm4, %v10456_v37, -inf }
0x445c   : > { %13671 = vrot.lane.b32.xlu0 %v16832_v13, %s17363_s6  ;;  %s17388_s6 = sshll.u32 %s15951_s10, 3 }
0x445d   : > { %s2691_s2 = scalar_lea.vmem [#allocation52], %s17388_s6  ;;  %s14807_s6 = sshll.u32 %s15073_s22, 4  ;;  %s14808_s6 = int_to_ptr.vmem [resolvable:$false] %s14807_s6 }
0x445e   : > { %s10991_s23 = sshll.u32 %s2691_s2, 4  ;;  %s16978_s23 = int_to_ptr.vmem [resolvable:$true] %s10991_s23 }
0x445f   : > { %s14803_s4 = scalar_lea.vmem %s16978_s23, 128  ;;  %p14810_p11 = scmp.lt.s32.totalorder %s16978_s23, %s14808_s6 }
0x4460   : > { %p14804_p3 = scmp.ne.s32.totalorder %s16978_s23, %s14803_s4 }
0x4462   : > { %p14805_p10 = pnand %p14804_p3, %p17389_p7 }
0x4464   : > { %p14806_p0 = pneg %p14805_p10 }
0x44d3   : > { %v10210_v26 = vpop.xlane.xlu0 %10209 }
0x44d4   : > { %v10211_v27 = vsub.f32 %v10207_v23, %v10210_v26 }
0x44d6   : > { %v10212_v34 = vmul.f32 1.442695, %v10211_v27 }
0x44d7   : > { %v13672_v18 = vpop.permute.xlu0 %13671 }
0x44d8   : > { %13828 = vpow2.f32 %v10212_v34  ;;  %v13674_v28 = vunpack.i.h.bf16 %v13672_v18  ;;  %v13673_v30 = vunpack.i.l.bf16 %v13672_v18 }
0x44da   : > { %v13009_v31 = vpack.c.bf16 %v13674_v28, %v13673_v30  ;;  %v11769_v30 = vld [vmem:[#allocation39] ss:$0 sm:$0xff] }
0x44dc   : > { %13011 = vmatpush3.bf16.msk.msra.mxu1 %vm16148_vm7, %v13009_v31 }
0x44dd   : > { %12673 = vmatprep.subr.mxu1 %v15072_v5 }
0x44e2   : > { %v13829_v36 = vpop.eup %13828 }
0x44e3   : > { %v10214_v38 = vsel %vm2918_vm4, %v13829_v36, 0.0 }
0x44e4   : > { %10215 = vadd.xlane.f32.xlu1 %v10214_v38 }
0x44e8   : > { %10458 = vmax.xlane.f32.xlu1 %v10457_v43 }
0x4571   : > { %v10216_v44 = vpop.xlane.xlu1 %10215 }
0x4572   : > { %13830 = vrcp.f32 %v10216_v44 }
0x4575   : > { %v10459_v45 = vpop.xlane.xlu1 %10458 }
0x4576   : > { %v10460_v24 = vsub.f32 %v10456_v37, %v10459_v45  ;;  %v11771_v45 = vld [vmem:[#allocation31] ss:$0 sm:$0xff] }
0x4578   : > { %v10461_v47 = vmul.f32 1.442695, %v10460_v24 }
0x457a   : > { %13832 = vpow2.f32 %v10461_v47 }
0x457c   : > { %v13831_v48 = vpop.eup %13830 }
0x457d   : > { %v10218_v39 = vmul.f32 %v13831_v48, %v13829_v36 }
0x457f   : > { %12671 = vmatmul.mubr.msk.f32.vlgmr.msra.gmra.mrb[76].mxu1 %vm2918_vm4, %v10218_v39 }
0x4580   : > { %12675 = vmatprep.mubr.msk.f32.mxu1 %vm15071_vm10, %v15072_v5  ;;  %12674 = vmatpush3.msra.mxu1 %v9455_v42 }
0x4581   : > { %13016 = vmatprep.subr.bf16.mxu1 %v15070_v35 }
0x4584   : > { %v13833_v20 = vpop.eup %13832 }
0x4585   : > { %v10463_v49 = vsel %vm2918_vm4, %v13833_v20, 0.0 }
0x4586   : > { %10464 = vadd.xlane.f32.xlu1 %v10463_v49 }
0x4597   : > { %13676 = vrot.lane.b32.xlu1 %v16832_v13, %s17347_s16  ;;  %s17384_s16 = sld [smem:[#allocation102_spill]] }
0x459d   : > { %v10744_v17 = vld [vmem:[%s17384_s16] sm:$0xff]  ;;  %v10745_v29 = vld [vmem:[%s17384_s16 + $0x8] sm:$0xff]  ;;  %v10746_v21 = vld [vmem:[%s17384_s16 + $0x10] sm:$0xff] }
0x459e   : > { %v13027_v22 = vpack.c.bf16 %v10745_v29, %v10744_v17  ;;  %v10747_v23 = vld [vmem:[%s17384_s16 + $0x18] sm:$0xff]  ;;  %v10748_v46 = vld [vmem:[%s17384_s16 + $0x20] sm:$0xff]  ;;  %v10749_v25 = vld [vmem:[%s17384_s16 + $0x28] sm:$0xff] }
0x459f   : > { %v13030_v16 = vpack.c.bf16 %v10747_v23, %v10746_v21  ;;  %v13033_v26 = vpack.c.bf16 %v10749_v25, %v10748_v46  ;;  %v10750_v38 = vld [vmem:[%s17384_s16 + $0x30] sm:$0xff]  ;;  %v10751_v43 = vld [vmem:[%s17384_s16 + $0x38] sm:$0xff] }
0x45a0   : > { %v13036_v44 = vpack.c.bf16 %v10751_v43, %v10750_v38  ;;  %v11778_v29 = vld [vmem:[#allocation46] ss:$0 sm:$0xff] }
0x4613   : > { %v10465_v57 = vpop.xlane.xlu1 %10464 }
0x4614   : > { %13834 = vrcp.f32 %v10465_v57 }
0x4617   : > { %v13677_v50 = vpop.permute.xlu1 %13676 }
0x4618   : > { %v13679_v51 = vunpack.i.h.bf16 %v13677_v50  ;;  %v13678_v52 = vunpack.i.l.bf16 %v13677_v50 }
0x461a   : > { %v13017_v53 = vpack.c.bf16 %v13679_v51, %v13678_v52 }
0x461e   : > { %v13835_v40 = vpop.eup %13834 }
0x461f   : > { %v10467_v13 = vmul.f32 %v13835_v40, %v13833_v20  ;;  %v11773_v20 = vld [vmem:[#allocation33] ss:$0 sm:$0xff] }
0x4652   : > { %v10295_v54 = vpop.f32.mrb[76].mxu1 }
0x4653   : > { %v12672_v55 = vpop.f32.mrb[77].mxu1  ;;  %12676 = vmatmul.mubr.msk.f32.vlgmr.msra.gmra.mrb[78].mxu1 %vm2830_vm1, %v10295_v54 }
0x4654   : > { %13019 = vmatpush3.bf16.msk.msra.mxu1 %vm16148_vm7, %v13017_v53  ;;  %12689 = vmatprep.mubr.msk.f32.mxu1 %vm15071_vm10, %v15072_v5 }
0x4655   : > { %12692 = vmatprep.subr.mxu1 %v15072_v5 }
0x4657   : > { %12690 = vmatmul.mubr.msk.f32.vlgmr.msra.gmra.mrb[80].mxu1 %vm2918_vm4, %v10467_v13 }
0x4658   : > { %12694 = vmatprep.mubr.msk.f32.mxu1 %vm15071_vm10, %v15072_v5  ;;  %12693 = vmatpush3.msra.mxu1 %v9456_v56 }
0x4659   : > { %13026 = vmatprep.subr.bf16.mxu1 %v15070_v35 }
0x4726   : > { %v10368_v32 = vpop.f32.mrb[78].mxu1 }
0x4727   : > { %v10372_v58 = vadd.f32 %v10368_v32, %v16903_v15  ;;  %v12677_v19 = vpop.f32.mrb[79].mxu1 }
0x472a   : > { %v10544_v60 = vpop.f32.mrb[80].mxu1 }
0x472b   : > { %v12691_v7 = vpop.f32.mrb[81].mxu1  ;;  %12695 = vmatmul.mubr.msk.f32.vlgmr.msra.gmra.mrb[82].mxu1 %vm2830_vm1, %v10544_v60  ;;  %v11776_v60 = vld [vmem:[#allocation40] ss:$0 sm:$0xff] }
0x472c   : > { %12724 = vmatprep.mubr.msk.f32.mxu1 %vm15071_vm10, %v15072_v5  ;;  %13028 = vmatpush3.bf16.msra.mxu1 %v13027_v22 }
0x472d   : > { %13029 = vmatprep.subr.bf16.mxu1 %v15070_v35 }
0x4730   : > { %13031 = vmatpush3.bf16.msra.mxu1 %v13030_v16 }
0x4731   : > { %13032 = vmatprep.subr.bf16.mxu1 %v15070_v35 }
0x4734   : > { %13034 = vmatpush3.bf16.msra.mxu1 %v13033_v26 }
0x4735   : > { %13035 = vmatprep.subr.bf16.mxu1 %v15070_v35 }
0x4738   : > { %13037 = vmatpush3.bf16.msra.mxu1 %v13036_v44 }
0x47fe   : > { %v10617_v61 = vpop.f32.mrb[82].mxu1 }
0x47ff   : > { %v10621_v62 = vadd.f32 %v10617_v61, %v10372_v58  ;;  %v12696_v1 = vpop.f32.mrb[83].mxu1  ;;  %v11775_v58 = vld [vmem:[#allocation42] ss:$0 sm:$0xff] }
0x4801   : > { %v10628_v63 = vadd.f32 %v11768_v59, %v10621_v62 }
0x4803   : > { %v10629_v0 = vadd.f32 %v10628_v63, %v16826_v2  ;;  %v10661_v2 = vld [vmem:[%s17383_s5 + $0x10] sm:$0xff]  ;;  %s14809_s5 = scalar_lea.vmem %s14808_s6, 256 }
0x4804   : > { %v13024_v15 = vpack.c.bf16 %v10662_v14, %v10661_v2  ;;  %p14811_p6 = scmp.lt.s32.totalorder %s14809_s5, %s14803_s4 }
0x4805   : > { %v10632_v41 = vsel %vm2742_vm0, %v10629_v0, 0.0 }
0x4806   : > { %10633 = vadd.xlane.f32.xlu0 %v10632_v41  ;;  %13025 = vmatpush3.bf16.msra.mxu0 %v13024_v15  ;;  %v11777_v15 = vld [vmem:[#allocation48] ss:$0 sm:$0xff]  ;;  %p14812_p12 = por %p14811_p6, %p14810_p11 }
0x4807   : > { %13038 = vmatprep.subr.bf16.mxu0 %v15070_v35 }
0x4808   : > { %p14813_p9 = pnand %p14812_p12, %p14806_p0 }
0x4893   : > { %v10634_v3 = vpop.xlane.xlu0 %10633 }
0x4894   : > { %v10635_v4 = vmul.f32 0.03125, %v10634_v3  ;;  %v10891_v3 = vld [vmem:[%s17385_s14] sm:$0xff] }
0x4896   : > { %v10636_v6 = vsub.f32 %v10629_v0, %v10635_v4  ;;  %v10892_v4 = vld [vmem:[%s17385_s14 + $0x8] sm:$0xff] }
0x4898   : > { %v10637_v11 = vmul.f32 %v10636_v6, %v10636_v6 }
0x489a   : > { %v10638_v10 = vsel %vm2742_vm0, %v10637_v11, 0.0  ;;  %v10893_v11 = vld [vmem:[%s17385_s14 + $0x10] sm:$0xff] }
0x489b   : > { %10639 = vadd.xlane.f32.xlu1 %v10638_v10  ;;  %v10894_v10 = vld [vmem:[%s17385_s14 + $0x18] sm:$0xff] }
0x489c   : > { %v13042_v8 = vpack.c.bf16 %v10894_v10, %v10893_v11 }
0x4928   : > { %v10640_v27 = vpop.xlane.xlu1 %10639 }
0x4929   : > { %v10641_v34 = vmul.f32 0.03125, %v10640_v27 }
0x492b   : > { %v10642_v18 = vadd.f32 1e-05, %v10641_v34 }
0x492d   : > { %13836 = vrsqrt.f32 %v10642_v18 }
0x4937   : > { %v13837_v28 = vpop.eup %13836 }
0x4938   : > { %v10644_v31 = vmul.f32 %v13837_v28, %v10636_v6  ;;  %v13039_v6 = vpack.c.bf16 %v10892_v4, %v10891_v3 }
0x493a   : > { %v10651_v36 = vmul.f32 %v11769_v30, %v10644_v31 }
0x493c   : > { %v10658_v37 = vadd.f32 %v11770_v33, %v10651_v36 }
0x493e   : > { %12706 = vmatmul.mubr.msk.f32.vlgmr.msra.gmra.mrb[76].mxu0 %vm2742_vm0, %v10658_v37 }
0x493f   : > { %12735 = vmatprep.mubr.msk.f32.mxu0 %vm15071_vm10, %v15072_v5  ;;  %13040 = vmatpush3.bf16.msra.mxu0 %v13039_v6 }
0x4940   : > { %13041 = vmatprep.subr.bf16.mxu0 %v15070_v35  ;;  %v11779_v35 = vld [vmem:[#allocation51] ss:$0 sm:$0xff] }
0x4943   : > { %13043 = vmatpush3.bf16.msra.mxu0 %v13042_v8 }
0x4a11   : > { %v10739_v24 = vpop.f32.mrb[76].mxu0 }
0x4a12   : > { %v10740_v47 = vadd.f32 %v11771_v45, %v10739_v24  ;;  %v12707_v48 = vpop.f32.mrb[77].mxu0 }
0x4a14   : > { %v10743_v39 = vmax.f32 %v10740_v47, 0.0 }
0x4a16   : > { %12725 = vmatmul.mubr.msk.f32.vlgmr.msra.gmra.mrb[84].mxu1 %vm4139_vm9, %v10743_v39 }
0x4ae9   : > { %v10828_v49 = vpop.f32.mrb[84].mxu1 }
0x4aea   : > { %v10829_v42 = vadd.f32 %v11773_v20, %v10828_v49  ;;  %v12726_v57 = vpop.f32.mrb[85].mxu1 }
0x4aec   : > { %v10832_v50 = vadd.f32 %v10829_v42, %v10658_v37 }
0x4aee   : > { %v10835_v51 = vsel %vm2742_vm0, %v10832_v50, 0.0 }
0x4aef   : > { %10836 = vadd.xlane.f32.xlu0 %v10835_v51 }
0x4b7c   : > { %v10837_v5 = vpop.xlane.xlu0 %10836 }
0x4b7d   : > { %v10838_v52 = vmul.f32 0.03125, %v10837_v5 }
0x4b7f   : > { %v10839_v40 = vsub.f32 %v10832_v50, %v10838_v52 }
0x4b81   : > { %v10840_v53 = vmul.f32 %v10839_v40, %v10839_v40 }
0x4b83   : > { %v10841_v54 = vsel %vm2742_vm0, %v10840_v53, 0.0 }
0x4b84   : > { %10842 = vadd.xlane.f32.xlu0 %v10841_v54 }
0x4c11   : > { %v10843_v55 = vpop.xlane.xlu0 %10842 }
0x4c12   : > { %v10844_v13 = vmul.f32 0.03125, %v10843_v55 }
0x4c14   : > { %v10845_v56 = vadd.f32 1e-05, %v10844_v13 }
0x4c16   : > { %13838 = vrsqrt.f32 %v10845_v56 }
0x4c20   : > { %v13839_v32 = vpop.eup %13838 }
0x4c21   : > { %v10847_v19 = vmul.f32 %v13839_v32, %v10839_v40 }
0x4c23   : > { %v10854_v7 = vmul.f32 %v11775_v58, %v10847_v19 }
0x4c25   : > { %v10861_v59 = vadd.f32 %v11776_v60, %v10854_v7 }
0x4c27   : > { %v10864_v61 = vsel %vm2742_vm0, %v10861_v59, 0.0 }
0x4c28   : > { %10865 = vadd.xlane.f32.xlu0 %v10864_v61 }
0x4cb5   : > { %v10866_v62 = vpop.xlane.xlu0 %10865 }
0x4cb6   : > { %v10867_v1 = vmul.f32 0.03125, %v10866_v62 }
0x4cb8   : > { %v10868_v63 = vsub.f32 %v10861_v59, %v10867_v1 }
0x4cba   : > { %v10869_v0 = vmul.f32 %v10868_v63, %v10868_v63 }
0x4cbc   : > { %v10870_v41 = vsel %vm2742_vm0, %v10869_v0, 0.0 }
0x4cbd   : > { %10871 = vadd.xlane.f32.xlu0 %v10870_v41 }
0x4d4a   : > { %v10872_v9 = vpop.xlane.xlu0 %10871 }
0x4d4b   : > { %v10873_v12 = vmul.f32 0.03125, %v10872_v9 }
0x4d4d   : > { %v10874_v2 = vadd.f32 1e-05, %v10873_v12 }
0x4d4f   : > { %13840 = vrsqrt.f32 %v10874_v2 }
0x4d59   : > { %v13841_v14 = vpop.eup %13840 }
0x4d5a   : > { %v10876_v17 = vmul.f32 %v13841_v14, %v10868_v63 }
0x4d5c   : > { %v10883_v21 = vmul.f32 %v11777_v15, %v10876_v17 }
0x4d5e   : > { %v10890_v22 = vadd.f32 %v11778_v29, %v10883_v21 }
0x4d60   : > { %12736 = vmatmul.mubr.msk.f32.vlgmr.msra.gmra.mrb[78].mxu0 %vm2742_vm0, %v10890_v22 }
0x4e33   : > { %v10971_v23 = vpop.f32.mrb[78].mxu0 }
0x4e34   : > { %v10972_v16 = vadd.f32 %v11779_v35, %v10971_v23  ;;  %v12737_v46 = vpop.f32.mrb[79].mxu0 }
0x4e36   : > { %10976 = vst.msk [vmem:[%s2691_s2] sm:$0xff] %vm10975_vm11, %v10972_v16 }
0x4e37   : > { %14816 = shalt.err (!%p14813_p9)
}
0x4e38   : > { %s14817_s10 = scalar_lea.hbm %s16976_s1, 128  ;;  %s14821_s12 = scalar_lea.hbm %s17386_s13, 256 }
0x4e39   : > { %p14818_p2 = scmp.ne.s32.totalorder %s16976_s1, %s14817_s10  ;;  %p14822_p8 = scmp.lt.u32.totalorder %s16976_s1, %s17386_s13 }
0x4e3a   : > { %p14823_p5 = scmp.lt.u32.totalorder %s14821_s12, %s14817_s10  ;;  %p14825_p3 = scmp.lt.u32.totalorder %s14817_s10, %s16976_s1 }
0x4e3b   : > { %p14819_p4 = pnand %p14818_p2, %p17389_p7 }
0x4e3c   : > { %p14824_p1 = por %p14823_p5, %p14822_p8 }
0x4e3d   : > { %p14820_p13 = pneg %p14819_p4 }
0x4e3e   : > { %p14826_p10 = por %p14825_p3, %p14824_p1 }
0x4e40   : > { %p14827_p0 = pnand %p14826_p10, %p14820_p13 }
0x4e42   : > { %14830 = shalt.err (!%p14827_p0)
}
0x4e43   : > { %13184 = dma.vmem_to_hbm [thread:$0]  (%p17389_p7), %s16978_s23, 128, %s16976_s1, %s10978_s3  }
0x4e44 PF: > { %s17390_s4 = sld [smem:[#allocation143_spill]]  ;;  %s17391_s5 = sld [smem:[#allocation152_spill]] }
0x4e45   : > { %p17393_p6 = scmp.ge.s32.totalorder %s14945_s26, 2 }
0x4e4a   : > { %s11003_s2 = sand.u32 1, %s17390_s4   ;;  %p17392_p11 = scmp.ne.s32.totalorder %s17391_s5, 0 }
0x4e4b   : > { %s11004_s22 = scalar_lea.sflag [#allocation4], %s11003_s2 }
0x4e4c   : > { %p13291_p12 = pnand %p17393_p6, %p17392_p11 }
0x4e4e   : > { %14928 = dma.done.wait (!%p13291_p12), %s11004_s22, 128  }
0x4e4f   : > { %14930 = vsyncadd (!%p13291_p12), %s11004_s22, 4294967168  ;;  %s17394_s26 = sld [smem:[#allocation148_spill]]  ;;  %s17395_s0 = sld [smem:[#allocation144_spill]] }
0x4e50   : > { %s17396_s22 = sld [smem:[#allocation145_spill]]  ;;  %s17397_s23 = sld [smem:[#allocation149_spill]] }
0x4e55   : > { %p178_p9 = scmp.ge.s32.totalorder %s17394_s26, 4  }
0x4e57   :  { %180 = sbr.rel (!%p178_p9) target bundleno = 167 (0xa7), region = 596 }
0x4e5e   :  { %11009 = vsyncpa [#allocation3], 1 }
0x4e5f   :  { %11011 = vsyncpa [#allocation3 + $0x1], 1 }
0x4e60   :  { %11012 = vsyncpa [#allocation6], 1 }
0x4e61   :  { %11013 = vsyncpa [#allocation9], 1 }
0x4e62   :  { %11014 = vsyncpa [#allocation17], 1 }
0x4e63   :  { %11015 = vsyncpa [#allocation20], 1 }
0x4e64   :  { %11016 = vsyncpa [#allocation23], 1 }
0x4e65   :  { %11017 = vsyncpa [#allocation26], 1 }
0x4e66   :  { %11018 = vsyncpa [#allocation29], 1 }
0x4e67   :  { %11019 = vsyncpa [#allocation32], 1 }
0x4e68   :  { %11020 = vsyncpa [#allocation35], 1 }
0x4e69   :  { %11021 = vsyncpa [#allocation38], 1 }
0x4e6a   :  { %11022 = vsyncpa [#allocation41], 1 }
0x4e6b   :  { %11023 = vsyncpa [#allocation44], 1 }
0x4e6c   :  { %11024 = vsyncpa [#allocation47], 1 }
0x4e6d   :  { %11025 = vsyncpa [#allocation50], 1 }
0x4e6e   :  { %11026 = vsyncpa [#allocation4], 1 }
0x4e6f   :  { %11028 = vsyncpa [#allocation4 + $0x1], 1 }

</bundles_post_ra>
